<compile_context>
chip_gen: v6e
topology: v6e:2x2x1
jax: 0.10.0
libtpu: 0.0.40
codegen_flags: <defaults>
</compile_context>

<pallas_src>
import functools

import jax
import jax.numpy as jnp
from jax import lax
from jax.experimental import pallas as pl
from jax.experimental.pallas import tpu as pltpu

_EPS = 1e-5   # PyTorch BatchNorm2d default eps
_HALO = 4     # halo rows per side of a row block (one per fused conv stage)
_LP = 1       # left zero-pad columns inside each padded scratch row


def _round_up(a, b):
    return (a + b - 1) // b * b


# ---------------------------- Pallas kernel ----------------------------

def _rrcnn_fused_kernel(x_ref, w1_ref, b1_ref, w36_ref, shift_ref, out_ref,
                        xp_ref, *, h_blk, wp, w_real):
    """One (image, row-block) pair per grid step; everything stays in VMEM.

    x_ref     : (1, 1, Mw, Cin)  padded-grid input rows (channels-last)
    w1_ref    : (Cin, C)         1x1 conv weight
    b1_ref    : (1, C)           1x1 conv bias (f32)
    w36_ref   : (36, C, C)       per-(stage, tap) 3x3 weights, BN scale and
                                 the (x+x) doubling folded in (idx = s*9 + tap)
    shift_ref : (4, 1, C)        per-stage folded BN shift (incl. conv bias)
    out_ref   : (1, 1, H_blk*Wp, C)  output block (also parks x1)
    xp_ref    : ((H_ext+4)*Wp, C)    flat zero-padded activation scratch
    """
    h_ext = h_blk + 2 * _HALO
    mw = h_ext * wp                 # rows of the padded compute grid
    c = out_ref.shape[-1]
    base = 2 * wp                   # window start inside the flat scratch

    rb = pl.program_id(1)
    nrb = pl.num_programs(1)

    # Zero ONLY the slack border rows read by the extreme taps (4*Wp rows).
    edge = jnp.zeros((base, c), xp_ref.dtype)
    xp_ref[0:base, :] = edge
    xp_ref[base + mw:base + mw + base, :] = edge

    # ---- 1x1 conv + bias (residual branch); park central rows in out_ref ----
    x1 = jnp.dot(x_ref[0, 0], w1_ref[...],
                 preferred_element_type=jnp.float32) + b1_ref[...]
    out_ref[0, 0] = x1[_HALO * wp:(_HALO + h_blk) * wp, :]

    # ---- 4 fused stages: conv3x3 -> BN(eval, folded) -> ReLU ----------------
    def stage(s, act):
        # Horizontal SAME padding: zero the padding columns of the value being
        # restaged (column pattern is static; no division, no persistent mask).
        col = lax.broadcasted_iota(jnp.int32, (h_ext, wp, 1), 1)
        colmask = ((col >= _LP) & (col < _LP + w_real)
                   ).astype(jnp.float32).reshape(mw, 1)

        # One dense, aligned restage store of the whole window.
        xp_ref[base:base + mw, :] = (act * colmask).astype(xp_ref.dtype)

        # Vertical SAME padding at the image edges: zero the out-of-image halo
        # rows (edge row-blocks only).  Interior blocks keep real neighbour
        # rows; their validity shrinks by one row per stage (halo = 4 stages).
        @pl.when(rb == 0)
        def _zero_top():
            xp_ref[base:base + _HALO * wp, :] = jnp.zeros(
                (_HALO * wp, c), xp_ref.dtype)

        @pl.when(rb == nrb - 1)
        def _zero_bottom():
            xp_ref[base + (_HALO + h_blk) * wp:base + mw, :] = jnp.zeros(
                (_HALO * wp, c), xp_ref.dtype)

        # 9 taps = 9 contiguous (Mw, C) slices of the flat scratch; chained
        # accumulation (initialized from tap 0) keeps it MRB-friendly on v7x.
        acc = None
        for k in range(9):                      # static unroll: 9 MXU pushes
            dy, dx = k // 3, k % 3
            start = (1 + dy) * wp + (dx - 1)    # static; dx=1 taps are aligned
            d = jnp.dot(xp_ref[start:start + mw, :], w36_ref[s * 9 + k],
                        preferred_element_type=jnp.float32)
            acc = d if acc is None else acc + d
        return jnp.maximum(acc + shift_ref[s], 0.0)   # f32 epilogue

    act = lax.fori_loop(0, 4, stage, x1)

    # out = x1 + RCNN(x1)  (central rows; pad columns are dropped by wrapper)
    out_ref[0, 0] = out_ref[0, 0] + act[_HALO * wp:(_HALO + h_blk) * wp, :]


# ---------------------------- VMEM budgeting ----------------------------

def _vmem_estimate_bytes(h_blk, wp, cin, c, itemsize):
    h_ext = h_blk + 2 * _HALO
    mw = h_ext * wp
    return (2 * mw * cin * itemsize            # double-buffered input block
            + 2 * h_blk * wp * c * 4           # double-buffered f32 output block
            + (h_ext + 4) * wp * c * itemsize  # padded activation scratch
            + 3 * mw * c * 4                   # live act carry + acc (f32)
            + (36 * c * c + cin * c) * itemsize + 8 * c * 4)


def _choose_row_block(h, wp, cin, c, itemsize, budget):
    best = 1   # fallback even if the budget is never met
    for d in range(1, h + 1):
        if h % d == 0 and _vmem_estimate_bytes(d, wp, cin, c, itemsize) <= budget:
            best = d
    return best


# ---------------------------- JAX wrapper ----------------------------

def rrcnn_block(x_nchw, params, *, compute_dtype=jnp.bfloat16, row_block=None,
                vmem_budget_bytes=20 << 20):
    """Forward of RRCNN_block (t=2, BatchNorm in eval mode).

    compute_dtype=bfloat16 (default) feeds the MXU natively on v6e/v7x with
    f32 accumulation; pass float32 for bit-tighter numerics (BN scale and the
    x2 factor are folded into the weights; the shift/ReLU epilogue is f32).
    """
    n, cin, h, w = x_nchw.shape
    c = int(params["b1x1"].shape[0])
    itemsize = jnp.dtype(compute_dtype).itemsize
    wp = _round_up(w + 2, 8 if itemsize >= 4 else 16)

    if row_block is None:
        row_block = _choose_row_block(h, wp, cin, c, itemsize, vmem_budget_bytes)
    assert h % row_block == 0, (h, row_block)  # TODO(synk): ragged last block
    nr = h // row_block
    h_ext = row_block + 2 * _HALO
    mw = h_ext * wp

    # ---- layout glue (done once in HBM by XLA) ----
    x_nhwc = jnp.transpose(x_nchw, (0, 2, 3, 1)).astype(compute_dtype)
    x_pad = jnp.pad(x_nhwc, ((0, 0), (_HALO, _HALO), (_LP, wp - w - _LP), (0, 0)))
    x_win = jnp.stack(
        [x_pad[:, rb * row_block: rb * row_block + h_ext] for rb in range(nr)],
        axis=1).reshape(n, nr, mw, cin)

    # ---- fold eval-mode BN + conv bias + the (x+x) doubling into weights ----
    def fold(p):
        scale = p["gamma"] * lax.rsqrt(p["var"] + _EPS)
        shift = (p["b"] - p["mean"]) * scale + p["beta"]
        w9 = (p["w"] * scale[None, None, None, :]).reshape(9, c, c)   # HWIO
        return w9, shift

    w9_1, sh1 = fold(params["rb1"])
    w9_2, sh2 = fold(params["rb2"])
    # Stage order: rb1.conv(x1), rb1.conv(2*..), rb2.conv(..), rb2.conv(2*..)
    w36 = jnp.concatenate([w9_1, 2.0 * w9_1, w9_2, 2.0 * w9_2]).astype(compute_dtype)
    shift_stk = jnp.stack([sh1, sh1, sh2, sh2]).reshape(4, 1, c).astype(jnp.float32)

    w1x1 = params["w1x1"].astype(compute_dtype)
    b1x1 = params["b1x1"].reshape(1, c).astype(jnp.float32)

    kernel = functools.partial(_rrcnn_fused_kernel, h_blk=row_block, wp=wp,
                               w_real=w)

    flops = 2 * n * nr * mw * (cin * c + 36 * c * c)
    bytes_accessed = int(x_win.size * itemsize + n * nr * row_block * wp * c * 4
                         + w36.size * itemsize + w1x1.size * itemsize
                         + b1x1.size * 4 + shift_stk.size * 4)
    vmem_limit = int(min(64 << 20,
                         max(24 << 20,
                             1.4 * _vmem_estimate_bytes(row_block, wp, cin, c,
                                                        itemsize))))

    out = pl.pallas_call(
        kernel,
        out_shape=jax.ShapeDtypeStruct((n, nr, row_block * wp, c), jnp.float32),
        grid_spec=pltpu.PrefetchScalarGridSpec(
            num_scalar_prefetch=0,
            grid=(n, nr),
            in_specs=[
                pl.BlockSpec((1, 1, mw, cin), lambda i, rb: (i, rb, 0, 0)),
                pl.BlockSpec((cin, c), lambda i, rb: (0, 0)),
                pl.BlockSpec((1, c), lambda i, rb: (0, 0)),
                pl.BlockSpec((36, c, c), lambda i, rb: (0, 0, 0)),
                pl.BlockSpec((4, 1, c), lambda i, rb: (0, 0, 0)),
            ],
            out_specs=pl.BlockSpec((1, 1, row_block * wp, c),
                                   lambda i, rb: (i, rb, 0, 0)),
            scratch_shapes=[pltpu.VMEM(((h_ext + 4) * wp, c), compute_dtype)],
        ),
        compiler_params=pltpu.CompilerParams(
            dimension_semantics=("parallel", "parallel"),
            vmem_limit_bytes=vmem_limit),
        cost_estimate=pl.CostEstimate(flops=flops, transcendentals=0,
                                      bytes_accessed=bytes_accessed),
    )(x_win, w1x1, b1x1, w36, shift_stk)

    out = out.reshape(n, h, wp, c)[:, :, _LP:_LP + w, :]
    return jnp.transpose(out, (0, 3, 1, 2))   # -> NCHW


# ---------------------- deterministic parameter init ----------------------

def init_params(key, in_ch, out_ch):
    ks = jax.random.split(key, 4)

    def rb_params(k):
        kk = jax.random.split(k, 6)
        return dict(
            w=0.1 * jax.random.normal(kk[0], (3, 3, out_ch, out_ch), jnp.float32),
            b=0.05 * jax.random.normal(kk[1], (out_ch,), jnp.float32),
            gamma=1.0 + 0.1 * jax.random.normal(kk[2], (out_ch,), jnp.float32),
            beta=0.05 * jax.random.normal(kk[3], (out_ch,), jnp.float32),
            mean=0.1 * jax.random.normal(kk[4], (out_ch,), jnp.float32),
            var=0.5 + jax.random.uniform(kk[5], (out_ch,), jnp.float32),
        )

    return dict(
        w1x1=0.1 * jax.random.normal(ks[0], (in_ch, out_ch), jnp.float32),
        b1x1=0.05 * jax.random.normal(ks[1], (out_ch,), jnp.float32),
        rb1=rb_params(ks[2]),
        rb2=rb_params(ks[3]),
    )


# ------- pure-JAX reference mirroring the PyTorch module (eval-mode BN) -------

def _cbr_ref(z, p):
    y = lax.conv_general_dilated(
        z, p["w"], (1, 1), "SAME", dimension_numbers=("NHWC", "HWIO", "NHWC")
    ) + p["b"]
    y = (y - p["mean"]) / jnp.sqrt(p["var"] + _EPS) * p["gamma"] + p["beta"]
    return jnp.maximum(y, 0.0)


def reference(x_nchw, params):
    x = jnp.transpose(x_nchw, (0, 2, 3, 1)).astype(jnp.float32)
    x1 = jnp.einsum("nhwc,co->nhwo", x, params["w1x1"]) + params["b1x1"]
    p1, p2 = params["rb1"], params["rb2"]
    # Recurrent_block(t=2): x = conv(x); out = conv(x + x)  (i=1 recomputes the
    # identical `out`) -- applied twice, exactly as in the PyTorch spec.
    a = _cbr_ref(x1, p1)
    r1 = _cbr_ref(a + a, p1)
    b = _cbr_ref(r1, p2)
    r2 = _cbr_ref(b + b, p2)
    return jnp.transpose(x1 + r2, (0, 3, 1, 2))


if __name__ == "__main__":
    key = jax.random.PRNGKey(0)
    k_x, k_p = jax.random.split(key)
    N, IN_CH, OUT_CH, H, W = 2, 4, 8, 16, 16

    x = jax.random.normal(k_x, (N, IN_CH, H, W), jnp.float32)
    params = init_params(k_p, IN_CH, OUT_CH)
    ref = reference(x, params)
    max_ref = float(jnp.max(jnp.abs(ref)))

    # f32, auto row block (single block) -- strict numeric check.
    run_f32 = jax.jit(functools.partial(rrcnn_block, compute_dtype=jnp.float32))
    out = jax.block_until_ready(run_f32(x, params))
    assert out.shape == (N, OUT_CH, H, W), out.shape
    err = float(jnp.max(jnp.abs(out - ref)))
    assert err < 1e-3, f"f32 (auto row block) mismatch vs reference: {err}"

    # f32, 4 halo'd row blocks -- exercises edge + interior row-block tiling.
    run_f32_rb = jax.jit(functools.partial(rrcnn_block, compute_dtype=jnp.float32,
                                           row_block=4))
    out_rb = jax.block_until_ready(run_f32_rb(x, params))
    err_rb = float(jnp.max(jnp.abs(out_rb - ref)))
    assert err_rb < 1e-3, f"f32 (row_block=4) mismatch vs reference: {err_rb}"

    # bf16 default path (MXU-native on v6e/v7x), 2 row blocks -- loose check
    # (bf16 quantization accumulates over 4 stages; exact path checked above).
    run_bf16 = jax.jit(functools.partial(rrcnn_block, row_block=8))
    out_bf = jax.block_until_ready(run_bf16(x, params))
    assert out_bf.shape == (N, OUT_CH, H, W), out_bf.shape
    assert bool(jnp.all(jnp.isfinite(out_bf)))
    err_bf = float(jnp.max(jnp.abs(out_bf - ref)))
    assert err_bf < 0.15 * (1.0 + max_ref), f"bf16 mismatch vs reference: {err_bf}"

    print("KERNEL_OK")
</pallas_src>

<mosaic_0001>
module attributes {stable_mosaic.version = 11 : i64} {
  func.func @_rrcnn_fused_kernel(%arg0: i32, %arg1: i32, %arg2: memref<1x1x576x4xf32, #tpu.memory_space<vmem>>, %arg3: memref<4x8xf32, #tpu.memory_space<vmem>>, %arg4: memref<1x8xf32, #tpu.memory_space<vmem>>, %arg5: memref<36x8x8xf32, #tpu.memory_space<vmem>>, %arg6: memref<4x1x8xf32, #tpu.memory_space<vmem>>, %arg7: memref<1x1x384x8xf32, #tpu.memory_space<vmem>>, %arg8: memref<672x8xf32, #tpu.memory_space<vmem>>) attributes {dimension_semantics = [#tpu.dimension_semantics<parallel>, #tpu.dimension_semantics<parallel>], iteration_bounds = array<i64: 2, 1>, scalar_prefetch = 0 : i64, scratch_operands = 1 : i64, tpu.core_type = #tpu.core_type<tc>, window_params = [{transform_indices = @transform_0, window_bounds = array<i64: 1, 1, 576, 4>}, {pipeline_mode = #tpu.pipeline_mode<synchronous>, transform_indices = @transform_1, window_bounds = array<i64: 4, 8>}, {pipeline_mode = #tpu.pipeline_mode<synchronous>, transform_indices = @transform_2, window_bounds = array<i64: 1, 8>}, {pipeline_mode = #tpu.pipeline_mode<synchronous>, transform_indices = @transform_3, window_bounds = array<i64: 36, 8, 8>}, {pipeline_mode = #tpu.pipeline_mode<synchronous>, transform_indices = @transform_4, window_bounds = array<i64: 4, 1, 8>}, {transform_indices = @transform_5, window_bounds = array<i64: 1, 1, 384, 8>}]} {
    %cst = arith.constant 0.000000e+00 : f32
    %0 = vector.broadcast %cst : f32 to vector<48x8xf32>
    %c0 = arith.constant 0 : index
    %c0_0 = arith.constant 0 : index
    %1 = vector.load %arg8[%c0, %c0_0] : memref<672x8xf32, #tpu.memory_space<vmem>>, vector<48x8xf32>
    tpu.vector_store %arg8[%c0, %c0_0], %0 {strides = array<i32>} : memref<672x8xf32, #tpu.memory_space<vmem>>, vector<48x8xf32>,
    %c624 = arith.constant 624 : index
    %c0_1 = arith.constant 0 : index
    %2 = vector.load %arg8[%c624, %c0_1] : memref<672x8xf32, #tpu.memory_space<vmem>>, vector<48x8xf32>
    tpu.vector_store %arg8[%c624, %c0_1], %0 {strides = array<i32>} : memref<672x8xf32, #tpu.memory_space<vmem>>, vector<48x8xf32>,
    %c0_2 = arith.constant 0 : index
    %c0_3 = arith.constant 0 : index
    %c0_4 = arith.constant 0 : index
    %c0_5 = arith.constant 0 : index
    %3 = vector.load %arg2[%c0_2, %c0_3, %c0_4, %c0_5] : memref<1x1x576x4xf32, #tpu.memory_space<vmem>>, vector<1x1x576x4xf32>
    %4 = vector.shape_cast %3 : vector<1x1x576x4xf32> to vector<576x4xf32>
    %c0_6 = arith.constant 0 : index
    %c0_7 = arith.constant 0 : index
    %5 = vector.load %arg3[%c0_6, %c0_7] : memref<4x8xf32, #tpu.memory_space<vmem>>, vector<4x8xf32>
    %cst_8 = arith.constant dense<0.000000e+00> : vector<576x8xf32>
    %6 = tpu.matmul %4, %5, %cst_8 {dimension_numbers = #tpu.dot_dimension_numbers<[1], [0], [0], [1], [0, 0, 1, 1], [], []>} : vector<576x4xf32>, vector<4x8xf32>, vector<576x8xf32> -> vector<576x8xf32>
    %c0_9 = arith.constant 0 : index
    %c0_10 = arith.constant 0 : index
    %7 = vector.load %arg4[%c0_9, %c0_10] : memref<1x8xf32, #tpu.memory_space<vmem>>, vector<1x8xf32>
    %8 = vector.broadcast %7 : vector<1x8xf32> to vector<576x8xf32>
    %9 = arith.addf %6, %8 : vector<576x8xf32>
    %10 = vector.extract_strided_slice %9 {offsets = [96, 0], sizes = [384, 8], strides = [1, 1]} : vector<576x8xf32> to vector<384x8xf32>
    %c0_11 = arith.constant 0 : index
    %c0_12 = arith.constant 0 : index
    %c0_13 = arith.constant 0 : index
    %c0_14 = arith.constant 0 : index
    %11 = vector.load %arg7[%c0_11, %c0_12, %c0_13, %c0_14] : memref<1x1x384x8xf32, #tpu.memory_space<vmem>>, vector<1x1x384x8xf32>
    %12 = vector.shape_cast %11 : vector<1x1x384x8xf32> to vector<384x8xf32>
    %13 = vector.shape_cast %10 : vector<384x8xf32> to vector<1x1x384x8xf32>
    tpu.vector_store %arg7[%c0_11, %c0_12, %c0_13, %c0_14], %13 {strides = array<i32>} : memref<1x1x384x8xf32, #tpu.memory_space<vmem>>, vector<1x1x384x8xf32>,
    %c0_i32 = arith.constant 0 : i32
    %c4_i32 = arith.constant 4 : i32
    %14 = arith.addi %c0_i32, %c4_i32 : i32
    %c1_i32 = arith.constant 1 : i32
    %15 = scf.for %arg9 = %c0_i32 to %14 step %c1_i32 iter_args(%arg10 = %9) -> (vector<576x8xf32>)  : i32 {
      %23 = tpu.iota {dimensions = array<i32: 1>} : vector<24x24x1xi32>
      %c1_i32_24 = arith.constant 1 : i32
      %24 = vector.broadcast %c1_i32_24 : i32 to vector<24x24x1xi32>
      %25 = arith.cmpi sge, %23, %24 : vector<24x24x1xi32>
      %c17_i32 = arith.constant 17 : i32
      %26 = vector.broadcast %c17_i32 : i32 to vector<24x24x1xi32>
      %27 = arith.cmpi slt, %23, %26 : vector<24x24x1xi32>
      %28 = arith.andi %25, %27 : vector<24x24x1xi1>
      %29 = arith.extui %28 : vector<24x24x1xi1> to vector<24x24x1xi32>
      %30 = arith.sitofp %29 : vector<24x24x1xi32> to vector<24x24x1xf32>
      %31 = vector.shape_cast %30 : vector<24x24x1xf32> to vector<576x1xf32>
      %32 = vector.broadcast %31 : vector<576x1xf32> to vector<576x8xf32>
      %33 = arith.mulf %arg10, %32 : vector<576x8xf32>
      %c48 = arith.constant 48 : index
      %c0_25 = arith.constant 0 : index
      %34 = vector.load %arg8[%c48, %c0_25] : memref<672x8xf32, #tpu.memory_space<vmem>>, vector<576x8xf32>
      tpu.vector_store %arg8[%c48, %c0_25], %33 {strides = array<i32>} : memref<672x8xf32, #tpu.memory_space<vmem>>, vector<576x8xf32>,
      %c0_i32_26 = arith.constant 0 : i32
      %35 = arith.cmpi eq, %arg1, %c0_i32_26 : i32
      %36 = arith.extui %35 : i1 to i32
      %c0_i32_27 = arith.constant 0 : i32
      %37 = arith.cmpi ne, %36, %c0_i32_27 : i32
      scf.if %37 {
        %cst_81 = arith.constant 0.000000e+00 : f32
        %119 = vector.broadcast %cst_81 : f32 to vector<96x8xf32>
        %c48_82 = arith.constant 48 : index
        %c0_83 = arith.constant 0 : index
        %120 = vector.load %arg8[%c48_82, %c0_83] : memref<672x8xf32, #tpu.memory_space<vmem>>, vector<96x8xf32>
        tpu.vector_store %arg8[%c48_82, %c0_83], %119 {strides = array<i32>} : memref<672x8xf32, #tpu.memory_space<vmem>>, vector<96x8xf32>,
      } else {
      }
      %c0_i32_28 = arith.constant 0 : i32
      %38 = arith.cmpi eq, %arg1, %c0_i32_28 : i32
      %39 = arith.extui %38 : i1 to i32
      %c0_i32_29 = arith.constant 0 : i32
      %40 = arith.cmpi ne, %39, %c0_i32_29 : i32
      scf.if %40 {
        %cst_81 = arith.constant 0.000000e+00 : f32
        %119 = vector.broadcast %cst_81 : f32 to vector<96x8xf32>
        %c528 = arith.constant 528 : index
        %c0_82 = arith.constant 0 : index
        %120 = vector.load %arg8[%c528, %c0_82] : memref<672x8xf32, #tpu.memory_space<vmem>>, vector<96x8xf32>
        tpu.vector_store %arg8[%c528, %c0_82], %119 {strides = array<i32>} : memref<672x8xf32, #tpu.memory_space<vmem>>, vector<96x8xf32>,
      } else {
      }
      %c23 = arith.constant 23 : index
      %c0_30 = arith.constant 0 : index
      %41 = vector.load %arg8[%c23, %c0_30] : memref<672x8xf32, #tpu.memory_space<vmem>>, vector<576x8xf32>
      %c9_i32 = arith.constant 9 : i32
      %42 = arith.muli %arg9, %c9_i32 : i32
      %c0_i32_31 = arith.constant 0 : i32
      %43 = arith.addi %42, %c0_i32_31 : i32
      %44 = arith.index_cast %43 : i32 to index
      %c0_32 = arith.constant 0 : index
      %c0_33 = arith.constant 0 : index
      %45 = vector.load %arg5[%44, %c0_32, %c0_33] : memref<36x8x8xf32, #tpu.memory_space<vmem>>, vector<1x8x8xf32>
      %46 = vector.shape_cast %45 : vector<1x8x8xf32> to vector<8x8xf32>
      %cst_34 = arith.constant dense<0.000000e+00> : vector<576x8xf32>
      %47 = tpu.matmul %41, %46, %cst_34 {dimension_numbers = #tpu.dot_dimension_numbers<[1], [0], [0], [1], [0, 0, 1, 1], [], []>} : vector<576x8xf32>, vector<8x8xf32>, vector<576x8xf32> -> vector<576x8xf32>
      %c24 = arith.constant 24 : index
      %c0_35 = arith.constant 0 : index
      %48 = vector.load %arg8[%c24, %c0_35] : memref<672x8xf32, #tpu.memory_space<vmem>>, vector<576x8xf32>
      %c9_i32_36 = arith.constant 9 : i32
      %49 = arith.muli %arg9, %c9_i32_36 : i32
      %c1_i32_37 = arith.constant 1 : i32
      %50 = arith.addi %49, %c1_i32_37 : i32
      %51 = arith.index_cast %50 : i32 to index
      %c0_38 = arith.constant 0 : index
      %c0_39 = arith.constant 0 : index
      %52 = vector.load %arg5[%51, %c0_38, %c0_39] : memref<36x8x8xf32, #tpu.memory_space<vmem>>, vector<1x8x8xf32>
      %53 = vector.shape_cast %52 : vector<1x8x8xf32> to vector<8x8xf32>
      %cst_40 = arith.constant dense<0.000000e+00> : vector<576x8xf32>
      %54 = tpu.matmul %48, %53, %cst_40 {dimension_numbers = #tpu.dot_dimension_numbers<[1], [0], [0], [1], [0, 0, 1, 1], [], []>} : vector<576x8xf32>, vector<8x8xf32>, vector<576x8xf32> -> vector<576x8xf32>
      %55 = arith.addf %47, %54 : vector<576x8xf32>
      %c25 = arith.constant 25 : index
      %c0_41 = arith.constant 0 : index
      %56 = vector.load %arg8[%c25, %c0_41] : memref<672x8xf32, #tpu.memory_space<vmem>>, vector<576x8xf32>
      %c9_i32_42 = arith.constant 9 : i32
      %57 = arith.muli %arg9, %c9_i32_42 : i32
      %c2_i32 = arith.constant 2 : i32
      %58 = arith.addi %57, %c2_i32 : i32
      %59 = arith.index_cast %58 : i32 to index
      %c0_43 = arith.constant 0 : index
      %c0_44 = arith.constant 0 : index
      %60 = vector.load %arg5[%59, %c0_43, %c0_44] : memref<36x8x8xf32, #tpu.memory_space<vmem>>, vector<1x8x8xf32>
      %61 = vector.shape_cast %60 : vector<1x8x8xf32> to vector<8x8xf32>
      %cst_45 = arith.constant dense<0.000000e+00> : vector<576x8xf32>
      %62 = tpu.matmul %56, %61, %cst_45 {dimension_numbers = #tpu.dot_dimension_numbers<[1], [0], [0], [1], [0, 0, 1, 1], [], []>} : vector<576x8xf32>, vector<8x8xf32>, vector<576x8xf32> -> vector<576x8xf32>
      %63 = arith.addf %55, %62 : vector<576x8xf32>
      %c47 = arith.constant 47 : index
      %c0_46 = arith.constant 0 : index
      %64 = vector.load %arg8[%c47, %c0_46] : memref<672x8xf32, #tpu.memory_space<vmem>>, vector<576x8xf32>
      %c9_i32_47 = arith.constant 9 : i32
      %65 = arith.muli %arg9, %c9_i32_47 : i32
      %c3_i32 = arith.constant 3 : i32
      %66 = arith.addi %65, %c3_i32 : i32
      %67 = arith.index_cast %66 : i32 to index
      %c0_48 = arith.constant 0 : index
      %c0_49 = arith.constant 0 : index
      %68 = vector.load %arg5[%67, %c0_48, %c0_49] : memref<36x8x8xf32, #tpu.memory_space<vmem>>, vector<1x8x8xf32>
      %69 = vector.shape_cast %68 : vector<1x8x8xf32> to vector<8x8xf32>
      %cst_50 = arith.constant dense<0.000000e+00> : vector<576x8xf32>
      %70 = tpu.matmul %64, %69, %cst_50 {dimension_numbers = #tpu.dot_dimension_numbers<[1], [0], [0], [1], [0, 0, 1, 1], [], []>} : vector<576x8xf32>, vector<8x8xf32>, vector<576x8xf32> -> vector<576x8xf32>
      %71 = arith.addf %63, %70 : vector<576x8xf32>
      %c48_51 = arith.constant 48 : index
      %c0_52 = arith.constant 0 : index
      %72 = vector.load %arg8[%c48_51, %c0_52] : memref<672x8xf32, #tpu.memory_space<vmem>>, vector<576x8xf32>
      %c9_i32_53 = arith.constant 9 : i32
      %73 = arith.muli %arg9, %c9_i32_53 : i32
      %c4_i32_54 = arith.constant 4 : i32
      %74 = arith.addi %73, %c4_i32_54 : i32
      %75 = arith.index_cast %74 : i32 to index
      %c0_55 = arith.constant 0 : index
      %c0_56 = arith.constant 0 : index
      %76 = vector.load %arg5[%75, %c0_55, %c0_56] : memref<36x8x8xf32, #tpu.memory_space<vmem>>, vector<1x8x8xf32>
      %77 = vector.shape_cast %76 : vector<1x8x8xf32> to vector<8x8xf32>
      %cst_57 = arith.constant dense<0.000000e+00> : vector<576x8xf32>
      %78 = tpu.matmul %72, %77, %cst_57 {dimension_numbers = #tpu.dot_dimension_numbers<[1], [0], [0], [1], [0, 0, 1, 1], [], []>} : vector<576x8xf32>, vector<8x8xf32>, vector<576x8xf32> -> vector<576x8xf32>
      %79 = arith.addf %71, %78 : vector<576x8xf32>
      %c49 = arith.constant 49 : index
      %c0_58 = arith.constant 0 : index
      %80 = vector.load %arg8[%c49, %c0_58] : memref<672x8xf32, #tpu.memory_space<vmem>>, vector<576x8xf32>
      %c9_i32_59 = arith.constant 9 : i32
      %81 = arith.muli %arg9, %c9_i32_59 : i32
      %c5_i32 = arith.constant 5 : i32
      %82 = arith.addi %81, %c5_i32 : i32
      %83 = arith.index_cast %82 : i32 to index
      %c0_60 = arith.constant 0 : index
      %c0_61 = arith.constant 0 : index
      %84 = vector.load %arg5[%83, %c0_60, %c0_61] : memref<36x8x8xf32, #tpu.memory_space<vmem>>, vector<1x8x8xf32>
      %85 = vector.shape_cast %84 : vector<1x8x8xf32> to vector<8x8xf32>
      %cst_62 = arith.constant dense<0.000000e+00> : vector<576x8xf32>
      %86 = tpu.matmul %80, %85, %cst_62 {dimension_numbers = #tpu.dot_dimension_numbers<[1], [0], [0], [1], [0, 0, 1, 1], [], []>} : vector<576x8xf32>, vector<8x8xf32>, vector<576x8xf32> -> vector<576x8xf32>
      %87 = arith.addf %79, %86 : vector<576x8xf32>
      %c71 = arith.constant 71 : index
      %c0_63 = arith.constant 0 : index
      %88 = vector.load %arg8[%c71, %c0_63] : memref<672x8xf32, #tpu.memory_space<vmem>>, vector<576x8xf32>
      %c9_i32_64 = arith.constant 9 : i32
      %89 = arith.muli %arg9, %c9_i32_64 : i32
      %c6_i32 = arith.constant 6 : i32
      %90 = arith.addi %89, %c6_i32 : i32
      %91 = arith.index_cast %90 : i32 to index
      %c0_65 = arith.constant 0 : index
      %c0_66 = arith.constant 0 : index
      %92 = vector.load %arg5[%91, %c0_65, %c0_66] : memref<36x8x8xf32, #tpu.memory_space<vmem>>, vector<1x8x8xf32>
      %93 = vector.shape_cast %92 : vector<1x8x8xf32> to vector<8x8xf32>
      %cst_67 = arith.constant dense<0.000000e+00> : vector<576x8xf32>
      %94 = tpu.matmul %88, %93, %cst_67 {dimension_numbers = #tpu.dot_dimension_numbers<[1], [0], [0], [1], [0, 0, 1, 1], [], []>} : vector<576x8xf32>, vector<8x8xf32>, vector<576x8xf32> -> vector<576x8xf32>
      %95 = arith.addf %87, %94 : vector<576x8xf32>
      %c72 = arith.constant 72 : index
      %c0_68 = arith.constant 0 : index
      %96 = vector.load %arg8[%c72, %c0_68] : memref<672x8xf32, #tpu.memory_space<vmem>>, vector<576x8xf32>
      %c9_i32_69 = arith.constant 9 : i32
      %97 = arith.muli %arg9, %c9_i32_69 : i32
      %c7_i32 = arith.constant 7 : i32
      %98 = arith.addi %97, %c7_i32 : i32
      %99 = arith.index_cast %98 : i32 to index
      %c0_70 = arith.constant 0 : index
      %c0_71 = arith.constant 0 : index
      %100 = vector.load %arg5[%99, %c0_70, %c0_71] : memref<36x8x8xf32, #tpu.memory_space<vmem>>, vector<1x8x8xf32>
      %101 = vector.shape_cast %100 : vector<1x8x8xf32> to vector<8x8xf32>
      %cst_72 = arith.constant dense<0.000000e+00> : vector<576x8xf32>
      %102 = tpu.matmul %96, %101, %cst_72 {dimension_numbers = #tpu.dot_dimension_numbers<[1], [0], [0], [1], [0, 0, 1, 1], [], []>} : vector<576x8xf32>, vector<8x8xf32>, vector<576x8xf32> -> vector<576x8xf32>
      %103 = arith.addf %95, %102 : vector<576x8xf32>
      %c73 = arith.constant 73 : index
      %c0_73 = arith.constant 0 : index
      %104 = vector.load %arg8[%c73, %c0_73] : memref<672x8xf32, #tpu.memory_space<vmem>>, vector<576x8xf32>
      %c9_i32_74 = arith.constant 9 : i32
      %105 = arith.muli %arg9, %c9_i32_74 : i32
      %c8_i32 = arith.constant 8 : i32
      %106 = arith.addi %105, %c8_i32 : i32
      %107 = arith.index_cast %106 : i32 to index
      %c0_75 = arith.constant 0 : index
      %c0_76 = arith.constant 0 : index
      %108 = vector.load %arg5[%107, %c0_75, %c0_76] : memref<36x8x8xf32, #tpu.memory_space<vmem>>, vector<1x8x8xf32>
      %109 = vector.shape_cast %108 : vector<1x8x8xf32> to vector<8x8xf32>
      %cst_77 = arith.constant dense<0.000000e+00> : vector<576x8xf32>
      %110 = tpu.matmul %104, %109, %cst_77 {dimension_numbers = #tpu.dot_dimension_numbers<[1], [0], [0], [1], [0, 0, 1, 1], [], []>} : vector<576x8xf32>, vector<8x8xf32>, vector<576x8xf32> -> vector<576x8xf32>
      %111 = arith.addf %103, %110 : vector<576x8xf32>
      %112 = arith.index_cast %arg9 : i32 to index
      %c0_78 = arith.constant 0 : index
      %c0_79 = arith.constant 0 : index
      %113 = vector.load %arg6[%112, %c0_78, %c0_79] : memref<4x1x8xf32, #tpu.memory_space<vmem>>, vector<1x1x8xf32>
      %114 = vector.shape_cast %113 : vector<1x1x8xf32> to vector<1x8xf32>
      %115 = vector.broadcast %114 : vector<1x8xf32> to vector<576x8xf32>
      %116 = arith.addf %111, %115 : vector<576x8xf32>
      %cst_80 = arith.constant 0.000000e+00 : f32
      %117 = vector.broadcast %cst_80 : f32 to vector<576x8xf32>
      %118 = arith.maximumf %116, %117 : vector<576x8xf32>
      scf.yield %118 : vector<576x8xf32>
    }
    %c4_i32_15 = arith.constant 4 : i32
    %c0_16 = arith.constant 0 : index
    %c0_17 = arith.constant 0 : index
    %c0_18 = arith.constant 0 : index
    %c0_19 = arith.constant 0 : index
    %16 = vector.load %arg7[%c0_16, %c0_17, %c0_18, %c0_19] : memref<1x1x384x8xf32, #tpu.memory_space<vmem>>, vector<1x1x384x8xf32>
    %17 = vector.shape_cast %16 : vector<1x1x384x8xf32> to vector<384x8xf32>
    %18 = vector.extract_strided_slice %15 {offsets = [96, 0], sizes = [384, 8], strides = [1, 1]} : vector<576x8xf32> to vector<384x8xf32>
    %19 = arith.addf %17, %18 : vector<384x8xf32>
    %c0_20 = arith.constant 0 : index
    %c0_21 = arith.constant 0 : index
    %c0_22 = arith.constant 0 : index
    %c0_23 = arith.constant 0 : index
    %20 = vector.load %arg7[%c0_20, %c0_21, %c0_22, %c0_23] : memref<1x1x384x8xf32, #tpu.memory_space<vmem>>, vector<1x1x384x8xf32>
    %21 = vector.shape_cast %20 : vector<1x1x384x8xf32> to vector<384x8xf32>
    %22 = vector.shape_cast %19 : vector<384x8xf32> to vector<1x1x384x8xf32>
    tpu.vector_store %arg7[%c0_20, %c0_21, %c0_22, %c0_23], %22 {strides = array<i32>} : memref<1x1x384x8xf32, #tpu.memory_space<vmem>>, vector<1x1x384x8xf32>,
    return
  }
  func.func @transform_0(%arg0: i32, %arg1: i32) -> (i32, i32, i32, i32) {
    %c0_i32 = arith.constant 0 : i32
    %c0_i32_0 = arith.constant 0 : i32
    %c0_i32_1 = arith.constant 0 : i32
    return %arg0, %arg1, %c0_i32, %c0_i32_0 : i32, i32, i32, i32
  }
  func.func @transform_1(%arg0: i32, %arg1: i32) -> (i32, i32) {
    %c0_i32 = arith.constant 0 : i32
    %c0_i32_0 = arith.constant 0 : i32
    %c0_i32_1 = arith.constant 0 : i32
    return %c0_i32, %c0_i32_0 : i32, i32
  }
  func.func @transform_2(%arg0: i32, %arg1: i32) -> (i32, i32) {
    %c0_i32 = arith.constant 0 : i32
    %c0_i32_0 = arith.constant 0 : i32
    %c0_i32_1 = arith.constant 0 : i32
    return %c0_i32, %c0_i32_0 : i32, i32
  }
  func.func @transform_3(%arg0: i32, %arg1: i32) -> (i32, i32, i32) {
    %c0_i32 = arith.constant 0 : i32
    %c0_i32_0 = arith.constant 0 : i32
    %c0_i32_1 = arith.constant 0 : i32
    %c0_i32_2 = arith.constant 0 : i32
    return %c0_i32, %c0_i32_0, %c0_i32_1 : i32, i32, i32
  }
  func.func @transform_4(%arg0: i32, %arg1: i32) -> (i32, i32, i32) {
    %c0_i32 = arith.constant 0 : i32
    %c0_i32_0 = arith.constant 0 : i32
    %c0_i32_1 = arith.constant 0 : i32
    %c0_i32_2 = arith.constant 0 : i32
    return %c0_i32, %c0_i32_0, %c0_i32_1 : i32, i32, i32
  }
  func.func @transform_5(%arg0: i32, %arg1: i32) -> (i32, i32, i32, i32) {
    %c0_i32 = arith.constant 0 : i32
    %c0_i32_0 = arith.constant 0 : i32
    %c0_i32_1 = arith.constant 0 : i32
    return %arg0, %arg1, %c0_i32, %c0_i32_0 : i32, i32, i32, i32
  }
}

</mosaic_0001>

<bundles_post_ra>
// kernel: rrcnn_block.1
= control target key start
LH: loop header
LB: loop body
LE: loop exit
PB: predicated region body
PF: predicated region fallthrough
CT: control target
= control target key end

     0   :  { %s12755_s18 = smov 0   ;;  %s12757_s19 = smov 0   ;;  %s16530_s0 = inlined_call_operand.vmem [shape: f32[2,1,576,4], index: 0, kind: input, shape index: {}]   ;;  %s16531_s1 = inlined_call_operand.vmem [shape: f32[4,8], index: 1, kind: input, shape index: {}]   ;;  %s16532_s2 = inlined_call_operand.vmem [shape: f32[1,8], index: 2, kind: input, shape index: {}]   ;;  %s16533_s3 = inlined_call_operand.vmem [shape: f32[36,8,8], index: 3, kind: input, shape index: {}]   ;;  %s16534_s4 = inlined_call_operand.vmem [shape: f32[4,1,8], index: 4, kind: input, shape index: {}]   ;;  %s16535_s5 = inlined_call_operand.vmem [shape: f32[2,1,384,8], index: 5, kind: output, shape index: {}]  }
   0x1   :  { %s12759_s20 = smov 0  }
   0x2 LB: > { %s27_s21 = sadd.s32 1, %s12425_s19  ;;  %p8922_p0 = scmp.ge.s32.totalorder %s12429_s20, 1  ;;  %s12429_s20 = sphi %s12759_s20, %s15_s20   ;;  %s12425_s19 = sphi %s12757_s19, %s17406_s19   ;;  %s12421_s18 = sphi %s12755_s18, %s17405_s18  }
   0x3   : > { %p29_p1 = scmp.ge.s32.totalorder %s27_s21, 2  ;;  %p207_p2 = scmp.lt.s32.totalorder %s12429_s20, 3 }
   0x5   : > { %s17408_s21 = smov (%p29_p1, %s27_s21), 0  ;;  %p208_p3 = pnand %p8922_p0, %p207_p2 }
   0x7   : > { %211 = sbr.rel (%p208_p3) target bundleno = 1201 (0x4b1), region = 40 }
   0xc   : > { %v346_v0 = vld [vmem:[%s16531_s1] sm:$0xf]  ;;  %vm571_vm0 = vcmask 1043456   ;;  %p243_p4 = scmp.lt.s32.totalorder %s12421_s18, 1  ;;  %vm354_vm1 = vcmask 31744   ;;  %vm261_vm2 = vcmask 64512  }
   0xd   : > { %10399 = vmatprep.subr.msk.mxu0 %vm571_vm0, %v346_v0  ;;  %11499 = vmatprep.subr.msk.mxu1 %vm571_vm0, %v346_v0  ;;  %s13474_s9 = smov 0  }
   0xe   : > { %10400 = vmatpush3.msk.msra.mxu0 %vm571_vm0, %v346_v0  ;;  %11500 = vmatpush3.msk.msra.mxu1 %vm571_vm0, %v346_v0  ;;  %s17410_s18 = smov (!%p243_p4, %s12421_s18), 1 }
   0xf   : > { %s11503_s24 = smul.u32 576, %s17410_s18 }
  0x10   : > { %s11504_s28 = smul.u32 384, %s17410_s18 }
  0x11   : > { %s12782_s27 = scalar_lea.vmem %s16530_s0, %s11503_s24 }
  0x12   : > { %v274_v1 = vld [vmem:[%s12782_s27] sm:$0xff]  ;;  %v275_v3 = vld [vmem:[%s12782_s27 + $0x8] sm:$0xff]  ;;  %v276_v5 = vld [vmem:[%s12782_s27 + $0x10] sm:$0xff]  ;;  %s12945_s8 = scalar_lea.vmem %s16535_s5, %s11504_s28 }
  0x13   : > { %v310_v2 = vld [vmem:[%s12782_s27 + $0x120] sm:$0xff]  ;;  %10401 = vmatprep.mubr.msk.f32.mxu0 %vm354_vm1, %v274_v1  ;;  %v311_v4 = vld [vmem:[%s12782_s27 + $0x128] sm:$0xff]  ;;  %v312_v6 = vld [vmem:[%s12782_s27 + $0x130] sm:$0xff] }
  0x14   : > { %10455 = vmatprep.mubr.msk.f32.mxu1 %vm354_vm1, %v310_v2  ;;  %10402 = vmatmul.mubr.msk.f32.vlgmr.msra.gmra.mxu0 %vm354_vm1, %v275_v3  ;;  %v277_v7 = vld [vmem:[%s12782_s27 + $0x18] sm:$0xff]  ;;  %v278_v9 = vld [vmem:[%s12782_s27 + $0x20] sm:$0xff]  ;;  %v279_v11 = vld [vmem:[%s12782_s27 + $0x28] sm:$0xff] }
  0x15   : > { %10456 = vmatmul.mubr.msk.f32.vlgmr.msra.gmra.mxu1 %vm354_vm1, %v311_v4  ;;  %10404 = vmatprep.mubr.msk.f32.mxu0 %vm354_vm1, %v276_v5  ;;  %v313_v8 = vld [vmem:[%s12782_s27 + $0x138] sm:$0xff]  ;;  %v314_v10 = vld [vmem:[%s12782_s27 + $0x140] sm:$0xff]  ;;  %v315_v12 = vld [vmem:[%s12782_s27 + $0x148] sm:$0xff] }
  0x16   : > { %10458 = vmatprep.mubr.msk.f32.mxu1 %vm354_vm1, %v312_v6  ;;  %v280_v13 = vld [vmem:[%s12782_s27 + $0x30] sm:$0xff]  ;;  %v281_v15 = vld [vmem:[%s12782_s27 + $0x38] sm:$0xff]  ;;  %v282_v17 = vld [vmem:[%s12782_s27 + $0x40] sm:$0xff] }
  0x17   : > { %v316_v14 = vld [vmem:[%s12782_s27 + $0x150] sm:$0xff]  ;;  %v317_v16 = vld [vmem:[%s12782_s27 + $0x158] sm:$0xff]  ;;  %v318_v18 = vld [vmem:[%s12782_s27 + $0x160] sm:$0xff] }
  0x18   : > { %10405 = vmatmul.mubr.msk.f32.gmra.mxu0 %vm354_vm1, %v277_v7  ;;  %v283_v19 = vld [vmem:[%s12782_s27 + $0x48] sm:$0xff]  ;;  %v284_v21 = vld [vmem:[%s12782_s27 + $0x50] sm:$0xff]  ;;  %v285_v23 = vld [vmem:[%s12782_s27 + $0x58] sm:$0xff] }
  0x19   : > { %10459 = vmatmul.mubr.msk.f32.gmra.mxu1 %vm354_vm1, %v313_v8  ;;  %10407 = vmatprep.mubr.msk.f32.mxu0 %vm354_vm1, %v278_v9  ;;  %v319_v20 = vld [vmem:[%s12782_s27 + $0x168] sm:$0xff]  ;;  %v320_v22 = vld [vmem:[%s12782_s27 + $0x170] sm:$0xff]  ;;  %v321_v24 = vld [vmem:[%s12782_s27 + $0x178] sm:$0xff]  ;;  %v12723_v9 = vmov 0.0  }
  0x1a   : > { %10461 = vmatprep.mubr.msk.f32.mxu1 %vm354_vm1, %v314_v10  ;;  %v286_v25 = vld [vmem:[%s12782_s27 + $0x60] sm:$0xff]  ;;  %v287_v27 = vld [vmem:[%s12782_s27 + $0x68] sm:$0xff]  ;;  %v288_v29 = vld [vmem:[%s12782_s27 + $0x70] sm:$0xff]  ;;  %264 = vst.msk [vmem:[#allocation2 + $0x10] sm:$0xff] %vm261_vm2, %v12723_v9 }
  0x1b   : > { %v322_v26 = vld [vmem:[%s12782_s27 + $0x180] sm:$0xff]  ;;  %v323_v28 = vld [vmem:[%s12782_s27 + $0x188] sm:$0xff]  ;;  %v324_v30 = vld [vmem:[%s12782_s27 + $0x190] sm:$0xff]  ;;  %265 = vst.msk [vmem:[#allocation2 + $0x18] sm:$0xff] %vm261_vm2, %v12723_v9 }
  0x1c   : > { %10408 = vmatmul.mubr.msk.f32.gmra.mxu0 %vm354_vm1, %v279_v11  ;;  %v289_v31 = vld [vmem:[%s12782_s27 + $0x78] sm:$0xff]  ;;  %v290_v33 = vld [vmem:[%s12782_s27 + $0x80] sm:$0xff]  ;;  %v291_v35 = vld [vmem:[%s12782_s27 + $0x88] sm:$0xff]  ;;  %266 = vst.msk [vmem:[#allocation2 + $0x20] sm:$0xff] %vm261_vm2, %v12723_v9 }
  0x1d   : > { %10462 = vmatmul.mubr.msk.f32.gmra.mxu1 %vm354_vm1, %v315_v12  ;;  %10410 = vmatprep.mubr.msk.f32.mxu0 %vm354_vm1, %v280_v13  ;;  %v325_v32 = vld [vmem:[%s12782_s27 + $0x198] sm:$0xff]  ;;  %v326_v34 = vld [vmem:[%s12782_s27 + $0x1a0] sm:$0xff]  ;;  %v327_v36 = vld [vmem:[%s12782_s27 + $0x1a8] sm:$0xff]  ;;  %267 = vst.msk [vmem:[#allocation2 + $0x28] sm:$0xff] %vm261_vm2, %v12723_v9 }
  0x1e   : > { %10464 = vmatprep.mubr.msk.f32.mxu1 %vm354_vm1, %v316_v14  ;;  %v292_v37 = vld [vmem:[%s12782_s27 + $0x90] sm:$0xff]  ;;  %v293_v39 = vld [vmem:[%s12782_s27 + $0x98] sm:$0xff]  ;;  %v294_v41 = vld [vmem:[%s12782_s27 + $0xa0] sm:$0xff]  ;;  %268 = vst.msk [vmem:[#allocation2 + $0x270] sm:$0xff] %vm261_vm2, %v12723_v9 }
  0x1f   : > { %v328_v38 = vld [vmem:[%s12782_s27 + $0x1b0] sm:$0xff]  ;;  %v329_v40 = vld [vmem:[%s12782_s27 + $0x1b8] sm:$0xff]  ;;  %v330_v42 = vld [vmem:[%s12782_s27 + $0x1c0] sm:$0xff]  ;;  %269 = vst.msk [vmem:[#allocation2 + $0x278] sm:$0xff] %vm261_vm2, %v12723_v9 }
  0x20   : > { %10411 = vmatmul.mubr.msk.f32.gmra.mxu0 %vm354_vm1, %v281_v15  ;;  %v295_v43 = vld [vmem:[%s12782_s27 + $0xa8] sm:$0xff]  ;;  %v296_v45 = vld [vmem:[%s12782_s27 + $0xb0] sm:$0xff]  ;;  %v297_v47 = vld [vmem:[%s12782_s27 + $0xb8] sm:$0xff]  ;;  %270 = vst.msk [vmem:[#allocation2 + $0x280] sm:$0xff] %vm261_vm2, %v12723_v9 }
  0x21   : > { %10465 = vmatmul.mubr.msk.f32.gmra.mxu1 %vm354_vm1, %v317_v16  ;;  %10413 = vmatprep.mubr.msk.f32.mxu0 %vm354_vm1, %v282_v17  ;;  %v331_v44 = vld [vmem:[%s12782_s27 + $0x1c8] sm:$0xff]  ;;  %v332_v46 = vld [vmem:[%s12782_s27 + $0x1d0] sm:$0xff]  ;;  %v333_v48 = vld [vmem:[%s12782_s27 + $0x1d8] sm:$0xff]  ;;  %271 = vst.msk [vmem:[#allocation2 + $0x288] sm:$0xff] %vm261_vm2, %v12723_v9 }
  0x22   : > { %10467 = vmatprep.mubr.msk.f32.mxu1 %vm354_vm1, %v318_v18  ;;  %v298_v49 = vld [vmem:[%s12782_s27 + $0xc0] sm:$0xff]  ;;  %v299_v51 = vld [vmem:[%s12782_s27 + $0xc8] sm:$0xff]  ;;  %v300_v53 = vld [vmem:[%s12782_s27 + $0xd0] sm:$0xff] }
  0x23   : > { %v334_v50 = vld [vmem:[%s12782_s27 + $0x1e0] sm:$0xff]  ;;  %v335_v52 = vld [vmem:[%s12782_s27 + $0x1e8] sm:$0xff]  ;;  %v336_v54 = vld [vmem:[%s12782_s27 + $0x1f0] sm:$0xff] }
  0x24   : > { %10414 = vmatmul.mubr.msk.f32.gmra.mxu0 %vm354_vm1, %v283_v19  ;;  %v301_v55 = vld [vmem:[%s12782_s27 + $0xd8] sm:$0xff]  ;;  %v302_v57 = vld [vmem:[%s12782_s27 + $0xe0] sm:$0xff]  ;;  %v303_v59 = vld [vmem:[%s12782_s27 + $0xe8] sm:$0xff] }
  0x25   : > { %10468 = vmatmul.mubr.msk.f32.gmra.mxu1 %vm354_vm1, %v319_v20  ;;  %10416 = vmatprep.mubr.msk.f32.mxu0 %vm354_vm1, %v284_v21  ;;  %v337_v56 = vld [vmem:[%s12782_s27 + $0x1f8] sm:$0xff]  ;;  %v338_v58 = vld [vmem:[%s12782_s27 + $0x200] sm:$0xff]  ;;  %v339_v60 = vld [vmem:[%s12782_s27 + $0x208] sm:$0xff] }
  0x26   : > { %10470 = vmatprep.mubr.msk.f32.mxu1 %vm354_vm1, %v320_v22  ;;  %v304_v61 = vld [vmem:[%s12782_s27 + $0xf0] sm:$0xff]  ;;  %v305_v63 = vld [vmem:[%s12782_s27 + $0xf8] sm:$0xff]  ;;  %v306_v1 = vld [vmem:[%s12782_s27 + $0x100] sm:$0xff] }
  0x27   : > { %v340_v62 = vld [vmem:[%s12782_s27 + $0x210] sm:$0xff]  ;;  %v341_v0 = vld [vmem:[%s12782_s27 + $0x218] sm:$0xff]  ;;  %v342_v2 = vld [vmem:[%s12782_s27 + $0x220] sm:$0xff] }
  0x28   : > { %10417 = vmatmul.mubr.msk.f32.gmra.mxu0 %vm354_vm1, %v285_v23  ;;  %v307_v3 = vld [vmem:[%s12782_s27 + $0x108] sm:$0xff]  ;;  %v308_v5 = vld [vmem:[%s12782_s27 + $0x110] sm:$0xff]  ;;  %v309_v7 = vld [vmem:[%s12782_s27 + $0x118] sm:$0xff] }
  0x29   : > { %10471 = vmatmul.mubr.msk.f32.gmra.mxu1 %vm354_vm1, %v321_v24  ;;  %10419 = vmatprep.mubr.msk.f32.mxu0 %vm354_vm1, %v286_v25  ;;  %v343_v4 = vld [vmem:[%s12782_s27 + $0x228] sm:$0xff]  ;;  %v344_v6 = vld [vmem:[%s12782_s27 + $0x230] sm:$0xff]  ;;  %v345_v8 = vld [vmem:[%s12782_s27 + $0x238] sm:$0xff] }
  0x2a   : > { %10473 = vmatprep.mubr.msk.f32.mxu1 %vm354_vm1, %v322_v26  ;;  %v12940_v10 = vld [vmem:[%s16532_s2] ss:$0 sm:$0xff] }
  0x2c   : > { %10420 = vmatmul.mubr.msk.f32.gmra.mxu0 %vm354_vm1, %v287_v27 }
  0x2d   : > { %10474 = vmatmul.mubr.msk.f32.gmra.mxu1 %vm354_vm1, %v323_v28  ;;  %10422 = vmatprep.mubr.msk.f32.mxu0 %vm354_vm1, %v288_v29 }
  0x2e   : > { %10476 = vmatprep.mubr.msk.f32.mxu1 %vm354_vm1, %v324_v30 }
  0x30   : > { %10423 = vmatmul.mubr.msk.f32.gmra.mxu0 %vm354_vm1, %v289_v31 }
  0x31   : > { %10477 = vmatmul.mubr.msk.f32.gmra.mxu1 %vm354_vm1, %v325_v32  ;;  %10425 = vmatprep.mubr.msk.f32.mxu0 %vm354_vm1, %v290_v33 }
  0x32   : > { %10479 = vmatprep.mubr.msk.f32.mxu1 %vm354_vm1, %v326_v34 }
  0x34   : > { %10426 = vmatmul.mubr.msk.f32.gmra.mxu0 %vm354_vm1, %v291_v35 }
  0x35   : > { %10480 = vmatmul.mubr.msk.f32.gmra.mxu1 %vm354_vm1, %v327_v36  ;;  %10428 = vmatprep.mubr.msk.f32.mxu0 %vm354_vm1, %v292_v37 }
  0x36   : > { %10482 = vmatprep.mubr.msk.f32.mxu1 %vm354_vm1, %v328_v38 }
  0x38   : > { %10429 = vmatmul.mubr.msk.f32.gmra.mxu0 %vm354_vm1, %v293_v39 }
  0x39   : > { %10483 = vmatmul.mubr.msk.f32.gmra.mxu1 %vm354_vm1, %v329_v40  ;;  %10431 = vmatprep.mubr.msk.f32.mxu0 %vm354_vm1, %v294_v41 }
  0x3a   : > { %10485 = vmatprep.mubr.msk.f32.mxu1 %vm354_vm1, %v330_v42 }
  0x3c   : > { %10432 = vmatmul.mubr.msk.f32.gmra.mxu0 %vm354_vm1, %v295_v43 }
  0x3d   : > { %10486 = vmatmul.mubr.msk.f32.gmra.mxu1 %vm354_vm1, %v331_v44  ;;  %10434 = vmatprep.mubr.msk.f32.mxu0 %vm354_vm1, %v296_v45 }
  0x3e   : > { %10488 = vmatprep.mubr.msk.f32.mxu1 %vm354_vm1, %v332_v46 }
  0x40   : > { %10435 = vmatmul.mubr.msk.f32.gmra.mxu0 %vm354_vm1, %v297_v47 }
  0x41   : > { %10489 = vmatmul.mubr.msk.f32.gmra.mxu1 %vm354_vm1, %v333_v48  ;;  %10437 = vmatprep.mubr.msk.f32.mxu0 %vm354_vm1, %v298_v49 }
  0x42   : > { %10491 = vmatprep.mubr.msk.f32.mxu1 %vm354_vm1, %v334_v50 }
  0x44   : > { %10438 = vmatmul.mubr.msk.f32.gmra.mxu0 %vm354_vm1, %v299_v51 }
  0x45   : > { %10492 = vmatmul.mubr.msk.f32.gmra.mxu1 %vm354_vm1, %v335_v52  ;;  %10440 = vmatprep.mubr.msk.f32.mxu0 %vm354_vm1, %v300_v53 }
  0x46   : > { %10494 = vmatprep.mubr.msk.f32.mxu1 %vm354_vm1, %v336_v54 }
  0x48   : > { %10441 = vmatmul.mubr.msk.f32.gmra.mxu0 %vm354_vm1, %v301_v55 }
  0x49   : > { %10495 = vmatmul.mubr.msk.f32.gmra.mxu1 %vm354_vm1, %v337_v56  ;;  %10443 = vmatprep.mubr.msk.f32.mxu0 %vm354_vm1, %v302_v57 }
  0x4a   : > { %10497 = vmatprep.mubr.msk.f32.mxu1 %vm354_vm1, %v338_v58 }
  0x4c   : > { %10444 = vmatmul.mubr.msk.f32.gmra.mxu0 %vm354_vm1, %v303_v59 }
  0x4d   : > { %10498 = vmatmul.mubr.msk.f32.gmra.mxu1 %vm354_vm1, %v339_v60  ;;  %10446 = vmatprep.mubr.msk.f32.mxu0 %vm354_vm1, %v304_v61 }
  0x4e   : > { %10500 = vmatprep.mubr.msk.f32.mxu1 %vm354_vm1, %v340_v62 }
  0x50   : > { %10447 = vmatmul.mubr.msk.f32.gmra.mxu0 %vm354_vm1, %v305_v63 }
  0x51   : > { %10501 = vmatmul.mubr.msk.f32.gmra.mxu1 %vm354_vm1, %v341_v0  ;;  %10449 = vmatprep.mubr.msk.f32.mxu0 %vm354_vm1, %v306_v1 }
  0x52   : > { %10503 = vmatprep.mubr.msk.f32.mxu1 %vm354_vm1, %v342_v2 }
  0x54   : > { %10450 = vmatmul.mubr.msk.f32.gmra.mxu0 %vm354_vm1, %v307_v3 }
  0x55   : > { %10504 = vmatmul.mubr.msk.f32.gmra.mxu1 %vm354_vm1, %v343_v4  ;;  %10452 = vmatprep.mubr.msk.f32.mxu0 %vm354_vm1, %v308_v5 }
  0x56   : > { %10506 = vmatprep.mubr.msk.f32.mxu1 %vm354_vm1, %v344_v6 }
  0x58   : > { %10453 = vmatmul.mubr.msk.f32.gmra.mxu0 %vm354_vm1, %v309_v7 }
  0x59   : > { %10507 = vmatmul.mubr.msk.f32.gmra.mxu1 %vm354_vm1, %v345_v8 }
  0xd4   : > { %v10403_v11 = vpop.f32.mrf.mxu0 }
  0xd5   : > { %v10457_v12 = vpop.f32.mrf.mxu1  ;;  %v12948_v13 = vadd.f32 %v10403_v11, %v12940_v10  }
  0xd6   : > { %v12951_v14 = vadd.f32 %v10457_v12, %v12940_v10   ;;  %v641_v15 = vpop.f32.mrf.mxu0 }
  0xd7   : > { %16634 = vst [vmem:[#allocation3_spill] sm:$0xff] %v12948_v13  ;;  %v821_v16 = vpop.f32.mrf.mxu1  ;;  %v12957_v17 = vadd.f32 %v12940_v10, %v641_v15  }
  0xd8   : > { %1025 = vst.msk [vmem:[%s12945_s8 + $0xc8] sm:$0xff] %vm261_vm2, %v12951_v14  ;;  %v12960_v18 = vadd.f32 %v12940_v10, %v821_v16   ;;  %v10406_v19 = vpop.f32.mrf.mxu0 }
  0xd9   : > { %16635 = vst [vmem:[#allocation4_spill] sm:$0xff] %v12957_v17  ;;  %v10460_v20 = vpop.f32.mrf.mxu1  ;;  %v12966_v21 = vadd.f32 %v10406_v19, %v12940_v10  }
  0xda   : > { %1024 = vst.msk [vmem:[%s12945_s8 + $0xc0] sm:$0xff] %vm261_vm2, %v12960_v18  ;;  %v12969_v22 = vadd.f32 %v10460_v20, %v12940_v10   ;;  %v651_v23 = vpop.f32.mrf.mxu0 }
  0xdb   : > { %16636 = vst [vmem:[#allocation5_spill] sm:$0xff] %v12966_v21  ;;  %v831_v24 = vpop.f32.mrf.mxu1  ;;  %v12975_v25 = vadd.f32 %v12940_v10, %v651_v23  }
  0xdc   : > { %1027 = vst.msk [vmem:[%s12945_s8 + $0xd8] sm:$0xff] %vm261_vm2, %v12969_v22  ;;  %v12978_v26 = vadd.f32 %v12940_v10, %v831_v24   ;;  %v10409_v27 = vpop.f32.mrf.mxu0 }
  0xdd   : > { %16637 = vst [vmem:[#allocation6_spill] sm:$0xff] %v12975_v25  ;;  %v10463_v28 = vpop.f32.mrf.mxu1  ;;  %v12984_v29 = vadd.f32 %v10409_v27, %v12940_v10  }
  0xde   : > { %1026 = vst.msk [vmem:[%s12945_s8 + $0xd0] sm:$0xff] %vm261_vm2, %v12978_v26  ;;  %v12987_v30 = vadd.f32 %v10463_v28, %v12940_v10   ;;  %v661_v31 = vpop.f32.mrf.mxu0 }
  0xdf   : > { %16638 = vst [vmem:[#allocation7_spill] sm:$0xff] %v12984_v29  ;;  %v841_v32 = vpop.f32.mrf.mxu1  ;;  %v12993_v33 = vadd.f32 %v12940_v10, %v661_v31  }
  0xe0   : > { %1029 = vst.msk [vmem:[%s12945_s8 + $0xe8] sm:$0xff] %vm261_vm2, %v12987_v30  ;;  %v12996_v34 = vadd.f32 %v12940_v10, %v841_v32   ;;  %v10412_v35 = vpop.f32.mrf.mxu0 }
  0xe1   : > { %16639 = vst [vmem:[#allocation8_spill] sm:$0xff] %v12993_v33  ;;  %v10466_v36 = vpop.f32.mrf.mxu1  ;;  %v13002_v37 = vadd.f32 %v10412_v35, %v12940_v10  }
  0xe2   : > { %1028 = vst.msk [vmem:[%s12945_s8 + $0xe0] sm:$0xff] %vm261_vm2, %v12996_v34  ;;  %v13005_v38 = vadd.f32 %v10466_v36, %v12940_v10   ;;  %v671_v39 = vpop.f32.mrf.mxu0 }
  0xe3   : > { %16640 = vst [vmem:[#allocation9_spill] sm:$0xff] %v13002_v37  ;;  %v851_v40 = vpop.f32.mrf.mxu1  ;;  %v13011_v41 = vadd.f32 %v12940_v10, %v671_v39  }
  0xe4   : > { %1031 = vst.msk [vmem:[%s12945_s8 + $0xf8] sm:$0xff] %vm261_vm2, %v13005_v38  ;;  %v13014_v42 = vadd.f32 %v12940_v10, %v851_v40   ;;  %v10415_v43 = vpop.f32.mrf.mxu0 }
  0xe5   : > { %16641 = vst [vmem:[#allocation10_spill] sm:$0xff] %v13011_v41  ;;  %v10469_v44 = vpop.f32.mrf.mxu1  ;;  %v13020_v45 = vadd.f32 %v10415_v43, %v12940_v10  }
  0xe6   : > { %1030 = vst.msk [vmem:[%s12945_s8 + $0xf0] sm:$0xff] %vm261_vm2, %v13014_v42  ;;  %v13023_v46 = vadd.f32 %v10469_v44, %v12940_v10   ;;  %v681_v47 = vpop.f32.mrf.mxu0 }
  0xe7   : > { %16642 = vst [vmem:[#allocation11_spill] sm:$0xff] %v13020_v45  ;;  %v861_v48 = vpop.f32.mrf.mxu1  ;;  %v13029_v49 = vadd.f32 %v12940_v10, %v681_v47  }
  0xe8   : > { %1033 = vst.msk [vmem:[%s12945_s8 + $0x108] sm:$0xff] %vm261_vm2, %v13023_v46  ;;  %v13032_v50 = vadd.f32 %v12940_v10, %v861_v48   ;;  %v10418_v51 = vpop.f32.mrf.mxu0 }
  0xe9   : > { %16643 = vst [vmem:[#allocation12_spill] sm:$0xff] %v13029_v49  ;;  %v10472_v52 = vpop.f32.mrf.mxu1  ;;  %v13038_v53 = vadd.f32 %v10418_v51, %v12940_v10  }
  0xea   : > { %1032 = vst.msk [vmem:[%s12945_s8 + $0x100] sm:$0xff] %vm261_vm2, %v13032_v50  ;;  %v13041_v54 = vadd.f32 %v10472_v52, %v12940_v10   ;;  %v691_v55 = vpop.f32.mrf.mxu0 }
  0xeb   : > { %16644 = vst [vmem:[#allocation13_spill] sm:$0xff] %v13038_v53  ;;  %v871_v56 = vpop.f32.mrf.mxu1  ;;  %v13047_v57 = vadd.f32 %v12940_v10, %v691_v55  }
  0xec   : > { %1035 = vst.msk [vmem:[%s12945_s8 + $0x118] sm:$0xff] %vm261_vm2, %v13041_v54  ;;  %v13050_v58 = vadd.f32 %v12940_v10, %v871_v56   ;;  %v10421_v59 = vpop.f32.mrf.mxu0 }
  0xed   : > { %16645 = vst [vmem:[#allocation14_spill] sm:$0xff] %v13047_v57  ;;  %v10475_v60 = vpop.f32.mrf.mxu1  ;;  %v13056_v61 = vadd.f32 %v10421_v59, %v12940_v10  }
  0xee   : > { %1034 = vst.msk [vmem:[%s12945_s8 + $0x110] sm:$0xff] %vm261_vm2, %v13050_v58  ;;  %v13059_v62 = vadd.f32 %v10475_v60, %v12940_v10   ;;  %v701_v63 = vpop.f32.mrf.mxu0 }
  0xef   : > { %16646 = vst [vmem:[#allocation15_spill] sm:$0xff] %v13056_v61  ;;  %v881_v0 = vpop.f32.mrf.mxu1  ;;  %1001 = vst.msk [vmem:[%s12945_s8 + $0x8] sm:$0xff] %vm261_vm2, %v13056_v61  ;;  %v13068_v1 = vadd.f32 %v12940_v10, %v701_v63  }
  0xf0   : > { %1037 = vst.msk [vmem:[%s12945_s8 + $0x128] sm:$0xff] %vm261_vm2, %v13059_v62  ;;  %v13071_v2 = vadd.f32 %v12940_v10, %v881_v0   ;;  %v10424_v3 = vpop.f32.mrf.mxu0 }
  0xf1   : > { %16647 = vst [vmem:[#allocation16_spill] sm:$0xff] %v13068_v1  ;;  %v10478_v4 = vpop.f32.mrf.mxu1  ;;  %1000 = vst.msk [vmem:[%s12945_s8] sm:$0xff] %vm261_vm2, %v13068_v1  ;;  %v13080_v5 = vadd.f32 %v10424_v3, %v12940_v10  }
  0xf2   : > { %1036 = vst.msk [vmem:[%s12945_s8 + $0x120] sm:$0xff] %vm261_vm2, %v13071_v2  ;;  %v13083_v6 = vadd.f32 %v10478_v4, %v12940_v10   ;;  %v711_v7 = vpop.f32.mrf.mxu0 }
  0xf3   : > { %v891_v8 = vpop.f32.mrf.mxu1  ;;  %1003 = vst.msk [vmem:[%s12945_s8 + $0x18] sm:$0xff] %vm261_vm2, %v13080_v5  ;;  %v13092_v9 = vadd.f32 %v12940_v10, %v711_v7   ;;  %16652 = vst [vmem:[#allocation21_spill] sm:$0xff] %v13080_v5  ;;  %v16667_v5 = vld [vmem:[#allocation9_spill] sm:$0xff] }
  0xf4   : > { %1039 = vst.msk [vmem:[%s12945_s8 + $0x138] sm:$0xff] %vm261_vm2, %v13083_v6  ;;  %v13095_v11 = vadd.f32 %v12940_v10, %v891_v8   ;;  %v10427_v12 = vpop.f32.mrf.mxu0 }
  0xf5   : > { %16648 = vst [vmem:[#allocation17_spill] sm:$0xff] %v13092_v9  ;;  %v10481_v15 = vpop.f32.mrf.mxu1  ;;  %1002 = vst.msk [vmem:[%s12945_s8 + $0x10] sm:$0xff] %vm261_vm2, %v13092_v9  ;;  %v13104_v16 = vadd.f32 %v10427_v12, %v12940_v10  }
  0xf6   : > { %1038 = vst.msk [vmem:[%s12945_s8 + $0x130] sm:$0xff] %vm261_vm2, %v13095_v11  ;;  %v13107_v19 = vadd.f32 %v10481_v15, %v12940_v10   ;;  %v721_v20 = vpop.f32.mrf.mxu0 }
  0xf7   : > { %v901_v23 = vpop.f32.mrf.mxu1  ;;  %1005 = vst.msk [vmem:[%s12945_s8 + $0x28] sm:$0xff] %vm261_vm2, %v13104_v16  ;;  %v13116_v24 = vadd.f32 %v12940_v10, %v721_v20   ;;  %16650 = vst [vmem:[#allocation19_spill] sm:$0xff] %v13104_v16 }
  0xf8   : > { %1041 = vst.msk [vmem:[%s12945_s8 + $0x148] sm:$0xff] %vm261_vm2, %v13107_v19  ;;  %v13119_v27 = vadd.f32 %v12940_v10, %v901_v23   ;;  %v10430_v28 = vpop.f32.mrf.mxu0 }
  0xf9   : > { %v10484_v31 = vpop.f32.mrf.mxu1  ;;  %1004 = vst.msk [vmem:[%s12945_s8 + $0x20] sm:$0xff] %vm261_vm2, %v13116_v24  ;;  %v13128_v32 = vadd.f32 %v10430_v28, %v12940_v10   ;;  %16651 = vst [vmem:[#allocation20_spill] sm:$0xff] %v13116_v24 }
  0xfa   : > { %1040 = vst.msk [vmem:[%s12945_s8 + $0x140] sm:$0xff] %vm261_vm2, %v13119_v27  ;;  %v13131_v35 = vadd.f32 %v10484_v31, %v12940_v10   ;;  %v731_v36 = vpop.f32.mrf.mxu0 }
  0xfb   : > { %v911_v39 = vpop.f32.mrf.mxu1  ;;  %1007 = vst.msk [vmem:[%s12945_s8 + $0x38] sm:$0xff] %vm261_vm2, %v13128_v32  ;;  %v13140_v40 = vadd.f32 %v12940_v10, %v731_v36  }
  0xfc   : > { %1043 = vst.msk [vmem:[%s12945_s8 + $0x158] sm:$0xff] %vm261_vm2, %v13131_v35  ;;  %v13143_v43 = vadd.f32 %v12940_v10, %v911_v39   ;;  %v10433_v44 = vpop.f32.mrf.mxu0 }
  0xfd   : > { %v10487_v47 = vpop.f32.mrf.mxu1  ;;  %1006 = vst.msk [vmem:[%s12945_s8 + $0x30] sm:$0xff] %vm261_vm2, %v13140_v40  ;;  %v13152_v48 = vadd.f32 %v10433_v44, %v12940_v10   ;;  %16649 = vst [vmem:[#allocation18_spill] sm:$0xff] %v13140_v40 }
  0xfe   : > { %1042 = vst.msk [vmem:[%s12945_s8 + $0x150] sm:$0xff] %vm261_vm2, %v13143_v43  ;;  %v13155_v51 = vadd.f32 %v10487_v47, %v12940_v10   ;;  %v741_v52 = vpop.f32.mrf.mxu0 }
  0xff   : > { %v921_v55 = vpop.f32.mrf.mxu1  ;;  %1009 = vst.msk [vmem:[%s12945_s8 + $0x48] sm:$0xff] %vm261_vm2, %v13152_v48  ;;  %v13164_v56 = vadd.f32 %v12940_v10, %v741_v52  }
 0x100   : > { %1045 = vst.msk [vmem:[%s12945_s8 + $0x168] sm:$0xff] %vm261_vm2, %v13155_v51  ;;  %v13167_v59 = vadd.f32 %v12940_v10, %v921_v55   ;;  %v10436_v60 = vpop.f32.mrf.mxu0 }
 0x101   : > { %v10490_v63 = vpop.f32.mrf.mxu1  ;;  %1008 = vst.msk [vmem:[%s12945_s8 + $0x40] sm:$0xff] %vm261_vm2, %v13164_v56  ;;  %v13176_v0 = vadd.f32 %v10436_v60, %v12940_v10  }
 0x102   : > { %1044 = vst.msk [vmem:[%s12945_s8 + $0x160] sm:$0xff] %vm261_vm2, %v13167_v59  ;;  %v13179_v3 = vadd.f32 %v10490_v63, %v12940_v10   ;;  %v751_v4 = vpop.f32.mrf.mxu0 }
 0x103   : > { %v931_v7 = vpop.f32.mrf.mxu1  ;;  %1011 = vst.msk [vmem:[%s12945_s8 + $0x58] sm:$0xff] %vm261_vm2, %v13176_v0  ;;  %v13188_v8 = vadd.f32 %v12940_v10, %v751_v4  }
 0x104   : > { %1047 = vst.msk [vmem:[%s12945_s8 + $0x178] sm:$0xff] %vm261_vm2, %v13179_v3  ;;  %v13191_v12 = vadd.f32 %v12940_v10, %v931_v7   ;;  %v10439_v15 = vpop.f32.mrf.mxu0 }
 0x105   : > { %v10493_v20 = vpop.f32.mrf.mxu1  ;;  %1010 = vst.msk [vmem:[%s12945_s8 + $0x50] sm:$0xff] %vm261_vm2, %v13188_v8  ;;  %v13200_v23 = vadd.f32 %v10439_v15, %v12940_v10  }
 0x106   : > { %1046 = vst.msk [vmem:[%s12945_s8 + $0x170] sm:$0xff] %vm261_vm2, %v13191_v12  ;;  %v13203_v28 = vadd.f32 %v10493_v20, %v12940_v10   ;;  %v761_v31 = vpop.f32.mrf.mxu0 }
 0x107   : > { %v941_v36 = vpop.f32.mrf.mxu1  ;;  %1013 = vst.msk [vmem:[%s12945_s8 + $0x68] sm:$0xff] %vm261_vm2, %v13200_v23  ;;  %v13209_v39 = vadd.f32 %v12940_v10, %v761_v31  }
 0x108   : > { %v942_v44 = vadd.f32 %v12940_v10, %v941_v36   ;;  %v10442_v47 = vpop.f32.mrf.mxu0 }
 0x109   : > { %v10496_v52 = vpop.f32.mrf.mxu1  ;;  %1012 = vst.msk [vmem:[%s12945_s8 + $0x60] sm:$0xff] %vm261_vm2, %v13209_v39  ;;  %v13216_v55 = vadd.f32 %v10442_v47, %v12940_v10  }
 0x10a   : > { %v957_v60 = vadd.f32 %v10496_v52, %v12940_v10   ;;  %v771_v63 = vpop.f32.mrf.mxu0 }
 0x10b   : > { %v951_v4 = vpop.f32.mrf.mxu1  ;;  %1015 = vst.msk [vmem:[%s12945_s8 + $0x78] sm:$0xff] %vm261_vm2, %v13216_v55  ;;  %v13223_v7 = vadd.f32 %v12940_v10, %v771_v63  }
 0x10c   : > { %v952_v15 = vadd.f32 %v12940_v10, %v951_v4   ;;  %v10445_v20 = vpop.f32.mrf.mxu0 }
 0x10d   : > { %v10499_v31 = vpop.f32.mrf.mxu1  ;;  %1014 = vst.msk [vmem:[%s12945_s8 + $0x70] sm:$0xff] %vm261_vm2, %v13223_v7  ;;  %v13230_v36 = vadd.f32 %v10445_v20, %v12940_v10  }
 0x10e   : > { %v967_v47 = vadd.f32 %v10499_v31, %v12940_v10   ;;  %v781_v52 = vpop.f32.mrf.mxu0 }
 0x10f   : > { %v961_v17 = vpop.f32.mrf.mxu1  ;;  %1017 = vst.msk [vmem:[%s12945_s8 + $0x88] sm:$0xff] %vm261_vm2, %v13230_v36  ;;  %v13237_v63 = vadd.f32 %v12940_v10, %v781_v52  }
 0x110   : > { %v962_v4 = vadd.f32 %v12940_v10, %v961_v17   ;;  %v10448_v13 = vpop.f32.mrf.mxu0 }
 0x111   : > { %v10502_v25 = vpop.f32.mrf.mxu1  ;;  %1016 = vst.msk [vmem:[%s12945_s8 + $0x80] sm:$0xff] %vm261_vm2, %v13237_v63  ;;  %v13244_v20 = vadd.f32 %v10448_v13, %v12940_v10  }
 0x112   : > { %v977_v31 = vadd.f32 %v10502_v25, %v12940_v10   ;;  %v791_v21 = vpop.f32.mrf.mxu0 }
 0x113   : > { %v971_v33 = vpop.f32.mrf.mxu1  ;;  %1019 = vst.msk [vmem:[%s12945_s8 + $0x98] sm:$0xff] %vm261_vm2, %v13244_v20  ;;  %v13251_v52 = vadd.f32 %v12940_v10, %v791_v21  }
 0x114   : > { %v972_v17 = vadd.f32 %v12940_v10, %v971_v33   ;;  %v10451_v29 = vpop.f32.mrf.mxu0 }
 0x115   : > { %v10505_v41 = vpop.f32.mrf.mxu1  ;;  %1018 = vst.msk [vmem:[%s12945_s8 + $0x90] sm:$0xff] %vm261_vm2, %v13251_v52  ;;  %v807_v13 = vadd.f32 %v10451_v29, %v12940_v10  }
 0x116   : > { %v987_v25 = vadd.f32 %v10505_v41, %v12940_v10   ;;  %v801_v37 = vpop.f32.mrf.mxu0 }
 0x117   : > { %v981_v49 = vpop.f32.mrf.mxu1  ;;  %1021 = vst.msk [vmem:[%s12945_s8 + $0xa8] sm:$0xff] %vm261_vm2, %v807_v13  ;;  %v802_v21 = vadd.f32 %v12940_v10, %v801_v37   ;;  %v16655_v37 = vld [vmem:[#allocation15_spill] sm:$0xff] }
 0x118   : > { %v982_v45 = vadd.f32 %v12940_v10, %v981_v49   ;;  %v10454_v33 = vpop.f32.mrf.mxu0  ;;  %16656 = vst [vmem:[#allocation15_spill] sm:$0xff] %v16655_v37  ;;  %v16657_v49 = vld [vmem:[#allocation16_spill] sm:$0xff]  ;;  %v16669_v37 = vld [vmem:[#allocation7_spill] sm:$0xff] }
 0x119   : > { %v10508_v57 = vpop.f32.mrf.mxu1  ;;  %1020 = vst.msk [vmem:[%s12945_s8 + $0xa0] sm:$0xff] %vm261_vm2, %v802_v21  ;;  %v817_v53 = vadd.f32 %v10454_v33, %v12940_v10   ;;  %16658 = vst [vmem:[#allocation16_spill] sm:$0xff] %v16657_v49  ;;  %v16663_v33 = vld [vmem:[#allocation11_spill] sm:$0xff]  ;;  %v16671_v49 = vld [vmem:[#allocation8_spill] sm:$0xff] }
 0x11a   : > { %v997_v1 = vadd.f32 %v10508_v57, %v12940_v10   ;;  %v811_v29 = vpop.f32.mrf.mxu0  ;;  %v16659_v57 = vld [vmem:[#allocation13_spill] sm:$0xff]  ;;  %16664 = vst [vmem:[#allocation11_spill] sm:$0xff] %v16663_v33  ;;  %16670 = vst [vmem:[#allocation9_spill] sm:$0xff] %v16669_v37  ;;  %v16676_v33 = vld [vmem:[#allocation3_spill] sm:$0xff] }
 0x11b   : > { %v991_v61 = vpop.f32.mrf.mxu1  ;;  %1023 = vst.msk [vmem:[%s12945_s8 + $0xb8] sm:$0xff] %vm261_vm2, %v817_v53  ;;  %v812_v41 = vadd.f32 %v12940_v10, %v811_v29   ;;  %16660 = vst [vmem:[#allocation13_spill] sm:$0xff] %v16659_v57  ;;  %v16665_v29 = vld [vmem:[#allocation12_spill] sm:$0xff]  ;;  %v16672_v57 = vld [vmem:[#allocation5_spill] sm:$0xff] }
 0x11c   : > { %v992_v9 = vadd.f32 %v12940_v10, %v991_v61   ;;  %v16653_v10 = vld [vmem:[#allocation17_spill] sm:$0xff]  ;;  %v16661_v61 = vld [vmem:[#allocation14_spill] sm:$0xff]  ;;  %16666 = vst [vmem:[#allocation12_spill] sm:$0xff] %v16665_v29  ;;  %16677 = vst [vmem:[#allocation8_spill] sm:$0xff] %v16676_v33 }
 0x11d   : > { %1022 = vst.msk [vmem:[%s12945_s8 + $0xb0] sm:$0xff] %vm261_vm2, %v812_v41  ;;  %16654 = vst [vmem:[#allocation17_spill] sm:$0xff] %v16653_v10  ;;  %v16668_v10 = vld [vmem:[#allocation10_spill] sm:$0xff]  ;;  %v16678_v29 = vld [vmem:[#allocation4_spill] sm:$0xff] }
 0x11e   : > { %16662 = vst [vmem:[#allocation14_spill] sm:$0xff] %v16661_v61  ;;  %16673 = vst [vmem:[#allocation10_spill] sm:$0xff] %v16672_v57  ;;  %v16674_v61 = vld [vmem:[#allocation6_spill] sm:$0xff] }
 0x11f   : > { %16675 = vst [vmem:[#allocation7_spill] sm:$0xff] %v16674_v61  ;;  %16679 = vst [vmem:[#allocation5_spill] sm:$0xff] %v16678_v29 }
 0x120 LB: >> { %16696 = vst [vmem:[#allocation22_spill] sm:$0xff] %v12433_v1  ;;  %16697 = vst [vmem:[#allocation23_spill] sm:$0xff] %v12437_v9  ;;  %v16714_v40 = vld [vmem:[#allocation18_spill] sm:$0xff]  ;;  %v16715_v16 = vld [vmem:[#allocation19_spill] sm:$0xff]  ;;  %s9001_s10 = smul.u32 72, %s12721_s9  ;;  %s8274_s16 = scalar_lea.vmem %s16534_s4, %s12721_s9  ;;  %s12721_s9 = sphi %s13474_s9, %s17308_s9   ;;  %v12701_v49 = vphi %v16671_v49, %v17295_v49   ;;  %v12693_v10 = vphi %v16668_v10, %v17290_v10   ;;  %v12689_v5 = vphi %v16667_v5, %v17288_v5   ;;  %v12641_v32 = vphi %v13128_v32, %v17253_v32   ;;  %v12637_v56 = vphi %v13164_v56, %v17251_v56   ;;  %v12633_v48 = vphi %v13152_v48, %v17249_v48   ;;  %v12629_v8 = vphi %v13188_v8, %v17247_v8   ;;  %v12625_v0 = vphi %v13176_v0, %v17245_v0   ;;  %v12621_v39 = vphi %v13209_v39, %v17243_v39   ;;  %v12617_v23 = vphi %v13200_v23, %v17241_v23   ;;  %v12613_v7 = vphi %v13223_v7, %v17239_v7   ;;  %v12609_v55 = vphi %v13216_v55, %v17237_v55   ;;  %v12605_v63 = vphi %v13237_v63, %v17235_v63   ;;  %v12601_v36 = vphi %v13230_v36, %v17233_v36   ;;  %v12597_v52 = vphi %v13251_v52, %v17231_v52   ;;  %v12593_v20 = vphi %v13244_v20, %v17229_v20   ;;  %v12589_v21 = vphi %v802_v21, %v17227_v21   ;;  %v12585_v13 = vphi %v807_v13, %v17225_v13   ;;  %v12581_v41 = vphi %v812_v41, %v17223_v41   ;;  %v12577_v53 = vphi %v817_v53, %v17221_v53   ;;  %v12573_v18 = vphi %v12960_v18, %v17219_v18   ;;  %v12569_v14 = vphi %v12951_v14, %v17217_v14   ;;  %v12565_v26 = vphi %v12978_v26, %v17215_v26   ;;  %v12561_v22 = vphi %v12969_v22, %v17213_v22   ;;  %v12557_v34 = vphi %v12996_v34, %v17211_v34   ;;  %v12553_v30 = vphi %v12987_v30, %v17209_v30   ;;  %v12549_v42 = vphi %v13014_v42, %v17207_v42   ;;  %v12545_v38 = vphi %v13005_v38, %v17205_v38   ;;  %v12541_v50 = vphi %v13032_v50, %v17203_v50   ;;  %v12537_v46 = vphi %v13023_v46, %v17201_v46   ;;  %v12533_v58 = vphi %v13050_v58, %v17199_v58   ;;  %v12529_v54 = vphi %v13041_v54, %v17197_v54   ;;  %v12525_v2 = vphi %v13071_v2, %v17195_v2   ;;  %v12521_v62 = vphi %v13059_v62, %v17193_v62   ;;  %v12517_v11 = vphi %v13095_v11, %v17191_v11   ;;  %v12513_v6 = vphi %v13083_v6, %v17189_v6   ;;  %v12509_v27 = vphi %v13119_v27, %v17187_v27   ;;  %v12505_v19 = vphi %v13107_v19, %v17185_v19   ;;  %v12501_v43 = vphi %v13143_v43, %v17183_v43   ;;  %v12497_v35 = vphi %v13131_v35, %v17181_v35   ;;  %v12493_v59 = vphi %v13167_v59, %v17179_v59   ;;  %v12489_v51 = vphi %v13155_v51, %v17178_v51   ;;  %v12485_v12 = vphi %v13191_v12, %v17176_v12   ;;  %v12481_v3 = vphi %v13179_v3, %v17174_v3   ;;  %v12477_v44 = vphi %v942_v44, %v8414_v44   ;;  %v12473_v28 = vphi %v13203_v28, %v17172_v28   ;;  %v12469_v15 = vphi %v952_v15, %v8416_v15   ;;  %v12465_v60 = vphi %v957_v60, %v17171_v60   ;;  %v12461_v4 = vphi %v962_v4, %v8418_v4   ;;  %v12457_v47 = vphi %v967_v47, %v8419_v47   ;;  %v12453_v17 = vphi %v972_v17, %v8420_v17   ;;  %v12449_v31 = vphi %v977_v31, %v8421_v31   ;;  %v12445_v45 = vphi %v982_v45, %v8422_v45   ;;  %v12441_v25 = vphi %v987_v25, %v8423_v25   ;;  %v12437_v9 = vphi %v992_v9, %v8424_v9   ;;  %v12433_v1 = vphi %v997_v1, %v8425_v1  }
 0x121   : >> { %16698 = vst [vmem:[#allocation24_spill] sm:$0xff] %v12441_v25  ;;  %16699 = vst [vmem:[#allocation25_spill] sm:$0xff] %v12445_v45  ;;  %v16716_v24 = vld [vmem:[#allocation20_spill] sm:$0xff]  ;;  %v16717_v9 = vld [vmem:[#allocation21_spill] sm:$0xff]  ;;  %s1053_s17 = sadd.s32 1, %s12721_s9  }
 0x122   : >> { %16700 = vst [vmem:[#allocation26_spill] sm:$0xff] %v12449_v31  ;;  %16701 = vst [vmem:[#allocation27_spill] sm:$0xff] %v12453_v17  ;;  %v16719_v25 = vld [vmem:[#allocation15_spill] sm:$0xff]  ;;  %v16720_v45 = vld [vmem:[#allocation16_spill] sm:$0xff]  ;;  %s13681_s13 = scalar_lea.vmem %s16533_s3, %s9001_s10  ;;  %p16005_p5 = scmp.ge.s32.totalorder %s1053_s17, 4  }
 0x123   : >> { %16702 = vst [vmem:[#allocation28_spill] sm:$0xff] %v12457_v47  ;;  %16703 = vst [vmem:[#allocation29_spill] sm:$0xff] %v12461_v4  ;;  %v16724_v17 = vld [vmem:[#allocation12_spill] sm:$0xff]  ;;  %v16725_v37 = vld [vmem:[#allocation9_spill] sm:$0xff]  ;;  %v1126_v47 = vlaneseq  ;;  %s17308_s9 = smov %s1053_s17 }
 0x124   : >> { %16704 = vst [vmem:[#allocation30_spill] sm:$0xff] %v12465_v60  ;;  %16705 = vst [vmem:[#allocation31_spill] sm:$0xff] %v12469_v15  ;;  %v16718_v1 = vld [vmem:[#allocation17_spill] sm:$0xff]  ;;  %v16728_v33 = vld [vmem:[#allocation8_spill] sm:$0xff]  ;;  %v16539_v60 = vmov 0.0  }
 0x125   : >> { %16706 = vst [vmem:[#allocation32_spill] sm:$0xff] %v12473_v28  ;;  %16707 = vst [vmem:[#allocation33_spill] sm:$0xff] %v12589_v21  ;;  %v16721_v21 = vld [vmem:[#allocation13_spill] sm:$0xff]  ;;  %v16722_v31 = vld [vmem:[#allocation14_spill] sm:$0xff]  ;;  %v16730_v28 = vmov 0.0  }
 0x126   : >> { %16708 = vst [vmem:[#allocation34_spill] sm:$0xff] %v12593_v20  ;;  %16709 = vst [vmem:[#allocation35_spill] sm:$0xff] %v12597_v52  ;;  %v16723_v20 = vld [vmem:[#allocation11_spill] sm:$0xff]  ;;  %v16726_v57 = vld [vmem:[#allocation10_spill] sm:$0xff] }
 0x127   : >> { %16710 = vst [vmem:[#allocation36_spill] sm:$0xff] %v12601_v36  ;;  %16711 = vst [vmem:[#allocation37_spill] sm:$0xff] %v12605_v63  ;;  %v16727_v61 = vld [vmem:[#allocation7_spill] sm:$0xff]  ;;  %v16729_v29 = vld [vmem:[#allocation5_spill] sm:$0xff]  ;;  %v1127_v36 = vshrl.u32 %v1126_v47, 7 }
 0x128   : >> { %16712 = vst [vmem:[#allocation38_spill] sm:$0xff] %v12609_v55  ;;  %16713 = vst [vmem:[#allocation39_spill] sm:$0xff] %v12613_v7  ;;  %v1393_v52 = vld [vmem:[#allocation2 + $0x18] sm:$0xff]  ;;  %v9003_v63 = vld [vmem:[%s13681_s13 + $0x8] sm:$0xff] }
 0x129   : >> { %10511 = vmatprep.mubr.msk.f32.mxu0 %vm261_vm2, %v1393_v52  ;;  %1251 = vst.msk [vmem:[#allocation2 + $0x140] sm:$0xff] %vm261_vm2, %v12581_v41  ;;  %vm1130_vm3 = vcmp.ge.s32.totalorder %v1127_v36, 1  ;;  %v1129_v4 = vadd.s32 16, %v1127_v36  ;;  %v13688_v52 = vld [vmem:[%s13681_s13] sm:$0xff]  ;;  %1218 = vst.msk [vmem:[#allocation2 + $0x38] sm:$0xff] %vm261_vm2, %v16728_v33  ;;  %11501 = vmatprep.subr.mxu1 %v9003_v63  ;;  %v9149_v15 = vld [vmem:[%s13681_s13 + $0x10] sm:$0xff] }
 0x12a   : >> { %v13685_v55 = vsel %vm1130_vm3, 1.0, %v16539_v60  ;;  %v1394_v47 = vld [vmem:[#allocation2 + $0x20] sm:$0xff]  ;;  %1254 = vst.msk [vmem:[#allocation2 + $0x158] sm:$0xff] %vm261_vm2, %v12569_v14  ;;  %10509 = vmatprep.subr.mxu0 %v9003_v63  ;;  %v1395_v7 = vld [vmem:[#allocation2 + $0x28] sm:$0xff]  ;;  %1294 = vst.msk [vmem:[#allocation2 + $0x38] sm:$0xff] %vm261_vm2, %v16730_v28  ;;  %11502 = vmatpush3.msra.mxu1 %v9003_v63 }
 0x12b   : >> { %v1178_v41 = vmul.f32 %v12585_v13, %v13685_v55  ;;  %vm1135_vm4 = vcmp.lt.s32.totalorder %v1129_v4, 17  ;;  %v1145_v36 = vmul.f32 %v16729_v29, %v13685_v55  ;;  %v1181_v60 = vmul.f32 %v12573_v18, %v13685_v55  ;;  %10510 = vmatpush3.msra.mxu0 %v9003_v63  ;;  %10619 = vmatprep.subr.mxu1 %v13688_v52  ;;  %v13712_v4 = vld [vmem:[%s13681_s13 + $0x20] sm:$0xff] }
 0x12c   : >> { %v13699_v33 = vsel %vm1135_vm4, 1.0, %v16730_v28  ;;  %10512 = vmatmul.mubr.msk.f32.vlgmr.msra.gmra.mxu0 %vm261_vm2, %v1394_v47  ;;  %10729 = vmatprep.subr.mxu0 %v9149_v15  ;;  %v1148_v13 = vmul.f32 %v16726_v57, %v13685_v55  ;;  %1221 = vst.msk [vmem:[#allocation2 + $0x50] sm:$0xff] %vm261_vm2, %v12701_v49  ;;  %1257 = vst.msk [vmem:[#allocation2 + $0x170] sm:$0xff] %vm261_vm2, %v12557_v34  ;;  %v1154_v49 = vmul.f32 %v16723_v20, %v13685_v55 }
 0x12d   : >> { %1250 = vst.msk [vmem:[#allocation2 + $0x138] sm:$0xff] %vm261_vm2, %v1178_v41  ;;  %v1180_v14 = vmul.f32 %v12577_v53, %v13699_v33  ;;  %1217 = vst.msk [vmem:[#allocation2 + $0x30] sm:$0xff] %vm261_vm2, %v1145_v36  ;;  %v1147_v18 = vmul.f32 %v16727_v61, %v13699_v33  ;;  %v1183_v63 = vmul.f32 %v12565_v26, %v13699_v33  ;;  %10514 = vmatprep.mubr.msk.f32.mxu0 %vm261_vm2, %v1395_v7 }
 0x12e   : >> { %1253 = vst.msk [vmem:[#allocation2 + $0x150] sm:$0xff] %vm261_vm2, %v1181_v60  ;;  %1293 = vst.msk [vmem:[#allocation2 + $0x30] sm:$0xff] %vm261_vm2, %v16730_v28  ;;  %v1184_v53 = vmul.f32 %v12561_v22, %v13685_v55  ;;  %10730 = vmatpush3.msra.mxu0 %v9149_v15  ;;  %v1150_v22 = vmul.f32 %v16725_v37, %v13699_v33  ;;  %v1186_v26 = vmul.f32 %v12553_v30, %v13699_v33 }
 0x12f   : >> { %1252 = vst.msk [vmem:[#allocation2 + $0x148] sm:$0xff] %vm261_vm2, %v1180_v14  ;;  %1219 = vst.msk [vmem:[#allocation2 + $0x40] sm:$0xff] %vm261_vm2, %v1147_v18  ;;  %10949 = vmatprep.subr.mxu0 %v13712_v4  ;;  %v1151_v60 = vmul.f32 %v12693_v10, %v13685_v55  ;;  %v1187_v7 = vmul.f32 %v12549_v42, %v13685_v55  ;;  %v1153_v10 = vmul.f32 %v16724_v17, %v13699_v33 }
 0x130   : >> { %1255 = vst.msk [vmem:[#allocation2 + $0x160] sm:$0xff] %vm261_vm2, %v1183_v63  ;;  %1295 = vst.msk [vmem:[#allocation2 + $0x40] sm:$0xff] %vm261_vm2, %v16730_v28  ;;  %v1430_v34 = vld [vmem:[#allocation2 + $0x140] sm:$0xff]  ;;  %v1189_v37 = vmul.f32 %v12541_v50, %v13699_v33  ;;  %v1190_v57 = vmul.f32 %v12537_v46, %v13685_v55  ;;  %v1156_v46 = vmul.f32 %v16721_v21, %v13699_v33 }
 0x131   : >> { %1220 = vst.msk [vmem:[#allocation2 + $0x48] sm:$0xff] %vm261_vm2, %v1148_v13  ;;  %1256 = vst.msk [vmem:[#allocation2 + $0x168] sm:$0xff] %vm261_vm2, %v1184_v53  ;;  %v1397_v42 = vld [vmem:[#allocation2 + $0x38] sm:$0xff]  ;;  %v1192_v20 = vmul.f32 %v12529_v54, %v13699_v33  ;;  %v1160_v41 = vmul.f32 %v16717_v9, %v13685_v55  ;;  %v1196_v36 = vmul.f32 %v12513_v6, %v13685_v55 }
 0x132   : >> { %1296 = vst.msk [vmem:[#allocation2 + $0x48] sm:$0xff] %vm261_vm2, %v16730_v28  ;;  %1297 = vst.msk [vmem:[#allocation2 + $0x50] sm:$0xff] %vm261_vm2, %v16730_v28  ;;  %v1433_v50 = vld [vmem:[#allocation2 + $0x158] sm:$0xff]  ;;  %v1162_v6 = vmul.f32 %v16715_v16, %v13699_v33  ;;  %v1198_v9 = vmul.f32 %v12505_v19, %v13699_v33  ;;  %v1163_v14 = vmul.f32 %v16714_v40, %v13685_v55 }
 0x133   : >> { %1222 = vst.msk [vmem:[#allocation2 + $0x58] sm:$0xff] %vm261_vm2, %v1150_v22  ;;  %1258 = vst.msk [vmem:[#allocation2 + $0x178] sm:$0xff] %vm261_vm2, %v1186_v26  ;;  %v1199_v18 = vmul.f32 %v12501_v43, %v13685_v55  ;;  %v1165_v40 = vmul.f32 %v12637_v56, %v13699_v33  ;;  %v1201_v43 = vmul.f32 %v12493_v59, %v13699_v33 }
 0x134   : >> { %v1429_v15 = vld [vmem:[#allocation2 + $0x138] sm:$0xff]  ;;  %1298 = vst.msk [vmem:[#allocation2 + $0x58] sm:$0xff] %vm261_vm2, %v16730_v28  ;;  %1223 = vst.msk [vmem:[#allocation2 + $0x60] sm:$0xff] %vm261_vm2, %v1151_v60  ;;  %v1166_v63 = vmul.f32 %v12633_v48, %v13685_v55  ;;  %v1202_v13 = vmul.f32 %v12489_v51, %v13685_v55  ;;  %v1168_v48 = vmul.f32 %v12625_v0, %v13699_v33  ;;  %v16733_v60 = vld [vmem:[#allocation31_spill] sm:$0xff] }
 0x135   : >> { %1259 = vst.msk [vmem:[#allocation2 + $0x180] sm:$0xff] %vm261_vm2, %v1187_v7  ;;  %1224 = vst.msk [vmem:[#allocation2 + $0x68] sm:$0xff] %vm261_vm2, %v12689_v5  ;;  %10565 = vmatprep.mubr.msk.f32.mxu1 %vm261_vm2, %v1429_v15  ;;  %v1396_v30 = vld [vmem:[#allocation2 + $0x30] sm:$0xff]  ;;  %v13762_v5 = vld [vmem:[%s13681_s13 + $0x18] sm:$0xff]  ;;  %v1204_v51 = vmul.f32 %v12481_v3, %v13699_v33  ;;  %v1169_v53 = vmul.f32 %v12621_v39, %v13685_v55  ;;  %v1205_v22 = vmul.f32 %v12477_v44, %v13685_v55 }
 0x136   : >> { %1260 = vst.msk [vmem:[#allocation2 + $0x188] sm:$0xff] %vm261_vm2, %v12545_v38  ;;  %1299 = vst.msk [vmem:[#allocation2 + $0x60] sm:$0xff] %vm261_vm2, %v16730_v28  ;;  %10566 = vmatmul.mubr.msk.f32.vlgmr.msra.gmra.mxu1 %vm261_vm2, %v1430_v34  ;;  %v1431_v38 = vld [vmem:[#allocation2 + $0x148] sm:$0xff]  ;;  %10515 = vmatmul.mubr.msk.f32.gmra.mxu0 %vm261_vm2, %v1396_v30  ;;  %v1432_v17 = vld [vmem:[#allocation2 + $0x150] sm:$0xff]  ;;  %v1207_v7 = vmul.f32 %v16733_v60, %v13699_v33 }
 0x137   : >> { %1300 = vst.msk [vmem:[#allocation2 + $0x68] sm:$0xff] %vm261_vm2, %v16730_v28  ;;  %10620 = vmatpush3.msra.mxu1 %v13688_v52  ;;  %10568 = vmatprep.mubr.msk.f32.mxu1 %vm261_vm2, %v1431_v38  ;;  %v1398_v61 = vld [vmem:[#allocation2 + $0x40] sm:$0xff]  ;;  %1225 = vst.msk [vmem:[#allocation2 + $0x70] sm:$0xff] %vm261_vm2, %v1153_v10  ;;  %v16731_v39 = vld [vmem:[#allocation32_spill] sm:$0xff] }
 0x138   : >> { %1261 = vst.msk [vmem:[#allocation2 + $0x190] sm:$0xff] %vm261_vm2, %v1189_v37  ;;  %10517 = vmatprep.mubr.msk.f32.mxu0 %vm261_vm2, %v1397_v42  ;;  %1301 = vst.msk [vmem:[#allocation2 + $0x70] sm:$0xff] %vm261_vm2, %v16730_v28  ;;  %10839 = vmatprep.subr.mxu1 %v13762_v5  ;;  %v1434_v52 = vld [vmem:[#allocation2 + $0x160] sm:$0xff]  ;;  %v1435_v54 = vld [vmem:[#allocation2 + $0x168] sm:$0xff] }
 0x139   : >> { %v1399_v29 = vld [vmem:[#allocation2 + $0x48] sm:$0xff]  ;;  %1226 = vst.msk [vmem:[#allocation2 + $0x78] sm:$0xff] %vm261_vm2, %v1154_v49  ;;  %1262 = vst.msk [vmem:[#allocation2 + $0x198] sm:$0xff] %vm261_vm2, %v1190_v57  ;;  %v1400_v47 = vld [vmem:[#allocation2 + $0x50] sm:$0xff] }
 0x13a   : >> { %1227 = vst.msk [vmem:[#allocation2 + $0x80] sm:$0xff] %vm261_vm2, %v16722_v31  ;;  %1263 = vst.msk [vmem:[#allocation2 + $0x1a0] sm:$0xff] %vm261_vm2, %v12533_v58  ;;  %10569 = vmatmul.mubr.msk.f32.gmra.mxu1 %vm261_vm2, %v1432_v17  ;;  %10518 = vmatmul.mubr.msk.f32.gmra.mxu0 %vm261_vm2, %v1398_v61  ;;  %v1157_v58 = vmul.f32 %v16720_v45, %v13685_v55  ;;  %v1193_v31 = vmul.f32 %v12525_v2, %v13685_v55  ;;  %v16732_v44 = vld [vmem:[#allocation39_spill] sm:$0xff]  ;;  %v16735_v15 = vld [vmem:[#allocation30_spill] sm:$0xff] }
 0x13b   : >> { %1302 = vst.msk [vmem:[#allocation2 + $0x78] sm:$0xff] %vm261_vm2, %v16730_v28  ;;  %1303 = vst.msk [vmem:[#allocation2 + $0x80] sm:$0xff] %vm261_vm2, %v16730_v28  ;;  %10571 = vmatprep.mubr.msk.f32.mxu1 %vm261_vm2, %v1433_v50  ;;  %10520 = vmatprep.mubr.msk.f32.mxu0 %vm261_vm2, %v1399_v29  ;;  %v1401_v21 = vld [vmem:[#allocation2 + $0x58] sm:$0xff]  ;;  %v1159_v45 = vmul.f32 %v16718_v1, %v13699_v33  ;;  %v1195_v2 = vmul.f32 %v12517_v11, %v13699_v33  ;;  %v16738_v17 = vld [vmem:[#allocation36_spill] sm:$0xff] }
 0x13c   : >> { %1228 = vst.msk [vmem:[#allocation2 + $0x88] sm:$0xff] %vm261_vm2, %v1156_v46  ;;  %1264 = vst.msk [vmem:[#allocation2 + $0x1a8] sm:$0xff] %vm261_vm2, %v1192_v20  ;;  %v1437_v1 = vld [vmem:[#allocation2 + $0x178] sm:$0xff]  ;;  %v1171_v26 = vmul.f32 %v16732_v44, %v13699_v33  ;;  %v1208_v30 = vmul.f32 %v16735_v15, %v13685_v55  ;;  %v1174_v61 = vmul.f32 %v16738_v17, %v13699_v33  ;;  %v16739_v50 = vld [vmem:[#allocation28_spill] sm:$0xff] }
 0x13d   : >> { %1304 = vst.msk [vmem:[#allocation2 + $0x88] sm:$0xff] %vm261_vm2, %v16730_v28  ;;  %1229 = vst.msk [vmem:[#allocation2 + $0x90] sm:$0xff] %vm261_vm2, %v1157_v58  ;;  %v1439_v16 = vld [vmem:[#allocation2 + $0x188] sm:$0xff]  ;;  %v16736_v49 = vld [vmem:[#allocation37_spill] sm:$0xff]  ;;  %v1210_v29 = vmul.f32 %v16739_v50, %v13699_v33 }
 0x13e   : >> { %1265 = vst.msk [vmem:[#allocation2 + $0x1b0] sm:$0xff] %vm261_vm2, %v1193_v31  ;;  %1230 = vst.msk [vmem:[#allocation2 + $0x98] sm:$0xff] %vm261_vm2, %v16719_v25  ;;  %10572 = vmatmul.mubr.msk.f32.gmra.mxu1 %vm261_vm2, %v1434_v52  ;;  %10521 = vmatmul.mubr.msk.f32.gmra.mxu0 %vm261_vm2, %v1400_v47  ;;  %v1436_v25 = vld [vmem:[#allocation2 + $0x170] sm:$0xff]  ;;  %v1403_v11 = vld [vmem:[#allocation2 + $0x68] sm:$0xff] }
 0x13f   : >> { %1266 = vst.msk [vmem:[#allocation2 + $0x1b8] sm:$0xff] %vm261_vm2, %v12521_v62  ;;  %10574 = vmatprep.mubr.msk.f32.mxu1 %vm261_vm2, %v1435_v54  ;;  %10523 = vmatprep.mubr.msk.f32.mxu0 %vm261_vm2, %v1401_v21  ;;  %v1402_v62 = vld [vmem:[#allocation2 + $0x60] sm:$0xff]  ;;  %1231 = vst.msk [vmem:[#allocation2 + $0xa0] sm:$0xff] %vm261_vm2, %v1159_v45  ;;  %v16737_v57 = vld [vmem:[#allocation29_spill] sm:$0xff] }
 0x140   : >> { %1267 = vst.msk [vmem:[#allocation2 + $0x1c0] sm:$0xff] %vm261_vm2, %v1195_v2  ;;  %1232 = vst.msk [vmem:[#allocation2 + $0xa8] sm:$0xff] %vm261_vm2, %v1160_v41  ;;  %v1441_v56 = vld [vmem:[#allocation2 + $0x198] sm:$0xff]  ;;  %v16740_v46 = vld [vmem:[#allocation35_spill] sm:$0xff] }
 0x141   : >> { %1268 = vst.msk [vmem:[#allocation2 + $0x1c8] sm:$0xff] %vm261_vm2, %v1196_v36  ;;  %1233 = vst.msk [vmem:[#allocation2 + $0xb0] sm:$0xff] %vm261_vm2, %v16716_v24  ;;  %v1438_v24 = vld [vmem:[#allocation2 + $0x180] sm:$0xff]  ;;  %v1175_v20 = vmul.f32 %v16740_v46, %v13685_v55  ;;  %v16741_v58 = vld [vmem:[#allocation27_spill] sm:$0xff] }
 0x142   : >> { %1269 = vst.msk [vmem:[#allocation2 + $0x1d0] sm:$0xff] %vm261_vm2, %v12509_v27  ;;  %10575 = vmatmul.mubr.msk.f32.gmra.mxu1 %vm261_vm2, %v1436_v25  ;;  %10524 = vmatmul.mubr.msk.f32.gmra.mxu0 %vm261_vm2, %v1402_v62  ;;  %v1404_v27 = vld [vmem:[#allocation2 + $0x70] sm:$0xff]  ;;  %1234 = vst.msk [vmem:[#allocation2 + $0xb8] sm:$0xff] %vm261_vm2, %v1162_v6  ;;  %v1405_v19 = vld [vmem:[#allocation2 + $0x78] sm:$0xff]  ;;  %v1211_v31 = vmul.f32 %v16741_v58, %v13685_v55 }
 0x143   : >> { %10577 = vmatprep.mubr.msk.f32.mxu1 %vm261_vm2, %v1437_v1  ;;  %10526 = vmatprep.mubr.msk.f32.mxu0 %vm261_vm2, %v1403_v11  ;;  %1270 = vst.msk [vmem:[#allocation2 + $0x1d8] sm:$0xff] %vm261_vm2, %v1198_v9  ;;  %1235 = vst.msk [vmem:[#allocation2 + $0xc0] sm:$0xff] %vm261_vm2, %v1163_v14  ;;  %v1443_v0 = vld [vmem:[#allocation2 + $0x1a8] sm:$0xff]  ;;  %v16742_v45 = vld [vmem:[#allocation34_spill] sm:$0xff] }
 0x144   : >> { %1271 = vst.msk [vmem:[#allocation2 + $0x1e0] sm:$0xff] %vm261_vm2, %v1199_v18  ;;  %1236 = vst.msk [vmem:[#allocation2 + $0xc8] sm:$0xff] %vm261_vm2, %v12641_v32  ;;  %v1440_v32 = vld [vmem:[#allocation2 + $0x190] sm:$0xff]  ;;  %v1407_v59 = vld [vmem:[#allocation2 + $0x88] sm:$0xff] }
 0x145   : >> { %1272 = vst.msk [vmem:[#allocation2 + $0x1e8] sm:$0xff] %vm261_vm2, %v12497_v35  ;;  %v1406_v35 = vld [vmem:[#allocation2 + $0x80] sm:$0xff]  ;;  %1237 = vst.msk [vmem:[#allocation2 + $0xd0] sm:$0xff] %vm261_vm2, %v1165_v40  ;;  %v1409_v3 = vld [vmem:[#allocation2 + $0x98] sm:$0xff] }
 0x146   : >> { %10578 = vmatmul.mubr.msk.f32.gmra.mxu1 %vm261_vm2, %v1438_v24  ;;  %10527 = vmatmul.mubr.msk.f32.gmra.mxu0 %vm261_vm2, %v1404_v27  ;;  %1273 = vst.msk [vmem:[#allocation2 + $0x1f0] sm:$0xff] %vm261_vm2, %v1201_v43  ;;  %1238 = vst.msk [vmem:[#allocation2 + $0xd8] sm:$0xff] %vm261_vm2, %v1166_v63  ;;  %v1444_v42 = vld [vmem:[#allocation2 + $0x1b0] sm:$0xff]  ;;  %v1410_v10 = vld [vmem:[#allocation2 + $0xa0] sm:$0xff] }
 0x147   : >> { %10580 = vmatprep.mubr.msk.f32.mxu1 %vm261_vm2, %v1439_v16  ;;  %10529 = vmatprep.mubr.msk.f32.mxu0 %vm261_vm2, %v1405_v19  ;;  %1274 = vst.msk [vmem:[#allocation2 + $0x1f8] sm:$0xff] %vm261_vm2, %v1202_v13  ;;  %1239 = vst.msk [vmem:[#allocation2 + $0xe0] sm:$0xff] %vm261_vm2, %v12629_v8  ;;  %v1442_v8 = vld [vmem:[#allocation2 + $0x1a0] sm:$0xff]  ;;  %v1445_v37 = vld [vmem:[#allocation2 + $0x1b8] sm:$0xff] }
 0x148   : >> { %1275 = vst.msk [vmem:[#allocation2 + $0x200] sm:$0xff] %vm261_vm2, %v12485_v12  ;;  %v1408_v12 = vld [vmem:[#allocation2 + $0x90] sm:$0xff]  ;;  %1240 = vst.msk [vmem:[#allocation2 + $0xe8] sm:$0xff] %vm261_vm2, %v1168_v48  ;;  %v1411_v38 = vld [vmem:[#allocation2 + $0xa8] sm:$0xff] }
 0x149   : >> { %1276 = vst.msk [vmem:[#allocation2 + $0x208] sm:$0xff] %vm261_vm2, %v1204_v51  ;;  %1241 = vst.msk [vmem:[#allocation2 + $0xf0] sm:$0xff] %vm261_vm2, %v1169_v53  ;;  %v1446_v52 = vld [vmem:[#allocation2 + $0x1c0] sm:$0xff]  ;;  %v1412_v47 = vld [vmem:[#allocation2 + $0xb0] sm:$0xff] }
 0x14a   : >> { %10581 = vmatmul.mubr.msk.f32.gmra.mxu1 %vm261_vm2, %v1440_v32  ;;  %10530 = vmatmul.mubr.msk.f32.gmra.mxu0 %vm261_vm2, %v1406_v35  ;;  %1277 = vst.msk [vmem:[#allocation2 + $0x210] sm:$0xff] %vm261_vm2, %v1205_v22  ;;  %1242 = vst.msk [vmem:[#allocation2 + $0xf8] sm:$0xff] %vm261_vm2, %v12617_v23  ;;  %v16734_v23 = vld [vmem:[#allocation38_spill] sm:$0xff]  ;;  %v1447_v54 = vld [vmem:[#allocation2 + $0x1c8] sm:$0xff] }
 0x14b   : >> { %10583 = vmatprep.mubr.msk.f32.mxu1 %vm261_vm2, %v1441_v56  ;;  %10532 = vmatprep.mubr.msk.f32.mxu0 %vm261_vm2, %v1407_v59  ;;  %1278 = vst.msk [vmem:[#allocation2 + $0x218] sm:$0xff] %vm261_vm2, %v16731_v39  ;;  %1305 = vst.msk [vmem:[#allocation2 + $0x210] sm:$0xff] %vm261_vm2, %v16730_v28  ;;  %v1172_v34 = vmul.f32 %v16734_v23, %v13685_v55  ;;  %v1413_v21 = vld [vmem:[#allocation2 + $0xb8] sm:$0xff]  ;;  %v16743_v2 = vld [vmem:[#allocation26_spill] sm:$0xff] }
 0x14c   : >> { %1306 = vst.msk [vmem:[#allocation2 + $0x218] sm:$0xff] %vm261_vm2, %v16730_v28  ;;  %1243 = vst.msk [vmem:[#allocation2 + $0x100] sm:$0xff] %vm261_vm2, %v1171_v26  ;;  %v16744_v41 = vld [vmem:[#allocation33_spill] sm:$0xff]  ;;  %v1448_v1 = vld [vmem:[#allocation2 + $0x1d0] sm:$0xff] }
 0x14d   : >> { %1279 = vst.msk [vmem:[#allocation2 + $0x220] sm:$0xff] %vm261_vm2, %v1207_v7  ;;  %1244 = vst.msk [vmem:[#allocation2 + $0x108] sm:$0xff] %vm261_vm2, %v1172_v34  ;;  %v1177_v36 = vmul.f32 %v16744_v41, %v13699_v33  ;;  %v16745_v25 = vld [vmem:[#allocation25_spill] sm:$0xff]  ;;  %v1414_v11 = vld [vmem:[#allocation2 + $0xc0] sm:$0xff] }
 0x14e   : >> { %10584 = vmatmul.mubr.msk.f32.gmra.mxu1 %vm261_vm2, %v1442_v8  ;;  %10533 = vmatmul.mubr.msk.f32.gmra.mxu0 %vm261_vm2, %v1408_v12  ;;  %1307 = vst.msk [vmem:[#allocation2 + $0x220] sm:$0xff] %vm261_vm2, %v16730_v28  ;;  %1280 = vst.msk [vmem:[#allocation2 + $0x228] sm:$0xff] %vm261_vm2, %v1208_v30  ;;  %v1213_v62 = vmul.f32 %v16745_v25, %v13699_v33  ;;  %v1449_v6 = vld [vmem:[#allocation2 + $0x1d8] sm:$0xff]  ;;  %v1415_v9 = vld [vmem:[#allocation2 + $0xc8] sm:$0xff] }
 0x14f   : >> { %10586 = vmatprep.mubr.msk.f32.mxu1 %vm261_vm2, %v1443_v0  ;;  %10535 = vmatprep.mubr.msk.f32.mxu0 %vm261_vm2, %v1409_v3  ;;  %1245 = vst.msk [vmem:[#allocation2 + $0x110] sm:$0xff] %vm261_vm2, %v16736_v49  ;;  %1281 = vst.msk [vmem:[#allocation2 + $0x230] sm:$0xff] %vm261_vm2, %v16737_v57  ;;  %v1450_v14 = vld [vmem:[#allocation2 + $0x1e0] sm:$0xff]  ;;  %v1416_v18 = vld [vmem:[#allocation2 + $0xd0] sm:$0xff] }
 0x150   : >> { %1308 = vst.msk [vmem:[#allocation2 + $0x228] sm:$0xff] %vm261_vm2, %v16730_v28  ;;  %1309 = vst.msk [vmem:[#allocation2 + $0x230] sm:$0xff] %vm261_vm2, %v16730_v28  ;;  %v1451_v24 = vld [vmem:[#allocation2 + $0x1e8] sm:$0xff]  ;;  %v1417_v27 = vld [vmem:[#allocation2 + $0xd8] sm:$0xff] }
 0x151   : >> { %1246 = vst.msk [vmem:[#allocation2 + $0x118] sm:$0xff] %vm261_vm2, %v1174_v61  ;;  %1282 = vst.msk [vmem:[#allocation2 + $0x238] sm:$0xff] %vm261_vm2, %v1210_v29  ;;  %v1452_v16 = vld [vmem:[#allocation2 + $0x1f0] sm:$0xff]  ;;  %v1418_v19 = vld [vmem:[#allocation2 + $0xe0] sm:$0xff] }
 0x152   : >> { %10587 = vmatmul.mubr.msk.f32.gmra.mxu1 %vm261_vm2, %v1444_v42  ;;  %10536 = vmatmul.mubr.msk.f32.gmra.mxu0 %vm261_vm2, %v1410_v10  ;;  %1310 = vst.msk [vmem:[#allocation2 + $0x238] sm:$0xff] %vm261_vm2, %v16730_v28  ;;  %1247 = vst.msk [vmem:[#allocation2 + $0x120] sm:$0xff] %vm261_vm2, %v1175_v20  ;;  %v1453_v40 = vld [vmem:[#allocation2 + $0x1f8] sm:$0xff]  ;;  %v1419_v43 = vld [vmem:[#allocation2 + $0xe8] sm:$0xff] }
 0x153   : >> { %10589 = vmatprep.mubr.msk.f32.mxu1 %vm261_vm2, %v1445_v37  ;;  %10538 = vmatprep.mubr.msk.f32.mxu0 %vm261_vm2, %v1411_v38  ;;  %1283 = vst.msk [vmem:[#allocation2 + $0x240] sm:$0xff] %vm261_vm2, %v1211_v31  ;;  %1248 = vst.msk [vmem:[#allocation2 + $0x128] sm:$0xff] %vm261_vm2, %v16742_v45  ;;  %v1454_v63 = vld [vmem:[#allocation2 + $0x200] sm:$0xff]  ;;  %v1420_v13 = vld [vmem:[#allocation2 + $0xf0] sm:$0xff] }
 0x154   : >> { %1284 = vst.msk [vmem:[#allocation2 + $0x248] sm:$0xff] %vm261_vm2, %v16743_v2  ;;  %1311 = vst.msk [vmem:[#allocation2 + $0x240] sm:$0xff] %vm261_vm2, %v16730_v28  ;;  %v1455_v32 = vld [vmem:[#allocation2 + $0x208] sm:$0xff]  ;;  %v1421_v35 = vld [vmem:[#allocation2 + $0xf8] sm:$0xff] }
 0x155   : >> { %1312 = vst.msk [vmem:[#allocation2 + $0x248] sm:$0xff] %vm261_vm2, %v16730_v28  ;;  %1249 = vst.msk [vmem:[#allocation2 + $0x130] sm:$0xff] %vm261_vm2, %v1177_v36  ;;  %v1456_v56 = vld [vmem:[#allocation2 + $0x210] sm:$0xff]  ;;  %v1422_v59 = vld [vmem:[#allocation2 + $0x100] sm:$0xff] }
 0x156   : >> { %10590 = vmatmul.mubr.msk.f32.gmra.mxu1 %vm261_vm2, %v1446_v52  ;;  %10539 = vmatmul.mubr.msk.f32.gmra.mxu0 %vm261_vm2, %v1412_v47  ;;  %1285 = vst.msk [vmem:[#allocation2 + $0x250] sm:$0xff] %vm261_vm2, %v1213_v62  ;;  %v1457_v48 = vld [vmem:[#allocation2 + $0x218] sm:$0xff]  ;;  %v1423_v51 = vld [vmem:[#allocation2 + $0x108] sm:$0xff]  ;;  %v1458_v53 = vld [vmem:[#allocation2 + $0x220] sm:$0xff] }
 0x157   : >> { %10592 = vmatprep.mubr.msk.f32.mxu1 %vm261_vm2, %v1447_v54  ;;  %10541 = vmatprep.mubr.msk.f32.mxu0 %vm261_vm2, %v1413_v21  ;;  %1313 = vst.msk [vmem:[#allocation2 + $0x250] sm:$0xff] %vm261_vm2, %v16730_v28  ;;  %v1424_v22 = vld [vmem:[#allocation2 + $0x110] sm:$0xff]  ;;  %v1459_v8 = vld [vmem:[#allocation2 + $0x228] sm:$0xff]  ;;  %v2751_v23 = vld [vmem:[#allocation2 + $0x19] sm:$0xff] }
 0x158   : >> { %v1425_v12 = vld [vmem:[#allocation2 + $0x118] sm:$0xff]  ;;  %v1460_v0 = vld [vmem:[#allocation2 + $0x230] sm:$0xff]  ;;  %v2752_v15 = vld [vmem:[#allocation2 + $0x21] sm:$0xff] }
 0x159   : >> { %v1426_v3 = vld [vmem:[#allocation2 + $0x120] sm:$0xff]  ;;  %v1461_v39 = vld [vmem:[#allocation2 + $0x238] sm:$0xff]  ;;  %v2753_v42 = vld [vmem:[#allocation2 + $0x29] sm:$0xff] }
 0x15a   : >> { %10593 = vmatmul.mubr.msk.f32.gmra.mxu1 %vm261_vm2, %v1448_v1  ;;  %10542 = vmatmul.mubr.msk.f32.gmra.mxu0 %vm261_vm2, %v1414_v11  ;;  %v1427_v44 = vld [vmem:[#allocation2 + $0x128] sm:$0xff]  ;;  %v1317_v30 = vld [vmem:[#allocation2 + $0x17] sm:$0xff]  ;;  %v1318_v10 = vld [vmem:[#allocation2 + $0x1f] sm:$0xff] }
 0x15b   : >> { %10595 = vmatprep.mubr.msk.f32.mxu1 %vm261_vm2, %v1449_v6  ;;  %10544 = vmatprep.mubr.msk.f32.mxu0 %vm261_vm2, %v1415_v9  ;;  %v1462_v26 = vld [vmem:[#allocation2 + $0x240] sm:$0xff]  ;;  %v2754_v37 = vld [vmem:[#allocation2 + $0x31] sm:$0xff]  ;;  %v2757_v29 = vld [vmem:[#allocation2 + $0x49] sm:$0xff] }
 0x15c   : >> { %v1428_v60 = vld [vmem:[#allocation2 + $0x130] sm:$0xff]  ;;  %v1463_v7 = vld [vmem:[#allocation2 + $0x248] sm:$0xff]  ;;  %v2755_v49 = vld [vmem:[#allocation2 + $0x39] sm:$0xff] }
 0x15d   : >> { %v1319_v38 = vld [vmem:[#allocation2 + $0x27] sm:$0xff]  ;;  %v13999_v57 = vld [vmem:[#allocation2 + $0x2f] sm:$0xff]  ;;  %v2759_v20 = vld [vmem:[#allocation2 + $0x59] sm:$0xff] }
 0x15e   : >> { %10596 = vmatmul.mubr.msk.f32.gmra.mxu1 %vm261_vm2, %v1450_v14  ;;  %10545 = vmatmul.mubr.msk.f32.gmra.mxu0 %vm261_vm2, %v1416_v18  ;;  %v1464_v34 = vld [vmem:[#allocation2 + $0x250] sm:$0xff]  ;;  %v2756_v17 = vld [vmem:[#allocation2 + $0x41] sm:$0xff]  ;;  %v2763_v2 = vld [vmem:[#allocation2 + $0x79] sm:$0xff] }
 0x15f   : >> { %10598 = vmatprep.mubr.msk.f32.mxu1 %vm261_vm2, %v1451_v24  ;;  %10547 = vmatprep.mubr.msk.f32.mxu0 %vm261_vm2, %v1417_v27  ;;  %v16746_v61 = vld [vmem:[#allocation24_spill] sm:$0xff]  ;;  %v14017_v46 = vld [vmem:[#allocation2 + $0x47] sm:$0xff]  ;;  %v14034_v54 = vld [vmem:[#allocation2 + $0x5f] sm:$0xff] }
 0x160   : >> { %v1214_v50 = vmul.f32 %v16746_v61, %v13685_v55  ;;  %v2758_v55 = vld [vmem:[#allocation2 + $0x51] sm:$0xff]  ;;  %v2760_v31 = vld [vmem:[#allocation2 + $0x61] sm:$0xff]  ;;  %v2761_v47 = vld [vmem:[#allocation2 + $0x69] sm:$0xff] }
 0x161   : >> { %v14024_v58 = vld [vmem:[#allocation2 + $0x4f] sm:$0xff]  ;;  %v14027_v52 = vld [vmem:[#allocation2 + $0x57] sm:$0xff]  ;;  %v14037_v45 = vld [vmem:[#allocation2 + $0x67] sm:$0xff] }
 0x162   : >> { %10599 = vmatmul.mubr.msk.f32.gmra.mxu1 %vm261_vm2, %v1452_v16  ;;  %10548 = vmatmul.mubr.msk.f32.gmra.mxu0 %vm261_vm2, %v1418_v19  ;;  %1286 = vst.msk [vmem:[#allocation2 + $0x258] sm:$0xff] %vm261_vm2, %v1214_v50  ;;  %v2762_v21 = vld [vmem:[#allocation2 + $0x71] sm:$0xff]  ;;  %v14040_v41 = vld [vmem:[%s13681_s13 + $0x28] sm:$0xff]  ;;  %v14062_v6 = vld [vmem:[#allocation2 + $0x7f] sm:$0xff] }
 0x163   : >> { %10601 = vmatprep.mubr.msk.f32.mxu1 %vm261_vm2, %v1453_v40  ;;  %10550 = vmatprep.mubr.msk.f32.mxu0 %vm261_vm2, %v1419_v43  ;;  %1314 = vst.msk [vmem:[#allocation2 + $0x258] sm:$0xff] %vm261_vm2, %v16730_v28  ;;  %v14048_v36 = vld [vmem:[#allocation2 + $0x6f] sm:$0xff]  ;;  %v2764_v25 = vld [vmem:[#allocation2 + $0x81] sm:$0xff]  ;;  %v14054_v1 = vld [vmem:[#allocation2 + $0x77] sm:$0xff] }
 0x164   : >> { %v14052_v62 = vld [vmem:[%s13681_s13 + $0x30] sm:$0xff]  ;;  %v14065_v14 = vld [vmem:[#allocation2 + $0x87] sm:$0xff]  ;;  %v2767_v18 = vld [vmem:[#allocation2 + $0x99] sm:$0xff] }
 0x165   : >> { %v2765_v11 = vld [vmem:[#allocation2 + $0x89] sm:$0xff]  ;;  %v2766_v9 = vld [vmem:[#allocation2 + $0x91] sm:$0xff]  ;;  %v2768_v27 = vld [vmem:[#allocation2 + $0xa1] sm:$0xff] }
 0x166   : >> { %10602 = vmatmul.mubr.msk.f32.gmra.mxu1 %vm261_vm2, %v1454_v63  ;;  %10551 = vmatmul.mubr.msk.f32.gmra.mxu0 %vm261_vm2, %v1420_v13  ;;  %v14072_v24 = vld [vmem:[#allocation2 + $0x8f] sm:$0xff]  ;;  %v14075_v16 = vld [vmem:[#allocation2 + $0x97] sm:$0xff]  ;;  %v14082_v40 = vld [vmem:[#allocation2 + $0x9f] sm:$0xff] }
 0x167   : >> { %10604 = vmatprep.mubr.msk.f32.mxu1 %vm261_vm2, %v1455_v32  ;;  %10553 = vmatprep.mubr.msk.f32.mxu0 %vm261_vm2, %v1421_v35  ;;  %v2769_v19 = vld [vmem:[#allocation2 + $0xa9] sm:$0xff]  ;;  %v2770_v43 = vld [vmem:[#allocation2 + $0xb1] sm:$0xff]  ;;  %v2771_v13 = vld [vmem:[#allocation2 + $0xb9] sm:$0xff] }
 0x168   : >> { %v14085_v63 = vld [vmem:[#allocation2 + $0xa7] sm:$0xff]  ;;  %v14092_v32 = vld [vmem:[#allocation2 + $0xaf] sm:$0xff]  ;;  %v14162_v50 = vld [vmem:[#allocation2 + $0x11f] sm:$0xff] }
 0x169   : >> { %v2772_v35 = vld [vmem:[#allocation2 + $0xc1] sm:$0xff]  ;;  %v2785_v61 = vld [vmem:[#allocation2 + $0x129] sm:$0xff] }
 0x16a   : >> { %10605 = vmatmul.mubr.msk.f32.gmra.mxu1 %vm261_vm2, %v1456_v56  ;;  %10554 = vmatmul.mubr.msk.f32.gmra.mxu0 %vm261_vm2, %v1422_v59  ;;  %v14095_v56 = vld [vmem:[#allocation2 + $0xb7] sm:$0xff]  ;;  %v2773_v59 = vld [vmem:[#allocation2 + $0xc9] sm:$0xff] }
 0x16b   : >> { %10607 = vmatprep.mubr.msk.f32.mxu1 %vm261_vm2, %v1457_v48  ;;  %10556 = vmatprep.mubr.msk.f32.mxu0 %vm261_vm2, %v1423_v51  ;;  %v14102_v48 = vld [vmem:[#allocation2 + $0xbf] sm:$0xff]  ;;  %v2774_v51 = vld [vmem:[#allocation2 + $0xd1] sm:$0xff] }
 0x16e   : >> { %10608 = vmatmul.mubr.msk.f32.gmra.mxu1 %vm261_vm2, %v1458_v53  ;;  %10557 = vmatmul.mubr.msk.f32.gmra.mxu0 %vm261_vm2, %v1424_v22  ;;  %v14105_v53 = vld [vmem:[#allocation2 + $0xc7] sm:$0xff]  ;;  %v2775_v22 = vld [vmem:[#allocation2 + $0xd9] sm:$0xff] }
 0x16f   : >> { %10610 = vmatprep.mubr.msk.f32.mxu1 %vm261_vm2, %v1459_v8  ;;  %10559 = vmatprep.mubr.msk.f32.mxu0 %vm261_vm2, %v1425_v12  ;;  %v14112_v8 = vld [vmem:[#allocation2 + $0xcf] sm:$0xff]  ;;  %v2776_v12 = vld [vmem:[#allocation2 + $0xe1] sm:$0xff] }
 0x172   : >> { %10611 = vmatmul.mubr.msk.f32.gmra.mxu1 %vm261_vm2, %v1460_v0  ;;  %10560 = vmatmul.mubr.msk.f32.gmra.mxu0 %vm261_vm2, %v1426_v3  ;;  %v14115_v0 = vld [vmem:[#allocation2 + $0xd7] sm:$0xff]  ;;  %v2777_v3 = vld [vmem:[#allocation2 + $0xe9] sm:$0xff] }
 0x173   : >> { %10613 = vmatprep.mubr.msk.f32.mxu1 %vm261_vm2, %v1461_v39  ;;  %10562 = vmatprep.mubr.msk.f32.mxu0 %vm261_vm2, %v1427_v44  ;;  %v14122_v39 = vld [vmem:[#allocation2 + $0xdf] sm:$0xff]  ;;  %v2778_v44 = vld [vmem:[#allocation2 + $0xf1] sm:$0xff] }
 0x176   : >> { %10614 = vmatmul.mubr.msk.f32.gmra.mxu1 %vm261_vm2, %v1462_v26  ;;  %10563 = vmatmul.mubr.msk.f32.gmra.mxu0 %vm261_vm2, %v1428_v60  ;;  %v14125_v26 = vld [vmem:[#allocation2 + $0xe7] sm:$0xff]  ;;  %v2779_v60 = vld [vmem:[#allocation2 + $0xf9] sm:$0xff] }
 0x177   : >> { %10616 = vmatprep.mubr.msk.f32.mxu1 %vm261_vm2, %v1463_v7  ;;  %10731 = vmatprep.mubr.msk.f32.mxu0 %vm261_vm2, %v2751_v23  ;;  %v14132_v7 = vld [vmem:[#allocation2 + $0xef] sm:$0xff]  ;;  %v2780_v23 = vld [vmem:[#allocation2 + $0x101] sm:$0xff] }
 0x17a   : >> { %10617 = vmatmul.mubr.msk.f32.gmra.mxu1 %vm261_vm2, %v1464_v34  ;;  %10732 = vmatmul.mubr.msk.f32.vlgmr.msra.gmra.mxu0 %vm261_vm2, %v2752_v15  ;;  %v14135_v34 = vld [vmem:[#allocation2 + $0xf7] sm:$0xff]  ;;  %v2781_v15 = vld [vmem:[#allocation2 + $0x109] sm:$0xff] }
 0x17b   : >> { %10621 = vmatprep.mubr.msk.f32.mxu1 %vm261_vm2, %v1317_v30  ;;  %10950 = vmatpush3.msra.mxu0 %v13712_v4  ;;  %v14003_v4 = vld [vmem:[#allocation2 + $0x37] sm:$0xff]  ;;  %v14142_v30 = vld [vmem:[#allocation2 + $0xff] sm:$0xff] }
 0x17c   : >> { %10734 = vmatprep.mubr.msk.f32.mxu0 %vm261_vm2, %v2753_v42  ;;  %11169 = vmatprep.subr.mxu0 %v14052_v62  ;;  %v2782_v42 = vld [vmem:[#allocation2 + $0x111] sm:$0xff] }
 0x17e   : >> { %10622 = vmatmul.mubr.msk.f32.vlgmr.msra.gmra.mxu1 %vm261_vm2, %v1318_v10  ;;  %10735 = vmatmul.mubr.msk.f32.gmra.mxu0 %vm261_vm2, %v2754_v37  ;;  %v14145_v10 = vld [vmem:[#allocation2 + $0x107] sm:$0xff]  ;;  %v2783_v37 = vld [vmem:[#allocation2 + $0x119] sm:$0xff] }
 0x17f   : >> { %10840 = vmatpush3.msra.mxu1 %v13762_v5  ;;  %10624 = vmatprep.mubr.msk.f32.mxu1 %vm261_vm2, %v1319_v38  ;;  %v14014_v5 = vld [vmem:[#allocation2 + $0x3f] sm:$0xff]  ;;  %v14152_v38 = vld [vmem:[#allocation2 + $0x10f] sm:$0xff] }
 0x180   : >> { %10737 = vmatprep.mubr.msk.f32.mxu0 %vm261_vm2, %v2755_v49  ;;  %11059 = vmatprep.subr.mxu1 %v14040_v41  ;;  %v2784_v49 = vld [vmem:[#allocation2 + $0x121] sm:$0xff] }
 0x182   : >> { %10625 = vmatmul.mubr.msk.f32.gmra.mxu1 %vm261_vm2, %v13999_v57  ;;  %10738 = vmatmul.mubr.msk.f32.gmra.mxu0 %vm261_vm2, %v2756_v17  ;;  %v14155_v17 = vld [vmem:[#allocation2 + $0x117] sm:$0xff] }
 0x183   : >> { %10627 = vmatprep.mubr.msk.f32.mxu1 %vm261_vm2, %v14003_v4  ;;  %10740 = vmatprep.mubr.msk.f32.mxu0 %vm261_vm2, %v2757_v29  ;;  %v2786_v29 = vld [vmem:[#allocation2 + $0x131] sm:$0xff] }
 0x186   : >> { %10628 = vmatmul.mubr.msk.f32.gmra.mxu1 %vm261_vm2, %v14014_v5  ;;  %10741 = vmatmul.mubr.msk.f32.gmra.mxu0 %vm261_vm2, %v2758_v55  ;;  %v14165_v55 = vld [vmem:[#allocation2 + $0x127] sm:$0xff] }
 0x187   : >> { %10630 = vmatprep.mubr.msk.f32.mxu1 %vm261_vm2, %v14017_v46  ;;  %10743 = vmatprep.mubr.msk.f32.mxu0 %vm261_vm2, %v2759_v20  ;;  %v2787_v20 = vld [vmem:[#allocation2 + $0x139] sm:$0xff] }
 0x18a   : >> { %10631 = vmatmul.mubr.msk.f32.gmra.mxu1 %vm261_vm2, %v14024_v58  ;;  %10744 = vmatmul.mubr.msk.f32.gmra.mxu0 %vm261_vm2, %v2760_v31  ;;  %v14172_v31 = vld [vmem:[#allocation2 + $0x12f] sm:$0xff] }
 0x18b   : >> { %10633 = vmatprep.mubr.msk.f32.mxu1 %vm261_vm2, %v14027_v52  ;;  %10746 = vmatprep.mubr.msk.f32.mxu0 %vm261_vm2, %v2761_v47  ;;  %v2788_v47 = vld [vmem:[#allocation2 + $0x141] sm:$0xff] }
 0x18e   : >> { %10634 = vmatmul.mubr.msk.f32.gmra.mxu1 %vm261_vm2, %v14034_v54  ;;  %10747 = vmatmul.mubr.msk.f32.gmra.mxu0 %vm261_vm2, %v2762_v21  ;;  %v14175_v21 = vld [vmem:[#allocation2 + $0x137] sm:$0xff] }
 0x18f   : >> { %10636 = vmatprep.mubr.msk.f32.mxu1 %vm261_vm2, %v14037_v45  ;;  %10749 = vmatprep.mubr.msk.f32.mxu0 %vm261_vm2, %v2763_v2  ;;  %v2789_v2 = vld [vmem:[#allocation2 + $0x149] sm:$0xff] }
 0x192   : >> { %10637 = vmatmul.mubr.msk.f32.gmra.mxu1 %vm261_vm2, %v14048_v36  ;;  %10750 = vmatmul.mubr.msk.f32.gmra.mxu0 %vm261_vm2, %v2764_v25  ;;  %v14182_v25 = vld [vmem:[#allocation2 + $0x13f] sm:$0xff] }
 0x193   : >> { %10639 = vmatprep.mubr.msk.f32.mxu1 %vm261_vm2, %v14054_v1  ;;  %10752 = vmatprep.mubr.msk.f32.mxu0 %vm261_vm2, %v2765_v11  ;;  %v2790_v11 = vld [vmem:[#allocation2 + $0x151] sm:$0xff] }
 0x196   : >> { %10640 = vmatmul.mubr.msk.f32.gmra.mxu1 %vm261_vm2, %v14062_v6  ;;  %10753 = vmatmul.mubr.msk.f32.gmra.mxu0 %vm261_vm2, %v2766_v9  ;;  %v14185_v9 = vld [vmem:[#allocation2 + $0x147] sm:$0xff] }
 0x197   : >> { %10642 = vmatprep.mubr.msk.f32.mxu1 %vm261_vm2, %v14065_v14  ;;  %10755 = vmatprep.mubr.msk.f32.mxu0 %vm261_vm2, %v2767_v18  ;;  %v2791_v18 = vld [vmem:[#allocation2 + $0x159] sm:$0xff] }
 0x19a   : >> { %10643 = vmatmul.mubr.msk.f32.gmra.mxu1 %vm261_vm2, %v14072_v24  ;;  %10756 = vmatmul.mubr.msk.f32.gmra.mxu0 %vm261_vm2, %v2768_v27  ;;  %v14192_v27 = vld [vmem:[#allocation2 + $0x14f] sm:$0xff] }
 0x19b   : >> { %10645 = vmatprep.mubr.msk.f32.mxu1 %vm261_vm2, %v14075_v16  ;;  %10758 = vmatprep.mubr.msk.f32.mxu0 %vm261_vm2, %v2769_v19  ;;  %v2792_v19 = vld [vmem:[#allocation2 + $0x161] sm:$0xff] }
 0x19e   : >> { %10646 = vmatmul.mubr.msk.f32.gmra.mxu1 %vm261_vm2, %v14082_v40  ;;  %10759 = vmatmul.mubr.msk.f32.gmra.mxu0 %vm261_vm2, %v2770_v43  ;;  %v14195_v43 = vld [vmem:[#allocation2 + $0x157] sm:$0xff] }
 0x19f   : >> { %10648 = vmatprep.mubr.msk.f32.mxu1 %vm261_vm2, %v14085_v63  ;;  %10761 = vmatprep.mubr.msk.f32.mxu0 %vm261_vm2, %v2771_v13  ;;  %v2793_v13 = vld [vmem:[#allocation2 + $0x169] sm:$0xff] }
 0x1a2   : >> { %10649 = vmatmul.mubr.msk.f32.gmra.mxu1 %vm261_vm2, %v14092_v32  ;;  %10762 = vmatmul.mubr.msk.f32.gmra.mxu0 %vm261_vm2, %v2772_v35  ;;  %v14202_v35 = vld [vmem:[#allocation2 + $0x15f] sm:$0xff] }
 0x1a3   : >> { %10651 = vmatprep.mubr.msk.f32.mxu1 %vm261_vm2, %v14095_v56  ;;  %10764 = vmatprep.mubr.msk.f32.mxu0 %vm261_vm2, %v2773_v59  ;;  %v2794_v59 = vld [vmem:[#allocation2 + $0x171] sm:$0xff] }
 0x1a6   : >> { %10652 = vmatmul.mubr.msk.f32.gmra.mxu1 %vm261_vm2, %v14102_v48  ;;  %10765 = vmatmul.mubr.msk.f32.gmra.mxu0 %vm261_vm2, %v2774_v51  ;;  %v14205_v51 = vld [vmem:[#allocation2 + $0x167] sm:$0xff] }
 0x1a7   : >> { %10654 = vmatprep.mubr.msk.f32.mxu1 %vm261_vm2, %v14105_v53  ;;  %10767 = vmatprep.mubr.msk.f32.mxu0 %vm261_vm2, %v2775_v22  ;;  %16747 = vst [vmem:[#allocation18_spill] sm:$0xff] %v14205_v51  ;;  %v2795_v22 = vld [vmem:[#allocation2 + $0x179] sm:$0xff] }
 0x1aa   : >> { %10655 = vmatmul.mubr.msk.f32.gmra.mxu1 %vm261_vm2, %v14112_v8  ;;  %10768 = vmatmul.mubr.msk.f32.gmra.mxu0 %vm261_vm2, %v2776_v12  ;;  %v14212_v12 = vld [vmem:[#allocation2 + $0x16f] sm:$0xff] }
 0x1ab   : >> { %10657 = vmatprep.mubr.msk.f32.mxu1 %vm261_vm2, %v14115_v0  ;;  %10770 = vmatprep.mubr.msk.f32.mxu0 %vm261_vm2, %v2777_v3  ;;  %16748 = vst [vmem:[#allocation19_spill] sm:$0xff] %v14212_v12  ;;  %v2796_v3 = vld [vmem:[#allocation2 + $0x181] sm:$0xff] }
 0x1ae   : >> { %10658 = vmatmul.mubr.msk.f32.gmra.mxu1 %vm261_vm2, %v14122_v39  ;;  %10771 = vmatmul.mubr.msk.f32.gmra.mxu0 %vm261_vm2, %v2778_v44  ;;  %v14215_v44 = vld [vmem:[#allocation2 + $0x177] sm:$0xff] }
 0x1af   : >> { %10660 = vmatprep.mubr.msk.f32.mxu1 %vm261_vm2, %v14125_v26  ;;  %10773 = vmatprep.mubr.msk.f32.mxu0 %vm261_vm2, %v2779_v60  ;;  %16749 = vst [vmem:[#allocation20_spill] sm:$0xff] %v14215_v44  ;;  %v2797_v60 = vld [vmem:[#allocation2 + $0x189] sm:$0xff] }
 0x1b2   : >> { %10661 = vmatmul.mubr.msk.f32.gmra.mxu1 %vm261_vm2, %v14132_v7  ;;  %10774 = vmatmul.mubr.msk.f32.gmra.mxu0 %vm261_vm2, %v2780_v23  ;;  %v14222_v23 = vld [vmem:[#allocation2 + $0x17f] sm:$0xff] }
 0x1b3   : >> { %10663 = vmatprep.mubr.msk.f32.mxu1 %vm261_vm2, %v14135_v34  ;;  %10776 = vmatprep.mubr.msk.f32.mxu0 %vm261_vm2, %v2781_v15  ;;  %16750 = vst [vmem:[#allocation21_spill] sm:$0xff] %v14222_v23  ;;  %v2798_v15 = vld [vmem:[#allocation2 + $0x191] sm:$0xff] }
 0x1b6   : >> { %10664 = vmatmul.mubr.msk.f32.gmra.mxu1 %vm261_vm2, %v14142_v30  ;;  %10777 = vmatmul.mubr.msk.f32.gmra.mxu0 %vm261_vm2, %v2782_v42  ;;  %v14225_v42 = vld [vmem:[#allocation2 + $0x187] sm:$0xff] }
 0x1b7   : >> { %10666 = vmatprep.mubr.msk.f32.mxu1 %vm261_vm2, %v14145_v10  ;;  %10779 = vmatprep.mubr.msk.f32.mxu0 %vm261_vm2, %v2783_v37  ;;  %16751 = vst [vmem:[#allocation17_spill] sm:$0xff] %v14225_v42  ;;  %v2799_v37 = vld [vmem:[#allocation2 + $0x199] sm:$0xff] }
 0x1ba   : >> { %10667 = vmatmul.mubr.msk.f32.gmra.mxu1 %vm261_vm2, %v14152_v38  ;;  %10780 = vmatmul.mubr.msk.f32.gmra.mxu0 %vm261_vm2, %v2784_v49  ;;  %v14232_v49 = vld [vmem:[#allocation2 + $0x18f] sm:$0xff] }
 0x1bb   : >> { %10669 = vmatprep.mubr.msk.f32.mxu1 %vm261_vm2, %v14155_v17  ;;  %10782 = vmatprep.mubr.msk.f32.mxu0 %vm261_vm2, %v2785_v61  ;;  %16752 = vst [vmem:[#allocation15_spill] sm:$0xff] %v14232_v49  ;;  %v2800_v61 = vld [vmem:[#allocation2 + $0x1a1] sm:$0xff] }
 0x1be   : >> { %10670 = vmatmul.mubr.msk.f32.gmra.mxu1 %vm261_vm2, %v14162_v50  ;;  %10783 = vmatmul.mubr.msk.f32.gmra.mxu0 %vm261_vm2, %v2786_v29  ;;  %v14235_v29 = vld [vmem:[#allocation2 + $0x197] sm:$0xff] }
 0x1bf   : >> { %10672 = vmatprep.mubr.msk.f32.mxu1 %vm261_vm2, %v14165_v55  ;;  %10785 = vmatprep.mubr.msk.f32.mxu0 %vm261_vm2, %v2787_v20  ;;  %16753 = vst [vmem:[#allocation16_spill] sm:$0xff] %v14235_v29  ;;  %v2801_v20 = vld [vmem:[#allocation2 + $0x1a9] sm:$0xff] }
 0x1c2   : >> { %10673 = vmatmul.mubr.msk.f32.gmra.mxu1 %vm261_vm2, %v14172_v31  ;;  %10786 = vmatmul.mubr.msk.f32.gmra.mxu0 %vm261_vm2, %v2788_v47  ;;  %v14242_v47 = vld [vmem:[#allocation2 + $0x19f] sm:$0xff] }
 0x1c3   : >> { %10675 = vmatprep.mubr.msk.f32.mxu1 %vm261_vm2, %v14175_v21  ;;  %10788 = vmatprep.mubr.msk.f32.mxu0 %vm261_vm2, %v2789_v2  ;;  %16754 = vst [vmem:[#allocation13_spill] sm:$0xff] %v14242_v47  ;;  %v2802_v2 = vld [vmem:[#allocation2 + $0x1b1] sm:$0xff] }
 0x1c6   : >> { %10676 = vmatmul.mubr.msk.f32.gmra.mxu1 %vm261_vm2, %v14182_v25  ;;  %10789 = vmatmul.mubr.msk.f32.gmra.mxu0 %vm261_vm2, %v2790_v11  ;;  %v14245_v11 = vld [vmem:[#allocation2 + $0x1a7] sm:$0xff] }
 0x1c7   : >> { %10678 = vmatprep.mubr.msk.f32.mxu1 %vm261_vm2, %v14185_v9  ;;  %10791 = vmatprep.mubr.msk.f32.mxu0 %vm261_vm2, %v2791_v18  ;;  %16755 = vst [vmem:[#allocation14_spill] sm:$0xff] %v14245_v11  ;;  %v2803_v18 = vld [vmem:[#allocation2 + $0x1b9] sm:$0xff] }
 0x1ca   : >> { %10679 = vmatmul.mubr.msk.f32.gmra.mxu1 %vm261_vm2, %v14192_v27  ;;  %10792 = vmatmul.mubr.msk.f32.gmra.mxu0 %vm261_vm2, %v2792_v19  ;;  %v14252_v19 = vld [vmem:[#allocation2 + $0x1af] sm:$0xff] }
 0x1cb   : >> { %10681 = vmatprep.mubr.msk.f32.mxu1 %vm261_vm2, %v14195_v43  ;;  %10794 = vmatprep.mubr.msk.f32.mxu0 %vm261_vm2, %v2793_v13  ;;  %16756 = vst [vmem:[#allocation11_spill] sm:$0xff] %v14252_v19  ;;  %v2804_v13 = vld [vmem:[#allocation2 + $0x1c1] sm:$0xff] }
 0x1ce   : >> { %10682 = vmatmul.mubr.msk.f32.gmra.mxu1 %vm261_vm2, %v14202_v35  ;;  %10795 = vmatmul.mubr.msk.f32.gmra.mxu0 %vm261_vm2, %v2794_v59  ;;  %v14255_v59 = vld [vmem:[#allocation2 + $0x1b7] sm:$0xff] }
 0x1cf   : >> { %10684 = vmatprep.mubr.msk.f32.mxu1 %vm261_vm2, %v14205_v51  ;;  %10797 = vmatprep.mubr.msk.f32.mxu0 %vm261_vm2, %v2795_v22  ;;  %16757 = vst [vmem:[#allocation12_spill] sm:$0xff] %v14255_v59  ;;  %v2805_v22 = vld [vmem:[#allocation2 + $0x1c9] sm:$0xff]  ;;  %v4331_v51 = vld [vmem:[#allocation2 + $0x40] sm:$0xff] }
 0x1d2   : >> { %10685 = vmatmul.mubr.msk.f32.gmra.mxu1 %vm261_vm2, %v14212_v12  ;;  %10798 = vmatmul.mubr.msk.f32.gmra.mxu0 %vm261_vm2, %v2796_v3  ;;  %v14262_v3 = vld [vmem:[#allocation2 + $0x1bf] sm:$0xff] }
 0x1d3   : >> { %10687 = vmatprep.mubr.msk.f32.mxu1 %vm261_vm2, %v14215_v44  ;;  %10800 = vmatprep.mubr.msk.f32.mxu0 %vm261_vm2, %v2797_v60  ;;  %16758 = vst [vmem:[#allocation9_spill] sm:$0xff] %v14262_v3  ;;  %v2806_v60 = vld [vmem:[#allocation2 + $0x1d1] sm:$0xff] }
 0x1d4   : >> { %v4329_v44 = vld [vmem:[#allocation2 + $0x30] sm:$0xff] }
 0x1d6   : >> { %10688 = vmatmul.mubr.msk.f32.gmra.mxu1 %vm261_vm2, %v14222_v23  ;;  %10801 = vmatmul.mubr.msk.f32.gmra.mxu0 %vm261_vm2, %v2798_v15  ;;  %v14265_v15 = vld [vmem:[#allocation2 + $0x1c7] sm:$0xff] }
 0x1d7   : >> { %10690 = vmatprep.mubr.msk.f32.mxu1 %vm261_vm2, %v14225_v42  ;;  %10803 = vmatprep.mubr.msk.f32.mxu0 %vm261_vm2, %v2799_v37  ;;  %16759 = vst [vmem:[#allocation10_spill] sm:$0xff] %v14265_v15  ;;  %v2807_v37 = vld [vmem:[#allocation2 + $0x1d9] sm:$0xff]  ;;  %v2821_v42 = vld [vmem:[#allocation2 + $0x249] sm:$0xff] }
 0x1da   : >> { %10691 = vmatmul.mubr.msk.f32.gmra.mxu1 %vm261_vm2, %v14232_v49  ;;  %10804 = vmatmul.mubr.msk.f32.gmra.mxu0 %vm261_vm2, %v2800_v61  ;;  %v14272_v61 = vld [vmem:[#allocation2 + $0x1cf] sm:$0xff] }
 0x1db   : >> { %10693 = vmatprep.mubr.msk.f32.mxu1 %vm261_vm2, %v14235_v29  ;;  %10806 = vmatprep.mubr.msk.f32.mxu0 %vm261_vm2, %v2801_v20  ;;  %16760 = vst [vmem:[#allocation7_spill] sm:$0xff] %v14272_v61  ;;  %v2808_v20 = vld [vmem:[#allocation2 + $0x1e1] sm:$0xff]  ;;  %v2819_v29 = vld [vmem:[#allocation2 + $0x239] sm:$0xff] }
 0x1de   : >> { %10694 = vmatmul.mubr.msk.f32.gmra.mxu1 %vm261_vm2, %v14242_v47  ;;  %10807 = vmatmul.mubr.msk.f32.gmra.mxu0 %vm261_vm2, %v2802_v2  ;;  %v14275_v2 = vld [vmem:[#allocation2 + $0x1d7] sm:$0xff] }
 0x1df   : >> { %10696 = vmatprep.mubr.msk.f32.mxu1 %vm261_vm2, %v14245_v11  ;;  %10809 = vmatprep.mubr.msk.f32.mxu0 %vm261_vm2, %v2803_v18  ;;  %16761 = vst [vmem:[#allocation8_spill] sm:$0xff] %v14275_v2  ;;  %v2809_v18 = vld [vmem:[#allocation2 + $0x1e9] sm:$0xff] }
 0x1e0   : >> { %v2817_v11 = vld [vmem:[#allocation2 + $0x229] sm:$0xff] }
 0x1e2   : >> { %10697 = vmatmul.mubr.msk.f32.gmra.mxu1 %vm261_vm2, %v14252_v19  ;;  %10810 = vmatmul.mubr.msk.f32.gmra.mxu0 %vm261_vm2, %v2804_v13  ;;  %v14282_v13 = vld [vmem:[#allocation2 + $0x1df] sm:$0xff] }
 0x1e3   : >> { %10699 = vmatprep.mubr.msk.f32.mxu1 %vm261_vm2, %v14255_v59  ;;  %10812 = vmatprep.mubr.msk.f32.mxu0 %vm261_vm2, %v2805_v22  ;;  %16762 = vst [vmem:[#allocation5_spill] sm:$0xff] %v14282_v13  ;;  %v2810_v22 = vld [vmem:[#allocation2 + $0x1f1] sm:$0xff] }
 0x1e6   : >> { %10700 = vmatmul.mubr.msk.f32.gmra.mxu1 %vm261_vm2, %v14262_v3  ;;  %10813 = vmatmul.mubr.msk.f32.gmra.mxu0 %vm261_vm2, %v2806_v60  ;;  %v14285_v60 = vld [vmem:[#allocation2 + $0x1e7] sm:$0xff]  ;;  %v2815_v3 = vld [vmem:[#allocation2 + $0x219] sm:$0xff] }
 0x1e7   : >> { %10702 = vmatprep.mubr.msk.f32.mxu1 %vm261_vm2, %v14265_v15  ;;  %10815 = vmatprep.mubr.msk.f32.mxu0 %vm261_vm2, %v2807_v37  ;;  %16763 = vst [vmem:[#allocation32_spill] sm:$0xff] %v14285_v60  ;;  %v2811_v37 = vld [vmem:[#allocation2 + $0x1f9] sm:$0xff] }
 0x1ea   : >> { %10703 = vmatmul.mubr.msk.f32.gmra.mxu1 %vm261_vm2, %v14272_v61  ;;  %10816 = vmatmul.mubr.msk.f32.gmra.mxu0 %vm261_vm2, %v2808_v20  ;;  %v14294_v20 = vld [vmem:[#allocation2 + $0x1ef] sm:$0xff] }
 0x1eb   : >> { %10705 = vmatprep.mubr.msk.f32.mxu1 %vm261_vm2, %v14275_v2  ;;  %10818 = vmatprep.mubr.msk.f32.mxu0 %vm261_vm2, %v2809_v18  ;;  %16764 = vst [vmem:[#allocation39_spill] sm:$0xff] %v14294_v20  ;;  %v2812_v2 = vld [vmem:[#allocation2 + $0x201] sm:$0xff]  ;;  %v14297_v18 = vld [vmem:[#allocation2 + $0x1f7] sm:$0xff]  ;;  %v2813_v61 = vld [vmem:[#allocation2 + $0x209] sm:$0xff] }
 0x1ec   : >> { %v14290_v15 = vpop.f32.mrf.mxu0  ;;  %16765 = vst [vmem:[#allocation31_spill] sm:$0xff] %v14297_v18 }
 0x1ee   : >> { %10706 = vmatmul.mubr.msk.f32.gmra.mxu1 %vm261_vm2, %v14282_v13  ;;  %10819 = vmatmul.mubr.msk.f32.gmra.mxu0 %vm261_vm2, %v2810_v22  ;;  %v14302_v13 = vpop.f32.mrf.mxu0  ;;  %v14306_v22 = vld [vmem:[#allocation2 + $0x1ff] sm:$0xff] }
 0x1ef   : >> { %10708 = vmatprep.mubr.msk.f32.mxu1 %vm261_vm2, %v14285_v60  ;;  %10821 = vmatprep.mubr.msk.f32.mxu0 %vm261_vm2, %v2811_v37  ;;  %16766 = vst [vmem:[#allocation38_spill] sm:$0xff] %v14306_v22  ;;  %v2814_v60 = vld [vmem:[#allocation2 + $0x211] sm:$0xff]  ;;  %v14309_v37 = vld [vmem:[#allocation2 + $0x207] sm:$0xff] }
 0x1f0   : >> { %16767 = vst [vmem:[#allocation30_spill] sm:$0xff] %v14309_v37 }
 0x1f2   : >> { %10709 = vmatmul.mubr.msk.f32.gmra.mxu1 %vm261_vm2, %v14294_v20  ;;  %10822 = vmatmul.mubr.msk.f32.gmra.mxu0 %vm261_vm2, %v2812_v2  ;;  %v14320_v2 = vld [vmem:[#allocation2 + $0x20f] sm:$0xff] }
 0x1f3   : >> { %10711 = vmatprep.mubr.msk.f32.mxu1 %vm261_vm2, %v14297_v18  ;;  %10824 = vmatprep.mubr.msk.f32.mxu0 %vm261_vm2, %v2813_v61  ;;  %16769 = vst [vmem:[#allocation29_spill] sm:$0xff] %v14320_v2  ;;  %v2816_v61 = vld [vmem:[#allocation2 + $0x221] sm:$0xff] }
 0x1f6   : >> { %v14311_v59 = vpop.f32.mrf.mxu1  ;;  %10712 = vmatmul.mubr.msk.f32.gmra.mxu1 %vm261_vm2, %v14306_v22  ;;  %v14315_v20 = vpop.f32.mrf.mxu0  ;;  %10825 = vmatmul.mubr.msk.f32.gmra.mxu0 %vm261_vm2, %v2814_v60 }
 0x1f7   : >> { %16768 = vst [vmem:[#allocation37_spill] sm:$0xff] %v14311_v59  ;;  %10714 = vmatprep.mubr.msk.f32.mxu1 %vm261_vm2, %v14309_v37  ;;  %10827 = vmatprep.mubr.msk.f32.mxu0 %vm261_vm2, %v2815_v3  ;;  %v14327_v59 = vld [vmem:[#allocation2 + $0x217] sm:$0xff]  ;;  %v14338_v3 = vld [vmem:[#allocation2 + $0x21f] sm:$0xff] }
 0x1f8   : >> { %v14323_v18 = vpop.f32.mrf.mxu1  ;;  %v14325_v19 = vpop.f32.mrf.mxu0  ;;  %16771 = vst [vmem:[#allocation28_spill] sm:$0xff] %v14327_v59  ;;  %16773 = vst [vmem:[#allocation27_spill] sm:$0xff] %v14338_v3 }
 0x1f9   : >> { %16770 = vst [vmem:[#allocation36_spill] sm:$0xff] %v14323_v18  ;;  %v2818_v18 = vld [vmem:[#allocation2 + $0x231] sm:$0xff] }
 0x1fa   : >> { %v14329_v22 = vpop.f32.mrf.mxu1  ;;  %10715 = vmatmul.mubr.msk.f32.gmra.mxu1 %vm261_vm2, %v14320_v2  ;;  %v14333_v60 = vpop.f32.mrf.mxu0  ;;  %10828 = vmatmul.mubr.msk.f32.gmra.mxu0 %vm261_vm2, %v2816_v61 }
 0x1fb   : >> { %16772 = vst [vmem:[#allocation35_spill] sm:$0xff] %v14329_v22  ;;  %10717 = vmatprep.mubr.msk.f32.mxu1 %vm261_vm2, %v14327_v59  ;;  %10830 = vmatprep.mubr.msk.f32.mxu0 %vm261_vm2, %v2817_v11  ;;  %v14345_v22 = vld [vmem:[#allocation2 + $0x227] sm:$0xff]  ;;  %v14356_v11 = vld [vmem:[#allocation2 + $0x22f] sm:$0xff] }
 0x1fc   : >> { %v14341_v37 = vpop.f32.mrf.mxu1  ;;  %v14343_v47 = vpop.f32.mrf.mxu0  ;;  %16775 = vst [vmem:[#allocation26_spill] sm:$0xff] %v14345_v22  ;;  %16777 = vst [vmem:[#allocation25_spill] sm:$0xff] %v14356_v11 }
 0x1fd   : >> { %16774 = vst [vmem:[#allocation34_spill] sm:$0xff] %v14341_v37  ;;  %v2820_v37 = vld [vmem:[#allocation2 + $0x241] sm:$0xff] }
 0x1fe   : >> { %v14347_v2 = vpop.f32.mrf.mxu1  ;;  %10718 = vmatmul.mubr.msk.f32.gmra.mxu1 %vm261_vm2, %v14338_v3  ;;  %v14351_v61 = vpop.f32.mrf.mxu0  ;;  %10831 = vmatmul.mubr.msk.f32.gmra.mxu0 %vm261_vm2, %v2818_v18 }
 0x1ff   : >> { %16776 = vst [vmem:[#allocation33_spill] sm:$0xff] %v14347_v2  ;;  %10720 = vmatprep.mubr.msk.f32.mxu1 %vm261_vm2, %v14345_v22  ;;  %10833 = vmatprep.mubr.msk.f32.mxu0 %vm261_vm2, %v2819_v29  ;;  %v14363_v2 = vld [vmem:[#allocation2 + $0x237] sm:$0xff]  ;;  %v14374_v29 = vld [vmem:[#allocation2 + $0x23f] sm:$0xff] }
 0x200   : >> { %v14359_v59 = vpop.f32.mrf.mxu1  ;;  %v14361_v49 = vpop.f32.mrf.mxu0  ;;  %16779 = vst [vmem:[#allocation40_spill] sm:$0xff] %v14363_v2  ;;  %16781 = vst [vmem:[#allocation42_spill] sm:$0xff] %v14374_v29 }
 0x201   : >> { %16778 = vst [vmem:[#allocation24_spill] sm:$0xff] %v14359_v59  ;;  %v2822_v59 = vld [vmem:[#allocation2 + $0x251] sm:$0xff] }
 0x202   : >> { %v14365_v3 = vpop.f32.mrf.mxu1  ;;  %10721 = vmatmul.mubr.msk.f32.gmra.mxu1 %vm261_vm2, %v14356_v11  ;;  %v14369_v18 = vpop.f32.mrf.mxu0  ;;  %10834 = vmatmul.mubr.msk.f32.gmra.mxu0 %vm261_vm2, %v2820_v37 }
 0x203   : >> { %16780 = vst [vmem:[#allocation41_spill] sm:$0xff] %v14365_v3  ;;  %10723 = vmatprep.mubr.msk.f32.mxu1 %vm261_vm2, %v14363_v2  ;;  %10836 = vmatprep.mubr.msk.f32.mxu0 %vm261_vm2, %v2821_v42  ;;  %v14381_v3 = vld [vmem:[#allocation2 + $0x247] sm:$0xff]  ;;  %v1388_v42 = vld [vmem:[#allocation2 + $0x24f] sm:$0xff] }
 0x204   : >> { %v14377_v22 = vpop.f32.mrf.mxu1  ;;  %v14379_v23 = vpop.f32.mrf.mxu0  ;;  %16783 = vst [vmem:[#allocation44_spill] sm:$0xff] %v14381_v3 }
 0x205   : >> { %16782 = vst [vmem:[#allocation43_spill] sm:$0xff] %v14377_v22  ;;  %v4330_v22 = vld [vmem:[#allocation2 + $0x38] sm:$0xff] }
 0x206   : >> { %v14383_v11 = vpop.f32.mrf.mxu1  ;;  %10724 = vmatmul.mubr.msk.f32.gmra.mxu1 %vm261_vm2, %v14374_v29  ;;  %v14387_v37 = vpop.f32.mrf.mxu0  ;;  %10837 = vmatmul.mubr.msk.f32.gmra.mxu0 %vm261_vm2, %v2822_v59 }
 0x207   : >> { %16784 = vst [vmem:[#allocation45_spill] sm:$0xff] %v14383_v11  ;;  %10726 = vmatprep.mubr.msk.f32.mxu1 %vm261_vm2, %v14381_v3  ;;  %10951 = vmatprep.mubr.msk.f32.mxu0 %vm261_vm2, %v4329_v44  ;;  %v4332_v44 = vld [vmem:[#allocation2 + $0x48] sm:$0xff]  ;;  %v4333_v3 = vld [vmem:[#allocation2 + $0x50] sm:$0xff] }
 0x208   : >> { %v14393_v2 = vpop.f32.mrf.mxu1  ;;  %v14395_v12 = vpop.f32.mrf.mxu0 }
 0x209   : >> { %16785 = vst [vmem:[#allocation46_spill] sm:$0xff] %v14393_v2 }
 0x20a   : >> { %v14397_v11 = vpop.f32.mrf.mxu1  ;;  %10727 = vmatmul.mubr.msk.f32.gmra.mxu1 %vm261_vm2, %v1388_v42  ;;  %v14400_v29 = vpop.f32.mrf.mxu0  ;;  %10952 = vmatmul.mubr.msk.f32.vlgmr.msra.gmra.mxu0 %vm261_vm2, %v4330_v22 }
 0x20b   : >> { %16786 = vst [vmem:[#allocation47_spill] sm:$0xff] %v14397_v11  ;;  %10841 = vmatprep.mubr.msk.f32.mxu1 %vm261_vm2, %v13999_v57  ;;  %11170 = vmatpush3.msra.mxu0 %v14052_v62  ;;  %v4334_v57 = vld [vmem:[#allocation2 + $0x58] sm:$0xff]  ;;  %v16789_v62 = vld [vmem:[#allocation22_spill] sm:$0xff] }
 0x20c   : >> { %v14406_v59 = vpop.f32.mrf.mxu1  ;;  %v14408_v2 = vpop.f32.mrf.mxu0  ;;  %10954 = vmatprep.mubr.msk.f32.mxu0 %vm261_vm2, %v4331_v51  ;;  %v1216_v22 = vmul.f32 %v16789_v62, %v13699_v33 }
 0x20d   : >> { %16787 = vst [vmem:[#allocation48_spill] sm:$0xff] %v14406_v59 }
 0x20e   : >> { %v14411_v11 = vpop.f32.mrf.mxu1  ;;  %10842 = vmatmul.mubr.msk.f32.vlgmr.msra.gmra.mxu1 %vm261_vm2, %v14003_v4  ;;  %v14415_v42 = vpop.f32.mrf.mxu0  ;;  %10955 = vmatmul.mubr.msk.f32.gmra.mxu0 %vm261_vm2, %v4332_v44  ;;  %v4335_v4 = vld [vmem:[#allocation2 + $0x60] sm:$0xff]  ;;  %1288 = vst.msk [vmem:[#allocation2 + $0x268] sm:$0xff] %vm261_vm2, %v1216_v22  ;;  %v4337_v44 = vld [vmem:[#allocation2 + $0x70] sm:$0xff] }
 0x20f   : >> { %16788 = vst [vmem:[#allocation49_spill] sm:$0xff] %v14411_v11  ;;  %11060 = vmatpush3.msra.mxu1 %v14040_v41  ;;  %10844 = vmatprep.mubr.msk.f32.mxu1 %vm261_vm2, %v14014_v5  ;;  %v16791_v11 = vld [vmem:[#allocation23_spill] sm:$0xff]  ;;  %1316 = vst.msk [vmem:[#allocation2 + $0x268] sm:$0xff] %vm261_vm2, %v16730_v28  ;;  %v4339_v22 = vld [vmem:[#allocation2 + $0x80] sm:$0xff] }
 0x210   : >> { %v14423_v51 = vpop.f32.mrf.mxu1  ;;  %v14425_v59 = vpop.f32.mrf.mxu0  ;;  %10957 = vmatprep.mubr.msk.f32.mxu0 %vm261_vm2, %v4333_v3  ;;  %1287 = vst.msk [vmem:[#allocation2 + $0x260] sm:$0xff] %vm261_vm2, %v16791_v11  ;;  %v4336_v41 = vld [vmem:[#allocation2 + $0x68] sm:$0xff] }
 0x211   : >> { %16790 = vst [vmem:[#allocation22_spill] sm:$0xff] %v14423_v51  ;;  %1315 = vst.msk [vmem:[#allocation2 + $0x260] sm:$0xff] %vm261_vm2, %v16730_v28  ;;  %v4338_v28 = vld [vmem:[#allocation2 + $0x78] sm:$0xff] }
 0x212   : >> { %v14433_v5 = vpop.f32.mrf.mxu1  ;;  %10845 = vmatmul.mubr.msk.f32.gmra.mxu1 %vm261_vm2, %v14017_v46  ;;  %v14437_v33 = vpop.f32.mrf.mxu0  ;;  %10958 = vmatmul.mubr.msk.f32.gmra.mxu0 %vm261_vm2, %v4334_v57 }
 0x213   : >> { %16792 = vst [vmem:[#allocation23_spill] sm:$0xff] %v14433_v5  ;;  %10847 = vmatprep.mubr.msk.f32.mxu1 %vm261_vm2, %v14024_v58  ;;  %10960 = vmatprep.mubr.msk.f32.mxu0 %vm261_vm2, %v4335_v4 }
 0x214   : >> { %v14445_v3 = vpop.f32.mrf.mxu1  ;;  %v14447_v11 = vpop.f32.mrf.mxu0 }
 0x215   : >> { %16793 = vst [vmem:[#allocation50_spill] sm:$0xff] %v14445_v3  ;;  %v4345_v3 = vld [vmem:[#allocation2 + $0xb0] sm:$0xff] }
 0x216   : >> { %v14449_v62 = vpop.f32.mrf.mxu1  ;;  %10848 = vmatmul.mubr.msk.f32.gmra.mxu1 %vm261_vm2, %v14027_v52  ;;  %v14453_v46 = vpop.f32.mrf.mxu0  ;;  %10961 = vmatmul.mubr.msk.f32.gmra.mxu0 %vm261_vm2, %v4336_v41 }
 0x217   : >> { %16794 = vst [vmem:[#allocation51_spill] sm:$0xff] %v14449_v62  ;;  %10850 = vmatprep.mubr.msk.f32.mxu1 %vm261_vm2, %v14034_v54  ;;  %10963 = vmatprep.mubr.msk.f32.mxu0 %vm261_vm2, %v4337_v44  ;;  %v4340_v54 = vld [vmem:[#allocation2 + $0x88] sm:$0xff] }
 0x218   : >> { %v14459_v58 = vpop.f32.mrf.mxu1  ;;  %v14461_v57 = vpop.f32.mrf.mxu0 }
 0x219   : >> { %16795 = vst [vmem:[#allocation52_spill] sm:$0xff] %v14459_v58 }
 0x21a   : >> { %v14463_v4 = vpop.f32.mrf.mxu1  ;;  %10851 = vmatmul.mubr.msk.f32.gmra.mxu1 %vm261_vm2, %v14037_v45  ;;  %v14467_v52 = vpop.f32.mrf.mxu0  ;;  %10964 = vmatmul.mubr.msk.f32.gmra.mxu0 %vm261_vm2, %v4338_v28  ;;  %v14488_v28 = vld [vmem:[%s13681_s13 + $0x38] sm:$0xff] }
 0x21b   : >> { %16796 = vst [vmem:[#allocation53_spill] sm:$0xff] %v14463_v4  ;;  %10853 = vmatprep.mubr.msk.f32.mxu1 %vm261_vm2, %v14048_v36  ;;  %10966 = vmatprep.mubr.msk.f32.mxu0 %vm261_vm2, %v4339_v22  ;;  %v4341_v4 = vld [vmem:[#allocation2 + $0x90] sm:$0xff]  ;;  %v4342_v36 = vld [vmem:[#allocation2 + $0x98] sm:$0xff]  ;;  %16799 = vst [vmem:[#allocation56_spill] sm:$0xff] %v14488_v28 }
 0x21c   : >> { %v14473_v41 = vpop.f32.mrf.mxu1  ;;  %v14475_v44 = vpop.f32.mrf.mxu0  ;;  %11279 = vmatprep.subr.mxu1 %v14488_v28 }
 0x21d   : >> { %16797 = vst [vmem:[#allocation54_spill] sm:$0xff] %v14473_v41 }
 0x21e   : >> { %v14477_v58 = vpop.f32.mrf.mxu1  ;;  %10854 = vmatmul.mubr.msk.f32.gmra.mxu1 %vm261_vm2, %v14054_v1  ;;  %v14481_v45 = vpop.f32.mrf.mxu0  ;;  %10967 = vmatmul.mubr.msk.f32.gmra.mxu0 %vm261_vm2, %v4340_v54  ;;  %v14496_v1 = vld [vmem:[%s13681_s13 + $0x40] sm:$0xff] }
 0x21f   : >> { %16798 = vst [vmem:[#allocation55_spill] sm:$0xff] %v14477_v58  ;;  %10856 = vmatprep.mubr.msk.f32.mxu1 %vm261_vm2, %v14062_v6  ;;  %10969 = vmatprep.mubr.msk.f32.mxu0 %vm261_vm2, %v4341_v4  ;;  %v4343_v58 = vld [vmem:[#allocation2 + $0xa0] sm:$0xff]  ;;  %16801 = vst [vmem:[#allocation58_spill] sm:$0xff] %v14496_v1  ;;  %v4344_v4 = vld [vmem:[#allocation2 + $0xa8] sm:$0xff] }
 0x220   : >> { %v14490_v22 = vpop.f32.mrf.mxu1  ;;  %v14492_v41 = vpop.f32.mrf.mxu0  ;;  %11389 = vmatprep.subr.mxu0 %v14496_v1 }
 0x221   : >> { %16800 = vst [vmem:[#allocation57_spill] sm:$0xff] %v14490_v22 }
 0x222   : >> { %v14498_v62 = vpop.f32.mrf.mxu1  ;;  %10857 = vmatmul.mubr.msk.f32.gmra.mxu1 %vm261_vm2, %v14065_v14  ;;  %v14502_v6 = vpop.f32.mrf.mxu0  ;;  %10970 = vmatmul.mubr.msk.f32.gmra.mxu0 %vm261_vm2, %v4342_v36 }
 0x223   : >> { %16802 = vst [vmem:[#allocation59_spill] sm:$0xff] %v14498_v62  ;;  %10859 = vmatprep.mubr.msk.f32.mxu1 %vm261_vm2, %v14072_v24  ;;  %10972 = vmatprep.mubr.msk.f32.mxu0 %vm261_vm2, %v4343_v58  ;;  %v4346_v24 = vld [vmem:[#allocation2 + $0xb8] sm:$0xff] }
 0x224   : >> { %v14508_v54 = vpop.f32.mrf.mxu1  ;;  %v14510_v22 = vpop.f32.mrf.mxu0 }
 0x225   : >> { %16803 = vst [vmem:[#allocation60_spill] sm:$0xff] %v14508_v54  ;;  %v4347_v54 = vld [vmem:[#allocation2 + $0xc0] sm:$0xff] }
 0x226   : >> { %v14513_v62 = vpop.f32.mrf.mxu1  ;;  %10860 = vmatmul.mubr.msk.f32.gmra.mxu1 %vm261_vm2, %v14075_v16  ;;  %v14517_v14 = vpop.f32.mrf.mxu0  ;;  %10973 = vmatmul.mubr.msk.f32.gmra.mxu0 %vm261_vm2, %v4344_v4 }
 0x227   : >> { %16804 = vst [vmem:[#allocation61_spill] sm:$0xff] %v14513_v62  ;;  %10862 = vmatprep.mubr.msk.f32.mxu1 %vm261_vm2, %v14082_v40  ;;  %10975 = vmatprep.mubr.msk.f32.mxu0 %vm261_vm2, %v4345_v3  ;;  %v4348_v40 = vld [vmem:[#allocation2 + $0xc8] sm:$0xff] }
 0x228   : >> { %v14523_v58 = vpop.f32.mrf.mxu1  ;;  %v14525_v36 = vpop.f32.mrf.mxu0 }
 0x229   : >> { %16805 = vst [vmem:[#allocation62_spill] sm:$0xff] %v14523_v58  ;;  %v4349_v58 = vld [vmem:[#allocation2 + $0xd0] sm:$0xff] }
 0x22a   : >> { %v14527_v5 = vpop.f32.mrf.mxu1  ;;  %10863 = vmatmul.mubr.msk.f32.gmra.mxu1 %vm261_vm2, %v14085_v63  ;;  %v14531_v16 = vpop.f32.mrf.mxu0  ;;  %10976 = vmatmul.mubr.msk.f32.gmra.mxu0 %vm261_vm2, %v4346_v24 }
 0x22b   : >> { %16806 = vst [vmem:[#allocation63_spill] sm:$0xff] %v14527_v5  ;;  %10865 = vmatprep.mubr.msk.f32.mxu1 %vm261_vm2, %v14092_v32  ;;  %10978 = vmatprep.mubr.msk.f32.mxu0 %vm261_vm2, %v4347_v54  ;;  %v4350_v32 = vld [vmem:[#allocation2 + $0xd8] sm:$0xff] }
 0x22c   : >> { %v14537_v3 = vpop.f32.mrf.mxu1  ;;  %v14539_v4 = vpop.f32.mrf.mxu0 }
 0x22d   : >> { %16807 = vst [vmem:[#allocation64_spill] sm:$0xff] %v14537_v3  ;;  %v4351_v3 = vld [vmem:[#allocation2 + $0xe0] sm:$0xff] }
 0x22e   : >> { %v14541_v62 = vpop.f32.mrf.mxu1  ;;  %10866 = vmatmul.mubr.msk.f32.gmra.mxu1 %vm261_vm2, %v14095_v56  ;;  %v14545_v63 = vpop.f32.mrf.mxu0  ;;  %10979 = vmatmul.mubr.msk.f32.gmra.mxu0 %vm261_vm2, %v4348_v40 }
 0x22f   : >> { %16808 = vst [vmem:[#allocation65_spill] sm:$0xff] %v14541_v62  ;;  %10868 = vmatprep.mubr.msk.f32.mxu1 %vm261_vm2, %v14102_v48  ;;  %10981 = vmatprep.mubr.msk.f32.mxu0 %vm261_vm2, %v4349_v58  ;;  %v4352_v48 = vld [vmem:[#allocation2 + $0xe8] sm:$0xff] }
 0x230   : >> { %v14551_v54 = vpop.f32.mrf.mxu1  ;;  %v14553_v24 = vpop.f32.mrf.mxu0 }
 0x231   : >> { %16809 = vst [vmem:[#allocation66_spill] sm:$0xff] %v14551_v54  ;;  %v4353_v54 = vld [vmem:[#allocation2 + $0xf0] sm:$0xff] }
 0x232   : >> { %v14555_v5 = vpop.f32.mrf.mxu1  ;;  %10869 = vmatmul.mubr.msk.f32.gmra.mxu1 %vm261_vm2, %v14105_v53  ;;  %v14559_v56 = vpop.f32.mrf.mxu0  ;;  %10982 = vmatmul.mubr.msk.f32.gmra.mxu0 %vm261_vm2, %v4350_v32 }
 0x233   : >> { %16810 = vst [vmem:[#allocation67_spill] sm:$0xff] %v14555_v5  ;;  %10871 = vmatprep.mubr.msk.f32.mxu1 %vm261_vm2, %v14112_v8  ;;  %10984 = vmatprep.mubr.msk.f32.mxu0 %vm261_vm2, %v4351_v3  ;;  %v4354_v8 = vld [vmem:[#allocation2 + $0xf8] sm:$0xff] }
 0x234   : >> { %v14565_v58 = vpop.f32.mrf.mxu1  ;;  %v14567_v40 = vpop.f32.mrf.mxu0 }
 0x235   : >> { %16811 = vst [vmem:[#allocation68_spill] sm:$0xff] %v14565_v58  ;;  %v4355_v58 = vld [vmem:[#allocation2 + $0x100] sm:$0xff] }
 0x236   : >> { %v14569_v62 = vpop.f32.mrf.mxu1  ;;  %10872 = vmatmul.mubr.msk.f32.gmra.mxu1 %vm261_vm2, %v14115_v0  ;;  %v14573_v53 = vpop.f32.mrf.mxu0  ;;  %10985 = vmatmul.mubr.msk.f32.gmra.mxu0 %vm261_vm2, %v4352_v48 }
 0x237   : >> { %16812 = vst [vmem:[#allocation69_spill] sm:$0xff] %v14569_v62  ;;  %10874 = vmatprep.mubr.msk.f32.mxu1 %vm261_vm2, %v14122_v39  ;;  %10987 = vmatprep.mubr.msk.f32.mxu0 %vm261_vm2, %v4353_v54  ;;  %v4356_v39 = vld [vmem:[#allocation2 + $0x108] sm:$0xff] }
 0x238   : >> { %v14579_v3 = vpop.f32.mrf.mxu1  ;;  %v14581_v32 = vpop.f32.mrf.mxu0 }
 0x239   : >> { %16813 = vst [vmem:[#allocation70_spill] sm:$0xff] %v14579_v3  ;;  %v4357_v3 = vld [vmem:[#allocation2 + $0x110] sm:$0xff] }
 0x23a   : >> { %v14583_v5 = vpop.f32.mrf.mxu1  ;;  %10875 = vmatmul.mubr.msk.f32.gmra.mxu1 %vm261_vm2, %v14125_v26  ;;  %v10733_v0 = vpop.f32.mrf.mxu0  ;;  %10988 = vmatmul.mubr.msk.f32.gmra.mxu0 %vm261_vm2, %v4354_v8 }
 0x23b   : >> { %16814 = vst [vmem:[#allocation71_spill] sm:$0xff] %v14583_v5  ;;  %10877 = vmatprep.mubr.msk.f32.mxu1 %vm261_vm2, %v14132_v7  ;;  %10990 = vmatprep.mubr.msk.f32.mxu0 %vm261_vm2, %v4355_v58  ;;  %v4358_v7 = vld [vmem:[#allocation2 + $0x118] sm:$0xff] }
 0x23c   : >> { %v14591_v54 = vpop.f32.mrf.mxu1  ;;  %v3109_v48 = vpop.f32.mrf.mxu0 }
 0x23d   : >> { %16815 = vst [vmem:[#allocation72_spill] sm:$0xff] %v14591_v54  ;;  %v4359_v54 = vld [vmem:[#allocation2 + $0x120] sm:$0xff] }
 0x23e   : >> { %v10623_v62 = vpop.f32.mrf.mxu1  ;;  %10878 = vmatmul.mubr.msk.f32.gmra.mxu1 %vm261_vm2, %v14135_v34  ;;  %v10736_v5 = vpop.f32.mrf.mxu0  ;;  %10991 = vmatmul.mubr.msk.f32.gmra.mxu0 %vm261_vm2, %v4356_v39 }
 0x23f   : >> { %v2398_v26 = vadd.f32 %v10623_v62, %v14290_v15  ;;  %10880 = vmatprep.mubr.msk.f32.mxu1 %vm261_vm2, %v14142_v30  ;;  %10993 = vmatprep.mubr.msk.f32.mxu0 %vm261_vm2, %v4357_v3  ;;  %v4360_v62 = vld [vmem:[#allocation2 + $0x128] sm:$0xff] }
 0x240   : >> { %v2392_v58 = vpop.f32.mrf.mxu1  ;;  %v3119_v8 = vpop.f32.mrf.mxu0 }
 0x241   : >> { %v14600_v51 = vadd.f32 %v10733_v0, %v2398_v26  ;;  %v2393_v28 = vadd.f32 %v2392_v58, %v14302_v13  ;;  %v4361_v13 = vld [vmem:[#allocation2 + $0x130] sm:$0xff] }
 0x242   : >> { %v10626_v1 = vpop.f32.mrf.mxu1  ;;  %10881 = vmatmul.mubr.msk.f32.gmra.mxu1 %vm261_vm2, %v14145_v10  ;;  %v10739_v34 = vpop.f32.mrf.mxu0  ;;  %10994 = vmatmul.mubr.msk.f32.gmra.mxu0 %vm261_vm2, %v4358_v7 }
 0x243   : >> { %v14606_v15 = vadd.f32 %v3109_v48, %v2393_v28  ;;  %v2408_v30 = vadd.f32 %v10626_v1, %v14315_v20  ;;  %10883 = vmatprep.mubr.msk.f32.mxu1 %vm261_vm2, %v14152_v38  ;;  %10996 = vmatprep.mubr.msk.f32.mxu0 %vm261_vm2, %v4359_v54 }
 0x244   : >> { %v2402_v3 = vpop.f32.mrf.mxu1  ;;  %v3129_v0 = vpop.f32.mrf.mxu0 }
 0x245   : >> { %v14612_v39 = vadd.f32 %v10736_v5, %v2408_v30  ;;  %v2403_v10 = vadd.f32 %v2402_v3, %v14325_v19  ;;  %v4362_v5 = vld [vmem:[#allocation2 + $0x138] sm:$0xff]  ;;  %v4363_v19 = vld [vmem:[#allocation2 + $0x140] sm:$0xff] }
 0x246   : >> { %v10629_v26 = vpop.f32.mrf.mxu1  ;;  %10884 = vmatmul.mubr.msk.f32.gmra.mxu1 %vm261_vm2, %v14155_v17  ;;  %v10742_v28 = vpop.f32.mrf.mxu0  ;;  %10997 = vmatmul.mubr.msk.f32.gmra.mxu0 %vm261_vm2, %v4360_v62 }
 0x247   : >> { %v14618_v20 = vadd.f32 %v3119_v8, %v2403_v10  ;;  %v2418_v38 = vadd.f32 %v10629_v26, %v14333_v60  ;;  %10886 = vmatprep.mubr.msk.f32.mxu1 %vm261_vm2, %v14162_v50  ;;  %10999 = vmatprep.mubr.msk.f32.mxu0 %vm261_vm2, %v4361_v13  ;;  %v4364_v8 = vld [vmem:[#allocation2 + $0x148] sm:$0xff]  ;;  %v4366_v13 = vld [vmem:[#allocation2 + $0x158] sm:$0xff] }
 0x248   : >> { %v2412_v1 = vpop.f32.mrf.mxu1  ;;  %v3139_v54 = vpop.f32.mrf.mxu0 }
 0x249   : >> { %v14624_v48 = vadd.f32 %v10739_v34, %v2418_v38  ;;  %v2413_v17 = vadd.f32 %v2412_v1, %v14343_v47  ;;  %v4365_v47 = vld [vmem:[#allocation2 + $0x150] sm:$0xff]  ;;  %v4368_v1 = vld [vmem:[#allocation2 + $0x168] sm:$0xff] }
 0x24a   : >> { %v10632_v7 = vpop.f32.mrf.mxu1  ;;  %10887 = vmatmul.mubr.msk.f32.gmra.mxu1 %vm261_vm2, %v14165_v55  ;;  %v10745_v58 = vpop.f32.mrf.mxu0  ;;  %11000 = vmatmul.mubr.msk.f32.gmra.mxu0 %vm261_vm2, %v4362_v5 }
 0x24b   : >> { %v14630_v60 = vadd.f32 %v3129_v0, %v2413_v17  ;;  %v2428_v50 = vadd.f32 %v10632_v7, %v14351_v61  ;;  %10889 = vmatprep.mubr.msk.f32.mxu1 %vm261_vm2, %v14172_v31  ;;  %11002 = vmatprep.mubr.msk.f32.mxu0 %vm261_vm2, %v4363_v19 }
 0x24c   : >> { %v2422_v34 = vpop.f32.mrf.mxu1  ;;  %v3149_v30 = vpop.f32.mrf.mxu0 }
 0x24d   : >> { %v14636_v62 = vadd.f32 %v10742_v28, %v2428_v50  ;;  %v2423_v55 = vadd.f32 %v2422_v34, %v14361_v49  ;;  %v4367_v49 = vld [vmem:[#allocation2 + $0x160] sm:$0xff]  ;;  %v4370_v50 = vld [vmem:[#allocation2 + $0x178] sm:$0xff] }
 0x24e   : >> { %v10635_v3 = vpop.f32.mrf.mxu1  ;;  %10890 = vmatmul.mubr.msk.f32.gmra.mxu1 %vm261_vm2, %v14175_v21  ;;  %v10748_v0 = vpop.f32.mrf.mxu0  ;;  %11003 = vmatmul.mubr.msk.f32.gmra.mxu0 %vm261_vm2, %v4364_v8 }
 0x24f   : >> { %v14642_v61 = vadd.f32 %v3139_v54, %v2423_v55  ;;  %v2438_v31 = vadd.f32 %v10635_v3, %v14369_v18  ;;  %10892 = vmatprep.mubr.msk.f32.mxu1 %vm261_vm2, %v14182_v25  ;;  %11005 = vmatprep.mubr.msk.f32.mxu0 %vm261_vm2, %v4365_v47  ;;  %v16816_v55 = vld [vmem:[#allocation18_spill] sm:$0xff] }
 0x250   : >> { %v2432_v10 = vpop.f32.mrf.mxu1  ;;  %v3159_v26 = vpop.f32.mrf.mxu0 }
 0x251   : >> { %v14648_v28 = vadd.f32 %v10745_v58, %v2438_v31  ;;  %v2433_v21 = vadd.f32 %v2432_v10, %v14379_v23  ;;  %v4369_v23 = vld [vmem:[#allocation2 + $0x170] sm:$0xff]  ;;  %v4372_v31 = vld [vmem:[#allocation2 + $0x188] sm:$0xff] }
 0x252   : >> { %v10638_v38 = vpop.f32.mrf.mxu1  ;;  %10893 = vmatmul.mubr.msk.f32.gmra.mxu1 %vm261_vm2, %v14185_v9  ;;  %v10751_v5 = vpop.f32.mrf.mxu0  ;;  %11006 = vmatmul.mubr.msk.f32.gmra.mxu0 %vm261_vm2, %v4366_v13 }
 0x253   : >> { %v14654_v18 = vadd.f32 %v3149_v30, %v2433_v21  ;;  %v2448_v25 = vadd.f32 %v10638_v38, %v14387_v37  ;;  %10895 = vmatprep.mubr.msk.f32.mxu1 %vm261_vm2, %v14192_v27  ;;  %11008 = vmatprep.mubr.msk.f32.mxu0 %vm261_vm2, %v4367_v49  ;;  %v16818_v38 = vld [vmem:[#allocation20_spill] sm:$0xff] }
 0x254   : >> { %v2442_v54 = vpop.f32.mrf.mxu1  ;;  %v3169_v19 = vpop.f32.mrf.mxu0 }
 0x255   : >> { %v14660_v17 = vadd.f32 %v10748_v0, %v2448_v25  ;;  %v2443_v9 = vadd.f32 %v2442_v54, %v14395_v12  ;;  %v4371_v12 = vld [vmem:[#allocation2 + $0x180] sm:$0xff]  ;;  %v4374_v54 = vld [vmem:[#allocation2 + $0x198] sm:$0xff] }
 0x256   : >> { %v10641_v7 = vpop.f32.mrf.mxu1  ;;  %10896 = vmatmul.mubr.msk.f32.gmra.mxu1 %vm261_vm2, %v14195_v43  ;;  %v10754_v58 = vpop.f32.mrf.mxu0  ;;  %11009 = vmatmul.mubr.msk.f32.gmra.mxu0 %vm261_vm2, %v4368_v1  ;;  %v16817_v0 = vld [vmem:[#allocation19_spill] sm:$0xff]  ;;  %v16819_v1 = vld [vmem:[#allocation21_spill] sm:$0xff] }
 0x257   : >> { %v14666_v37 = vadd.f32 %v3159_v26, %v2443_v9  ;;  %v2458_v27 = vadd.f32 %v10641_v7, %v14400_v29  ;;  %10898 = vmatprep.mubr.msk.f32.mxu1 %vm261_vm2, %v14202_v35  ;;  %11011 = vmatprep.mubr.msk.f32.mxu0 %vm261_vm2, %v4369_v23 }
 0x258   : >> { %v2452_v8 = vpop.f32.mrf.mxu1  ;;  %v3179_v34 = vpop.f32.mrf.mxu0 }
 0x259   : >> { %v14672_v30 = vadd.f32 %v10751_v5, %v2458_v27  ;;  %v2453_v43 = vadd.f32 %v2452_v8, %v14408_v2  ;;  %v4373_v2 = vld [vmem:[#allocation2 + $0x190] sm:$0xff] }
 0x25a   : >> { %v10644_v47 = vpop.f32.mrf.mxu1  ;;  %10899 = vmatmul.mubr.msk.f32.gmra.mxu1 %vm261_vm2, %v16816_v55  ;;  %v10757_v3 = vpop.f32.mrf.mxu0  ;;  %11012 = vmatmul.mubr.msk.f32.gmra.mxu0 %vm261_vm2, %v4370_v50  ;;  %v16820_v27 = vld [vmem:[#allocation17_spill] sm:$0xff] }
 0x25b   : >> { %v14678_v29 = vadd.f32 %v3169_v19, %v2453_v43  ;;  %v2468_v35 = vadd.f32 %v10644_v47, %v14415_v42  ;;  %10901 = vmatprep.mubr.msk.f32.mxu1 %vm261_vm2, %v16817_v0  ;;  %11014 = vmatprep.mubr.msk.f32.mxu0 %vm261_vm2, %v4371_v12  ;;  %v4376_v12 = vld [vmem:[#allocation2 + $0x1a8] sm:$0xff] }
 0x25c   : >> { %v2462_v13 = vpop.f32.mrf.mxu1  ;;  %v3189_v10 = vpop.f32.mrf.mxu0  ;;  %v16822_v0 = vld [vmem:[#allocation16_spill] sm:$0xff] }
 0x25d   : >> { %v14684_v26 = vadd.f32 %v10754_v58, %v2468_v35  ;;  %v2463_v49 = vadd.f32 %v2462_v13, %v14425_v59  ;;  %v4375_v59 = vld [vmem:[#allocation2 + $0x1a0] sm:$0xff] }
 0x25e   : >> { %v10647_v21 = vpop.f32.mrf.mxu1  ;;  %10902 = vmatmul.mubr.msk.f32.gmra.mxu1 %vm261_vm2, %v16818_v38  ;;  %v10760_v5 = vpop.f32.mrf.mxu0  ;;  %11015 = vmatmul.mubr.msk.f32.gmra.mxu0 %vm261_vm2, %v4372_v31 }
 0x25f   : >> { %v14690_v42 = vadd.f32 %v3179_v34, %v2463_v49  ;;  %v2478_v25 = vadd.f32 %v10647_v21, %v14437_v33  ;;  %10904 = vmatprep.mubr.msk.f32.mxu1 %vm261_vm2, %v16819_v1  ;;  %11017 = vmatprep.mubr.msk.f32.mxu0 %vm261_vm2, %v4373_v2  ;;  %v16821_v34 = vld [vmem:[#allocation15_spill] sm:$0xff]  ;;  %v4378_v2 = vld [vmem:[#allocation2 + $0x1b8] sm:$0xff] }
 0x260   : >> { %v2472_v19 = vpop.f32.mrf.mxu1  ;;  %v3199_v23 = vpop.f32.mrf.mxu0  ;;  %v16824_v1 = vld [vmem:[#allocation14_spill] sm:$0xff] }
 0x261   : >> { %v14696_v9 = vadd.f32 %v10757_v3, %v2478_v25  ;;  %v2473_v7 = vadd.f32 %v2472_v19, %v14447_v11  ;;  %v4377_v11 = vld [vmem:[#allocation2 + $0x1b0] sm:$0xff] }
 0x262   : >> { %v10650_v58 = vpop.f32.mrf.mxu1  ;;  %10905 = vmatmul.mubr.msk.f32.gmra.mxu1 %vm261_vm2, %v16820_v27  ;;  %v10763_v50 = vpop.f32.mrf.mxu0  ;;  %11018 = vmatmul.mubr.msk.f32.gmra.mxu0 %vm261_vm2, %v4374_v54 }
 0x263   : >> { %v14702_v33 = vadd.f32 %v3189_v10, %v2473_v7  ;;  %v2488_v8 = vadd.f32 %v10650_v58, %v14453_v46  ;;  %10907 = vmatprep.mubr.msk.f32.mxu1 %vm261_vm2, %v16821_v34  ;;  %11020 = vmatprep.mubr.msk.f32.mxu0 %vm261_vm2, %v4375_v59  ;;  %v16823_v10 = vld [vmem:[#allocation13_spill] sm:$0xff]  ;;  %v4380_v59 = vld [vmem:[#allocation2 + $0x1c8] sm:$0xff] }
 0x264   : >> { %v2482_v43 = vpop.f32.mrf.mxu1  ;;  %v3209_v47 = vpop.f32.mrf.mxu0  ;;  %v16826_v34 = vld [vmem:[#allocation12_spill] sm:$0xff] }
 0x265   : >> { %v14708_v55 = vadd.f32 %v10760_v5, %v2488_v8  ;;  %v2483_v3 = vadd.f32 %v2482_v43, %v14461_v57  ;;  %v4379_v57 = vld [vmem:[#allocation2 + $0x1c0] sm:$0xff] }
 0x266   : >> { %v10653_v35 = vpop.f32.mrf.mxu1  ;;  %10908 = vmatmul.mubr.msk.f32.gmra.mxu1 %vm261_vm2, %v16822_v0  ;;  %v10766_v31 = vpop.f32.mrf.mxu0  ;;  %11021 = vmatmul.mubr.msk.f32.gmra.mxu0 %vm261_vm2, %v4376_v12 }
 0x267   : >> { %v14714_v46 = vadd.f32 %v3199_v23, %v2483_v3  ;;  %v2498_v13 = vadd.f32 %v10653_v35, %v14467_v52  ;;  %10910 = vmatprep.mubr.msk.f32.mxu1 %vm261_vm2, %v16823_v10  ;;  %11023 = vmatprep.mubr.msk.f32.mxu0 %vm261_vm2, %v4377_v11  ;;  %v16825_v23 = vld [vmem:[#allocation11_spill] sm:$0xff]  ;;  %v4382_v11 = vld [vmem:[#allocation2 + $0x1d8] sm:$0xff] }
 0x268   : >> { %v2492_v49 = vpop.f32.mrf.mxu1  ;;  %v3219_v21 = vpop.f32.mrf.mxu0  ;;  %v16828_v10 = vld [vmem:[#allocation10_spill] sm:$0xff] }
 0x269   : >> { %v14720_v38 = vadd.f32 %v10763_v50, %v2498_v13  ;;  %v2493_v5 = vadd.f32 %v2492_v49, %v14475_v44  ;;  %v4381_v44 = vld [vmem:[#allocation2 + $0x1d0] sm:$0xff] }
 0x26a   : >> { %v10656_v25 = vpop.f32.mrf.mxu1  ;;  %10911 = vmatmul.mubr.msk.f32.gmra.mxu1 %vm261_vm2, %v16824_v1  ;;  %v10769_v54 = vpop.f32.mrf.mxu0  ;;  %11024 = vmatmul.mubr.msk.f32.gmra.mxu0 %vm261_vm2, %v4378_v2 }
 0x26b   : >> { %v14726_v52 = vadd.f32 %v3209_v47, %v2493_v5  ;;  %v2508_v19 = vadd.f32 %v10656_v25, %v14481_v45  ;;  %10913 = vmatprep.mubr.msk.f32.mxu1 %vm261_vm2, %v16825_v23  ;;  %11026 = vmatprep.mubr.msk.f32.mxu0 %vm261_vm2, %v4379_v57  ;;  %v16827_v47 = vld [vmem:[#allocation9_spill] sm:$0xff]  ;;  %v4384_v57 = vld [vmem:[#allocation2 + $0x1e8] sm:$0xff] }
 0x26c   : >> { %v2502_v7 = vpop.f32.mrf.mxu1  ;;  %v3229_v58 = vpop.f32.mrf.mxu0  ;;  %v16830_v23 = vld [vmem:[#allocation8_spill] sm:$0xff] }
 0x26d   : >> { %v14732_v27 = vadd.f32 %v10766_v31, %v2508_v19  ;;  %v2503_v50 = vadd.f32 %v2502_v7, %v14492_v41  ;;  %v4383_v41 = vld [vmem:[#allocation2 + $0x1e0] sm:$0xff] }
 0x26e   : >> { %v10659_v8 = vpop.f32.mrf.mxu1  ;;  %10914 = vmatmul.mubr.msk.f32.gmra.mxu1 %vm261_vm2, %v16826_v34  ;;  %v10772_v12 = vpop.f32.mrf.mxu0  ;;  %11027 = vmatmul.mubr.msk.f32.gmra.mxu0 %vm261_vm2, %v4380_v59 }
 0x26f   : >> { %v14738_v45 = vadd.f32 %v3219_v21, %v2503_v50  ;;  %v2518_v43 = vadd.f32 %v10659_v8, %v14502_v6  ;;  %10916 = vmatprep.mubr.msk.f32.mxu1 %vm261_vm2, %v16827_v47  ;;  %11029 = vmatprep.mubr.msk.f32.mxu0 %vm261_vm2, %v4381_v44  ;;  %v16829_v21 = vld [vmem:[#allocation7_spill] sm:$0xff]  ;;  %v4386_v44 = vld [vmem:[#allocation2 + $0x1f8] sm:$0xff]  ;;  %v16832_v47 = vld [vmem:[#allocation32_spill] sm:$0xff] }
 0x270   : >> { %v2512_v3 = vpop.f32.mrf.mxu1  ;;  %v3239_v35 = vpop.f32.mrf.mxu0 }
 0x271   : >> { %v14744_v0 = vadd.f32 %v10769_v54, %v2518_v43  ;;  %v2513_v31 = vadd.f32 %v2512_v3, %v14510_v22  ;;  %v4385_v22 = vld [vmem:[#allocation2 + $0x1f0] sm:$0xff] }
 0x272   : >> { %v10662_v13 = vpop.f32.mrf.mxu1  ;;  %10917 = vmatmul.mubr.msk.f32.gmra.mxu1 %vm261_vm2, %v16828_v10  ;;  %v10775_v2 = vpop.f32.mrf.mxu0  ;;  %11030 = vmatmul.mubr.msk.f32.gmra.mxu0 %vm261_vm2, %v4382_v11 }
 0x273   : >> { %v14750_v6 = vadd.f32 %v3229_v58, %v2513_v31  ;;  %v2528_v49 = vadd.f32 %v10662_v13, %v14517_v14  ;;  %10919 = vmatprep.mubr.msk.f32.mxu1 %vm261_vm2, %v16829_v21  ;;  %11032 = vmatprep.mubr.msk.f32.mxu0 %vm261_vm2, %v4383_v41  ;;  %v16831_v58 = vld [vmem:[#allocation5_spill] sm:$0xff]  ;;  %v4388_v41 = vld [vmem:[#allocation2 + $0x208] sm:$0xff] }
 0x274   : >> { %v2522_v5 = vpop.f32.mrf.mxu1  ;;  %v3249_v25 = vpop.f32.mrf.mxu0  ;;  %v16834_v21 = vld [vmem:[#allocation31_spill] sm:$0xff] }
 0x275   : >> { %v14756_v1 = vadd.f32 %v10772_v12, %v2528_v49  ;;  %v2523_v54 = vadd.f32 %v2522_v5, %v14525_v36  ;;  %v4387_v36 = vld [vmem:[#allocation2 + $0x200] sm:$0xff] }
 0x276   : >> { %v10665_v19 = vpop.f32.mrf.mxu1  ;;  %10920 = vmatmul.mubr.msk.f32.gmra.mxu1 %vm261_vm2, %v16830_v23  ;;  %v10778_v59 = vpop.f32.mrf.mxu0  ;;  %11033 = vmatmul.mubr.msk.f32.gmra.mxu0 %vm261_vm2, %v4384_v57 }
 0x277   : >> { %v14762_v14 = vadd.f32 %v3239_v35, %v2523_v54  ;;  %v2538_v7 = vadd.f32 %v10665_v19, %v14531_v16  ;;  %10922 = vmatprep.mubr.msk.f32.mxu1 %vm261_vm2, %v16831_v58  ;;  %11035 = vmatprep.mubr.msk.f32.mxu0 %vm261_vm2, %v4385_v22  ;;  %v16833_v35 = vld [vmem:[#allocation39_spill] sm:$0xff]  ;;  %v4390_v22 = vld [vmem:[#allocation2 + $0x218] sm:$0xff]  ;;  %v16836_v58 = vld [vmem:[#allocation30_spill] sm:$0xff] }
 0x278   : >> { %v2532_v50 = vpop.f32.mrf.mxu1  ;;  %v3259_v8 = vpop.f32.mrf.mxu0 }
 0x279   : >> { %v14768_v34 = vadd.f32 %v10775_v2, %v2538_v7  ;;  %v2533_v12 = vadd.f32 %v2532_v50, %v14539_v4  ;;  %v4389_v4 = vld [vmem:[#allocation2 + $0x210] sm:$0xff] }
 0x27a   : >> { %v10668_v43 = vpop.f32.mrf.mxu1  ;;  %10923 = vmatmul.mubr.msk.f32.gmra.mxu1 %vm261_vm2, %v16832_v47  ;;  %v10781_v11 = vpop.f32.mrf.mxu0  ;;  %11036 = vmatmul.mubr.msk.f32.gmra.mxu0 %vm261_vm2, %v4386_v44 }
 0x27b   : >> { %v14774_v16 = vadd.f32 %v3249_v25, %v2533_v12  ;;  %v2548_v3 = vadd.f32 %v10668_v43, %v14545_v63  ;;  %10925 = vmatprep.mubr.msk.f32.mxu1 %vm261_vm2, %v16833_v35  ;;  %11038 = vmatprep.mubr.msk.f32.mxu0 %vm261_vm2, %v4387_v36  ;;  %v16835_v25 = vld [vmem:[#allocation38_spill] sm:$0xff]  ;;  %v4392_v36 = vld [vmem:[#allocation2 + $0x228] sm:$0xff]  ;;  %v16838_v35 = vld [vmem:[#allocation28_spill] sm:$0xff] }
 0x27c   : >> { %v2542_v31 = vpop.f32.mrf.mxu1  ;;  %v3269_v13 = vpop.f32.mrf.mxu0 }
 0x27d   : >> { %v14780_v10 = vadd.f32 %v10778_v59, %v2548_v3  ;;  %v2543_v2 = vadd.f32 %v2542_v31, %v14553_v24  ;;  %v4391_v24 = vld [vmem:[#allocation2 + $0x220] sm:$0xff]  ;;  %v16839_v31 = vld [vmem:[#allocation37_spill] sm:$0xff] }
 0x27e   : >> { %v10671_v49 = vpop.f32.mrf.mxu1  ;;  %10926 = vmatmul.mubr.msk.f32.gmra.mxu1 %vm261_vm2, %v16834_v21  ;;  %v10784_v57 = vpop.f32.mrf.mxu0  ;;  %11039 = vmatmul.mubr.msk.f32.gmra.mxu0 %vm261_vm2, %v4388_v41 }
 0x27f   : >> { %v14786_v63 = vadd.f32 %v3259_v8, %v2543_v2  ;;  %v2558_v5 = vadd.f32 %v10671_v49, %v14559_v56  ;;  %10928 = vmatprep.mubr.msk.f32.mxu1 %vm261_vm2, %v16835_v25  ;;  %11041 = vmatprep.mubr.msk.f32.mxu0 %vm261_vm2, %v4389_v4  ;;  %v16837_v8 = vld [vmem:[#allocation29_spill] sm:$0xff]  ;;  %v16840_v4 = vld [vmem:[#allocation27_spill] sm:$0xff] }
 0x280   : >> { %v2552_v54 = vpop.f32.mrf.mxu1  ;;  %v3279_v19 = vpop.f32.mrf.mxu0  ;;  %v4394_v2 = vld [vmem:[#allocation2 + $0x238] sm:$0xff] }
 0x281   : >> { %v14792_v23 = vadd.f32 %v10781_v11, %v2558_v5  ;;  %v2553_v59 = vadd.f32 %v2552_v54, %v14567_v40  ;;  %v4393_v40 = vld [vmem:[#allocation2 + $0x230] sm:$0xff]  ;;  %v16842_v54 = vld [vmem:[#allocation26_spill] sm:$0xff] }
 0x282   : >> { %v10674_v7 = vpop.f32.mrf.mxu1  ;;  %10929 = vmatmul.mubr.msk.f32.gmra.mxu1 %vm261_vm2, %v16836_v58  ;;  %v10787_v44 = vpop.f32.mrf.mxu0  ;;  %11042 = vmatmul.mubr.msk.f32.gmra.mxu0 %vm261_vm2, %v4390_v22  ;;  %v16841_v5 = vld [vmem:[#allocation36_spill] sm:$0xff]  ;;  %v16844_v58 = vld [vmem:[#allocation25_spill] sm:$0xff] }
 0x283   : >> { %v14798_v56 = vadd.f32 %v3269_v13, %v2553_v59  ;;  %v2568_v50 = vadd.f32 %v10674_v7, %v14573_v53  ;;  %10931 = vmatprep.mubr.msk.f32.mxu1 %vm261_vm2, %v16837_v8  ;;  %11044 = vmatprep.mubr.msk.f32.mxu0 %vm261_vm2, %v4391_v24  ;;  %v16843_v59 = vld [vmem:[#allocation35_spill] sm:$0xff] }
 0x284   : >> { %v2562_v12 = vpop.f32.mrf.mxu1  ;;  %v3289_v43 = vpop.f32.mrf.mxu0 }
 0x285   : >> { %v14804_v47 = vadd.f32 %v10784_v57, %v2568_v50  ;;  %v2563_v11 = vadd.f32 %v2562_v12, %v14581_v32  ;;  %v4395_v32 = vld [vmem:[#allocation2 + $0x240] sm:$0xff] }
 0x286   : >> { %v10677_v3 = vpop.f32.mrf.mxu1  ;;  %10932 = vmatmul.mubr.msk.f32.gmra.mxu1 %vm261_vm2, %v16838_v35  ;;  %v10790_v41 = vpop.f32.mrf.mxu0  ;;  %11045 = vmatmul.mubr.msk.f32.gmra.mxu0 %vm261_vm2, %v4392_v36  ;;  %v4397_v36 = vld [vmem:[#allocation2 + $0x250] sm:$0xff] }
 0x287   : >> { %v14810_v53 = vadd.f32 %v3279_v19, %v2563_v11  ;;  %v2578_v13 = vadd.f32 %v10677_v3, %v16839_v31  ;;  %10934 = vmatprep.mubr.msk.f32.mxu1 %vm261_vm2, %v16840_v4  ;;  %11047 = vmatprep.mubr.msk.f32.mxu0 %vm261_vm2, %v4393_v40  ;;  %v16845_v40 = vld [vmem:[#allocation34_spill] sm:$0xff]  ;;  %v16846_v35 = vld [vmem:[#allocation40_spill] sm:$0xff] }
 0x288   : >> { %v2572_v49 = vpop.f32.mrf.mxu1  ;;  %v3299_v21 = vpop.f32.mrf.mxu0 }
 0x289   : >> { %v14816_v57 = vadd.f32 %v10787_v44, %v2578_v13  ;;  %v2573_v25 = vadd.f32 %v2572_v49, %v16841_v5  ;;  %v4396_v44 = vld [vmem:[#allocation2 + $0x248] sm:$0xff]  ;;  %v16847_v13 = vld [vmem:[#allocation33_spill] sm:$0xff] }
 0x28a   : >> { %v10680_v22 = vpop.f32.mrf.mxu1  ;;  %10935 = vmatmul.mubr.msk.f32.gmra.mxu1 %vm261_vm2, %v16842_v54  ;;  %v10793_v19 = vpop.f32.mrf.mxu0  ;;  %11048 = vmatmul.mubr.msk.f32.gmra.mxu0 %vm261_vm2, %v4394_v2  ;;  %v16848_v2 = vld [vmem:[#allocation42_spill] sm:$0xff]  ;;  %v3608_v5 = vld [vmem:[#allocation2 + $0x24f] sm:$0xff] }
 0x28b   : >> { %v14822_v24 = vadd.f32 %v3289_v43, %v2573_v25  ;;  %v2588_v7 = vadd.f32 %v10680_v22, %v16843_v59  ;;  %10937 = vmatprep.mubr.msk.f32.mxu1 %vm261_vm2, %v16844_v58  ;;  %11050 = vmatprep.mubr.msk.f32.mxu0 %vm261_vm2, %v4395_v32  ;;  %v4399_v25 = vld [vmem:[#allocation2 + $0x260] sm:$0xff]  ;;  %v16849_v54 = vld [vmem:[#allocation24_spill] sm:$0xff] }
 0x28c   : >> { %v2582_v50 = vpop.f32.mrf.mxu1  ;;  %v3309_v8 = vpop.f32.mrf.mxu0  ;;  %v16850_v58 = vld [vmem:[#allocation44_spill] sm:$0xff] }
 0x28d   : >> { %v14828_v12 = vadd.f32 %v10790_v41, %v2588_v7  ;;  %v2583_v11 = vadd.f32 %v2582_v50, %v16845_v40  ;;  %v4398_v41 = vld [vmem:[#allocation2 + $0x258] sm:$0xff] }
 0x28e   : >> { %v10683_v3 = vpop.f32.mrf.mxu1  ;;  %10938 = vmatmul.mubr.msk.f32.gmra.mxu1 %vm261_vm2, %v16846_v35  ;;  %v10796_v43 = vpop.f32.mrf.mxu0  ;;  %11051 = vmatmul.mubr.msk.f32.gmra.mxu0 %vm261_vm2, %v4396_v44  ;;  %v16851_v50 = vld [vmem:[#allocation41_spill] sm:$0xff] }
 0x28f   : >> { %v14834_v31 = vadd.f32 %v3299_v21, %v2583_v11  ;;  %v2598_v4 = vadd.f32 %v10683_v3, %v16847_v13  ;;  %10940 = vmatprep.mubr.msk.f32.mxu1 %vm261_vm2, %v16848_v2  ;;  %11053 = vmatprep.mubr.msk.f32.mxu0 %vm261_vm2, %v4397_v36  ;;  %v3609_v40 = vld [vmem:[#allocation2 + $0x257] sm:$0xff]  ;;  %v3610_v35 = vld [vmem:[#allocation2 + $0x25f] sm:$0xff]  ;;  %v5907_v13 = vld [vmem:[#allocation2 + $0x47] sm:$0xff] }
 0x290   : >> { %v2592_v49 = vpop.f32.mrf.mxu1  ;;  %v3319_v32 = vpop.f32.mrf.mxu0  ;;  %v16853_v2 = vld [vmem:[#allocation43_spill] sm:$0xff] }
 0x291   : >> { %v14840_v22 = vadd.f32 %v10793_v19, %v2598_v4  ;;  %v2593_v59 = vadd.f32 %v2592_v49, %v16849_v54  ;;  %v4400_v19 = vld [vmem:[#allocation2 + $0x268] sm:$0xff] }
 0x292   : >> { %v10686_v7 = vpop.f32.mrf.mxu1  ;;  %10941 = vmatmul.mubr.msk.f32.gmra.mxu1 %vm261_vm2, %v16850_v58  ;;  %v10799_v21 = vpop.f32.mrf.mxu0  ;;  %11054 = vmatmul.mubr.msk.f32.gmra.mxu0 %vm261_vm2, %v4398_v41 }
 0x293   : >> { %v14846_v44 = vadd.f32 %v3309_v8, %v2593_v59  ;;  %v2608_v36 = vadd.f32 %v10686_v7, %v16851_v50  ;;  %10943 = vmatprep.mubr.msk.f32.mxu1 %vm261_vm2, %v3608_v5  ;;  %11056 = vmatprep.mubr.msk.f32.mxu0 %vm261_vm2, %v4399_v25  ;;  %v16855_v5 = vld [vmem:[#allocation45_spill] sm:$0xff]  ;;  %v3611_v25 = vld [vmem:[#allocation2 + $0x267] sm:$0xff]  ;;  %v5908_v7 = vld [vmem:[#allocation2 + $0x4f] sm:$0xff] }
 0x294   : >> { %v2602_v11 = vpop.f32.mrf.mxu1  ;;  %v3329_v3 = vpop.f32.mrf.mxu0  ;;  %v5118_v50 = vld [vmem:[#allocation2 + $0x31] sm:$0xff] }
 0x295   : >> { %v14851_v4 = vadd.f32 %v10796_v43, %v2608_v36  ;;  %v2603_v49 = vadd.f32 %v2602_v11, %v16853_v2  ;;  %v16857_v11 = vld [vmem:[#allocation46_spill] sm:$0xff]  ;;  %v5909_v2 = vld [vmem:[#allocation2 + $0x57] sm:$0xff] }
 0x296   : >> { %v10689_v54 = vpop.f32.mrf.mxu1  ;;  %10944 = vmatmul.mubr.msk.f32.gmra.mxu1 %vm261_vm2, %v3609_v40  ;;  %v10802_v8 = vpop.f32.mrf.mxu0  ;;  %11057 = vmatmul.mubr.msk.f32.gmra.mxu0 %vm261_vm2, %v4400_v19 }
 0x297   : >> { %16852 = vst [vmem:[#allocation18_spill] sm:$0xff] %v14851_v4  ;;  %v14856_v41 = vadd.f32 %v3319_v32, %v2603_v49  ;;  %v2618_v59 = vadd.f32 %v10689_v54, %v16855_v5  ;;  %10946 = vmatprep.mubr.msk.f32.mxu1 %vm261_vm2, %v3610_v35  ;;  %11171 = vmatprep.mubr.msk.f32.mxu0 %vm261_vm2, %v5907_v13  ;;  %v16859_v35 = vld [vmem:[#allocation47_spill] sm:$0xff]  ;;  %v5119_v13 = vld [vmem:[#allocation2 + $0x39] sm:$0xff] }
 0x298   : >> { %v2612_v43 = vpop.f32.mrf.mxu1  ;;  %v3339_v58 = vpop.f32.mrf.mxu0  ;;  %v16860_v54 = vld [vmem:[#allocation58_spill] sm:$0xff] }
 0x299   : >> { %16854 = vst [vmem:[#allocation19_spill] sm:$0xff] %v14856_v41  ;;  %v14861_v36 = vadd.f32 %v10799_v21, %v2618_v59  ;;  %v2613_v40 = vadd.f32 %v2612_v43, %v16857_v11  ;;  %v5910_v21 = vld [vmem:[#allocation2 + $0x5f] sm:$0xff] }
 0x29a   : >> { %v10692_v4 = vpop.f32.mrf.mxu1  ;;  %10947 = vmatmul.mubr.msk.f32.gmra.mxu1 %vm261_vm2, %v3611_v25  ;;  %v10805_v32 = vpop.f32.mrf.mxu0  ;;  %11172 = vmatmul.mubr.msk.f32.vlgmr.msra.gmra.mxu0 %vm261_vm2, %v5908_v7  ;;  %v5120_v43 = vld [vmem:[#allocation2 + $0x41] sm:$0xff]  ;;  %v16862_v25 = vld [vmem:[#allocation48_spill] sm:$0xff] }
 0x29b   : >> { %16856 = vst [vmem:[#allocation20_spill] sm:$0xff] %v14861_v36  ;;  %v14866_v19 = vadd.f32 %v3329_v3, %v2613_v40  ;;  %v2628_v49 = vadd.f32 %v10692_v4, %v16859_v35  ;;  %11061 = vmatprep.mubr.msk.f32.mxu1 %vm261_vm2, %v5118_v50  ;;  %11390 = vmatpush3.msra.mxu0 %v16860_v54  ;;  %v5911_v7 = vld [vmem:[#allocation2 + $0x67] sm:$0xff]  ;;  %v16864_v40 = vld [vmem:[#allocation49_spill] sm:$0xff]  ;;  %v16865_v54 = vld [vmem:[#allocation56_spill] sm:$0xff] }
 0x29c   : >> { %v2622_v5 = vpop.f32.mrf.mxu1  ;;  %v3349_v59 = vpop.f32.mrf.mxu0  ;;  %11174 = vmatprep.mubr.msk.f32.mxu0 %vm261_vm2, %v5909_v2  ;;  %v5121_v2 = vld [vmem:[#allocation2 + $0x49] sm:$0xff] }
 0x29d   : >> { %16858 = vst [vmem:[#allocation21_spill] sm:$0xff] %v14866_v19  ;;  %v14872_v11 = vadd.f32 %v10802_v8, %v2628_v49  ;;  %v2623_v36 = vadd.f32 %v2622_v5, %v16862_v25  ;;  %v5912_v8 = vld [vmem:[#allocation2 + $0x6f] sm:$0xff]  ;;  %v5913_v25 = vld [vmem:[#allocation2 + $0x77] sm:$0xff]  ;;  %v16867_v19 = vld [vmem:[#allocation22_spill] sm:$0xff] }
 0x29e   : >> { %v10695_v3 = vpop.f32.mrf.mxu1  ;;  %11062 = vmatmul.mubr.msk.f32.vlgmr.msra.gmra.mxu1 %vm261_vm2, %v5119_v13  ;;  %v10808_v4 = vpop.f32.mrf.mxu0  ;;  %11175 = vmatmul.mubr.msk.f32.gmra.mxu0 %vm261_vm2, %v5910_v21  ;;  %v5122_v5 = vld [vmem:[#allocation2 + $0x51] sm:$0xff] }
 0x29f   : >> { %16861 = vst [vmem:[#allocation17_spill] sm:$0xff] %v14872_v11  ;;  %v14877_v50 = vadd.f32 %v3339_v58, %v2623_v36  ;;  %v2638_v35 = vadd.f32 %v10695_v3, %v16864_v40  ;;  %11280 = vmatpush3.msra.mxu1 %v16865_v54  ;;  %11064 = vmatprep.mubr.msk.f32.mxu1 %vm261_vm2, %v5120_v43  ;;  %v16869_v43 = vld [vmem:[#allocation23_spill] sm:$0xff]  ;;  %v5123_v54 = vld [vmem:[#allocation2 + $0x59] sm:$0xff] }
 0x2a0   : >> { %v2632_v49 = vpop.f32.mrf.mxu1  ;;  %v3359_v11 = vpop.f32.mrf.mxu0  ;;  %11177 = vmatprep.mubr.msk.f32.mxu0 %vm261_vm2, %v5911_v7  ;;  %v5914_v7 = vld [vmem:[#allocation2 + $0x7f] sm:$0xff] }
 0x2a1   : >> { %16863 = vst [vmem:[#allocation15_spill] sm:$0xff] %v14877_v50  ;;  %v14883_v13 = vadd.f32 %v10805_v32, %v2638_v35  ;;  %v2633_v21 = vadd.f32 %v2632_v49, %v16867_v19  ;;  %v5915_v19 = vld [vmem:[#allocation2 + $0x87] sm:$0xff] }
 0x2a2   : >> { %v10698_v58 = vpop.f32.mrf.mxu1  ;;  %11065 = vmatmul.mubr.msk.f32.gmra.mxu1 %vm261_vm2, %v5121_v2  ;;  %v10811_v36 = vpop.f32.mrf.mxu0  ;;  %11178 = vmatmul.mubr.msk.f32.gmra.mxu0 %vm261_vm2, %v5912_v8  ;;  %v16871_v2 = vld [vmem:[#allocation50_spill] sm:$0xff] }
 0x2a3   : >> { %16866 = vst [vmem:[#allocation16_spill] sm:$0xff] %v14883_v13  ;;  %v14888_v3 = vadd.f32 %v3349_v59, %v2633_v21  ;;  %v2648_v40 = vadd.f32 %v10698_v58, %v16869_v43  ;;  %11067 = vmatprep.mubr.msk.f32.mxu1 %vm261_vm2, %v5122_v5  ;;  %11180 = vmatprep.mubr.msk.f32.mxu0 %vm261_vm2, %v5913_v25  ;;  %v5124_v13 = vld [vmem:[#allocation2 + $0x61] sm:$0xff]  ;;  %v5125_v25 = vld [vmem:[#allocation2 + $0x69] sm:$0xff] }
 0x2a4   : >> { %v2642_v32 = vpop.f32.mrf.mxu1  ;;  %v3369_v35 = vpop.f32.mrf.mxu0  ;;  %v16873_v5 = vld [vmem:[#allocation51_spill] sm:$0xff] }
 0x2a5   : >> { %16868 = vst [vmem:[#allocation13_spill] sm:$0xff] %v14888_v3  ;;  %v14893_v49 = vadd.f32 %v10808_v4, %v2648_v40  ;;  %v2643_v50 = vadd.f32 %v2642_v32, %v16871_v2  ;;  %v5916_v58 = vld [vmem:[#allocation2 + $0x8f] sm:$0xff]  ;;  %v5917_v32 = vld [vmem:[#allocation2 + $0x97] sm:$0xff] }
 0x2a6   : >> { %v10701_v41 = vpop.f32.mrf.mxu1  ;;  %11068 = vmatmul.mubr.msk.f32.gmra.mxu1 %vm261_vm2, %v5123_v54  ;;  %v10814_v59 = vpop.f32.mrf.mxu0  ;;  %11181 = vmatmul.mubr.msk.f32.gmra.mxu0 %vm261_vm2, %v5914_v7  ;;  %v5126_v40 = vld [vmem:[#allocation2 + $0x71] sm:$0xff]  ;;  %v5127_v7 = vld [vmem:[#allocation2 + $0x79] sm:$0xff] }
 0x2a7   : >> { %16870 = vst [vmem:[#allocation14_spill] sm:$0xff] %v14893_v49  ;;  %v14898_v8 = vadd.f32 %v3359_v11, %v2643_v50  ;;  %v2658_v21 = vadd.f32 %v10701_v41, %v16873_v5  ;;  %11070 = vmatprep.mubr.msk.f32.mxu1 %vm261_vm2, %v5124_v13  ;;  %11183 = vmatprep.mubr.msk.f32.mxu0 %vm261_vm2, %v5915_v19  ;;  %v16875_v54 = vld [vmem:[#allocation52_spill] sm:$0xff]  ;;  %v16877_v50 = vld [vmem:[#allocation53_spill] sm:$0xff] }
 0x2a8   : >> { %v2652_v4 = vpop.f32.mrf.mxu1  ;;  %v3379_v43 = vpop.f32.mrf.mxu0  ;;  %v5918_v19 = vld [vmem:[#allocation2 + $0x9f] sm:$0xff] }
 0x2a9   : >> { %16872 = vst [vmem:[#allocation11_spill] sm:$0xff] %v14898_v8  ;;  %v14903_v2 = vadd.f32 %v10811_v36, %v2658_v21  ;;  %v2653_v49 = vadd.f32 %v2652_v4, %v16875_v54  ;;  %v5128_v21 = vld [vmem:[#allocation2 + $0x81] sm:$0xff] }
 0x2aa   : >> { %v10704_v3 = vpop.f32.mrf.mxu1  ;;  %11071 = vmatmul.mubr.msk.f32.gmra.mxu1 %vm261_vm2, %v5125_v25  ;;  %v10817_v11 = vpop.f32.mrf.mxu0  ;;  %11184 = vmatmul.mubr.msk.f32.gmra.mxu0 %vm261_vm2, %v5916_v58  ;;  %v5919_v4 = vld [vmem:[#allocation2 + $0xa7] sm:$0xff] }
 0x2ab   : >> { %16874 = vst [vmem:[#allocation12_spill] sm:$0xff] %v14903_v2  ;;  %v14908_v41 = vadd.f32 %v3369_v35, %v2653_v49  ;;  %v2668_v13 = vadd.f32 %v10704_v3, %v16877_v50  ;;  %11073 = vmatprep.mubr.msk.f32.mxu1 %vm261_vm2, %v5126_v40  ;;  %11186 = vmatprep.mubr.msk.f32.mxu0 %vm261_vm2, %v5917_v32  ;;  %v16879_v25 = vld [vmem:[#allocation54_spill] sm:$0xff]  ;;  %v16881_v49 = vld [vmem:[#allocation55_spill] sm:$0xff] }
 0x2ac   : >> { %v2662_v36 = vpop.f32.mrf.mxu1  ;;  %v3389_v5 = vpop.f32.mrf.mxu0  ;;  %v5129_v40 = vld [vmem:[#allocation2 + $0x89] sm:$0xff] }
 0x2ad   : >> { %16876 = vst [vmem:[#allocation9_spill] sm:$0xff] %v14908_v41  ;;  %v14913_v54 = vadd.f32 %v10814_v59, %v2668_v13  ;;  %v2663_v2 = vadd.f32 %v2662_v36, %v16879_v25  ;;  %v5920_v32 = vld [vmem:[#allocation2 + $0xaf] sm:$0xff]  ;;  %v5921_v36 = vld [vmem:[#allocation2 + $0xb7] sm:$0xff] }
 0x2ae   : >> { %v10707_v8 = vpop.f32.mrf.mxu1  ;;  %11074 = vmatmul.mubr.msk.f32.gmra.mxu1 %vm261_vm2, %v5127_v7  ;;  %v10820_v35 = vpop.f32.mrf.mxu0  ;;  %11187 = vmatmul.mubr.msk.f32.gmra.mxu0 %vm261_vm2, %v5918_v19  ;;  %v5130_v13 = vld [vmem:[#allocation2 + $0x91] sm:$0xff] }
 0x2af   : >> { %16878 = vst [vmem:[#allocation10_spill] sm:$0xff] %v14913_v54  ;;  %v14918_v3 = vadd.f32 %v3379_v43, %v2663_v2  ;;  %v2678_v58 = vadd.f32 %v10707_v8, %v16881_v49  ;;  %11076 = vmatprep.mubr.msk.f32.mxu1 %vm261_vm2, %v5128_v21  ;;  %11189 = vmatprep.mubr.msk.f32.mxu0 %vm261_vm2, %v5919_v4  ;;  %v16883_v7 = vld [vmem:[#allocation57_spill] sm:$0xff]  ;;  %v16885_v2 = vld [vmem:[#allocation59_spill] sm:$0xff] }
 0x2b0   : >> { %v2672_v59 = vpop.f32.mrf.mxu1  ;;  %v3399_v50 = vpop.f32.mrf.mxu0  ;;  %v5131_v21 = vld [vmem:[#allocation2 + $0x99] sm:$0xff] }
 0x2b1   : >> { %16880 = vst [vmem:[#allocation7_spill] sm:$0xff] %v14918_v3  ;;  %v14923_v25 = vadd.f32 %v10817_v11, %v2678_v58  ;;  %v2673_v54 = vadd.f32 %v2672_v59, %v16883_v7  ;;  %v5922_v4 = vld [vmem:[#allocation2 + $0xbf] sm:$0xff]  ;;  %v5923_v59 = vld [vmem:[#allocation2 + $0xc7] sm:$0xff] }
 0x2b2   : >> { %v10710_v41 = vpop.f32.mrf.mxu1  ;;  %11077 = vmatmul.mubr.msk.f32.gmra.mxu1 %vm261_vm2, %v5129_v40  ;;  %v10823_v43 = vpop.f32.mrf.mxu0  ;;  %11190 = vmatmul.mubr.msk.f32.gmra.mxu0 %vm261_vm2, %v5920_v32  ;;  %v5132_v58 = vld [vmem:[#allocation2 + $0xa1] sm:$0xff]  ;;  %v16887_v40 = vld [vmem:[#allocation60_spill] sm:$0xff] }
 0x2b3   : >> { %16882 = vst [vmem:[#allocation8_spill] sm:$0xff] %v14923_v25  ;;  %v14928_v8 = vadd.f32 %v3389_v5, %v2673_v54  ;;  %v2688_v19 = vadd.f32 %v10710_v41, %v16885_v2  ;;  %11079 = vmatprep.mubr.msk.f32.mxu1 %vm261_vm2, %v5130_v13  ;;  %11192 = vmatprep.mubr.msk.f32.mxu0 %vm261_vm2, %v5921_v36  ;;  %v16889_v54 = vld [vmem:[#allocation61_spill] sm:$0xff]  ;;  %v5133_v13 = vld [vmem:[#allocation2 + $0xa9] sm:$0xff] }
 0x2b4   : >> { %v2682_v11 = vpop.f32.mrf.mxu1  ;;  %v3409_v49 = vpop.f32.mrf.mxu0  ;;  %v5924_v36 = vld [vmem:[#allocation2 + $0xcf] sm:$0xff] }
 0x2b5   : >> { %16884 = vst [vmem:[#allocation5_spill] sm:$0xff] %v14928_v8  ;;  %v14933_v7 = vadd.f32 %v10820_v35, %v2688_v19  ;;  %v2683_v25 = vadd.f32 %v2682_v11, %v16887_v40  ;;  %v5134_v19 = vld [vmem:[#allocation2 + $0xb1] sm:$0xff] }
 0x2b6   : >> { %v10713_v3 = vpop.f32.mrf.mxu1  ;;  %11080 = vmatmul.mubr.msk.f32.gmra.mxu1 %vm261_vm2, %v5131_v21  ;;  %v10826_v5 = vpop.f32.mrf.mxu0  ;;  %11193 = vmatmul.mubr.msk.f32.gmra.mxu0 %vm261_vm2, %v5922_v4  ;;  %v5925_v11 = vld [vmem:[#allocation2 + $0xd7] sm:$0xff]  ;;  %v16891_v21 = vld [vmem:[#allocation62_spill] sm:$0xff] }
 0x2b7   : >> { %16886 = vst [vmem:[#allocation32_spill] sm:$0xff] %v14933_v7  ;;  %v14938_v41 = vadd.f32 %v3399_v50, %v2683_v25  ;;  %v2698_v32 = vadd.f32 %v10713_v3, %v16889_v54  ;;  %11082 = vmatprep.mubr.msk.f32.mxu1 %vm261_vm2, %v5132_v58  ;;  %11195 = vmatprep.mubr.msk.f32.mxu0 %vm261_vm2, %v5923_v59  ;;  %v16893_v25 = vld [vmem:[#allocation63_spill] sm:$0xff]  ;;  %v5135_v58 = vld [vmem:[#allocation2 + $0xb9] sm:$0xff] }
 0x2b8   : >> { %v2692_v35 = vpop.f32.mrf.mxu1  ;;  %v3419_v2 = vpop.f32.mrf.mxu0  ;;  %v5926_v59 = vld [vmem:[#allocation2 + $0xdf] sm:$0xff] }
 0x2b9   : >> { %16888 = vst [vmem:[#allocation39_spill] sm:$0xff] %v14938_v41  ;;  %v14943_v40 = vadd.f32 %v10823_v43, %v2698_v32  ;;  %v2693_v7 = vadd.f32 %v2692_v35, %v16891_v21  ;;  %v5136_v32 = vld [vmem:[#allocation2 + $0xc1] sm:$0xff] }
 0x2ba   : >> { %v10716_v8 = vpop.f32.mrf.mxu1  ;;  %11083 = vmatmul.mubr.msk.f32.gmra.mxu1 %vm261_vm2, %v5133_v13  ;;  %v10829_v50 = vpop.f32.mrf.mxu0  ;;  %11196 = vmatmul.mubr.msk.f32.gmra.mxu0 %vm261_vm2, %v5924_v36  ;;  %v5927_v35 = vld [vmem:[#allocation2 + $0xe7] sm:$0xff]  ;;  %v16895_v13 = vld [vmem:[#allocation64_spill] sm:$0xff] }
 0x2bb   : >> { %16890 = vst [vmem:[#allocation31_spill] sm:$0xff] %v14943_v40  ;;  %v14948_v3 = vadd.f32 %v3409_v49, %v2693_v7  ;;  %v2708_v4 = vadd.f32 %v10716_v8, %v16893_v25  ;;  %11085 = vmatprep.mubr.msk.f32.mxu1 %vm261_vm2, %v5134_v19  ;;  %11198 = vmatprep.mubr.msk.f32.mxu0 %vm261_vm2, %v5925_v11  ;;  %v16897_v7 = vld [vmem:[#allocation65_spill] sm:$0xff]  ;;  %v5137_v19 = vld [vmem:[#allocation2 + $0xc9] sm:$0xff] }
 0x2bc   : >> { %v2702_v43 = vpop.f32.mrf.mxu1  ;;  %v3429_v54 = vpop.f32.mrf.mxu0  ;;  %v5928_v11 = vld [vmem:[#allocation2 + $0xef] sm:$0xff] }
 0x2bd   : >> { %16892 = vst [vmem:[#allocation38_spill] sm:$0xff] %v14948_v3  ;;  %v14953_v21 = vadd.f32 %v10826_v5, %v2708_v4  ;;  %v2703_v40 = vadd.f32 %v2702_v43, %v16895_v13  ;;  %v5138_v4 = vld [vmem:[#allocation2 + $0xd1] sm:$0xff] }
 0x2be   : >> { %v10719_v41 = vpop.f32.mrf.mxu1  ;;  %11086 = vmatmul.mubr.msk.f32.gmra.mxu1 %vm261_vm2, %v5135_v58  ;;  %v10832_v49 = vpop.f32.mrf.mxu0  ;;  %11199 = vmatmul.mubr.msk.f32.gmra.mxu0 %vm261_vm2, %v5926_v59  ;;  %v5929_v43 = vld [vmem:[#allocation2 + $0xf7] sm:$0xff]  ;;  %v16899_v58 = vld [vmem:[#allocation66_spill] sm:$0xff] }
 0x2bf   : >> { %16894 = vst [vmem:[#allocation30_spill] sm:$0xff] %v14953_v21  ;;  %v14958_v8 = vadd.f32 %v3419_v2, %v2703_v40  ;;  %v2718_v36 = vadd.f32 %v10719_v41, %v16897_v7  ;;  %11088 = vmatprep.mubr.msk.f32.mxu1 %vm261_vm2, %v5136_v32  ;;  %11201 = vmatprep.mubr.msk.f32.mxu0 %vm261_vm2, %v5927_v35  ;;  %v16901_v40 = vld [vmem:[#allocation67_spill] sm:$0xff]  ;;  %v5139_v32 = vld [vmem:[#allocation2 + $0xd9] sm:$0xff] }
 0x2c0   : >> { %v2712_v5 = vpop.f32.mrf.mxu1  ;;  %v3439_v25 = vpop.f32.mrf.mxu0  ;;  %v5930_v35 = vld [vmem:[#allocation2 + $0xff] sm:$0xff] }
 0x2c1   : >> { %16896 = vst [vmem:[#allocation29_spill] sm:$0xff] %v14958_v8  ;;  %v14963_v13 = vadd.f32 %v10829_v50, %v2718_v36  ;;  %v2713_v21 = vadd.f32 %v2712_v5, %v16899_v58  ;;  %v5140_v36 = vld [vmem:[#allocation2 + $0xe1] sm:$0xff] }
 0x2c2   : >> { %v10722_v3 = vpop.f32.mrf.mxu1  ;;  %11089 = vmatmul.mubr.msk.f32.gmra.mxu1 %vm261_vm2, %v5137_v19  ;;  %v10835_v2 = vpop.f32.mrf.mxu0  ;;  %11202 = vmatmul.mubr.msk.f32.gmra.mxu0 %vm261_vm2, %v5928_v11  ;;  %v5931_v5 = vld [vmem:[#allocation2 + $0x107] sm:$0xff]  ;;  %v16903_v19 = vld [vmem:[#allocation68_spill] sm:$0xff] }
 0x2c3   : >> { %16898 = vst [vmem:[#allocation28_spill] sm:$0xff] %v14963_v13  ;;  %v14968_v41 = vadd.f32 %v3429_v54, %v2713_v21  ;;  %v2728_v59 = vadd.f32 %v10722_v3, %v16901_v40  ;;  %11091 = vmatprep.mubr.msk.f32.mxu1 %vm261_vm2, %v5138_v4  ;;  %11204 = vmatprep.mubr.msk.f32.mxu0 %vm261_vm2, %v5929_v43  ;;  %v16905_v21 = vld [vmem:[#allocation69_spill] sm:$0xff]  ;;  %v5141_v4 = vld [vmem:[#allocation2 + $0xe9] sm:$0xff] }
 0x2c4   : >> { %v2722_v50 = vpop.f32.mrf.mxu1  ;;  %v3449_v7 = vpop.f32.mrf.mxu0  ;;  %v5932_v43 = vld [vmem:[#allocation2 + $0x10f] sm:$0xff] }
 0x2c5   : >> { %16900 = vst [vmem:[#allocation37_spill] sm:$0xff] %v14968_v41  ;;  %v14973_v58 = vadd.f32 %v10832_v49, %v2728_v59  ;;  %v2723_v13 = vadd.f32 %v2722_v50, %v16903_v19  ;;  %v5142_v59 = vld [vmem:[#allocation2 + $0xf1] sm:$0xff] }
 0x2c6   : >> { %v10725_v8 = vpop.f32.mrf.mxu1  ;;  %11092 = vmatmul.mubr.msk.f32.gmra.mxu1 %vm261_vm2, %v5139_v32  ;;  %v10838_v54 = vpop.f32.mrf.mxu0  ;;  %11205 = vmatmul.mubr.msk.f32.gmra.mxu0 %vm261_vm2, %v5930_v35  ;;  %v5933_v50 = vld [vmem:[#allocation2 + $0x117] sm:$0xff]  ;;  %v16907_v32 = vld [vmem:[#allocation70_spill] sm:$0xff] }
 0x2c7   : >> { %16902 = vst [vmem:[#allocation27_spill] sm:$0xff] %v14973_v58  ;;  %v14978_v3 = vadd.f32 %v3439_v25, %v2723_v13  ;;  %v2738_v11 = vadd.f32 %v10725_v8, %v16905_v21  ;;  %11094 = vmatprep.mubr.msk.f32.mxu1 %vm261_vm2, %v5140_v36  ;;  %11207 = vmatprep.mubr.msk.f32.mxu0 %vm261_vm2, %v5931_v5  ;;  %v16908_v13 = vld [vmem:[#allocation71_spill] sm:$0xff]  ;;  %v5143_v36 = vld [vmem:[#allocation2 + $0xf9] sm:$0xff] }
 0x2c8   : >> { %v2732_v49 = vpop.f32.mrf.mxu1  ;;  %v3459_v40 = vpop.f32.mrf.mxu0  ;;  %v5934_v5 = vld [vmem:[#allocation2 + $0x11f] sm:$0xff] }
 0x2c9   : >> { %16904 = vst [vmem:[#allocation36_spill] sm:$0xff] %v14978_v3  ;;  %v14983_v19 = vadd.f32 %v10835_v2, %v2738_v11  ;;  %v2733_v58 = vadd.f32 %v2732_v49, %v16907_v32  ;;  %v5144_v11 = vld [vmem:[#allocation2 + $0x101] sm:$0xff] }
 0x2ca   : >> { %v10728_v41 = vpop.f32.mrf.mxu1  ;;  %11095 = vmatmul.mubr.msk.f32.gmra.mxu1 %vm261_vm2, %v5141_v4  ;;  %v10953_v25 = vpop.f32.mrf.mxu0  ;;  %11208 = vmatmul.mubr.msk.f32.gmra.mxu0 %vm261_vm2, %v5932_v43  ;;  %v5935_v49 = vld [vmem:[#allocation2 + $0x127] sm:$0xff]  ;;  %v16909_v4 = vld [vmem:[#allocation72_spill] sm:$0xff] }
 0x2cb   : >> { %16906 = vst [vmem:[#allocation26_spill] sm:$0xff] %v14983_v19  ;;  %v14988_v8 = vadd.f32 %v3449_v7, %v2733_v58  ;;  %v2748_v35 = vadd.f32 %v10728_v41, %v16908_v13  ;;  %11097 = vmatprep.mubr.msk.f32.mxu1 %vm261_vm2, %v5142_v59  ;;  %11210 = vmatprep.mubr.msk.f32.mxu0 %vm261_vm2, %v5933_v50  ;;  %v5145_v43 = vld [vmem:[#allocation2 + $0x109] sm:$0xff]  ;;  %v5146_v13 = vld [vmem:[#allocation2 + $0x111] sm:$0xff] }
 0x2cc   : >> { %v2742_v2 = vpop.f32.mrf.mxu1  ;;  %v4687_v21 = vpop.f32.mrf.mxu0  ;;  %v5936_v59 = vld [vmem:[#allocation2 + $0x12f] sm:$0xff] }
 0x2cd   : >> { %v14993_v32 = vadd.f32 %v10838_v54, %v2748_v35  ;;  %v2743_v19 = vadd.f32 %v2742_v2, %v16909_v4  ;;  %v5937_v35 = vld [vmem:[#allocation2 + $0x137] sm:$0xff] }
 0x2ce   : >> { %v10843_v3 = vpop.f32.mrf.mxu1  ;;  %11098 = vmatmul.mubr.msk.f32.gmra.mxu1 %vm261_vm2, %v5143_v36  ;;  %v10956_v7 = vpop.f32.mrf.mxu0  ;;  %11211 = vmatmul.mubr.msk.f32.gmra.mxu0 %vm261_vm2, %v5934_v5  ;;  %v5938_v5 = vld [vmem:[#allocation2 + $0x13f] sm:$0xff] }
 0x2cf   : >> { %v14998_v41 = vadd.f32 %v3459_v40, %v2743_v19  ;;  %v4258_v58 = vadd.f32 %v10843_v3, %v14600_v51  ;;  %11100 = vmatprep.mubr.msk.f32.mxu1 %vm261_vm2, %v5144_v11  ;;  %11213 = vmatprep.mubr.msk.f32.mxu0 %vm261_vm2, %v5935_v49  ;;  %v5147_v19 = vld [vmem:[#allocation2 + $0x119] sm:$0xff]  ;;  %v5148_v49 = vld [vmem:[#allocation2 + $0x121] sm:$0xff] }
 0x2d0   : >> { %v3898_v54 = vpop.f32.mrf.mxu1  ;;  %v4697_v50 = vpop.f32.mrf.mxu0 }
 0x2d1   : >> { %v15003_v2 = vadd.f32 %v10953_v25, %v4258_v58  ;;  %v4257_v36 = vadd.f32 %v3898_v54, %v14606_v15  ;;  %v5939_v15 = vld [vmem:[#allocation2 + $0x147] sm:$0xff] }
 0x2d2   : >> { %v10846_v4 = vpop.f32.mrf.mxu1  ;;  %11101 = vmatmul.mubr.msk.f32.gmra.mxu1 %vm261_vm2, %v5145_v43  ;;  %v10959_v40 = vpop.f32.mrf.mxu0  ;;  %11214 = vmatmul.mubr.msk.f32.gmra.mxu0 %vm261_vm2, %v5936_v59 }
 0x2d3   : >> { %v15008_v51 = vadd.f32 %v4687_v21, %v4257_v36  ;;  %v4260_v3 = vadd.f32 %v10846_v4, %v14612_v39  ;;  %11103 = vmatprep.mubr.msk.f32.mxu1 %vm261_vm2, %v5146_v13  ;;  %11216 = vmatprep.mubr.msk.f32.mxu0 %vm261_vm2, %v5937_v35  ;;  %v5149_v13 = vld [vmem:[#allocation2 + $0x129] sm:$0xff]  ;;  %v5150_v4 = vld [vmem:[#allocation2 + $0x131] sm:$0xff] }
 0x2d4   : >> { %v3908_v25 = vpop.f32.mrf.mxu1  ;;  %v4707_v11 = vpop.f32.mrf.mxu0  ;;  %v5940_v35 = vld [vmem:[#allocation2 + $0x14f] sm:$0xff] }
 0x2d5   : >> { %v15013_v58 = vadd.f32 %v10956_v7, %v4260_v3  ;;  %v4259_v43 = vadd.f32 %v3908_v25, %v14618_v20  ;;  %v5941_v20 = vld [vmem:[#allocation2 + $0x157] sm:$0xff] }
 0x2d6   : >> { %v10849_v54 = vpop.f32.mrf.mxu1  ;;  %11104 = vmatmul.mubr.msk.f32.gmra.mxu1 %vm261_vm2, %v5147_v19  ;;  %v10962_v21 = vpop.f32.mrf.mxu0  ;;  %11217 = vmatmul.mubr.msk.f32.gmra.mxu0 %vm261_vm2, %v5938_v5 }
 0x2d7   : >> { %v15018_v39 = vadd.f32 %v4697_v50, %v4259_v43  ;;  %v4262_v59 = vadd.f32 %v10849_v54, %v14624_v48  ;;  %11106 = vmatprep.mubr.msk.f32.mxu1 %vm261_vm2, %v5148_v49  ;;  %11219 = vmatprep.mubr.msk.f32.mxu0 %vm261_vm2, %v5939_v15  ;;  %v5151_v49 = vld [vmem:[#allocation2 + $0x139] sm:$0xff]  ;;  %v5152_v54 = vld [vmem:[#allocation2 + $0x141] sm:$0xff] }
 0x2d8   : >> { %v3918_v7 = vpop.f32.mrf.mxu1  ;;  %v4717_v36 = vpop.f32.mrf.mxu0  ;;  %v5942_v15 = vld [vmem:[#allocation2 + $0x15f] sm:$0xff] }
 0x2d9   : >> { %v15023_v3 = vadd.f32 %v10959_v40, %v4262_v59  ;;  %v4261_v19 = vadd.f32 %v3918_v7, %v14630_v60  ;;  %v5943_v60 = vld [vmem:[#allocation2 + $0x167] sm:$0xff] }
 0x2da   : >> { %v10852_v25 = vpop.f32.mrf.mxu1  ;;  %11107 = vmatmul.mubr.msk.f32.gmra.mxu1 %vm261_vm2, %v5149_v13  ;;  %v10965_v50 = vpop.f32.mrf.mxu0  ;;  %11220 = vmatmul.mubr.msk.f32.gmra.mxu0 %vm261_vm2, %v5940_v35 }
 0x2db   : >> { %v15028_v48 = vadd.f32 %v4707_v11, %v4261_v19  ;;  %v4264_v5 = vadd.f32 %v10852_v25, %v14636_v62  ;;  %11109 = vmatprep.mubr.msk.f32.mxu1 %vm261_vm2, %v5150_v4  ;;  %11222 = vmatprep.mubr.msk.f32.mxu0 %vm261_vm2, %v5941_v20  ;;  %v5153_v4 = vld [vmem:[#allocation2 + $0x149] sm:$0xff]  ;;  %v5154_v25 = vld [vmem:[#allocation2 + $0x151] sm:$0xff] }
 0x2dc   : >> { %v3928_v40 = vpop.f32.mrf.mxu1  ;;  %v4727_v43 = vpop.f32.mrf.mxu0  ;;  %v5944_v20 = vld [vmem:[#allocation2 + $0x16f] sm:$0xff] }
 0x2dd   : >> { %v15033_v59 = vadd.f32 %v10962_v21, %v4264_v5  ;;  %v4263_v13 = vadd.f32 %v3928_v40, %v14642_v61  ;;  %v5945_v61 = vld [vmem:[#allocation2 + $0x177] sm:$0xff] }
 0x2de   : >> { %v10855_v7 = vpop.f32.mrf.mxu1  ;;  %11110 = vmatmul.mubr.msk.f32.gmra.mxu1 %vm261_vm2, %v5151_v49  ;;  %v10968_v11 = vpop.f32.mrf.mxu0  ;;  %11223 = vmatmul.mubr.msk.f32.gmra.mxu0 %vm261_vm2, %v5942_v15 }
 0x2df   : >> { %v15038_v62 = vadd.f32 %v4717_v36, %v4263_v13  ;;  %v4266_v35 = vadd.f32 %v10855_v7, %v14648_v28  ;;  %11112 = vmatprep.mubr.msk.f32.mxu1 %vm261_vm2, %v5152_v54  ;;  %11225 = vmatprep.mubr.msk.f32.mxu0 %vm261_vm2, %v5943_v60  ;;  %v5155_v54 = vld [vmem:[#allocation2 + $0x159] sm:$0xff]  ;;  %v5156_v7 = vld [vmem:[#allocation2 + $0x161] sm:$0xff] }
 0x2e0   : >> { %v3938_v21 = vpop.f32.mrf.mxu1  ;;  %v4737_v19 = vpop.f32.mrf.mxu0  ;;  %v5946_v60 = vld [vmem:[#allocation2 + $0x17f] sm:$0xff] }
 0x2e1   : >> { %v15043_v5 = vadd.f32 %v10965_v50, %v4266_v35  ;;  %v4265_v49 = vadd.f32 %v3938_v21, %v14654_v18  ;;  %v5947_v18 = vld [vmem:[#allocation2 + $0x187] sm:$0xff] }
 0x2e2   : >> { %v10858_v40 = vpop.f32.mrf.mxu1  ;;  %11113 = vmatmul.mubr.msk.f32.gmra.mxu1 %vm261_vm2, %v5153_v4  ;;  %v10971_v36 = vpop.f32.mrf.mxu0  ;;  %11226 = vmatmul.mubr.msk.f32.gmra.mxu0 %vm261_vm2, %v5944_v20 }
 0x2e3   : >> { %v15048_v28 = vadd.f32 %v4727_v43, %v4265_v49  ;;  %v4268_v15 = vadd.f32 %v10858_v40, %v14660_v17  ;;  %11115 = vmatprep.mubr.msk.f32.mxu1 %vm261_vm2, %v5154_v25  ;;  %11228 = vmatprep.mubr.msk.f32.mxu0 %vm261_vm2, %v5945_v61  ;;  %v5157_v25 = vld [vmem:[#allocation2 + $0x169] sm:$0xff]  ;;  %v5158_v40 = vld [vmem:[#allocation2 + $0x171] sm:$0xff] }
 0x2e4   : >> { %v3948_v50 = vpop.f32.mrf.mxu1  ;;  %v4747_v13 = vpop.f32.mrf.mxu0  ;;  %v5948_v61 = vld [vmem:[#allocation2 + $0x18f] sm:$0xff] }
 0x2e5   : >> { %v15053_v35 = vadd.f32 %v10968_v11, %v4268_v15  ;;  %v4267_v4 = vadd.f32 %v3948_v50, %v14666_v37  ;;  %v5949_v37 = vld [vmem:[#allocation2 + $0x197] sm:$0xff] }
 0x2e6   : >> { %v10861_v21 = vpop.f32.mrf.mxu1  ;;  %11116 = vmatmul.mubr.msk.f32.gmra.mxu1 %vm261_vm2, %v5155_v54  ;;  %v10974_v43 = vpop.f32.mrf.mxu0  ;;  %11229 = vmatmul.mubr.msk.f32.gmra.mxu0 %vm261_vm2, %v5946_v60 }
 0x2e7   : >> { %v15058_v17 = vadd.f32 %v4737_v19, %v4267_v4  ;;  %v4270_v20 = vadd.f32 %v10861_v21, %v14672_v30  ;;  %11118 = vmatprep.mubr.msk.f32.mxu1 %vm261_vm2, %v5156_v7  ;;  %11231 = vmatprep.mubr.msk.f32.mxu0 %vm261_vm2, %v5947_v18  ;;  %v5159_v7 = vld [vmem:[#allocation2 + $0x179] sm:$0xff]  ;;  %v5160_v21 = vld [vmem:[#allocation2 + $0x181] sm:$0xff] }
 0x2e8   : >> { %v3958_v11 = vpop.f32.mrf.mxu1  ;;  %v4757_v49 = vpop.f32.mrf.mxu0  ;;  %v5950_v18 = vld [vmem:[#allocation2 + $0x19f] sm:$0xff] }
 0x2e9   : >> { %v15063_v15 = vadd.f32 %v10971_v36, %v4270_v20  ;;  %v4269_v54 = vadd.f32 %v3958_v11, %v14678_v29  ;;  %v5951_v29 = vld [vmem:[#allocation2 + $0x1a7] sm:$0xff] }
 0x2ea   : >> { %v10864_v50 = vpop.f32.mrf.mxu1  ;;  %11119 = vmatmul.mubr.msk.f32.gmra.mxu1 %vm261_vm2, %v5157_v25  ;;  %v10977_v19 = vpop.f32.mrf.mxu0  ;;  %11232 = vmatmul.mubr.msk.f32.gmra.mxu0 %vm261_vm2, %v5948_v61 }
 0x2eb   : >> { %v15068_v30 = vadd.f32 %v4747_v13, %v4269_v54  ;;  %v4272_v60 = vadd.f32 %v10864_v50, %v14684_v26  ;;  %11121 = vmatprep.mubr.msk.f32.mxu1 %vm261_vm2, %v5158_v40  ;;  %11234 = vmatprep.mubr.msk.f32.mxu0 %vm261_vm2, %v5949_v37  ;;  %v5161_v40 = vld [vmem:[#allocation2 + $0x189] sm:$0xff]  ;;  %v5162_v50 = vld [vmem:[#allocation2 + $0x191] sm:$0xff] }
 0x2ec   : >> { %v3968_v36 = vpop.f32.mrf.mxu1  ;;  %v4767_v4 = vpop.f32.mrf.mxu0  ;;  %v5952_v37 = vld [vmem:[#allocation2 + $0x1af] sm:$0xff] }
 0x2ed   : >> { %v15073_v20 = vadd.f32 %v10974_v43, %v4272_v60  ;;  %v4271_v25 = vadd.f32 %v3968_v36, %v14690_v42  ;;  %v5953_v42 = vld [vmem:[#allocation2 + $0x1b7] sm:$0xff] }
 0x2ee   : >> { %v10867_v11 = vpop.f32.mrf.mxu1  ;;  %11122 = vmatmul.mubr.msk.f32.gmra.mxu1 %vm261_vm2, %v5159_v7  ;;  %v10980_v13 = vpop.f32.mrf.mxu0  ;;  %11235 = vmatmul.mubr.msk.f32.gmra.mxu0 %vm261_vm2, %v5950_v18 }
 0x2ef   : >> { %v15078_v26 = vadd.f32 %v4757_v49, %v4271_v25  ;;  %v4274_v61 = vadd.f32 %v10867_v11, %v14696_v9  ;;  %11124 = vmatprep.mubr.msk.f32.mxu1 %vm261_vm2, %v5160_v21  ;;  %11237 = vmatprep.mubr.msk.f32.mxu0 %vm261_vm2, %v5951_v29  ;;  %v5163_v21 = vld [vmem:[#allocation2 + $0x199] sm:$0xff]  ;;  %v5164_v11 = vld [vmem:[#allocation2 + $0x1a1] sm:$0xff] }
 0x2f0   : >> { %v3978_v43 = vpop.f32.mrf.mxu1  ;;  %v4777_v54 = vpop.f32.mrf.mxu0  ;;  %v5954_v29 = vld [vmem:[#allocation2 + $0x1bf] sm:$0xff] }
 0x2f1   : >> { %v15083_v60 = vadd.f32 %v10977_v19, %v4274_v61  ;;  %v4273_v7 = vadd.f32 %v3978_v43, %v14702_v33  ;;  %v5955_v33 = vld [vmem:[#allocation2 + $0x1c7] sm:$0xff] }
 0x2f2   : >> { %v10870_v36 = vpop.f32.mrf.mxu1  ;;  %11125 = vmatmul.mubr.msk.f32.gmra.mxu1 %vm261_vm2, %v5161_v40  ;;  %v10983_v49 = vpop.f32.mrf.mxu0  ;;  %11238 = vmatmul.mubr.msk.f32.gmra.mxu0 %vm261_vm2, %v5952_v37 }
 0x2f3   : >> { %v15088_v9 = vadd.f32 %v4767_v4, %v4273_v7  ;;  %v4276_v18 = vadd.f32 %v10870_v36, %v14708_v55  ;;  %11127 = vmatprep.mubr.msk.f32.mxu1 %vm261_vm2, %v5162_v50  ;;  %11240 = vmatprep.mubr.msk.f32.mxu0 %vm261_vm2, %v5953_v42  ;;  %v5165_v50 = vld [vmem:[#allocation2 + $0x1a9] sm:$0xff]  ;;  %v5166_v36 = vld [vmem:[#allocation2 + $0x1b1] sm:$0xff] }
 0x2f4   : >> { %v3988_v19 = vpop.f32.mrf.mxu1  ;;  %v4787_v25 = vpop.f32.mrf.mxu0  ;;  %v5956_v42 = vld [vmem:[#allocation2 + $0x1cf] sm:$0xff] }
 0x2f5   : >> { %v15093_v61 = vadd.f32 %v10980_v13, %v4276_v18  ;;  %v4275_v40 = vadd.f32 %v3988_v19, %v14714_v46  ;;  %v5957_v46 = vld [vmem:[#allocation2 + $0x1d7] sm:$0xff] }
 0x2f6   : >> { %v10873_v43 = vpop.f32.mrf.mxu1  ;;  %11128 = vmatmul.mubr.msk.f32.gmra.mxu1 %vm261_vm2, %v5163_v21  ;;  %v10986_v4 = vpop.f32.mrf.mxu0  ;;  %11241 = vmatmul.mubr.msk.f32.gmra.mxu0 %vm261_vm2, %v5954_v29 }
 0x2f7   : >> { %v15098_v55 = vadd.f32 %v4777_v54, %v4275_v40  ;;  %v4278_v37 = vadd.f32 %v10873_v43, %v14720_v38  ;;  %11130 = vmatprep.mubr.msk.f32.mxu1 %vm261_vm2, %v5164_v11  ;;  %11243 = vmatprep.mubr.msk.f32.mxu0 %vm261_vm2, %v5955_v33  ;;  %v5167_v11 = vld [vmem:[#allocation2 + $0x1b9] sm:$0xff]  ;;  %v5168_v43 = vld [vmem:[#allocation2 + $0x1c1] sm:$0xff] }
 0x2f8   : >> { %v3998_v13 = vpop.f32.mrf.mxu1  ;;  %v4797_v7 = vpop.f32.mrf.mxu0  ;;  %v5958_v33 = vld [vmem:[#allocation2 + $0x1df] sm:$0xff] }
 0x2f9   : >> { %v15103_v18 = vadd.f32 %v10983_v49, %v4278_v37  ;;  %v4277_v21 = vadd.f32 %v3998_v13, %v14726_v52  ;;  %v5959_v52 = vld [vmem:[#allocation2 + $0x1e7] sm:$0xff] }
 0x2fa   : >> { %v10876_v19 = vpop.f32.mrf.mxu1  ;;  %11131 = vmatmul.mubr.msk.f32.gmra.mxu1 %vm261_vm2, %v5165_v50  ;;  %v10989_v54 = vpop.f32.mrf.mxu0  ;;  %11244 = vmatmul.mubr.msk.f32.gmra.mxu0 %vm261_vm2, %v5956_v42 }
 0x2fb   : >> { %v15108_v38 = vadd.f32 %v4787_v25, %v4277_v21  ;;  %v4280_v29 = vadd.f32 %v10876_v19, %v14732_v27  ;;  %11133 = vmatprep.mubr.msk.f32.mxu1 %vm261_vm2, %v5166_v36  ;;  %11246 = vmatprep.mubr.msk.f32.mxu0 %vm261_vm2, %v5957_v46  ;;  %v5169_v36 = vld [vmem:[#allocation2 + $0x1c9] sm:$0xff]  ;;  %v5170_v19 = vld [vmem:[#allocation2 + $0x1d1] sm:$0xff] }
 0x2fc   : >> { %v4008_v49 = vpop.f32.mrf.mxu1  ;;  %v4807_v40 = vpop.f32.mrf.mxu0  ;;  %v5960_v46 = vld [vmem:[#allocation2 + $0x1ef] sm:$0xff] }
 0x2fd   : >> { %v15113_v37 = vadd.f32 %v10986_v4, %v4280_v29  ;;  %v4279_v50 = vadd.f32 %v4008_v49, %v14738_v45  ;;  %v5961_v45 = vld [vmem:[#allocation2 + $0x1f7] sm:$0xff] }
 0x2fe   : >> { %v10879_v13 = vpop.f32.mrf.mxu1  ;;  %11134 = vmatmul.mubr.msk.f32.gmra.mxu1 %vm261_vm2, %v5167_v11  ;;  %v10992_v25 = vpop.f32.mrf.mxu0  ;;  %11247 = vmatmul.mubr.msk.f32.gmra.mxu0 %vm261_vm2, %v5958_v33 }
 0x2ff   : >> { %v15118_v27 = vadd.f32 %v4797_v7, %v4279_v50  ;;  %v4282_v42 = vadd.f32 %v10879_v13, %v14744_v0  ;;  %11136 = vmatprep.mubr.msk.f32.mxu1 %vm261_vm2, %v5168_v43  ;;  %11249 = vmatprep.mubr.msk.f32.mxu0 %vm261_vm2, %v5959_v52  ;;  %v5171_v43 = vld [vmem:[#allocation2 + $0x1d9] sm:$0xff]  ;;  %v5172_v13 = vld [vmem:[#allocation2 + $0x1e1] sm:$0xff] }
 0x300   : >> { %v4018_v4 = vpop.f32.mrf.mxu1  ;;  %v4817_v21 = vpop.f32.mrf.mxu0  ;;  %v5962_v52 = vld [vmem:[#allocation2 + $0x1ff] sm:$0xff] }
 0x301   : >> { %v15123_v29 = vadd.f32 %v10989_v54, %v4282_v42  ;;  %v4281_v11 = vadd.f32 %v4018_v4, %v14750_v6  ;;  %v5963_v6 = vld [vmem:[#allocation2 + $0x207] sm:$0xff] }
 0x302   : >> { %v10882_v49 = vpop.f32.mrf.mxu1  ;;  %11137 = vmatmul.mubr.msk.f32.gmra.mxu1 %vm261_vm2, %v5169_v36  ;;  %v10995_v7 = vpop.f32.mrf.mxu0  ;;  %11250 = vmatmul.mubr.msk.f32.gmra.mxu0 %vm261_vm2, %v5960_v46 }
 0x303   : >> { %v15128_v0 = vadd.f32 %v4807_v40, %v4281_v11  ;;  %v4284_v33 = vadd.f32 %v10882_v49, %v14756_v1  ;;  %11139 = vmatprep.mubr.msk.f32.mxu1 %vm261_vm2, %v5170_v19  ;;  %11252 = vmatprep.mubr.msk.f32.mxu0 %vm261_vm2, %v5961_v45  ;;  %v5173_v19 = vld [vmem:[#allocation2 + $0x1e9] sm:$0xff]  ;;  %v5174_v49 = vld [vmem:[#allocation2 + $0x1f1] sm:$0xff] }
 0x304   : >> { %v4028_v54 = vpop.f32.mrf.mxu1  ;;  %v4827_v50 = vpop.f32.mrf.mxu0  ;;  %v5964_v45 = vld [vmem:[#allocation2 + $0x20f] sm:$0xff] }
 0x305   : >> { %v15133_v42 = vadd.f32 %v10992_v25, %v4284_v33  ;;  %v4283_v36 = vadd.f32 %v4028_v54, %v14762_v14  ;;  %v5965_v14 = vld [vmem:[#allocation2 + $0x217] sm:$0xff] }
 0x306   : >> { %v10885_v4 = vpop.f32.mrf.mxu1  ;;  %11140 = vmatmul.mubr.msk.f32.gmra.mxu1 %vm261_vm2, %v5171_v43  ;;  %v10998_v40 = vpop.f32.mrf.mxu0  ;;  %11253 = vmatmul.mubr.msk.f32.gmra.mxu0 %vm261_vm2, %v5962_v52 }
 0x307   : >> { %v15138_v1 = vadd.f32 %v4817_v21, %v4283_v36  ;;  %v4286_v46 = vadd.f32 %v10885_v4, %v14768_v34  ;;  %11142 = vmatprep.mubr.msk.f32.mxu1 %vm261_vm2, %v5172_v13  ;;  %11255 = vmatprep.mubr.msk.f32.mxu0 %vm261_vm2, %v5963_v6  ;;  %v5175_v13 = vld [vmem:[#allocation2 + $0x1f9] sm:$0xff]  ;;  %v5176_v4 = vld [vmem:[#allocation2 + $0x201] sm:$0xff] }
 0x308   : >> { %v4038_v25 = vpop.f32.mrf.mxu1  ;;  %v4837_v11 = vpop.f32.mrf.mxu0  ;;  %v5966_v6 = vld [vmem:[#allocation2 + $0x21f] sm:$0xff] }
 0x309   : >> { %v15143_v33 = vadd.f32 %v10995_v7, %v4286_v46  ;;  %v4285_v43 = vadd.f32 %v4038_v25, %v14774_v16  ;;  %v5967_v16 = vld [vmem:[#allocation2 + $0x227] sm:$0xff] }
 0x30a   : >> { %v10888_v54 = vpop.f32.mrf.mxu1  ;;  %11143 = vmatmul.mubr.msk.f32.gmra.mxu1 %vm261_vm2, %v5173_v19  ;;  %v11001_v21 = vpop.f32.mrf.mxu0  ;;  %11256 = vmatmul.mubr.msk.f32.gmra.mxu0 %vm261_vm2, %v5964_v45 }
 0x30b   : >> { %v15148_v34 = vadd.f32 %v4827_v50, %v4285_v43  ;;  %v4288_v52 = vadd.f32 %v10888_v54, %v14780_v10  ;;  %11145 = vmatprep.mubr.msk.f32.mxu1 %vm261_vm2, %v5174_v49  ;;  %11258 = vmatprep.mubr.msk.f32.mxu0 %vm261_vm2, %v5965_v14  ;;  %v5177_v49 = vld [vmem:[#allocation2 + $0x209] sm:$0xff]  ;;  %v5178_v54 = vld [vmem:[#allocation2 + $0x211] sm:$0xff] }
 0x30c   : >> { %v4048_v7 = vpop.f32.mrf.mxu1  ;;  %v4847_v36 = vpop.f32.mrf.mxu0  ;;  %v5968_v14 = vld [vmem:[#allocation2 + $0x22f] sm:$0xff] }
 0x30d   : >> { %v15153_v46 = vadd.f32 %v10998_v40, %v4288_v52  ;;  %v4287_v19 = vadd.f32 %v4048_v7, %v14786_v63  ;;  %v5969_v63 = vld [vmem:[#allocation2 + $0x237] sm:$0xff] }
 0x30e   : >> { %v10891_v25 = vpop.f32.mrf.mxu1  ;;  %11146 = vmatmul.mubr.msk.f32.gmra.mxu1 %vm261_vm2, %v5175_v13  ;;  %v11004_v50 = vpop.f32.mrf.mxu0  ;;  %11259 = vmatmul.mubr.msk.f32.gmra.mxu0 %vm261_vm2, %v5966_v6 }
 0x30f   : >> { %v15158_v10 = vadd.f32 %v4837_v11, %v4287_v19  ;;  %v4290_v45 = vadd.f32 %v10891_v25, %v14792_v23  ;;  %11148 = vmatprep.mubr.msk.f32.mxu1 %vm261_vm2, %v5176_v4  ;;  %11261 = vmatprep.mubr.msk.f32.mxu0 %vm261_vm2, %v5967_v16  ;;  %v5179_v4 = vld [vmem:[#allocation2 + $0x219] sm:$0xff]  ;;  %v5180_v25 = vld [vmem:[#allocation2 + $0x221] sm:$0xff] }
 0x310   : >> { %v4058_v40 = vpop.f32.mrf.mxu1  ;;  %v4857_v43 = vpop.f32.mrf.mxu0  ;;  %v5970_v16 = vld [vmem:[#allocation2 + $0x23f] sm:$0xff] }
 0x311   : >> { %v15163_v52 = vadd.f32 %v11001_v21, %v4290_v45  ;;  %v4289_v13 = vadd.f32 %v4058_v40, %v14798_v56  ;;  %v5971_v56 = vld [vmem:[#allocation2 + $0x247] sm:$0xff] }
 0x312   : >> { %v10894_v7 = vpop.f32.mrf.mxu1  ;;  %11149 = vmatmul.mubr.msk.f32.gmra.mxu1 %vm261_vm2, %v5177_v49  ;;  %v11007_v11 = vpop.f32.mrf.mxu0  ;;  %11262 = vmatmul.mubr.msk.f32.gmra.mxu0 %vm261_vm2, %v5968_v14 }
 0x313   : >> { %v15168_v23 = vadd.f32 %v4847_v36, %v4289_v13  ;;  %v4292_v6 = vadd.f32 %v10894_v7, %v14804_v47  ;;  %11151 = vmatprep.mubr.msk.f32.mxu1 %vm261_vm2, %v5178_v54  ;;  %11264 = vmatprep.mubr.msk.f32.mxu0 %vm261_vm2, %v5969_v63  ;;  %v5181_v54 = vld [vmem:[#allocation2 + $0x229] sm:$0xff]  ;;  %v5182_v7 = vld [vmem:[#allocation2 + $0x231] sm:$0xff] }
 0x314   : >> { %v4068_v21 = vpop.f32.mrf.mxu1  ;;  %v4867_v19 = vpop.f32.mrf.mxu0  ;;  %v5972_v63 = vld [vmem:[#allocation2 + $0x24f] sm:$0xff] }
 0x315   : >> { %v15173_v45 = vadd.f32 %v11004_v50, %v4292_v6  ;;  %v4291_v49 = vadd.f32 %v4068_v21, %v14810_v53  ;;  %v5973_v53 = vld [vmem:[#allocation2 + $0x257] sm:$0xff] }
 0x316   : >> { %v10897_v40 = vpop.f32.mrf.mxu1  ;;  %11152 = vmatmul.mubr.msk.f32.gmra.mxu1 %vm261_vm2, %v5179_v4  ;;  %v11010_v36 = vpop.f32.mrf.mxu0  ;;  %11265 = vmatmul.mubr.msk.f32.gmra.mxu0 %vm261_vm2, %v5970_v16 }
 0x317   : >> { %v15178_v47 = vadd.f32 %v4857_v43, %v4291_v49  ;;  %v4294_v14 = vadd.f32 %v10897_v40, %v14816_v57  ;;  %11154 = vmatprep.mubr.msk.f32.mxu1 %vm261_vm2, %v5180_v25  ;;  %11267 = vmatprep.mubr.msk.f32.mxu0 %vm261_vm2, %v5971_v56  ;;  %v5183_v25 = vld [vmem:[#allocation2 + $0x239] sm:$0xff]  ;;  %v5184_v40 = vld [vmem:[#allocation2 + $0x241] sm:$0xff] }
 0x318   : >> { %v4078_v50 = vpop.f32.mrf.mxu1  ;;  %v4877_v13 = vpop.f32.mrf.mxu0  ;;  %v5974_v56 = vld [vmem:[#allocation2 + $0x25f] sm:$0xff] }
 0x319   : >> { %v15183_v6 = vadd.f32 %v11007_v11, %v4294_v14  ;;  %v4293_v4 = vadd.f32 %v4078_v50, %v14822_v24  ;;  %v5975_v24 = vld [vmem:[#allocation2 + $0x267] sm:$0xff] }
 0x31a   : >> { %v10900_v21 = vpop.f32.mrf.mxu1  ;;  %11155 = vmatmul.mubr.msk.f32.gmra.mxu1 %vm261_vm2, %v5181_v54  ;;  %v11013_v43 = vpop.f32.mrf.mxu0  ;;  %11268 = vmatmul.mubr.msk.f32.gmra.mxu0 %vm261_vm2, %v5972_v63 }
 0x31b   : >> { %v15188_v57 = vadd.f32 %v4867_v19, %v4293_v4  ;;  %v4296_v16 = vadd.f32 %v10900_v21, %v14828_v12  ;;  %11157 = vmatprep.mubr.msk.f32.mxu1 %vm261_vm2, %v5182_v7  ;;  %11270 = vmatprep.mubr.msk.f32.mxu0 %vm261_vm2, %v5973_v53  ;;  %v5185_v7 = vld [vmem:[#allocation2 + $0x249] sm:$0xff]  ;;  %v5186_v21 = vld [vmem:[#allocation2 + $0x251] sm:$0xff] }
 0x31c   : >> { %v4088_v11 = vpop.f32.mrf.mxu1  ;;  %v4887_v49 = vpop.f32.mrf.mxu0  ;;  %v5976_v53 = vld [vmem:[#allocation2 + $0x26f] sm:$0xff] }
 0x31d   : >> { %v15193_v14 = vadd.f32 %v11010_v36, %v4296_v16  ;;  %v4295_v54 = vadd.f32 %v4088_v11, %v14834_v31  ;;  %v5977_v31 = vld [vmem:[#allocation2 + $0x277] sm:$0xff] }
 0x31e   : >> { %v10903_v50 = vpop.f32.mrf.mxu1  ;;  %11158 = vmatmul.mubr.msk.f32.gmra.mxu1 %vm261_vm2, %v5183_v25  ;;  %v11016_v19 = vpop.f32.mrf.mxu0  ;;  %11271 = vmatmul.mubr.msk.f32.gmra.mxu0 %vm261_vm2, %v5974_v56  ;;  %v16913_v56 = vld [vmem:[#allocation18_spill] sm:$0xff] }
 0x31f   : >> { %v15198_v12 = vadd.f32 %v4877_v13, %v4295_v54  ;;  %v4298_v63 = vadd.f32 %v10903_v50, %v14840_v22  ;;  %11160 = vmatprep.mubr.msk.f32.mxu1 %vm261_vm2, %v5184_v40  ;;  %11273 = vmatprep.mubr.msk.f32.mxu0 %vm261_vm2, %v5975_v24  ;;  %v5187_v24 = vld [vmem:[#allocation2 + $0x259] sm:$0xff] }
 0x320   : >> { %v4098_v36 = vpop.f32.mrf.mxu1  ;;  %v4897_v4 = vpop.f32.mrf.mxu0  ;;  %v5978_v54 = vld [vmem:[#allocation2 + $0x27f] sm:$0xff] }
 0x321   : >> { %16910 = vst [vmem:[#allocation35_spill] sm:$0xff] %v15198_v12  ;;  %v15203_v16 = vadd.f32 %v11013_v43, %v4298_v63  ;;  %v4297_v25 = vadd.f32 %v4098_v36, %v14846_v44  ;;  %v5188_v63 = vld [vmem:[#allocation2 + $0x261] sm:$0xff]  ;;  %v7485_v44 = vld [vmem:[#allocation2 + $0x49] sm:$0xff] }
 0x322   : >> { %v10906_v11 = vpop.f32.mrf.mxu1  ;;  %11161 = vmatmul.mubr.msk.f32.gmra.mxu1 %vm261_vm2, %v5185_v7  ;;  %v11019_v13 = vpop.f32.mrf.mxu0  ;;  %11274 = vmatmul.mubr.msk.f32.gmra.mxu0 %vm261_vm2, %v5976_v53  ;;  %v16915_v7 = vld [vmem:[#allocation19_spill] sm:$0xff] }
 0x323   : >> { %16911 = vst [vmem:[#allocation25_spill] sm:$0xff] %v15203_v16  ;;  %v15208_v22 = vadd.f32 %v4887_v49, %v4297_v25  ;;  %v4300_v40 = vadd.f32 %v10906_v11, %v16913_v56  ;;  %11163 = vmatprep.mubr.msk.f32.mxu1 %vm261_vm2, %v5186_v21  ;;  %11276 = vmatprep.mubr.msk.f32.mxu0 %vm261_vm2, %v5977_v31  ;;  %v16917_v21 = vld [vmem:[#allocation20_spill] sm:$0xff]  ;;  %v7486_v11 = vld [vmem:[#allocation2 + $0x51] sm:$0xff] }
 0x324   : >> { %v4108_v43 = vpop.f32.mrf.mxu1  ;;  %v4907_v50 = vpop.f32.mrf.mxu0  ;;  %v5189_v31 = vld [vmem:[#allocation2 + $0x269] sm:$0xff] }
 0x325   : >> { %16912 = vst [vmem:[#allocation34_spill] sm:$0xff] %v15208_v22  ;;  %v15213_v36 = vadd.f32 %v11016_v19, %v4300_v40  ;;  %v4299_v16 = vadd.f32 %v4108_v43, %v16915_v7  ;;  %v6696_v40 = vld [vmem:[#allocation2 + $0x48] sm:$0xff]  ;;  %v7487_v43 = vld [vmem:[#allocation2 + $0x59] sm:$0xff] }
 0x326   : >> { %v10909_v12 = vpop.f32.mrf.mxu1  ;;  %11164 = vmatmul.mubr.msk.f32.gmra.mxu1 %vm261_vm2, %v5187_v24  ;;  %v11022_v49 = vpop.f32.mrf.mxu0  ;;  %11277 = vmatmul.mubr.msk.f32.gmra.mxu0 %vm261_vm2, %v5978_v54  ;;  %v16919_v24 = vld [vmem:[#allocation21_spill] sm:$0xff] }
 0x327   : >> { %16914 = vst [vmem:[#allocation18_spill] sm:$0xff] %v15213_v36  ;;  %v15218_v53 = vadd.f32 %v4897_v4, %v4299_v16  ;;  %v4302_v25 = vadd.f32 %v10909_v12, %v16917_v21  ;;  %11166 = vmatprep.mubr.msk.f32.mxu1 %vm261_vm2, %v5188_v63  ;;  %11391 = vmatprep.mubr.msk.f32.mxu0 %vm261_vm2, %v7485_v44  ;;  %v16921_v16 = vld [vmem:[#allocation17_spill] sm:$0xff]  ;;  %v7488_v44 = vld [vmem:[#allocation2 + $0x61] sm:$0xff] }
 0x328   : >> { %v4118_v19 = vpop.f32.mrf.mxu1  ;;  %v4917_v56 = vpop.f32.mrf.mxu0  ;;  %v6697_v63 = vld [vmem:[#allocation2 + $0x50] sm:$0xff] }
 0x329   : >> { %16916 = vst [vmem:[#allocation19_spill] sm:$0xff] %v15218_v53  ;;  %v15223_v7 = vadd.f32 %v11019_v13, %v4302_v25  ;;  %v4301_v36 = vadd.f32 %v4118_v19, %v16919_v24  ;;  %v6698_v25 = vld [vmem:[#allocation2 + $0x58] sm:$0xff]  ;;  %v7489_v19 = vld [vmem:[#allocation2 + $0x69] sm:$0xff] }
 0x32a   : >> { %v10912_v22 = vpop.f32.mrf.mxu1  ;;  %11167 = vmatmul.mubr.msk.f32.gmra.mxu1 %vm261_vm2, %v5189_v31  ;;  %v11025_v4 = vpop.f32.mrf.mxu0  ;;  %11392 = vmatmul.mubr.msk.f32.vlgmr.msra.gmra.mxu0 %vm261_vm2, %v7486_v11  ;;  %v16923_v31 = vld [vmem:[#allocation15_spill] sm:$0xff] }
 0x32b   : >> { %16918 = vst [vmem:[#allocation20_spill] sm:$0xff] %v15223_v7  ;;  %v15228_v12 = vadd.f32 %v4907_v50, %v4301_v36  ;;  %v4304_v54 = vadd.f32 %v10912_v22, %v16921_v16  ;;  %11281 = vmatprep.mubr.msk.f32.mxu1 %vm261_vm2, %v6696_v40  ;;  %11394 = vmatprep.mubr.msk.f32.mxu0 %vm261_vm2, %v7487_v43  ;;  %v16925_v36 = vld [vmem:[#allocation16_spill] sm:$0xff]  ;;  %v6699_v40 = vld [vmem:[#allocation2 + $0x60] sm:$0xff]  ;;  %v7490_v43 = vld [vmem:[#allocation2 + $0x71] sm:$0xff] }
 0x32c   : >> { %v4128_v13 = vpop.f32.mrf.mxu1  ;;  %v4927_v21 = vpop.f32.mrf.mxu0 }
 0x32d   : >> { %16920 = vst [vmem:[#allocation21_spill] sm:$0xff] %v15228_v12  ;;  %v15233_v24 = vadd.f32 %v11022_v49, %v4304_v54  ;;  %v4303_v7 = vadd.f32 %v4128_v13, %v16923_v31  ;;  %v6700_v54 = vld [vmem:[#allocation2 + $0x68] sm:$0xff]  ;;  %v7491_v13 = vld [vmem:[#allocation2 + $0x79] sm:$0xff] }
 0x32e   : >> { %v10915_v53 = vpop.f32.mrf.mxu1  ;;  %11282 = vmatmul.mubr.msk.f32.vlgmr.msra.gmra.mxu1 %vm261_vm2, %v6697_v63  ;;  %v11028_v50 = vpop.f32.mrf.mxu0  ;;  %11395 = vmatmul.mubr.msk.f32.gmra.mxu0 %vm261_vm2, %v7488_v44  ;;  %v16927_v63 = vld [vmem:[#allocation13_spill] sm:$0xff] }
 0x32f   : >> { %16922 = vst [vmem:[#allocation17_spill] sm:$0xff] %v15233_v24  ;;  %v15238_v22 = vadd.f32 %v4917_v56, %v4303_v7  ;;  %v4306_v11 = vadd.f32 %v10915_v53, %v16925_v36  ;;  %11284 = vmatprep.mubr.msk.f32.mxu1 %vm261_vm2, %v6698_v25  ;;  %11397 = vmatprep.mubr.msk.f32.mxu0 %vm261_vm2, %v7489_v19  ;;  %v16929_v7 = vld [vmem:[#allocation14_spill] sm:$0xff]  ;;  %v6701_v25 = vld [vmem:[#allocation2 + $0x70] sm:$0xff]  ;;  %v7492_v19 = vld [vmem:[#allocation2 + $0x81] sm:$0xff] }
 0x330   : >> { %v4138_v49 = vpop.f32.mrf.mxu1  ;;  %v4937_v16 = vpop.f32.mrf.mxu0 }
 0x331   : >> { %16924 = vst [vmem:[#allocation15_spill] sm:$0xff] %v15238_v22  ;;  %v15243_v31 = vadd.f32 %v11025_v4, %v4306_v11  ;;  %v4305_v24 = vadd.f32 %v4138_v49, %v16927_v63  ;;  %v6702_v11 = vld [vmem:[#allocation2 + $0x78] sm:$0xff]  ;;  %v7493_v49 = vld [vmem:[#allocation2 + $0x89] sm:$0xff] }
 0x332   : >> { %v10918_v12 = vpop.f32.mrf.mxu1  ;;  %11285 = vmatmul.mubr.msk.f32.gmra.mxu1 %vm261_vm2, %v6699_v40  ;;  %v11031_v56 = vpop.f32.mrf.mxu0  ;;  %11398 = vmatmul.mubr.msk.f32.gmra.mxu0 %vm261_vm2, %v7490_v43  ;;  %v16931_v40 = vld [vmem:[#allocation11_spill] sm:$0xff] }
 0x333   : >> { %16926 = vst [vmem:[#allocation16_spill] sm:$0xff] %v15243_v31  ;;  %v15248_v53 = vadd.f32 %v4927_v21, %v4305_v24  ;;  %v4308_v44 = vadd.f32 %v10918_v12, %v16929_v7  ;;  %11287 = vmatprep.mubr.msk.f32.mxu1 %vm261_vm2, %v6700_v54  ;;  %11400 = vmatprep.mubr.msk.f32.mxu0 %vm261_vm2, %v7491_v13  ;;  %v16933_v24 = vld [vmem:[#allocation12_spill] sm:$0xff]  ;;  %v6703_v54 = vld [vmem:[#allocation2 + $0x80] sm:$0xff]  ;;  %v7494_v13 = vld [vmem:[#allocation2 + $0x91] sm:$0xff] }
 0x334   : >> { %v4148_v4 = vpop.f32.mrf.mxu1  ;;  %v4947_v36 = vpop.f32.mrf.mxu0 }
 0x335   : >> { %16928 = vst [vmem:[#allocation13_spill] sm:$0xff] %v15248_v53  ;;  %v15253_v63 = vadd.f32 %v11028_v50, %v4308_v44  ;;  %v4307_v31 = vadd.f32 %v4148_v4, %v16931_v40  ;;  %v6704_v44 = vld [vmem:[#allocation2 + $0x88] sm:$0xff]  ;;  %v7495_v4 = vld [vmem:[#allocation2 + $0x99] sm:$0xff] }
 0x336   : >> { %v10921_v22 = vpop.f32.mrf.mxu1  ;;  %11288 = vmatmul.mubr.msk.f32.gmra.mxu1 %vm261_vm2, %v6701_v25  ;;  %v11034_v21 = vpop.f32.mrf.mxu0  ;;  %11401 = vmatmul.mubr.msk.f32.gmra.mxu0 %vm261_vm2, %v7492_v19  ;;  %v16935_v25 = vld [vmem:[#allocation9_spill] sm:$0xff] }
 0x337   : >> { %16930 = vst [vmem:[#allocation14_spill] sm:$0xff] %v15253_v63  ;;  %v15258_v12 = vadd.f32 %v4937_v16, %v4307_v31  ;;  %v4310_v43 = vadd.f32 %v10921_v22, %v16933_v24  ;;  %11290 = vmatprep.mubr.msk.f32.mxu1 %vm261_vm2, %v6702_v11  ;;  %11403 = vmatprep.mubr.msk.f32.mxu0 %vm261_vm2, %v7493_v49  ;;  %v16937_v31 = vld [vmem:[#allocation10_spill] sm:$0xff]  ;;  %v6705_v11 = vld [vmem:[#allocation2 + $0x90] sm:$0xff]  ;;  %v7496_v49 = vld [vmem:[#allocation2 + $0xa1] sm:$0xff] }
 0x338   : >> { %v4158_v50 = vpop.f32.mrf.mxu1  ;;  %v4957_v7 = vpop.f32.mrf.mxu0 }
 0x339   : >> { %16932 = vst [vmem:[#allocation11_spill] sm:$0xff] %v15258_v12  ;;  %v15263_v40 = vadd.f32 %v11031_v56, %v4310_v43  ;;  %v4309_v63 = vadd.f32 %v4158_v50, %v16935_v25  ;;  %v6706_v43 = vld [vmem:[#allocation2 + $0x98] sm:$0xff]  ;;  %v7497_v50 = vld [vmem:[#allocation2 + $0xa9] sm:$0xff] }
 0x33a   : >> { %v10924_v53 = vpop.f32.mrf.mxu1  ;;  %11291 = vmatmul.mubr.msk.f32.gmra.mxu1 %vm261_vm2, %v6703_v54  ;;  %v11037_v16 = vpop.f32.mrf.mxu0  ;;  %11404 = vmatmul.mubr.msk.f32.gmra.mxu0 %vm261_vm2, %v7494_v13  ;;  %v16939_v54 = vld [vmem:[#allocation7_spill] sm:$0xff] }
 0x33b   : >> { %16934 = vst [vmem:[#allocation12_spill] sm:$0xff] %v15263_v40  ;;  %v15268_v22 = vadd.f32 %v4947_v36, %v4309_v63  ;;  %v4312_v19 = vadd.f32 %v10924_v53, %v16937_v31  ;;  %11293 = vmatprep.mubr.msk.f32.mxu1 %vm261_vm2, %v6704_v44  ;;  %11406 = vmatprep.mubr.msk.f32.mxu0 %vm261_vm2, %v7495_v4  ;;  %v16941_v63 = vld [vmem:[#allocation8_spill] sm:$0xff]  ;;  %v6707_v44 = vld [vmem:[#allocation2 + $0xa0] sm:$0xff]  ;;  %v7498_v4 = vld [vmem:[#allocation2 + $0xb1] sm:$0xff] }
 0x33c   : >> { %v4168_v56 = vpop.f32.mrf.mxu1  ;;  %v4967_v24 = vpop.f32.mrf.mxu0 }
 0x33d   : >> { %16936 = vst [vmem:[#allocation9_spill] sm:$0xff] %v15268_v22  ;;  %v15273_v25 = vadd.f32 %v11034_v21, %v4312_v19  ;;  %v4311_v40 = vadd.f32 %v4168_v56, %v16939_v54  ;;  %v6708_v19 = vld [vmem:[#allocation2 + $0xa8] sm:$0xff]  ;;  %v7499_v56 = vld [vmem:[#allocation2 + $0xb9] sm:$0xff] }
 0x33e   : >> { %v10927_v12 = vpop.f32.mrf.mxu1  ;;  %11294 = vmatmul.mubr.msk.f32.gmra.mxu1 %vm261_vm2, %v6705_v11  ;;  %v11040_v36 = vpop.f32.mrf.mxu0  ;;  %11407 = vmatmul.mubr.msk.f32.gmra.mxu0 %vm261_vm2, %v7496_v49  ;;  %v16943_v11 = vld [vmem:[#allocation5_spill] sm:$0xff] }
 0x33f   : >> { %16938 = vst [vmem:[#allocation10_spill] sm:$0xff] %v15273_v25  ;;  %v15278_v53 = vadd.f32 %v4957_v7, %v4311_v40  ;;  %v4314_v13 = vadd.f32 %v10927_v12, %v16941_v63  ;;  %11296 = vmatprep.mubr.msk.f32.mxu1 %vm261_vm2, %v6706_v43  ;;  %11409 = vmatprep.mubr.msk.f32.mxu0 %vm261_vm2, %v7497_v50  ;;  %v16945_v40 = vld [vmem:[#allocation32_spill] sm:$0xff]  ;;  %v7500_v50 = vld [vmem:[#allocation2 + $0xc1] sm:$0xff] }
 0x340   : >> { %v4178_v21 = vpop.f32.mrf.mxu1  ;;  %v4977_v31 = vpop.f32.mrf.mxu0  ;;  %v6709_v43 = vld [vmem:[#allocation2 + $0xb0] sm:$0xff] }
 0x341   : >> { %16940 = vst [vmem:[#allocation7_spill] sm:$0xff] %v15278_v53  ;;  %v15283_v54 = vadd.f32 %v11037_v16, %v4314_v13  ;;  %v4313_v25 = vadd.f32 %v4178_v21, %v16943_v11  ;;  %v6710_v13 = vld [vmem:[#allocation2 + $0xb8] sm:$0xff]  ;;  %v7501_v21 = vld [vmem:[#allocation2 + $0xc9] sm:$0xff] }
 0x342   : >> { %v10930_v22 = vpop.f32.mrf.mxu1  ;;  %11297 = vmatmul.mubr.msk.f32.gmra.mxu1 %vm261_vm2, %v6707_v44  ;;  %v11043_v7 = vpop.f32.mrf.mxu0  ;;  %11410 = vmatmul.mubr.msk.f32.gmra.mxu0 %vm261_vm2, %v7498_v4  ;;  %v16947_v44 = vld [vmem:[#allocation39_spill] sm:$0xff] }
 0x343   : >> { %16942 = vst [vmem:[#allocation8_spill] sm:$0xff] %v15283_v54  ;;  %v15288_v12 = vadd.f32 %v4967_v24, %v4313_v25  ;;  %v4316_v49 = vadd.f32 %v10930_v22, %v16945_v40  ;;  %11299 = vmatprep.mubr.msk.f32.mxu1 %vm261_vm2, %v6708_v19  ;;  %11412 = vmatprep.mubr.msk.f32.mxu0 %vm261_vm2, %v7499_v56  ;;  %v16949_v25 = vld [vmem:[#allocation31_spill] sm:$0xff]  ;;  %v6711_v19 = vld [vmem:[#allocation2 + $0xc0] sm:$0xff]  ;;  %v7502_v56 = vld [vmem:[#allocation2 + $0xd1] sm:$0xff] }
 0x344   : >> { %v4188_v16 = vpop.f32.mrf.mxu1  ;;  %v4987_v63 = vpop.f32.mrf.mxu0 }
 0x345   : >> { %16944 = vst [vmem:[#allocation5_spill] sm:$0xff] %v15288_v12  ;;  %v15293_v11 = vadd.f32 %v11040_v36, %v4316_v49  ;;  %v4315_v54 = vadd.f32 %v4188_v16, %v16947_v44  ;;  %v6712_v49 = vld [vmem:[#allocation2 + $0xc8] sm:$0xff]  ;;  %v7503_v16 = vld [vmem:[#allocation2 + $0xd9] sm:$0xff] }
 0x346   : >> { %v10933_v53 = vpop.f32.mrf.mxu1  ;;  %11300 = vmatmul.mubr.msk.f32.gmra.mxu1 %vm261_vm2, %v6709_v43  ;;  %v11046_v24 = vpop.f32.mrf.mxu0  ;;  %11413 = vmatmul.mubr.msk.f32.gmra.mxu0 %vm261_vm2, %v7500_v50  ;;  %v16951_v43 = vld [vmem:[#allocation38_spill] sm:$0xff] }
 0x347   : >> { %16946 = vst [vmem:[#allocation40_spill] sm:$0xff] %v15293_v11  ;;  %v15298_v22 = vadd.f32 %v4977_v31, %v4315_v54  ;;  %v4318_v4 = vadd.f32 %v10933_v53, %v16949_v25  ;;  %11302 = vmatprep.mubr.msk.f32.mxu1 %vm261_vm2, %v6710_v13  ;;  %11415 = vmatprep.mubr.msk.f32.mxu0 %vm261_vm2, %v7501_v21  ;;  %v16953_v54 = vld [vmem:[#allocation30_spill] sm:$0xff]  ;;  %v6713_v13 = vld [vmem:[#allocation2 + $0xd0] sm:$0xff] }
 0x348   : >> { %v4198_v36 = vpop.f32.mrf.mxu1  ;;  %v4997_v40 = vpop.f32.mrf.mxu0  ;;  %v7504_v21 = vld [vmem:[#allocation2 + $0xe1] sm:$0xff] }
 0x349   : >> { %16948 = vst [vmem:[#allocation33_spill] sm:$0xff] %v15298_v22  ;;  %v15303_v44 = vadd.f32 %v11043_v7, %v4318_v4  ;;  %v4317_v11 = vadd.f32 %v4198_v36, %v16951_v43  ;;  %v6714_v4 = vld [vmem:[#allocation2 + $0xd8] sm:$0xff]  ;;  %v7505_v36 = vld [vmem:[#allocation2 + $0xe9] sm:$0xff] }
 0x34a   : >> { %v10936_v12 = vpop.f32.mrf.mxu1  ;;  %11303 = vmatmul.mubr.msk.f32.gmra.mxu1 %vm261_vm2, %v6711_v19  ;;  %v11049_v31 = vpop.f32.mrf.mxu0  ;;  %11416 = vmatmul.mubr.msk.f32.gmra.mxu0 %vm261_vm2, %v7502_v56  ;;  %v16955_v19 = vld [vmem:[#allocation29_spill] sm:$0xff] }
 0x34b   : >> { %16950 = vst [vmem:[#allocation42_spill] sm:$0xff] %v15303_v44  ;;  %v15308_v53 = vadd.f32 %v4987_v63, %v4317_v11  ;;  %v4320_v50 = vadd.f32 %v10936_v12, %v16953_v54  ;;  %11305 = vmatprep.mubr.msk.f32.mxu1 %vm261_vm2, %v6712_v49  ;;  %11418 = vmatprep.mubr.msk.f32.mxu0 %vm261_vm2, %v7503_v16  ;;  %v16957_v11 = vld [vmem:[#allocation28_spill] sm:$0xff]  ;;  %v6715_v49 = vld [vmem:[#allocation2 + $0xe0] sm:$0xff] }
 0x34c   : >> { %v4208_v7 = vpop.f32.mrf.mxu1  ;;  %v5007_v25 = vpop.f32.mrf.mxu0  ;;  %v7506_v16 = vld [vmem:[#allocation2 + $0xf1] sm:$0xff] }
 0x34d   : >> { %16952 = vst [vmem:[#allocation24_spill] sm:$0xff] %v15308_v53  ;;  %v15313_v43 = vadd.f32 %v11046_v24, %v4320_v50  ;;  %v4319_v44 = vadd.f32 %v4208_v7, %v16955_v19  ;;  %v6716_v50 = vld [vmem:[#allocation2 + $0xe8] sm:$0xff]  ;;  %v7507_v7 = vld [vmem:[#allocation2 + $0xf9] sm:$0xff] }
 0x34e   : >> { %v10939_v22 = vpop.f32.mrf.mxu1  ;;  %11306 = vmatmul.mubr.msk.f32.gmra.mxu1 %vm261_vm2, %v6713_v13  ;;  %v11052_v63 = vpop.f32.mrf.mxu0  ;;  %11419 = vmatmul.mubr.msk.f32.gmra.mxu0 %vm261_vm2, %v7504_v21  ;;  %v16959_v13 = vld [vmem:[#allocation37_spill] sm:$0xff] }
 0x34f   : >> { %16954 = vst [vmem:[#allocation44_spill] sm:$0xff] %v15313_v43  ;;  %v15318_v12 = vadd.f32 %v4997_v40, %v4319_v44  ;;  %v4322_v56 = vadd.f32 %v10939_v22, %v16957_v11  ;;  %11308 = vmatprep.mubr.msk.f32.mxu1 %vm261_vm2, %v6714_v4  ;;  %11421 = vmatprep.mubr.msk.f32.mxu0 %vm261_vm2, %v7505_v36  ;;  %v16960_v44 = vld [vmem:[#allocation27_spill] sm:$0xff]  ;;  %v6717_v4 = vld [vmem:[#allocation2 + $0xf0] sm:$0xff] }
 0x350   : >> { %v4218_v24 = vpop.f32.mrf.mxu1  ;;  %v5017_v54 = vpop.f32.mrf.mxu0  ;;  %v7508_v36 = vld [vmem:[#allocation2 + $0x101] sm:$0xff] }
 0x351   : >> { %16956 = vst [vmem:[#allocation41_spill] sm:$0xff] %v15318_v12  ;;  %v15323_v19 = vadd.f32 %v11049_v31, %v4322_v56  ;;  %v4321_v43 = vadd.f32 %v4218_v24, %v16959_v13  ;;  %v6718_v56 = vld [vmem:[#allocation2 + $0xf8] sm:$0xff]  ;;  %v7509_v24 = vld [vmem:[#allocation2 + $0x109] sm:$0xff] }
 0x352   : >> { %v10942_v53 = vpop.f32.mrf.mxu1  ;;  %11309 = vmatmul.mubr.msk.f32.gmra.mxu1 %vm261_vm2, %v6715_v49  ;;  %v11055_v40 = vpop.f32.mrf.mxu0  ;;  %11422 = vmatmul.mubr.msk.f32.gmra.mxu0 %vm261_vm2, %v7506_v16  ;;  %v16962_v49 = vld [vmem:[#allocation36_spill] sm:$0xff] }
 0x353   : >> { %16958 = vst [vmem:[#allocation43_spill] sm:$0xff] %v15323_v19  ;;  %v15328_v22 = vadd.f32 %v5007_v25, %v4321_v43  ;;  %v4324_v21 = vadd.f32 %v10942_v53, %v16960_v44  ;;  %11311 = vmatprep.mubr.msk.f32.mxu1 %vm261_vm2, %v6716_v50  ;;  %11424 = vmatprep.mubr.msk.f32.mxu0 %vm261_vm2, %v7507_v7  ;;  %v16963_v43 = vld [vmem:[#allocation26_spill] sm:$0xff]  ;;  %v7510_v7 = vld [vmem:[#allocation2 + $0x111] sm:$0xff] }
 0x354   : >> { %v4228_v31 = vpop.f32.mrf.mxu1  ;;  %v5027_v11 = vpop.f32.mrf.mxu0  ;;  %v6719_v50 = vld [vmem:[#allocation2 + $0x100] sm:$0xff] }
 0x355   : >> { %v15333_v13 = vadd.f32 %v11052_v63, %v4324_v21  ;;  %v4323_v19 = vadd.f32 %v4228_v31, %v16962_v49  ;;  %v6720_v21 = vld [vmem:[#allocation2 + $0x108] sm:$0xff]  ;;  %v7511_v31 = vld [vmem:[#allocation2 + $0x119] sm:$0xff] }
 0x356   : >> { %v10945_v12 = vpop.f32.mrf.mxu1  ;;  %11312 = vmatmul.mubr.msk.f32.gmra.mxu1 %vm261_vm2, %v6717_v4  ;;  %v11058_v25 = vpop.f32.mrf.mxu0  ;;  %11425 = vmatmul.mubr.msk.f32.gmra.mxu0 %vm261_vm2, %v7508_v36  ;;  %v6721_v36 = vld [vmem:[#allocation2 + $0x110] sm:$0xff] }
 0x357   : >> { %16961 = vst [vmem:[#allocation45_spill] sm:$0xff] %v15333_v13  ;;  %v15338_v53 = vadd.f32 %v5017_v54, %v4323_v19  ;;  %v4326_v16 = vadd.f32 %v10945_v12, %v16963_v43  ;;  %11314 = vmatprep.mubr.msk.f32.mxu1 %vm261_vm2, %v6718_v56  ;;  %11427 = vmatprep.mubr.msk.f32.mxu0 %vm261_vm2, %v7509_v24  ;;  %v7512_v56 = vld [vmem:[#allocation2 + $0x121] sm:$0xff]  ;;  %v6722_v43 = vld [vmem:[#allocation2 + $0x118] sm:$0xff] }
 0x358   : >> { %v4238_v63 = vpop.f32.mrf.mxu1  ;;  %v5037_v44 = vpop.f32.mrf.mxu0 }
 0x359   : >> { %v15343_v49 = vadd.f32 %v11055_v40, %v4326_v16  ;;  %v4325_v4 = vadd.f32 %v4238_v63, %v14988_v8  ;;  %v7513_v8 = vld [vmem:[#allocation2 + $0x129] sm:$0xff] }
 0x35a   : >> { %v10948_v13 = vpop.f32.mrf.mxu1  ;;  %11315 = vmatmul.mubr.msk.f32.gmra.mxu1 %vm261_vm2, %v6719_v50  ;;  %v11173_v54 = vpop.f32.mrf.mxu0  ;;  %11428 = vmatmul.mubr.msk.f32.gmra.mxu0 %vm261_vm2, %v7510_v7  ;;  %v6723_v7 = vld [vmem:[#allocation2 + $0x120] sm:$0xff] }
 0x35b   : >> { %v15348_v12 = vadd.f32 %v5027_v11, %v4325_v4  ;;  %v4328_v19 = vadd.f32 %v10948_v13, %v14993_v32  ;;  %11317 = vmatprep.mubr.msk.f32.mxu1 %vm261_vm2, %v6720_v21  ;;  %11430 = vmatprep.mubr.msk.f32.mxu0 %vm261_vm2, %v7511_v31  ;;  %v7514_v21 = vld [vmem:[#allocation2 + $0x131] sm:$0xff]  ;;  %v6724_v4 = vld [vmem:[#allocation2 + $0x128] sm:$0xff] }
 0x35c   : >> { %v4248_v40 = vpop.f32.mrf.mxu1  ;;  %v6265_v24 = vpop.f32.mrf.mxu0 }
 0x35d   : >> { %v15353_v16 = vadd.f32 %v11058_v25, %v4328_v19  ;;  %v4327_v50 = vadd.f32 %v4248_v40, %v14998_v41  ;;  %v7515_v41 = vld [vmem:[#allocation2 + $0x139] sm:$0xff] }
 0x35e   : >> { %v11063_v63 = vpop.f32.mrf.mxu1  ;;  %11318 = vmatmul.mubr.msk.f32.gmra.mxu1 %vm261_vm2, %v6721_v36  ;;  %v11176_v11 = vpop.f32.mrf.mxu0  ;;  %11431 = vmatmul.mubr.msk.f32.gmra.mxu0 %vm261_vm2, %v7512_v56 }
 0x35f   : >> { %v15358_v32 = vadd.f32 %v5037_v44, %v4327_v50  ;;  %v5836_v13 = vadd.f32 %v11063_v63, %v15003_v2  ;;  %11320 = vmatprep.mubr.msk.f32.mxu1 %vm261_vm2, %v6722_v43  ;;  %11433 = vmatprep.mubr.msk.f32.mxu0 %vm261_vm2, %v7513_v8  ;;  %v6725_v43 = vld [vmem:[#allocation2 + $0x130] sm:$0xff]  ;;  %v7516_v8 = vld [vmem:[#allocation2 + $0x141] sm:$0xff]  ;;  %v6726_v63 = vld [vmem:[#allocation2 + $0x138] sm:$0xff] }
 0x360   : >> { %v5476_v25 = vpop.f32.mrf.mxu1  ;;  %v6275_v31 = vpop.f32.mrf.mxu0 }
 0x361   : >> { %v15363_v19 = vadd.f32 %v11173_v54, %v5836_v13  ;;  %v5835_v36 = vadd.f32 %v5476_v25, %v15008_v51  ;;  %v7517_v51 = vld [vmem:[#allocation2 + $0x149] sm:$0xff] }
 0x362   : >> { %v11066_v40 = vpop.f32.mrf.mxu1  ;;  %11321 = vmatmul.mubr.msk.f32.gmra.mxu1 %vm261_vm2, %v6723_v7  ;;  %v11179_v44 = vpop.f32.mrf.mxu0  ;;  %11434 = vmatmul.mubr.msk.f32.gmra.mxu0 %vm261_vm2, %v7514_v21 }
 0x363   : >> { %v15368_v2 = vadd.f32 %v6265_v24, %v5835_v36  ;;  %v5838_v56 = vadd.f32 %v11066_v40, %v15013_v58  ;;  %11323 = vmatprep.mubr.msk.f32.mxu1 %vm261_vm2, %v6724_v4  ;;  %11436 = vmatprep.mubr.msk.f32.mxu0 %vm261_vm2, %v7515_v41  ;;  %v6727_v4 = vld [vmem:[#allocation2 + $0x140] sm:$0xff]  ;;  %v7518_v41 = vld [vmem:[#allocation2 + $0x151] sm:$0xff]  ;;  %v6728_v40 = vld [vmem:[#allocation2 + $0x148] sm:$0xff] }
 0x364   : >> { %v5486_v54 = vpop.f32.mrf.mxu1  ;;  %v6285_v50 = vpop.f32.mrf.mxu0 }
 0x365   : >> { %v15373_v13 = vadd.f32 %v11176_v11, %v5838_v56  ;;  %v5837_v7 = vadd.f32 %v5486_v54, %v15018_v39  ;;  %v7519_v39 = vld [vmem:[#allocation2 + $0x159] sm:$0xff] }
 0x366   : >> { %v11069_v25 = vpop.f32.mrf.mxu1  ;;  %11324 = vmatmul.mubr.msk.f32.gmra.mxu1 %vm261_vm2, %v6725_v43  ;;  %v11182_v24 = vpop.f32.mrf.mxu0  ;;  %11437 = vmatmul.mubr.msk.f32.gmra.mxu0 %vm261_vm2, %v7516_v8 }
 0x367   : >> { %v15378_v58 = vadd.f32 %v6275_v31, %v5837_v7  ;;  %v5840_v21 = vadd.f32 %v11069_v25, %v15023_v3  ;;  %11326 = vmatprep.mubr.msk.f32.mxu1 %vm261_vm2, %v6726_v63  ;;  %11439 = vmatprep.mubr.msk.f32.mxu0 %vm261_vm2, %v7517_v51  ;;  %v6729_v63 = vld [vmem:[#allocation2 + $0x150] sm:$0xff]  ;;  %v7520_v51 = vld [vmem:[#allocation2 + $0x161] sm:$0xff]  ;;  %v6730_v25 = vld [vmem:[#allocation2 + $0x158] sm:$0xff] }
 0x368   : >> { %v5496_v11 = vpop.f32.mrf.mxu1  ;;  %v6295_v36 = vpop.f32.mrf.mxu0 }
 0x369   : >> { %v15383_v56 = vadd.f32 %v11179_v44, %v5840_v21  ;;  %v5839_v43 = vadd.f32 %v5496_v11, %v15028_v48  ;;  %v7521_v48 = vld [vmem:[#allocation2 + $0x169] sm:$0xff] }
 0x36a   : >> { %v11072_v54 = vpop.f32.mrf.mxu1  ;;  %11327 = vmatmul.mubr.msk.f32.gmra.mxu1 %vm261_vm2, %v6727_v4  ;;  %v11185_v31 = vpop.f32.mrf.mxu0  ;;  %11440 = vmatmul.mubr.msk.f32.gmra.mxu0 %vm261_vm2, %v7518_v41 }
 0x36b   : >> { %v15388_v3 = vadd.f32 %v6285_v50, %v5839_v43  ;;  %v5842_v8 = vadd.f32 %v11072_v54, %v15033_v59  ;;  %11329 = vmatprep.mubr.msk.f32.mxu1 %vm261_vm2, %v6728_v40  ;;  %11442 = vmatprep.mubr.msk.f32.mxu0 %vm261_vm2, %v7519_v39  ;;  %v6731_v40 = vld [vmem:[#allocation2 + $0x160] sm:$0xff]  ;;  %v7522_v39 = vld [vmem:[#allocation2 + $0x171] sm:$0xff]  ;;  %v6732_v54 = vld [vmem:[#allocation2 + $0x168] sm:$0xff] }
 0x36c   : >> { %v5506_v44 = vpop.f32.mrf.mxu1  ;;  %v6305_v7 = vpop.f32.mrf.mxu0 }
 0x36d   : >> { %v15393_v21 = vadd.f32 %v11182_v24, %v5842_v8  ;;  %v5841_v4 = vadd.f32 %v5506_v44, %v15038_v62  ;;  %v7523_v62 = vld [vmem:[#allocation2 + $0x179] sm:$0xff] }
 0x36e   : >> { %v11075_v11 = vpop.f32.mrf.mxu1  ;;  %11330 = vmatmul.mubr.msk.f32.gmra.mxu1 %vm261_vm2, %v6729_v63  ;;  %v11188_v50 = vpop.f32.mrf.mxu0  ;;  %11443 = vmatmul.mubr.msk.f32.gmra.mxu0 %vm261_vm2, %v7520_v51 }
 0x36f   : >> { %v15398_v59 = vadd.f32 %v6295_v36, %v5841_v4  ;;  %v5844_v41 = vadd.f32 %v11075_v11, %v15043_v5  ;;  %11332 = vmatprep.mubr.msk.f32.mxu1 %vm261_vm2, %v6730_v25  ;;  %11445 = vmatprep.mubr.msk.f32.mxu0 %vm261_vm2, %v7521_v48  ;;  %v6733_v25 = vld [vmem:[#allocation2 + $0x170] sm:$0xff]  ;;  %v7524_v48 = vld [vmem:[#allocation2 + $0x181] sm:$0xff]  ;;  %v6734_v11 = vld [vmem:[#allocation2 + $0x178] sm:$0xff] }
 0x370   : >> { %v5516_v24 = vpop.f32.mrf.mxu1  ;;  %v6315_v43 = vpop.f32.mrf.mxu0 }
 0x371   : >> { %v15403_v8 = vadd.f32 %v11185_v31, %v5844_v41  ;;  %v5843_v63 = vadd.f32 %v5516_v24, %v15048_v28  ;;  %v7525_v28 = vld [vmem:[#allocation2 + $0x189] sm:$0xff] }
 0x372   : >> { %v11078_v44 = vpop.f32.mrf.mxu1  ;;  %11333 = vmatmul.mubr.msk.f32.gmra.mxu1 %vm261_vm2, %v6731_v40  ;;  %v11191_v36 = vpop.f32.mrf.mxu0  ;;  %11446 = vmatmul.mubr.msk.f32.gmra.mxu0 %vm261_vm2, %v7522_v39 }
 0x373   : >> { %v15408_v5 = vadd.f32 %v6305_v7, %v5843_v63  ;;  %v5846_v51 = vadd.f32 %v11078_v44, %v15053_v35  ;;  %11335 = vmatprep.mubr.msk.f32.mxu1 %vm261_vm2, %v6732_v54  ;;  %11448 = vmatprep.mubr.msk.f32.mxu0 %vm261_vm2, %v7523_v62  ;;  %v6735_v54 = vld [vmem:[#allocation2 + $0x180] sm:$0xff]  ;;  %v7526_v62 = vld [vmem:[#allocation2 + $0x191] sm:$0xff]  ;;  %v6736_v44 = vld [vmem:[#allocation2 + $0x188] sm:$0xff] }
 0x374   : >> { %v5526_v31 = vpop.f32.mrf.mxu1  ;;  %v6325_v4 = vpop.f32.mrf.mxu0 }
 0x375   : >> { %v15413_v41 = vadd.f32 %v11188_v50, %v5846_v51  ;;  %v5845_v40 = vadd.f32 %v5526_v31, %v15058_v17  ;;  %v7527_v17 = vld [vmem:[#allocation2 + $0x199] sm:$0xff] }
 0x376   : >> { %v11081_v24 = vpop.f32.mrf.mxu1  ;;  %11336 = vmatmul.mubr.msk.f32.gmra.mxu1 %vm261_vm2, %v6733_v25  ;;  %v11194_v7 = vpop.f32.mrf.mxu0  ;;  %11449 = vmatmul.mubr.msk.f32.gmra.mxu0 %vm261_vm2, %v7524_v48 }
 0x377   : >> { %v15418_v35 = vadd.f32 %v6315_v43, %v5845_v40  ;;  %v5848_v39 = vadd.f32 %v11081_v24, %v15063_v15  ;;  %11338 = vmatprep.mubr.msk.f32.mxu1 %vm261_vm2, %v6734_v11  ;;  %11451 = vmatprep.mubr.msk.f32.mxu0 %vm261_vm2, %v7525_v28  ;;  %v6737_v11 = vld [vmem:[#allocation2 + $0x190] sm:$0xff]  ;;  %v7528_v28 = vld [vmem:[#allocation2 + $0x1a1] sm:$0xff]  ;;  %v6738_v24 = vld [vmem:[#allocation2 + $0x198] sm:$0xff] }
 0x378   : >> { %v5536_v50 = vpop.f32.mrf.mxu1  ;;  %v6335_v63 = vpop.f32.mrf.mxu0 }
 0x379   : >> { %v15423_v51 = vadd.f32 %v11191_v36, %v5848_v39  ;;  %v5847_v25 = vadd.f32 %v5536_v50, %v15068_v30  ;;  %v7529_v30 = vld [vmem:[#allocation2 + $0x1a9] sm:$0xff] }
 0x37a   : >> { %v11084_v31 = vpop.f32.mrf.mxu1  ;;  %11339 = vmatmul.mubr.msk.f32.gmra.mxu1 %vm261_vm2, %v6735_v54  ;;  %v11197_v43 = vpop.f32.mrf.mxu0  ;;  %11452 = vmatmul.mubr.msk.f32.gmra.mxu0 %vm261_vm2, %v7526_v62 }
 0x37b   : >> { %v15428_v15 = vadd.f32 %v6325_v4, %v5847_v25  ;;  %v5850_v48 = vadd.f32 %v11084_v31, %v15073_v20  ;;  %11341 = vmatprep.mubr.msk.f32.mxu1 %vm261_vm2, %v6736_v44  ;;  %11454 = vmatprep.mubr.msk.f32.mxu0 %vm261_vm2, %v7527_v17  ;;  %v6739_v44 = vld [vmem:[#allocation2 + $0x1a0] sm:$0xff]  ;;  %v7530_v17 = vld [vmem:[#allocation2 + $0x1b1] sm:$0xff]  ;;  %v6740_v31 = vld [vmem:[#allocation2 + $0x1a8] sm:$0xff] }
 0x37c   : >> { %v5546_v36 = vpop.f32.mrf.mxu1  ;;  %v6345_v40 = vpop.f32.mrf.mxu0 }
 0x37d   : >> { %v15433_v39 = vadd.f32 %v11194_v7, %v5850_v48  ;;  %v5849_v54 = vadd.f32 %v5546_v36, %v15078_v26  ;;  %v7531_v26 = vld [vmem:[#allocation2 + $0x1b9] sm:$0xff] }
 0x37e   : >> { %v11087_v50 = vpop.f32.mrf.mxu1  ;;  %11342 = vmatmul.mubr.msk.f32.gmra.mxu1 %vm261_vm2, %v6737_v11  ;;  %v11200_v4 = vpop.f32.mrf.mxu0  ;;  %11455 = vmatmul.mubr.msk.f32.gmra.mxu0 %vm261_vm2, %v7528_v28 }
 0x37f   : >> { %v15438_v20 = vadd.f32 %v6335_v63, %v5849_v54  ;;  %v5852_v62 = vadd.f32 %v11087_v50, %v15083_v60  ;;  %11344 = vmatprep.mubr.msk.f32.mxu1 %vm261_vm2, %v6738_v24  ;;  %11457 = vmatprep.mubr.msk.f32.mxu0 %vm261_vm2, %v7529_v30  ;;  %v6741_v24 = vld [vmem:[#allocation2 + $0x1b0] sm:$0xff]  ;;  %v7532_v30 = vld [vmem:[#allocation2 + $0x1c1] sm:$0xff]  ;;  %v6742_v50 = vld [vmem:[#allocation2 + $0x1b8] sm:$0xff] }
 0x380   : >> { %v5556_v7 = vpop.f32.mrf.mxu1  ;;  %v6355_v25 = vpop.f32.mrf.mxu0 }
 0x381   : >> { %v15443_v48 = vadd.f32 %v11197_v43, %v5852_v62  ;;  %v5851_v11 = vadd.f32 %v5556_v7, %v15088_v9  ;;  %v7533_v9 = vld [vmem:[#allocation2 + $0x1c9] sm:$0xff] }
 0x382   : >> { %v11090_v36 = vpop.f32.mrf.mxu1  ;;  %11345 = vmatmul.mubr.msk.f32.gmra.mxu1 %vm261_vm2, %v6739_v44  ;;  %v11203_v63 = vpop.f32.mrf.mxu0  ;;  %11458 = vmatmul.mubr.msk.f32.gmra.mxu0 %vm261_vm2, %v7530_v17 }
 0x383   : >> { %v15448_v60 = vadd.f32 %v6345_v40, %v5851_v11  ;;  %v5854_v28 = vadd.f32 %v11090_v36, %v15093_v61  ;;  %11347 = vmatprep.mubr.msk.f32.mxu1 %vm261_vm2, %v6740_v31  ;;  %11460 = vmatprep.mubr.msk.f32.mxu0 %vm261_vm2, %v7531_v26  ;;  %v6743_v31 = vld [vmem:[#allocation2 + $0x1c0] sm:$0xff]  ;;  %v7534_v26 = vld [vmem:[#allocation2 + $0x1d1] sm:$0xff]  ;;  %v6744_v36 = vld [vmem:[#allocation2 + $0x1c8] sm:$0xff] }
 0x384   : >> { %v5566_v43 = vpop.f32.mrf.mxu1  ;;  %v6365_v54 = vpop.f32.mrf.mxu0 }
 0x385   : >> { %v15453_v62 = vadd.f32 %v11200_v4, %v5854_v28  ;;  %v5853_v44 = vadd.f32 %v5566_v43, %v15098_v55  ;;  %v7535_v55 = vld [vmem:[#allocation2 + $0x1d9] sm:$0xff] }
 0x386   : >> { %v11093_v7 = vpop.f32.mrf.mxu1  ;;  %11348 = vmatmul.mubr.msk.f32.gmra.mxu1 %vm261_vm2, %v6741_v24  ;;  %v11206_v40 = vpop.f32.mrf.mxu0  ;;  %11461 = vmatmul.mubr.msk.f32.gmra.mxu0 %vm261_vm2, %v7532_v30 }
 0x387   : >> { %v15458_v61 = vadd.f32 %v6355_v25, %v5853_v44  ;;  %v5856_v17 = vadd.f32 %v11093_v7, %v15103_v18  ;;  %11350 = vmatprep.mubr.msk.f32.mxu1 %vm261_vm2, %v6742_v50  ;;  %11463 = vmatprep.mubr.msk.f32.mxu0 %vm261_vm2, %v7533_v9  ;;  %v6745_v50 = vld [vmem:[#allocation2 + $0x1d0] sm:$0xff]  ;;  %v7536_v9 = vld [vmem:[#allocation2 + $0x1e1] sm:$0xff]  ;;  %v6746_v7 = vld [vmem:[#allocation2 + $0x1d8] sm:$0xff] }
 0x388   : >> { %v5576_v4 = vpop.f32.mrf.mxu1  ;;  %v6375_v11 = vpop.f32.mrf.mxu0 }
 0x389   : >> { %16964 = vst [vmem:[#allocation46_spill] sm:$0xff] %v15458_v61  ;;  %v15463_v28 = vadd.f32 %v11203_v63, %v5856_v17  ;;  %v5855_v24 = vadd.f32 %v5576_v4, %v15108_v38  ;;  %v7537_v38 = vld [vmem:[#allocation2 + $0x1e9] sm:$0xff] }
 0x38a   : >> { %v11096_v43 = vpop.f32.mrf.mxu1  ;;  %11351 = vmatmul.mubr.msk.f32.gmra.mxu1 %vm261_vm2, %v6743_v31  ;;  %v11209_v25 = vpop.f32.mrf.mxu0  ;;  %11464 = vmatmul.mubr.msk.f32.gmra.mxu0 %vm261_vm2, %v7534_v26 }
 0x38b   : >> { %v15468_v18 = vadd.f32 %v6365_v54, %v5855_v24  ;;  %v5858_v30 = vadd.f32 %v11096_v43, %v15113_v37  ;;  %11353 = vmatprep.mubr.msk.f32.mxu1 %vm261_vm2, %v6744_v36  ;;  %11466 = vmatprep.mubr.msk.f32.mxu0 %vm261_vm2, %v7535_v55  ;;  %v6747_v36 = vld [vmem:[#allocation2 + $0x1e0] sm:$0xff]  ;;  %v7538_v55 = vld [vmem:[#allocation2 + $0x1f1] sm:$0xff]  ;;  %v6748_v43 = vld [vmem:[#allocation2 + $0x1e8] sm:$0xff] }
 0x38c   : >> { %v5586_v63 = vpop.f32.mrf.mxu1  ;;  %v6385_v44 = vpop.f32.mrf.mxu0 }
 0x38d   : >> { %v15473_v17 = vadd.f32 %v11206_v40, %v5858_v30  ;;  %v5857_v31 = vadd.f32 %v5586_v63, %v15118_v27  ;;  %v7539_v27 = vld [vmem:[#allocation2 + $0x1f9] sm:$0xff] }
 0x38e   : >> { %v11099_v4 = vpop.f32.mrf.mxu1  ;;  %11354 = vmatmul.mubr.msk.f32.gmra.mxu1 %vm261_vm2, %v6745_v50  ;;  %v11212_v54 = vpop.f32.mrf.mxu0  ;;  %11467 = vmatmul.mubr.msk.f32.gmra.mxu0 %vm261_vm2, %v7536_v9 }
 0x38f   : >> { %v15478_v37 = vadd.f32 %v6375_v11, %v5857_v31  ;;  %v5860_v26 = vadd.f32 %v11099_v4, %v15123_v29  ;;  %11356 = vmatprep.mubr.msk.f32.mxu1 %vm261_vm2, %v6746_v7  ;;  %11469 = vmatprep.mubr.msk.f32.mxu0 %vm261_vm2, %v7537_v38  ;;  %v6749_v7 = vld [vmem:[#allocation2 + $0x1f0] sm:$0xff]  ;;  %v7540_v38 = vld [vmem:[#allocation2 + $0x201] sm:$0xff]  ;;  %v6750_v4 = vld [vmem:[#allocation2 + $0x1f8] sm:$0xff] }
 0x390   : >> { %v5596_v40 = vpop.f32.mrf.mxu1  ;;  %v6395_v24 = vpop.f32.mrf.mxu0 }
 0x391   : >> { %16965 = vst [vmem:[#allocation47_spill] sm:$0xff] %v15478_v37  ;;  %v15483_v30 = vadd.f32 %v11209_v25, %v5860_v26  ;;  %v5859_v50 = vadd.f32 %v5596_v40, %v15128_v0  ;;  %v7541_v0 = vld [vmem:[#allocation2 + $0x209] sm:$0xff] }
 0x392   : >> { %v11102_v63 = vpop.f32.mrf.mxu1  ;;  %11357 = vmatmul.mubr.msk.f32.gmra.mxu1 %vm261_vm2, %v6747_v36  ;;  %v11215_v11 = vpop.f32.mrf.mxu0  ;;  %11470 = vmatmul.mubr.msk.f32.gmra.mxu0 %vm261_vm2, %v7538_v55 }
 0x393   : >> { %v15488_v29 = vadd.f32 %v6385_v44, %v5859_v50  ;;  %v5862_v9 = vadd.f32 %v11102_v63, %v15133_v42  ;;  %11359 = vmatprep.mubr.msk.f32.mxu1 %vm261_vm2, %v6748_v43  ;;  %11472 = vmatprep.mubr.msk.f32.mxu0 %vm261_vm2, %v7539_v27  ;;  %v6751_v43 = vld [vmem:[#allocation2 + $0x200] sm:$0xff]  ;;  %v7542_v27 = vld [vmem:[#allocation2 + $0x211] sm:$0xff]  ;;  %v6752_v63 = vld [vmem:[#allocation2 + $0x208] sm:$0xff] }
 0x394   : >> { %v5606_v25 = vpop.f32.mrf.mxu1  ;;  %v6405_v31 = vpop.f32.mrf.mxu0 }
 0x395   : >> { %16966 = vst [vmem:[#allocation58_spill] sm:$0xff] %v15488_v29  ;;  %v15493_v26 = vadd.f32 %v11212_v54, %v5862_v9  ;;  %v5861_v36 = vadd.f32 %v5606_v25, %v15138_v1  ;;  %v7543_v1 = vld [vmem:[#allocation2 + $0x219] sm:$0xff] }
 0x396   : >> { %v11105_v40 = vpop.f32.mrf.mxu1  ;;  %11360 = vmatmul.mubr.msk.f32.gmra.mxu1 %vm261_vm2, %v6749_v7  ;;  %v11218_v44 = vpop.f32.mrf.mxu0  ;;  %11473 = vmatmul.mubr.msk.f32.gmra.mxu0 %vm261_vm2, %v7540_v38 }
 0x397   : >> { %v15498_v42 = vadd.f32 %v6395_v24, %v5861_v36  ;;  %v5864_v55 = vadd.f32 %v11105_v40, %v15143_v33  ;;  %11362 = vmatprep.mubr.msk.f32.mxu1 %vm261_vm2, %v6750_v4  ;;  %11475 = vmatprep.mubr.msk.f32.mxu0 %vm261_vm2, %v7541_v0  ;;  %v6753_v4 = vld [vmem:[#allocation2 + $0x210] sm:$0xff]  ;;  %v7544_v0 = vld [vmem:[#allocation2 + $0x221] sm:$0xff]  ;;  %v6754_v40 = vld [vmem:[#allocation2 + $0x218] sm:$0xff] }
 0x398   : >> { %v5616_v54 = vpop.f32.mrf.mxu1  ;;  %v6415_v50 = vpop.f32.mrf.mxu0 }
 0x399   : >> { %v15503_v9 = vadd.f32 %v11215_v11, %v5864_v55  ;;  %v5863_v7 = vadd.f32 %v5616_v54, %v15148_v34  ;;  %v7545_v34 = vld [vmem:[#allocation2 + $0x229] sm:$0xff] }
 0x39a   : >> { %v11108_v25 = vpop.f32.mrf.mxu1  ;;  %11363 = vmatmul.mubr.msk.f32.gmra.mxu1 %vm261_vm2, %v6751_v43  ;;  %v11221_v24 = vpop.f32.mrf.mxu0  ;;  %11476 = vmatmul.mubr.msk.f32.gmra.mxu0 %vm261_vm2, %v7542_v27 }
 0x39b   : >> { %v15508_v33 = vadd.f32 %v6405_v31, %v5863_v7  ;;  %v5866_v38 = vadd.f32 %v11108_v25, %v15153_v46  ;;  %11365 = vmatprep.mubr.msk.f32.mxu1 %vm261_vm2, %v6752_v63  ;;  %11478 = vmatprep.mubr.msk.f32.mxu0 %vm261_vm2, %v7543_v1  ;;  %v6755_v63 = vld [vmem:[#allocation2 + $0x220] sm:$0xff]  ;;  %v7546_v1 = vld [vmem:[#allocation2 + $0x231] sm:$0xff]  ;;  %v6756_v25 = vld [vmem:[#allocation2 + $0x228] sm:$0xff] }
 0x39c   : >> { %v5626_v11 = vpop.f32.mrf.mxu1  ;;  %v6425_v36 = vpop.f32.mrf.mxu0 }
 0x39d   : >> { %16967 = vst [vmem:[#allocation48_spill] sm:$0xff] %v15508_v33  ;;  %v15513_v55 = vadd.f32 %v11218_v44, %v5866_v38  ;;  %v5865_v43 = vadd.f32 %v5626_v11, %v15158_v10  ;;  %v7547_v10 = vld [vmem:[#allocation2 + $0x239] sm:$0xff] }
 0x39e   : >> { %v11111_v54 = vpop.f32.mrf.mxu1  ;;  %11366 = vmatmul.mubr.msk.f32.gmra.mxu1 %vm261_vm2, %v6753_v4  ;;  %v11224_v31 = vpop.f32.mrf.mxu0  ;;  %11479 = vmatmul.mubr.msk.f32.gmra.mxu0 %vm261_vm2, %v7544_v0 }
 0x39f   : >> { %v15518_v46 = vadd.f32 %v6415_v50, %v5865_v43  ;;  %v5868_v27 = vadd.f32 %v11111_v54, %v15163_v52  ;;  %11368 = vmatprep.mubr.msk.f32.mxu1 %vm261_vm2, %v6754_v40  ;;  %11481 = vmatprep.mubr.msk.f32.mxu0 %vm261_vm2, %v7545_v34  ;;  %v6757_v40 = vld [vmem:[#allocation2 + $0x230] sm:$0xff]  ;;  %v7548_v34 = vld [vmem:[#allocation2 + $0x241] sm:$0xff]  ;;  %v6758_v54 = vld [vmem:[#allocation2 + $0x238] sm:$0xff] }
 0x3a0   : >> { %v5636_v44 = vpop.f32.mrf.mxu1  ;;  %v6435_v7 = vpop.f32.mrf.mxu0 }
 0x3a1   : >> { %v15523_v38 = vadd.f32 %v11221_v24, %v5868_v27  ;;  %v5867_v4 = vadd.f32 %v5636_v44, %v15168_v23  ;;  %v7549_v23 = vld [vmem:[#allocation2 + $0x249] sm:$0xff] }
 0x3a2   : >> { %v11114_v11 = vpop.f32.mrf.mxu1  ;;  %11369 = vmatmul.mubr.msk.f32.gmra.mxu1 %vm261_vm2, %v6755_v63  ;;  %v11227_v50 = vpop.f32.mrf.mxu0  ;;  %11482 = vmatmul.mubr.msk.f32.gmra.mxu0 %vm261_vm2, %v7546_v1 }
 0x3a3   : >> { %v15528_v52 = vadd.f32 %v6425_v36, %v5867_v4  ;;  %v5870_v0 = vadd.f32 %v11114_v11, %v15173_v45  ;;  %11371 = vmatprep.mubr.msk.f32.mxu1 %vm261_vm2, %v6756_v25  ;;  %11484 = vmatprep.mubr.msk.f32.mxu0 %vm261_vm2, %v7547_v10  ;;  %v6759_v25 = vld [vmem:[#allocation2 + $0x240] sm:$0xff]  ;;  %v7550_v10 = vld [vmem:[#allocation2 + $0x251] sm:$0xff]  ;;  %v6760_v11 = vld [vmem:[#allocation2 + $0x248] sm:$0xff] }
 0x3a4   : >> { %v5646_v24 = vpop.f32.mrf.mxu1  ;;  %v6445_v43 = vpop.f32.mrf.mxu0 }
 0x3a5   : >> { %v15533_v27 = vadd.f32 %v11224_v31, %v5870_v0  ;;  %v5869_v63 = vadd.f32 %v5646_v24, %v15178_v47  ;;  %v7551_v47 = vld [vmem:[#allocation2 + $0x259] sm:$0xff] }
 0x3a6   : >> { %v11117_v44 = vpop.f32.mrf.mxu1  ;;  %11372 = vmatmul.mubr.msk.f32.gmra.mxu1 %vm261_vm2, %v6757_v40  ;;  %v11230_v36 = vpop.f32.mrf.mxu0  ;;  %11485 = vmatmul.mubr.msk.f32.gmra.mxu0 %vm261_vm2, %v7548_v34 }
 0x3a7   : >> { %v15538_v45 = vadd.f32 %v6435_v7, %v5869_v63  ;;  %v5872_v1 = vadd.f32 %v11117_v44, %v15183_v6  ;;  %11374 = vmatprep.mubr.msk.f32.mxu1 %vm261_vm2, %v6758_v54  ;;  %11487 = vmatprep.mubr.msk.f32.mxu0 %vm261_vm2, %v7549_v23  ;;  %v6761_v54 = vld [vmem:[#allocation2 + $0x250] sm:$0xff]  ;;  %v7552_v23 = vld [vmem:[#allocation2 + $0x261] sm:$0xff]  ;;  %v6762_v44 = vld [vmem:[#allocation2 + $0x258] sm:$0xff] }
 0x3a8   : >> { %v5656_v31 = vpop.f32.mrf.mxu1  ;;  %v6455_v4 = vpop.f32.mrf.mxu0 }
 0x3a9   : >> { %v15543_v0 = vadd.f32 %v11227_v50, %v5872_v1  ;;  %v5871_v40 = vadd.f32 %v5656_v31, %v15188_v57  ;;  %v7553_v57 = vld [vmem:[#allocation2 + $0x269] sm:$0xff] }
 0x3aa   : >> { %v11120_v24 = vpop.f32.mrf.mxu1  ;;  %11375 = vmatmul.mubr.msk.f32.gmra.mxu1 %vm261_vm2, %v6759_v25  ;;  %v11233_v7 = vpop.f32.mrf.mxu0  ;;  %11488 = vmatmul.mubr.msk.f32.gmra.mxu0 %vm261_vm2, %v7550_v10  ;;  %v16971_v25 = vld [vmem:[#allocation35_spill] sm:$0xff]  ;;  %v16973_v10 = vld [vmem:[#allocation25_spill] sm:$0xff] }
 0x3ab   : >> { %16968 = vst [vmem:[#allocation49_spill] sm:$0xff] %v15543_v0  ;;  %v15548_v6 = vadd.f32 %v6445_v43, %v5871_v40  ;;  %v5874_v34 = vadd.f32 %v11120_v24, %v15193_v14  ;;  %11377 = vmatprep.mubr.msk.f32.mxu1 %vm261_vm2, %v6760_v11  ;;  %11490 = vmatprep.mubr.msk.f32.mxu0 %vm261_vm2, %v7551_v47  ;;  %v6763_v47 = vld [vmem:[#allocation2 + $0x260] sm:$0xff]  ;;  %v7554_v40 = vld [vmem:[#allocation2 + $0x271] sm:$0xff] }
 0x3ac   : >> { %v5666_v50 = vpop.f32.mrf.mxu1  ;;  %v6465_v63 = vpop.f32.mrf.mxu0 }
 0x3ad   : >> { %16969 = vst [vmem:[#allocation56_spill] sm:$0xff] %v15548_v6  ;;  %v15553_v1 = vadd.f32 %v11230_v36, %v5874_v34  ;;  %v5873_v31 = vadd.f32 %v5666_v50, %v16971_v25  ;;  %v6764_v34 = vld [vmem:[#allocation2 + $0x268] sm:$0xff]  ;;  %v7555_v50 = vld [vmem:[#allocation2 + $0x279] sm:$0xff] }
 0x3ae   : >> { %v11123_v0 = vpop.f32.mrf.mxu1  ;;  %11378 = vmatmul.mubr.msk.f32.gmra.mxu1 %vm261_vm2, %v6761_v54  ;;  %v11236_v43 = vpop.f32.mrf.mxu0  ;;  %11491 = vmatmul.mubr.msk.f32.gmra.mxu0 %vm261_vm2, %v7552_v23  ;;  %v16975_v54 = vld [vmem:[#allocation34_spill] sm:$0xff]  ;;  %v16977_v23 = vld [vmem:[#allocation18_spill] sm:$0xff] }
 0x3af   : >> { %16970 = vst [vmem:[#allocation22_spill] sm:$0xff] %v15553_v1  ;;  %v15558_v14 = vadd.f32 %v6455_v4, %v5873_v31  ;;  %v5876_v11 = vadd.f32 %v11123_v0, %v16973_v10  ;;  %11380 = vmatprep.mubr.msk.f32.mxu1 %vm261_vm2, %v6762_v44  ;;  %11493 = vmatprep.mubr.msk.f32.mxu0 %vm261_vm2, %v7553_v57  ;;  %v6765_v57 = vld [vmem:[#allocation2 + $0x270] sm:$0xff]  ;;  %v7556_v31 = vld [vmem:[#allocation2 + $0x281] sm:$0xff] }
 0x3b0   : >> { %v5676_v36 = vpop.f32.mrf.mxu1  ;;  %v6475_v24 = vpop.f32.mrf.mxu0 }
 0x3b1   : >> { %16972 = vst [vmem:[#allocation23_spill] sm:$0xff] %v15558_v14  ;;  %v15563_v25 = vadd.f32 %v11233_v7, %v5876_v11  ;;  %v5875_v1 = vadd.f32 %v5676_v36, %v16975_v54  ;;  %v6766_v11 = vld [vmem:[#allocation2 + $0x278] sm:$0xff]  ;;  %v16979_v54 = vld [vmem:[#allocation19_spill] sm:$0xff] }
 0x3b2   : >> { %v11126_v6 = vpop.f32.mrf.mxu1  ;;  %11381 = vmatmul.mubr.msk.f32.gmra.mxu1 %vm261_vm2, %v6763_v47  ;;  %v11239_v4 = vpop.f32.mrf.mxu0  ;;  %11494 = vmatmul.mubr.msk.f32.gmra.mxu0 %vm261_vm2, %v7554_v40 }
 0x3b3   : >> { %16974 = vst [vmem:[#allocation50_spill] sm:$0xff] %v15563_v25  ;;  %v15568_v0 = vadd.f32 %v6465_v63, %v5875_v1  ;;  %v5878_v44 = vadd.f32 %v11126_v6, %v16977_v23  ;;  %11383 = vmatprep.mubr.msk.f32.mxu1 %vm261_vm2, %v6764_v34  ;;  %11496 = vmatprep.mubr.msk.f32.mxu0 %vm261_vm2, %v7555_v50  ;;  %v16981_v1 = vld [vmem:[#allocation20_spill] sm:$0xff]  ;;  %v6767_v34 = vld [vmem:[#allocation2 + $0x280] sm:$0xff] }
 0x3b4   : >> { %v5686_v7 = vpop.f32.mrf.mxu1  ;;  %v6485_v10 = vpop.f32.mrf.mxu0 }
 0x3b5   : >> { %16976 = vst [vmem:[#allocation51_spill] sm:$0xff] %v15568_v0  ;;  %v15573_v36 = vadd.f32 %v11236_v43, %v5878_v44  ;;  %v5877_v47 = vadd.f32 %v5686_v7, %v16979_v54  ;;  %v16983_v43 = vld [vmem:[#allocation21_spill] sm:$0xff] }
 0x3b6   : >> { %v11129_v25 = vpop.f32.mrf.mxu1  ;;  %11384 = vmatmul.mubr.msk.f32.gmra.mxu1 %vm261_vm2, %v6765_v57  ;;  %v11242_v63 = vpop.f32.mrf.mxu0  ;;  %11497 = vmatmul.mubr.msk.f32.gmra.mxu0 %vm261_vm2, %v7556_v31  ;;  %v16985_v31 = vld [vmem:[#allocation17_spill] sm:$0xff] }
 0x3b7   : >> { %16978 = vst [vmem:[#allocation18_spill] sm:$0xff] %v15573_v36  ;;  %v15578_v6 = vadd.f32 %v6475_v24, %v5877_v47  ;;  %v5880_v40 = vadd.f32 %v11129_v25, %v16981_v1  ;;  %11386 = vmatprep.mubr.msk.f32.mxu1 %vm261_vm2, %v6766_v11  ;;  %v16987_v11 = vld [vmem:[#allocation15_spill] sm:$0xff] }
 0x3b8   : >> { %v5696_v50 = vpop.f32.mrf.mxu1  ;;  %v6495_v23 = vpop.f32.mrf.mxu0 }
 0x3b9   : >> { %16980 = vst [vmem:[#allocation19_spill] sm:$0xff] %v15578_v6  ;;  %v15582_v0 = vadd.f32 %v11239_v4, %v5880_v40  ;;  %v5879_v44 = vadd.f32 %v5696_v50, %v16983_v43  ;;  %v16989_v40 = vld [vmem:[#allocation16_spill] sm:$0xff] }
 0x3ba   : >> { %v11132_v7 = vpop.f32.mrf.mxu1  ;;  %11387 = vmatmul.mubr.msk.f32.gmra.mxu1 %vm261_vm2, %v6767_v34  ;;  %v11245_v57 = vpop.f32.mrf.mxu0 }
 0x3bb   : >> { %16982 = vst [vmem:[#allocation20_spill] sm:$0xff] %v15582_v0  ;;  %v15586_v54 = vadd.f32 %v6485_v10, %v5879_v44  ;;  %v5882_v24 = vadd.f32 %v11132_v7, %v16985_v31  ;;  %v16991_v10 = vld [vmem:[#allocation13_spill] sm:$0xff] }
 0x3bc   : >> { %v5706_v47 = vpop.f32.mrf.mxu1  ;;  %v6505_v6 = vpop.f32.mrf.mxu0 }
 0x3bd   : >> { %16984 = vst [vmem:[#allocation21_spill] sm:$0xff] %v15586_v54  ;;  %v15589_v25 = vadd.f32 %v11242_v63, %v5882_v24  ;;  %v5881_v1 = vadd.f32 %v5706_v47, %v16987_v11  ;;  %v16993_v63 = vld [vmem:[#allocation14_spill] sm:$0xff] }
 0x3be   : >> { %v11135_v36 = vpop.f32.mrf.mxu1  ;;  %v11248_v14 = vpop.f32.mrf.mxu0 }
 0x3bf   : >> { %16986 = vst [vmem:[#allocation17_spill] sm:$0xff] %v15589_v25  ;;  %v15592_v4 = vadd.f32 %v6495_v23, %v5881_v1  ;;  %v5884_v50 = vadd.f32 %v11135_v36, %v16989_v40  ;;  %v16995_v23 = vld [vmem:[#allocation11_spill] sm:$0xff] }
 0x3c0   : >> { %v5716_v43 = vpop.f32.mrf.mxu1  ;;  %v6515_v0 = vpop.f32.mrf.mxu0 }
 0x3c1   : >> { %16988 = vst [vmem:[#allocation15_spill] sm:$0xff] %v15592_v4  ;;  %v15595_v34 = vadd.f32 %v11245_v57, %v5884_v50  ;;  %v5883_v44 = vadd.f32 %v5716_v43, %v16991_v10  ;;  %v16997_v57 = vld [vmem:[#allocation12_spill] sm:$0xff] }
 0x3c2   : >> { %v11138_v54 = vpop.f32.mrf.mxu1  ;;  %v11251_v7 = vpop.f32.mrf.mxu0 }
 0x3c3   : >> { %16990 = vst [vmem:[#allocation16_spill] sm:$0xff] %v15595_v34  ;;  %v15598_v31 = vadd.f32 %v6505_v6, %v5883_v44  ;;  %v5886_v24 = vadd.f32 %v11138_v54, %v16993_v63  ;;  %v16999_v6 = vld [vmem:[#allocation9_spill] sm:$0xff] }
 0x3c4   : >> { %v5726_v25 = vpop.f32.mrf.mxu1  ;;  %v6525_v47 = vpop.f32.mrf.mxu0 }
 0x3c5   : >> { %16992 = vst [vmem:[#allocation13_spill] sm:$0xff] %v15598_v31  ;;  %v15601_v11 = vadd.f32 %v11248_v14, %v5886_v24  ;;  %v5885_v1 = vadd.f32 %v5726_v25, %v16995_v23  ;;  %v17001_v14 = vld [vmem:[#allocation10_spill] sm:$0xff] }
 0x3c6   : >> { %v11141_v4 = vpop.f32.mrf.mxu1  ;;  %v11254_v36 = vpop.f32.mrf.mxu0 }
 0x3c7   : >> { %16994 = vst [vmem:[#allocation14_spill] sm:$0xff] %v15601_v11  ;;  %v15604_v40 = vadd.f32 %v6515_v0, %v5885_v1  ;;  %v5888_v50 = vadd.f32 %v11141_v4, %v16997_v57  ;;  %v17003_v0 = vld [vmem:[#allocation7_spill] sm:$0xff] }
 0x3c8   : >> { %v5736_v34 = vpop.f32.mrf.mxu1  ;;  %v6535_v43 = vpop.f32.mrf.mxu0 }
 0x3c9   : >> { %16996 = vst [vmem:[#allocation11_spill] sm:$0xff] %v15604_v40  ;;  %v15607_v10 = vadd.f32 %v11251_v7, %v5888_v50  ;;  %v5887_v44 = vadd.f32 %v5736_v34, %v16999_v6  ;;  %v17005_v7 = vld [vmem:[#allocation8_spill] sm:$0xff] }
 0x3ca   : >> { %v11144_v31 = vpop.f32.mrf.mxu1  ;;  %v11257_v54 = vpop.f32.mrf.mxu0 }
 0x3cb   : >> { %16998 = vst [vmem:[#allocation12_spill] sm:$0xff] %v15607_v10  ;;  %v15610_v63 = vadd.f32 %v6525_v47, %v5887_v44  ;;  %v5890_v24 = vadd.f32 %v11144_v31, %v17001_v14  ;;  %v17007_v47 = vld [vmem:[#allocation5_spill] sm:$0xff] }
 0x3cc   : >> { %v5746_v11 = vpop.f32.mrf.mxu1  ;;  %v6545_v25 = vpop.f32.mrf.mxu0 }
 0x3cd   : >> { %17000 = vst [vmem:[#allocation9_spill] sm:$0xff] %v15610_v63  ;;  %v15613_v23 = vadd.f32 %v11254_v36, %v5890_v24  ;;  %v5889_v1 = vadd.f32 %v5746_v11, %v17003_v0  ;;  %v17009_v36 = vld [vmem:[#allocation40_spill] sm:$0xff] }
 0x3ce   : >> { %v11147_v40 = vpop.f32.mrf.mxu1  ;;  %v11260_v4 = vpop.f32.mrf.mxu0 }
 0x3cf   : >> { %17002 = vst [vmem:[#allocation10_spill] sm:$0xff] %v15613_v23  ;;  %v15616_v57 = vadd.f32 %v6535_v43, %v5889_v1  ;;  %v5892_v50 = vadd.f32 %v11147_v40, %v17005_v7  ;;  %v17011_v43 = vld [vmem:[#allocation33_spill] sm:$0xff] }
 0x3d0   : >> { %v5756_v10 = vpop.f32.mrf.mxu1  ;;  %v6555_v34 = vpop.f32.mrf.mxu0 }
 0x3d1   : >> { %17004 = vst [vmem:[#allocation7_spill] sm:$0xff] %v15616_v57  ;;  %v15619_v6 = vadd.f32 %v11257_v54, %v5892_v50  ;;  %v5891_v44 = vadd.f32 %v5756_v10, %v17007_v47  ;;  %v17013_v54 = vld [vmem:[#allocation42_spill] sm:$0xff] }
 0x3d2   : >> { %v11150_v63 = vpop.f32.mrf.mxu1  ;;  %v11263_v31 = vpop.f32.mrf.mxu0 }
 0x3d3   : >> { %17006 = vst [vmem:[#allocation8_spill] sm:$0xff] %v15619_v6  ;;  %v15622_v14 = vadd.f32 %v6545_v25, %v5891_v44  ;;  %v5894_v24 = vadd.f32 %v11150_v63, %v17009_v36  ;;  %v17015_v25 = vld [vmem:[#allocation24_spill] sm:$0xff] }
 0x3d4   : >> { %v5766_v23 = vpop.f32.mrf.mxu1  ;;  %v6565_v11 = vpop.f32.mrf.mxu0 }
 0x3d5   : >> { %17008 = vst [vmem:[#allocation5_spill] sm:$0xff] %v15622_v14  ;;  %v15625_v0 = vadd.f32 %v11260_v4, %v5894_v24  ;;  %v5893_v1 = vadd.f32 %v5766_v23, %v17011_v43  ;;  %v17016_v4 = vld [vmem:[#allocation44_spill] sm:$0xff] }
 0x3d6   : >> { %v11153_v57 = vpop.f32.mrf.mxu1  ;;  %v11266_v40 = vpop.f32.mrf.mxu0 }
 0x3d7   : >> { %17010 = vst [vmem:[#allocation52_spill] sm:$0xff] %v15625_v0  ;;  %v15628_v7 = vadd.f32 %v6555_v34, %v5893_v1  ;;  %v5896_v50 = vadd.f32 %v11153_v57, %v17013_v54  ;;  %v17018_v34 = vld [vmem:[#allocation41_spill] sm:$0xff] }
 0x3d8   : >> { %v5776_v6 = vpop.f32.mrf.mxu1  ;;  %v6575_v10 = vpop.f32.mrf.mxu0 }
 0x3d9   : >> { %17012 = vst [vmem:[#allocation53_spill] sm:$0xff] %v15628_v7  ;;  %v15631_v47 = vadd.f32 %v11263_v31, %v5896_v50  ;;  %v5895_v44 = vadd.f32 %v5776_v6, %v17015_v25  ;;  %v17019_v31 = vld [vmem:[#allocation43_spill] sm:$0xff] }
 0x3da   : >> { %v11156_v14 = vpop.f32.mrf.mxu1  ;;  %v11269_v63 = vpop.f32.mrf.mxu0 }
 0x3db   : >> { %17014 = vst [vmem:[#allocation54_spill] sm:$0xff] %v15631_v47  ;;  %v15634_v36 = vadd.f32 %v6565_v11, %v5895_v44  ;;  %v5898_v24 = vadd.f32 %v11156_v14, %v17016_v4 }
 0x3dc   : >> { %v5786_v0 = vpop.f32.mrf.mxu1  ;;  %v6585_v23 = vpop.f32.mrf.mxu0 }
 0x3dd   : >> { %v15637_v43 = vadd.f32 %v11266_v40, %v5898_v24  ;;  %v5897_v1 = vadd.f32 %v5786_v0, %v17018_v34  ;;  %v17020_v40 = vld [vmem:[#allocation45_spill] sm:$0xff] }
 0x3de   : >> { %v11159_v7 = vpop.f32.mrf.mxu1  ;;  %v11272_v57 = vpop.f32.mrf.mxu0 }
 0x3df   : >> { %17017 = vst [vmem:[#allocation55_spill] sm:$0xff] %v15637_v43  ;;  %v15640_v54 = vadd.f32 %v6575_v10, %v5897_v1  ;;  %v5900_v50 = vadd.f32 %v11159_v7, %v17019_v31 }
 0x3e0   : >> { %v5796_v47 = vpop.f32.mrf.mxu1  ;;  %v6595_v6 = vpop.f32.mrf.mxu0 }
 0x3e1   : >> { %v15643_v25 = vadd.f32 %v11269_v63, %v5900_v50  ;;  %v5899_v11 = vadd.f32 %v5796_v47, %v15328_v22 }
 0x3e2   : >> { %v11162_v44 = vpop.f32.mrf.mxu1  ;;  %v11275_v14 = vpop.f32.mrf.mxu0 }
 0x3e3   : >> { %v15646_v4 = vadd.f32 %v6585_v23, %v5899_v11  ;;  %v5902_v24 = vadd.f32 %v11162_v44, %v17020_v40 }
 0x3e4   : >> { %v5806_v43 = vpop.f32.mrf.mxu1  ;;  %v6605_v0 = vpop.f32.mrf.mxu0 }
 0x3e5   : >> { %v15649_v34 = vadd.f32 %v11272_v57, %v5902_v24  ;;  %v5901_v10 = vadd.f32 %v5806_v43, %v15338_v53 }
 0x3e6   : >> { %v11165_v7 = vpop.f32.mrf.mxu1  ;;  %v11278_v1 = vpop.f32.mrf.mxu0 }
 0x3e7   : >> { %v15652_v31 = vadd.f32 %v6595_v6, %v5901_v10  ;;  %v5904_v63 = vadd.f32 %v11165_v7, %v15343_v49 }
 0x3e8   : >> { %v5816_v22 = vpop.f32.mrf.mxu1  ;;  %v6615_v47 = vpop.f32.mrf.mxu0 }
 0x3e9   : >> { %v15655_v50 = vadd.f32 %v11275_v14, %v5904_v63  ;;  %v5903_v23 = vadd.f32 %v5816_v22, %v15348_v12 }
 0x3ea   : >> { %v11168_v11 = vpop.f32.mrf.mxu1  ;;  %v11393_v44 = vpop.f32.mrf.mxu0 }
 0x3eb   : >> { %v15658_v40 = vadd.f32 %v6605_v0, %v5903_v23  ;;  %v5906_v57 = vadd.f32 %v11168_v11, %v15353_v16  ;;  %v15671_v0 = vld [vmem:[%s8274_s16] ss:$0 sm:$0xff] }
 0x3ec   : >> { %v5826_v24 = vpop.f32.mrf.mxu1  ;;  %v7843_v53 = vpop.f32.mrf.mxu0 }
 0x3ed   : >> { %v15665_v43 = vadd.f32 %v11278_v1, %v5906_v57  ;;  %v5905_v49 = vadd.f32 %v5826_v24, %v15358_v32 }
 0x3ee   : >> { %v11283_v6 = vpop.f32.mrf.mxu1  ;;  %v11396_v14 = vpop.f32.mrf.mxu0 }
 0x3ef   : >> { %v15668_v10 = vadd.f32 %v6615_v47, %v5905_v49  ;;  %v7414_v12 = vadd.f32 %v11283_v6, %v15363_v19 }
 0x3f0   : >> { %v7054_v7 = vpop.f32.mrf.mxu1  ;;  %v7853_v16 = vpop.f32.mrf.mxu0 }
 0x3f1   : >> { %v8203_v63 = vadd.f32 %v11393_v44, %v7414_v12  ;;  %v7413_v22 = vadd.f32 %v7054_v7, %v15368_v2 }
 0x3f2   : >> { %v11286_v23 = vpop.f32.mrf.mxu1  ;;  %v11399_v11 = vpop.f32.mrf.mxu0 }
 0x3f3   : >> { %v15675_v1 = vadd.f32 %v15671_v0, %v8203_v63  ;;  %v8202_v57 = vadd.f32 %v7843_v53, %v7413_v22  ;;  %v7416_v32 = vadd.f32 %v11286_v23, %v15373_v13 }
 0x3f4   : >> { %v7064_v24 = vpop.f32.mrf.mxu1  ;;  %v7863_v47 = vpop.f32.mrf.mxu0 }
 0x3f5   : >> { %17021 = vst [vmem:[#allocation6_spill] sm:$0xff] %v15675_v1  ;;  %v15680_v19 = vadd.f32 %v15671_v0, %v8202_v57  ;;  %v8205_v49 = vadd.f32 %v11396_v14, %v7416_v32  ;;  %v7415_v44 = vadd.f32 %v7064_v24, %v15378_v58 }
 0x3f6   : >> { %v11289_v6 = vpop.f32.mrf.mxu1  ;;  %v11402_v2 = vpop.f32.mrf.mxu0 }
 0x3f7   : >> { %17023 = vst [vmem:[#allocation3_spill] sm:$0xff] %v15680_v19  ;;  %v15685_v57 = vadd.f32 %v15671_v0, %v8205_v49  ;;  %v8204_v53 = vadd.f32 %v7853_v16, %v7415_v44  ;;  %v7418_v13 = vadd.f32 %v11289_v6, %v15383_v56 }
 0x3f8   : >> { %v7074_v12 = vpop.f32.mrf.mxu1  ;;  %v7873_v7 = vpop.f32.mrf.mxu0 }
 0x3f9   : >> { %17025 = vst [vmem:[#allocation4_spill] sm:$0xff] %v15685_v57  ;;  %v15690_v63 = vadd.f32 %v15671_v0, %v8204_v53  ;;  %v8207_v14 = vadd.f32 %v11399_v11, %v7418_v13  ;;  %v7417_v58 = vadd.f32 %v7074_v12, %v15388_v3 }
 0x3fa   : >> { %v11292_v22 = vpop.f32.mrf.mxu1  ;;  %v11405_v23 = vpop.f32.mrf.mxu0 }
 0x3fb   : >> { %17026 = vst [vmem:[#allocation73_spill] sm:$0xff] %v15690_v63  ;;  %v15695_v1 = vadd.f32 %v15671_v0, %v8207_v14  ;;  %v8206_v16 = vadd.f32 %v7863_v47, %v7417_v58  ;;  %v7420_v56 = vadd.f32 %v11292_v22, %v15393_v21 }
 0x3fc   : >> { %v7084_v32 = vpop.f32.mrf.mxu1  ;;  %v7883_v24 = vpop.f32.mrf.mxu0 }
 0x3fd   : >> { %17028 = vst [vmem:[#allocation74_spill] sm:$0xff] %v15695_v1  ;;  %v15700_v19 = vadd.f32 %v15671_v0, %v8206_v16  ;;  %v8209_v11 = vadd.f32 %v11402_v2, %v7420_v56  ;;  %v7419_v3 = vadd.f32 %v7084_v32, %v15398_v59 }
 0x3fe   : >> { %v11295_v44 = vpop.f32.mrf.mxu1  ;;  %v11408_v6 = vpop.f32.mrf.mxu0 }
 0x3ff   : >> { %17030 = vst [vmem:[#allocation75_spill] sm:$0xff] %v15700_v19  ;;  %v15705_v53 = vadd.f32 %v15671_v0, %v8209_v11  ;;  %v8208_v47 = vadd.f32 %v7873_v7, %v7419_v3  ;;  %v7422_v21 = vadd.f32 %v11295_v44, %v15403_v8 }
 0x400   : >> { %v7094_v13 = vpop.f32.mrf.mxu1  ;;  %v7893_v12 = vpop.f32.mrf.mxu0 }
 0x401   : >> { %17032 = vst [vmem:[#allocation76_spill] sm:$0xff] %v15705_v53  ;;  %v15710_v63 = vadd.f32 %v15671_v0, %v8208_v47  ;;  %v8211_v2 = vadd.f32 %v11405_v23, %v7422_v21  ;;  %v7421_v59 = vadd.f32 %v7094_v13, %v15408_v5 }
 0x402   : >> { %v11298_v14 = vpop.f32.mrf.mxu1  ;;  %v11411_v58 = vpop.f32.mrf.mxu0 }
 0x403   : >> { %17034 = vst [vmem:[#allocation77_spill] sm:$0xff] %v15710_v63  ;;  %v15715_v22 = vadd.f32 %v15671_v0, %v8211_v2  ;;  %v8210_v7 = vadd.f32 %v7883_v24, %v7421_v59  ;;  %v7424_v8 = vadd.f32 %v11298_v14, %v15413_v41 }
 0x404   : >> { %v7104_v1 = vpop.f32.mrf.mxu1  ;;  %v7903_v16 = vpop.f32.mrf.mxu0 }
 0x405   : >> { %17036 = vst [vmem:[#allocation78_spill] sm:$0xff] %v15715_v22  ;;  %v15720_v56 = vadd.f32 %v15671_v0, %v8210_v7  ;;  %v8213_v23 = vadd.f32 %v11408_v6, %v7424_v8  ;;  %v7423_v5 = vadd.f32 %v7104_v1, %v15418_v35 }
 0x406   : >> { %v11301_v32 = vpop.f32.mrf.mxu1  ;;  %v11414_v19 = vpop.f32.mrf.mxu0 }
 0x407   : >> { %17038 = vst [vmem:[#allocation79_spill] sm:$0xff] %v15720_v56  ;;  %v15725_v21 = vadd.f32 %v15671_v0, %v8213_v23  ;;  %v8212_v24 = vadd.f32 %v7893_v12, %v7423_v5  ;;  %v7426_v41 = vadd.f32 %v11301_v32, %v15423_v51 }
 0x408   : >> { %v7114_v11 = vpop.f32.mrf.mxu1  ;;  %v7913_v3 = vpop.f32.mrf.mxu0 }
 0x409   : >> { %17040 = vst [vmem:[#allocation80_spill] sm:$0xff] %v15725_v21  ;;  %v15730_v44 = vadd.f32 %v15671_v0, %v8212_v24  ;;  %v8215_v6 = vadd.f32 %v11411_v58, %v7426_v41  ;;  %v7425_v35 = vadd.f32 %v7114_v11, %v15428_v15 }
 0x40a   : >> { %v11304_v53 = vpop.f32.mrf.mxu1  ;;  %v11417_v47 = vpop.f32.mrf.mxu0 }
 0x40b   : >> { %17042 = vst [vmem:[#allocation81_spill] sm:$0xff] %v15730_v44  ;;  %v15735_v13 = vadd.f32 %v15671_v0, %v8215_v6  ;;  %v8214_v21 = vadd.f32 %v7903_v16, %v7425_v35  ;;  %v7428_v51 = vadd.f32 %v11304_v53, %v15433_v39 }
 0x40c   : >> { %v7124_v12 = vpop.f32.mrf.mxu1  ;;  %v7923_v63 = vpop.f32.mrf.mxu0 }
 0x40d   : >> { %17044 = vst [vmem:[#allocation82_spill] sm:$0xff] %v15735_v13  ;;  %v15740_v2 = vadd.f32 %v15671_v0, %v8214_v21  ;;  %v8217_v59 = vadd.f32 %v11414_v19, %v7428_v51  ;;  %v7427_v15 = vadd.f32 %v7124_v12, %v15438_v20 }
 0x40e   : >> { %v11307_v14 = vpop.f32.mrf.mxu1  ;;  %v11420_v58 = vpop.f32.mrf.mxu0 }
 0x40f   : >> { %17046 = vst [vmem:[#allocation83_spill] sm:$0xff] %v15740_v2  ;;  %v15745_v22 = vadd.f32 %v15671_v0, %v8217_v59  ;;  %v8216_v7 = vadd.f32 %v7913_v3, %v7427_v15  ;;  %v7430_v39 = vadd.f32 %v11307_v14, %v15443_v48  ;;  %v17056_v3 = vld [vmem:[#allocation46_spill] sm:$0xff] }
 0x410   : >> { %v7134_v8 = vpop.f32.mrf.mxu1  ;;  %v7933_v1 = vpop.f32.mrf.mxu0 }
 0x411   : >> { %17048 = vst [vmem:[#allocation84_spill] sm:$0xff] %v15745_v22  ;;  %v15750_v16 = vadd.f32 %v15671_v0, %v8216_v7  ;;  %v8219_v56 = vadd.f32 %v11417_v47, %v7430_v39  ;;  %v7429_v20 = vadd.f32 %v7134_v8, %v15448_v60 }
 0x412   : >> { %v11310_v23 = vpop.f32.mrf.mxu1  ;;  %v11423_v5 = vpop.f32.mrf.mxu0 }
 0x413   : >> { %17050 = vst [vmem:[#allocation85_spill] sm:$0xff] %v15750_v16  ;;  %v15755_v16 = vadd.f32 %v15671_v0, %v8219_v56  ;;  %v8218_v32 = vadd.f32 %v7923_v63, %v7429_v20  ;;  %v7432_v48 = vadd.f32 %v11310_v23, %v15453_v62  ;;  %v17070_v20 = vmov %v15488_v29 }
 0x414   : >> { %v7144_v19 = vpop.f32.mrf.mxu1  ;;  %v7943_v24 = vpop.f32.mrf.mxu0 }
 0x415   : >> { %17052 = vst [vmem:[#allocation86_spill] sm:$0xff] %v15755_v16  ;;  %v15760_v41 = vadd.f32 %v15671_v0, %v8218_v32  ;;  %v8221_v11 = vadd.f32 %v11420_v58, %v7432_v48  ;;  %v7431_v60 = vadd.f32 %v7144_v19, %v17056_v3  ;;  %v17065_v58 = vmov %v15478_v37 }
 0x416   : >> { %v11313_v44 = vpop.f32.mrf.mxu1  ;;  %v11426_v6 = vpop.f32.mrf.mxu0 }
 0x417   : >> { %17054 = vst [vmem:[#allocation87_spill] sm:$0xff] %v15760_v41  ;;  %v15765_v32 = vadd.f32 %v15671_v0, %v8221_v11  ;;  %v8220_v35 = vadd.f32 %v7933_v1, %v7431_v60  ;;  %v7434_v62 = vadd.f32 %v11313_v44, %v15463_v28 }
 0x418   : >> { %v7154_v53 = vpop.f32.mrf.mxu1  ;;  %v7953_v47 = vpop.f32.mrf.mxu0 }
 0x419   : >> { %17057 = vst [vmem:[#allocation88_spill] sm:$0xff] %v15765_v32  ;;  %v15770_v13 = vadd.f32 %v15671_v0, %v8220_v35  ;;  %v8223_v21 = vadd.f32 %v11423_v5, %v7434_v62  ;;  %v7433_v51 = vadd.f32 %v7154_v53, %v15468_v18 }
 0x41a   : >> { %v11316_v12 = vpop.f32.mrf.mxu1  ;;  %v11429_v63 = vpop.f32.mrf.mxu0 }
 0x41b   : >> { %17059 = vst [vmem:[#allocation89_spill] sm:$0xff] %v15770_v13  ;;  %v15775_v48 = vadd.f32 %v15671_v0, %v8223_v21  ;;  %v8222_v2 = vadd.f32 %v7943_v24, %v7433_v51  ;;  %v7436_v28 = vadd.f32 %v11316_v12, %v15473_v17  ;;  %v17079_v13 = vld [vmem:[#allocation48_spill] sm:$0xff] }
 0x41c   : >> { %v7164_v59 = vpop.f32.mrf.mxu1  ;;  %v7963_v15 = vpop.f32.mrf.mxu0 }
 0x41d   : >> { %17061 = vst [vmem:[#allocation90_spill] sm:$0xff] %v15775_v48  ;;  %v15780_v56 = vadd.f32 %v15671_v0, %v8222_v2  ;;  %v8225_v14 = vadd.f32 %v11426_v6, %v7436_v28  ;;  %v7435_v18 = vadd.f32 %v7164_v59, %v17065_v58 }
 0x41e   : >> { %v11319_v22 = vpop.f32.mrf.mxu1  ;;  %v11432_v7 = vpop.f32.mrf.mxu0 }
 0x41f   : >> { %17063 = vst [vmem:[#allocation91_spill] sm:$0xff] %v15780_v56  ;;  %v15785_v39 = vadd.f32 %v15671_v0, %v8225_v14  ;;  %v8224_v8 = vadd.f32 %v7953_v47, %v7435_v18  ;;  %v7438_v17 = vadd.f32 %v11319_v22, %v15483_v30 }
 0x420   : >> { %v7174_v1 = vpop.f32.mrf.mxu1  ;;  %v7973_v16 = vpop.f32.mrf.mxu0 }
 0x421   : >> { %17066 = vst [vmem:[#allocation92_spill] sm:$0xff] %v15785_v39  ;;  %v15790_v8 = vadd.f32 %v15671_v0, %v8224_v8  ;;  %v8227_v56 = vadd.f32 %v11429_v63, %v7438_v17  ;;  %v7437_v23 = vadd.f32 %v7174_v1, %v17070_v20 }
 0x422   : >> { %v11322_v5 = vpop.f32.mrf.mxu1  ;;  %v11435_v32 = vpop.f32.mrf.mxu0 }
 0x423   : >> { %17068 = vst [vmem:[#allocation93_spill] sm:$0xff] %v15790_v8  ;;  %v15795_v48 = vadd.f32 %v15671_v0, %v8227_v56  ;;  %v8226_v19 = vadd.f32 %v7963_v15, %v7437_v23  ;;  %v7440_v30 = vadd.f32 %v11322_v5, %v15493_v26 }
 0x424   : >> { %v7184_v24 = vpop.f32.mrf.mxu1  ;;  %v7983_v41 = vpop.f32.mrf.mxu0 }
 0x425   : >> { %17071 = vst [vmem:[#allocation94_spill] sm:$0xff] %v15795_v48  ;;  %v15800_v39 = vadd.f32 %v15671_v0, %v8226_v19  ;;  %v8229_v11 = vadd.f32 %v11432_v7, %v7440_v30  ;;  %v7439_v3 = vadd.f32 %v7184_v24, %v15498_v42  ;;  %v17094_v19 = vld [vmem:[#allocation49_spill] sm:$0xff] }
 0x426   : >> { %v11325_v60 = vpop.f32.mrf.mxu1  ;;  %v11438_v44 = vpop.f32.mrf.mxu0 }
 0x427   : >> { %17073 = vst [vmem:[#allocation95_spill] sm:$0xff] %v15800_v39  ;;  %v15805_v6 = vadd.f32 %v15671_v0, %v8229_v11  ;;  %v8228_v35 = vadd.f32 %v7973_v16, %v7439_v3  ;;  %v7442_v26 = vadd.f32 %v11325_v60, %v15503_v9  ;;  %v17097_v3 = vld [vmem:[#allocation56_spill] sm:$0xff] }
 0x428   : >> { %v7194_v62 = vpop.f32.mrf.mxu1  ;;  %v7993_v53 = vpop.f32.mrf.mxu0 }
 0x429   : >> { %17075 = vst [vmem:[#allocation96_spill] sm:$0xff] %v15805_v6  ;;  %v15810_v7 = vadd.f32 %v15671_v0, %v8228_v35  ;;  %v8231_v47 = vadd.f32 %v11435_v32, %v7442_v26  ;;  %v7441_v42 = vadd.f32 %v7194_v62, %v17079_v13  ;;  %v17100_v35 = vld [vmem:[#allocation22_spill] sm:$0xff] }
 0x42a   : >> { %v11328_v21 = vpop.f32.mrf.mxu1  ;;  %v11441_v51 = vpop.f32.mrf.mxu0 }
 0x42b   : >> { %17077 = vst [vmem:[#allocation97_spill] sm:$0xff] %v15810_v7  ;;  %v15815_v12 = vadd.f32 %v15671_v0, %v8231_v47  ;;  %v8230_v63 = vadd.f32 %v7983_v41, %v7441_v42  ;;  %v7444_v9 = vadd.f32 %v11328_v21, %v15513_v55  ;;  %v17103_v47 = vld [vmem:[#allocation23_spill] sm:$0xff] }
 0x42c   : >> { %v7204_v2 = vpop.f32.mrf.mxu1  ;;  %v8003_v28 = vpop.f32.mrf.mxu0 }
 0x42d   : >> { %17080 = vst [vmem:[#allocation98_spill] sm:$0xff] %v15815_v12  ;;  %v15820_v63 = vadd.f32 %v15671_v0, %v8230_v63  ;;  %v8233_v59 = vadd.f32 %v11438_v44, %v7444_v9  ;;  %v7443_v15 = vadd.f32 %v7204_v2, %v15518_v46  ;;  %v17106_v12 = vld [vmem:[#allocation50_spill] sm:$0xff] }
 0x42e   : >> { %v11331_v14 = vpop.f32.mrf.mxu1  ;;  %v11444_v58 = vpop.f32.mrf.mxu0 }
 0x42f   : >> { %17082 = vst [vmem:[#allocation99_spill] sm:$0xff] %v15820_v63  ;;  %v15825_v20 = vadd.f32 %v15671_v0, %v8233_v59  ;;  %v8232_v18 = vadd.f32 %v7993_v53, %v7443_v15  ;;  %v7446_v55 = vadd.f32 %v11331_v14, %v15523_v38  ;;  %v17109_v59 = vld [vmem:[#allocation51_spill] sm:$0xff] }
 0x430   : >> { %v7214_v22 = vpop.f32.mrf.mxu1  ;;  %v8013_v7 = vpop.f32.mrf.mxu0 }
 0x431   : >> { %17084 = vst [vmem:[#allocation100_spill] sm:$0xff] %v15825_v20  ;;  %v15830_v39 = vadd.f32 %v15671_v0, %v8232_v18  ;;  %v8235_v8 = vadd.f32 %v11441_v51, %v7446_v55  ;;  %v7445_v46 = vadd.f32 %v7214_v22, %v15528_v52  ;;  %v17112_v55 = vld [vmem:[#allocation18_spill] sm:$0xff] }
 0x432   : >> { %v11334_v17 = vpop.f32.mrf.mxu1  ;;  %v11447_v1 = vpop.f32.mrf.mxu0 }
 0x433   : >> { %17086 = vst [vmem:[#allocation101_spill] sm:$0xff] %v15830_v39  ;;  %v15835_v13 = vadd.f32 %v15671_v0, %v8235_v8  ;;  %v8234_v16 = vadd.f32 %v8003_v28, %v7445_v46  ;;  %v7448_v38 = vadd.f32 %v11334_v17, %v15533_v27  ;;  %v17115_v17 = vld [vmem:[#allocation19_spill] sm:$0xff] }
 0x434   : >> { %v7224_v56 = vpop.f32.mrf.mxu1  ;;  %v8023_v20 = vpop.f32.mrf.mxu0 }
 0x435   : >> { %17088 = vst [vmem:[#allocation102_spill] sm:$0xff] %v15835_v13  ;;  %v15840_v21 = vadd.f32 %v15671_v0, %v8234_v16  ;;  %v8237_v23 = vadd.f32 %v11444_v58, %v7448_v38  ;;  %v7447_v52 = vadd.f32 %v7224_v56, %v15538_v45 }
 0x436   : >> { %v11337_v5 = vpop.f32.mrf.mxu1  ;;  %v11450_v32 = vpop.f32.mrf.mxu0 }
 0x437   : >> { %17090 = vst [vmem:[#allocation103_spill] sm:$0xff] %v15840_v21  ;;  %v15845_v53 = vadd.f32 %v15671_v0, %v8237_v23  ;;  %v8236_v48 = vadd.f32 %v8013_v7, %v7447_v52  ;;  %v7450_v27 = vadd.f32 %v11337_v5, %v17094_v19  ;;  %v17118_v23 = vld [vmem:[#allocation20_spill] sm:$0xff]  ;;  %v17121_v19 = vld [vmem:[#allocation21_spill] sm:$0xff] }
 0x438   : >> { %v7234_v30 = vpop.f32.mrf.mxu1  ;;  %v8033_v24 = vpop.f32.mrf.mxu0 }
 0x439   : >> { %17092 = vst [vmem:[#allocation104_spill] sm:$0xff] %v15845_v53  ;;  %v15850_v41 = vadd.f32 %v15671_v0, %v8236_v48  ;;  %v8239_v11 = vadd.f32 %v11447_v1, %v7450_v27  ;;  %v7449_v45 = vadd.f32 %v7234_v30, %v17097_v3  ;;  %v17124_v3 = vld [vmem:[#allocation17_spill] sm:$0xff] }
 0x43a   : >> { %v11340_v60 = vpop.f32.mrf.mxu1  ;;  %v11453_v44 = vpop.f32.mrf.mxu0 }
 0x43b   : >> { %17095 = vst [vmem:[#allocation105_spill] sm:$0xff] %v15850_v41  ;;  %v15855_v14 = vadd.f32 %v15671_v0, %v8239_v11  ;;  %v8238_v6 = vadd.f32 %v8023_v20, %v7449_v45  ;;  %v7452_v26 = vadd.f32 %v11340_v60, %v17100_v35 }
 0x43c   : >> { %v7244_v62 = vpop.f32.mrf.mxu1  ;;  %v8043_v53 = vpop.f32.mrf.mxu0 }
 0x43d   : >> { %17098 = vst [vmem:[#allocation106_spill] sm:$0xff] %v15855_v14  ;;  %v15860_v18 = vadd.f32 %v15671_v0, %v8238_v6  ;;  %v8241_v41 = vadd.f32 %v11450_v32, %v7452_v26  ;;  %v7451_v13 = vadd.f32 %v7244_v62, %v17103_v47 }
 0x43e   : >> { %v11343_v42 = vpop.f32.mrf.mxu1  ;;  %v11456_v21 = vpop.f32.mrf.mxu0 }
 0x43f   : >> { %17101 = vst [vmem:[#allocation107_spill] sm:$0xff] %v15860_v18  ;;  %v15865_v22 = vadd.f32 %v15671_v0, %v8241_v41  ;;  %v8240_v51 = vadd.f32 %v8033_v24, %v7451_v13  ;;  %v7454_v63 = vadd.f32 %v11343_v42, %v17106_v12 }
 0x440   : >> { %v7254_v9 = vpop.f32.mrf.mxu1  ;;  %v8053_v2 = vpop.f32.mrf.mxu0 }
 0x441   : >> { %17104 = vst [vmem:[#allocation108_spill] sm:$0xff] %v15865_v22  ;;  %v15870_v26 = vadd.f32 %v15671_v0, %v8240_v51  ;;  %v8243_v28 = vadd.f32 %v11453_v44, %v7454_v63  ;;  %v7453_v15 = vadd.f32 %v7254_v9, %v17109_v59  ;;  %v17133_v9 = vld [vmem:[#allocation13_spill] sm:$0xff] }
 0x442   : >> { %v11346_v14 = vpop.f32.mrf.mxu1  ;;  %v11459_v58 = vpop.f32.mrf.mxu0 }
 0x443   : >> { %17107 = vst [vmem:[#allocation109_spill] sm:$0xff] %v15870_v26  ;;  %v15875_v30 = vadd.f32 %v15671_v0, %v8243_v28  ;;  %v8242_v18 = vadd.f32 %v8043_v53, %v7453_v15  ;;  %v7456_v22 = vadd.f32 %v11346_v14, %v17112_v55  ;;  %v17127_v26 = vld [vmem:[#allocation15_spill] sm:$0xff]  ;;  %v17136_v14 = vld [vmem:[#allocation14_spill] sm:$0xff] }
 0x444   : >> { %v7264_v7 = vpop.f32.mrf.mxu1  ;;  %v8063_v39 = vpop.f32.mrf.mxu0 }
 0x445   : >> { %17110 = vst [vmem:[#allocation110_spill] sm:$0xff] %v15875_v30  ;;  %v15880_v8 = vadd.f32 %v15671_v0, %v8242_v18  ;;  %v8245_v46 = vadd.f32 %v11456_v21, %v7456_v22  ;;  %v7455_v1 = vadd.f32 %v7264_v7, %v17115_v17  ;;  %v17139_v7 = vld [vmem:[#allocation11_spill] sm:$0xff] }
 0x446   : >> { %v11349_v16 = vpop.f32.mrf.mxu1  ;;  %v11462_v38 = vpop.f32.mrf.mxu0 }
 0x447   : >> { %17113 = vst [vmem:[#allocation111_spill] sm:$0xff] %v15880_v8  ;;  %v15885_v56 = vadd.f32 %v15671_v0, %v8245_v46  ;;  %v8244_v20 = vadd.f32 %v8053_v2, %v7455_v1  ;;  %v7458_v52 = vadd.f32 %v11349_v16, %v17118_v23  ;;  %v17142_v1 = vld [vmem:[#allocation12_spill] sm:$0xff]  ;;  %v17145_v23 = vld [vmem:[#allocation9_spill] sm:$0xff] }
 0x448   : >> { %v7274_v5 = vpop.f32.mrf.mxu1  ;;  %v8073_v32 = vpop.f32.mrf.mxu0 }
 0x449   : >> { %17116 = vst [vmem:[#allocation112_spill] sm:$0xff] %v15885_v56  ;;  %v15890_v42 = vadd.f32 %v15671_v0, %v8244_v20  ;;  %v8247_v48 = vadd.f32 %v11459_v58, %v7458_v52  ;;  %v7457_v27 = vadd.f32 %v7274_v5, %v17121_v19 }
 0x44a   : >> { %v11352_v30 = vpop.f32.mrf.mxu1  ;;  %v11465_v24 = vpop.f32.mrf.mxu0 }
 0x44b   : >> { %17119 = vst [vmem:[#allocation113_spill] sm:$0xff] %v15890_v42  ;;  %v15895_v46 = vadd.f32 %v15671_v0, %v8247_v48  ;;  %v8246_v11 = vadd.f32 %v8063_v39, %v7457_v27  ;;  %v7460_v45 = vadd.f32 %v11352_v30, %v17124_v3  ;;  %v17130_v42 = vld [vmem:[#allocation16_spill] sm:$0xff]  ;;  %v17148_v27 = vld [vmem:[#allocation10_spill] sm:$0xff] }
 0x44c   : >> { %v7284_v60 = vpop.f32.mrf.mxu1  ;;  %v8083_v44 = vpop.f32.mrf.mxu0 }
 0x44d   : >> { %17122 = vst [vmem:[#allocation114_spill] sm:$0xff] %v15895_v46  ;;  %v15900_v6 = vadd.f32 %v15671_v0, %v8246_v11  ;;  %v8249_v35 = vadd.f32 %v11462_v38, %v7460_v45  ;;  %v7459_v62 = vadd.f32 %v7284_v60, %v17127_v26  ;;  %v17151_v45 = vld [vmem:[#allocation7_spill] sm:$0xff]  ;;  %v17154_v26 = vld [vmem:[#allocation8_spill] sm:$0xff] }
 0x44e   : >> { %v11355_v53 = vpop.f32.mrf.mxu1  ;;  %v11468_v41 = vpop.f32.mrf.mxu0 }
 0x44f   : >> { %17125 = vst [vmem:[#allocation115_spill] sm:$0xff] %v15900_v6  ;;  %v15905_v47 = vadd.f32 %v15671_v0, %v8249_v35  ;;  %v8248_v13 = vadd.f32 %v8073_v32, %v7459_v62  ;;  %v7462_v21 = vadd.f32 %v11355_v53, %v17130_v42  ;;  %v17157_v42 = vld [vmem:[#allocation5_spill] sm:$0xff] }
 0x450   : >> { %v7294_v51 = vpop.f32.mrf.mxu1  ;;  %v8093_v12 = vpop.f32.mrf.mxu0 }
 0x451   : >> { %17128 = vst [vmem:[#allocation116_spill] sm:$0xff] %v15905_v47  ;;  %v15910_v58 = vadd.f32 %v15671_v0, %v8248_v13  ;;  %v8251_v63 = vadd.f32 %v11465_v24, %v7462_v21  ;;  %v7461_v2 = vadd.f32 %v7294_v51, %v17133_v9  ;;  %v17160_v9 = vld [vmem:[#allocation52_spill] sm:$0xff] }
 0x452   : >> { %v11358_v28 = vpop.f32.mrf.mxu1  ;;  %v11471_v59 = vpop.f32.mrf.mxu0 }
 0x453   : >> { %17131 = vst [vmem:[#allocation117_spill] sm:$0xff] %v15910_v58  ;;  %v15915_v62 = vadd.f32 %v15671_v0, %v8251_v63  ;;  %v8250_v15 = vadd.f32 %v8083_v44, %v7461_v2  ;;  %v7464_v18 = vadd.f32 %v11358_v28, %v17136_v14 }
 0x454   : >> { %v7304_v55 = vpop.f32.mrf.mxu1  ;;  %v8103_v22 = vpop.f32.mrf.mxu0 }
 0x455   : >> { %17134 = vst [vmem:[#allocation118_spill] sm:$0xff] %v15915_v62  ;;  %v15920_v2 = vadd.f32 %v15671_v0, %v8250_v15  ;;  %v8253_v58 = vadd.f32 %v11468_v41, %v7464_v18  ;;  %v7463_v39 = vadd.f32 %v7304_v55, %v17139_v7  ;;  %v17163_v18 = vld [vmem:[#allocation53_spill] sm:$0xff] }
 0x456   : >> { %v11361_v8 = vpop.f32.mrf.mxu1  ;;  %v11474_v46 = vpop.f32.mrf.mxu0 }
 0x457   : >> { %17137 = vst [vmem:[#allocation119_spill] sm:$0xff] %v15920_v2  ;;  %v15925_v6 = vadd.f32 %v15671_v0, %v8253_v58  ;;  %v8252_v17 = vadd.f32 %v8093_v12, %v7463_v39  ;;  %v7466_v16 = vadd.f32 %v11361_v8, %v17142_v1  ;;  %v17166_v39 = vld [vmem:[#allocation54_spill] sm:$0xff] }
 0x458   : >> { %v7314_v38 = vpop.f32.mrf.mxu1  ;;  %v8113_v56 = vpop.f32.mrf.mxu0 }
 0x459   : >> { %17140 = vst [vmem:[#allocation120_spill] sm:$0xff] %v15925_v6  ;;  %v15930_v11 = vadd.f32 %v15671_v0, %v8252_v17  ;;  %v8255_v20 = vadd.f32 %v11471_v59, %v7466_v16  ;;  %v7465_v52 = vadd.f32 %v7314_v38, %v17145_v23 }
 0x45a   : >> { %v11364_v5 = vpop.f32.mrf.mxu1  ;;  %v11477_v32 = vpop.f32.mrf.mxu0 }
 0x45b   : >> { %17143 = vst [vmem:[#allocation121_spill] sm:$0xff] %v15930_v11  ;;  %v15935_v19 = vadd.f32 %v15671_v0, %v8255_v20  ;;  %v8254_v48 = vadd.f32 %v8103_v22, %v7465_v52  ;;  %v7468_v30 = vadd.f32 %v11364_v5, %v17148_v27  ;;  %v17169_v52 = vld [vmem:[#allocation55_spill] sm:$0xff] }
 0x45c   : >> { %v7324_v24 = vpop.f32.mrf.mxu1  ;;  %v8123_v3 = vpop.f32.mrf.mxu0 }
 0x45d   : >> { %17146 = vst [vmem:[#allocation122_spill] sm:$0xff] %v15935_v19  ;;  %v15940_v27 = vadd.f32 %v15671_v0, %v8254_v48  ;;  %v8257_v11 = vadd.f32 %v11474_v46, %v7468_v30  ;;  %v7467_v60 = vadd.f32 %v7324_v24, %v17151_v45 }
 0x45e   : >> { %v11367_v44 = vpop.f32.mrf.mxu1  ;;  %v11480_v6 = vpop.f32.mrf.mxu0 }
 0x45f   : >> { %17149 = vst [vmem:[#allocation123_spill] sm:$0xff] %v15940_v27  ;;  %v15945_v35 = vadd.f32 %v15671_v0, %v8257_v11  ;;  %v8256_v19 = vadd.f32 %v8113_v56, %v7467_v60  ;;  %v7470_v62 = vadd.f32 %v11367_v44, %v17154_v26 }
 0x460   : >> { %v7334_v53 = vpop.f32.mrf.mxu1  ;;  %v8133_v41 = vpop.f32.mrf.mxu0 }
 0x461   : >> { %17152 = vst [vmem:[#allocation124_spill] sm:$0xff] %v15945_v35  ;;  %v15950_v47 = vadd.f32 %v15671_v0, %v8256_v19  ;;  %v8259_v13 = vadd.f32 %v11477_v32, %v7470_v62  ;;  %v7469_v21 = vadd.f32 %v7334_v53, %v17157_v42 }
 0x462   : >> { %v11370_v51 = vpop.f32.mrf.mxu1  ;;  %v11483_v12 = vpop.f32.mrf.mxu0 }
 0x463   : >> { %17155 = vst [vmem:[#allocation125_spill] sm:$0xff] %v15950_v47  ;;  %v15955_v63 = vadd.f32 %v15671_v0, %v8259_v13  ;;  %v8258_v35 = vadd.f32 %v8123_v3, %v7469_v21  ;;  %v7472_v2 = vadd.f32 %v11370_v51, %v17160_v9 }
 0x464   : >> { %v7344_v28 = vpop.f32.mrf.mxu1  ;;  %v8143_v59 = vpop.f32.mrf.mxu0 }
 0x465   : >> { %17158 = vst [vmem:[#allocation126_spill] sm:$0xff] %v15955_v63  ;;  %v15960_v15 = vadd.f32 %v15671_v0, %v8258_v35  ;;  %v8261_v14 = vadd.f32 %v11480_v6, %v7472_v2  ;;  %v7471_v55 = vadd.f32 %v7344_v28, %v17163_v18 }
 0x466   : >> { %v11373_v22 = vpop.f32.mrf.mxu1  ;;  %v11486_v58 = vpop.f32.mrf.mxu0 }
 0x467   : >> { %17161 = vst [vmem:[#allocation127_spill] sm:$0xff] %v15960_v15  ;;  %v17162_v61 = vmov %v15960_v15  ;;  %v15965_v3 = vadd.f32 %v15671_v0, %v8261_v14  ;;  %v8260_v7 = vadd.f32 %v8133_v41, %v7471_v55  ;;  %v7474_v8 = vadd.f32 %v11373_v22, %v17166_v39 }
 0x468   : >> { %v7354_v46 = vpop.f32.mrf.mxu1  ;;  %v8153_v17 = vpop.f32.mrf.mxu0 }
 0x469   : >> { %17164 = vst [vmem:[#allocation128_spill] sm:$0xff] %v15965_v3  ;;  %v17165_v57 = vmov %v15965_v3  ;;  %v15970_v1 = vadd.f32 %v15671_v0, %v8260_v7  ;;  %v8263_v16 = vadd.f32 %v11483_v12, %v7474_v8  ;;  %v7473_v38 = vadd.f32 %v7354_v46, %v15634_v36 }
 0x46a   : >> { %v11376_v56 = vpop.f32.mrf.mxu1  ;;  %v11489_v20 = vpop.f32.mrf.mxu0  ;;  %v17173_v29 = vmax.f32 %v17165_v57, 0.0   ;;  %v17269_v57 = vld [vmem:[#allocation82_spill] sm:$0xff] }
 0x46b   : >> { %17167 = vst [vmem:[#allocation129_spill] sm:$0xff] %v15970_v1  ;;  %v17168_v33 = vmov %v15970_v1  ;;  %v15975_v28 = vadd.f32 %v15671_v0, %v8263_v16  ;;  %v8262_v23 = vadd.f32 %v8143_v59, %v7473_v38  ;;  %v7476_v5 = vadd.f32 %v11376_v56, %v17169_v52 }
 0x46c   : >> { %v7364_v32 = vpop.f32.mrf.mxu1  ;;  %v8163_v48 = vpop.f32.mrf.mxu0  ;;  %v17175_v37 = vmax.f32 %v17168_v33, 0.0   ;;  %v17270_v33 = vmax.f32 %v17269_v57, 0.0  }
 0x46d   : >> { %v8415_v27 = vmax.f32 %v15975_v28, 0.0   ;;  %v15980_v30 = vadd.f32 %v15671_v0, %v8262_v23  ;;  %v8265_v24 = vadd.f32 %v11486_v58, %v7476_v5  ;;  %v7475_v36 = vadd.f32 %v7364_v32, %v15640_v54  ;;  %v17252_v32 = vld [vmem:[#allocation88_spill] sm:$0xff] }
 0x46e   : >> { %v11379_v3 = vpop.f32.mrf.mxu1  ;;  %v11492_v11 = vpop.f32.mrf.mxu0  ;;  %v17253_v32 = vmax.f32 %v17252_v32, 0.0   ;;  %17271 = vst [vmem:[#allocation15_spill] sm:$0xff] %v17270_v33  ;;  %v17302_v33 = vld [vmem:[#allocation6_spill] sm:$0xff] }
 0x46f   : >> { %v8414_v44 = vmax.f32 %v15980_v30, 0.0   ;;  %v8345_v45 = vadd.f32 %v15671_v0, %v8265_v24  ;;  %v8264_v60 = vadd.f32 %v8153_v17, %v7475_v36  ;;  %v7478_v6 = vadd.f32 %v11379_v3, %v15643_v25  ;;  %v17208_v30 = vld [vmem:[#allocation110_spill] sm:$0xff]  ;;  %v17260_v24 = vld [vmem:[#allocation87_spill] sm:$0xff] }
 0x470   : >> { %v7374_v19 = vpop.f32.mrf.mxu1  ;;  %v8173_v26 = vpop.f32.mrf.mxu0  ;;  %v17172_v28 = vmov %v8415_v27  ;;  %v17174_v3 = vmov %v17173_v29  ;;  %v17186_v27 = vld [vmem:[#allocation123_spill] sm:$0xff]  ;;  %v17209_v30 = vmax.f32 %v17208_v30, 0.0   ;;  %v17232_v36 = vld [vmem:[#allocation98_spill] sm:$0xff]  ;;  %v17261_v24 = vmax.f32 %v17260_v24, 0.0   ;;  %v17266_v29 = vld [vmem:[#allocation85_spill] sm:$0xff] }
 0x471   : >> { %v8417_v62 = vmax.f32 %v8345_v45, 0.0   ;;  %v8344_v53 = vadd.f32 %v15671_v0, %v8264_v60  ;;  %v8267_v41 = vadd.f32 %v11489_v20, %v7478_v6  ;;  %v7477_v47 = vadd.f32 %v7374_v19, %v15646_v4  ;;  %v17184_v19 = vld [vmem:[#allocation122_spill] sm:$0xff]  ;;  %v17188_v6 = vld [vmem:[#allocation120_spill] sm:$0xff]  ;;  %v8431_v28 = vld [vmem:[%s12945_s8 + $0x28] sm:$0xff] (%p16005_p5) }
 0x472   : >> { %v11382_v13 = vpop.f32.mrf.mxu1  ;;  %v11495_v42 = vpop.f32.mrf.mxu0  ;;  %v17185_v19 = vmax.f32 %v17184_v19, 0.0   ;;  %v17187_v27 = vmax.f32 %v17186_v27, 0.0   ;;  %v17189_v6 = vmax.f32 %v17188_v6, 0.0   ;;  %v17233_v36 = vmax.f32 %v17232_v36, 0.0   ;;  %17262 = vst [vmem:[#allocation20_spill] sm:$0xff] %v17261_v24  ;;  %v8430_v44 = vld [vmem:[%s12945_s8 + $0x20] sm:$0xff] (%p16005_p5) }
 0x473   : >> { %v8416_v15 = vmax.f32 %v8344_v53, 0.0   ;;  %v8347_v54 = vadd.f32 %v15671_v0, %v8267_v41  ;;  %v8266_v21 = vadd.f32 %v8163_v48, %v7477_v47  ;;  %v7480_v51 = vadd.f32 %v11382_v13, %v15649_v34  ;;  %v17220_v53 = vld [vmem:[#allocation104_spill] sm:$0xff]  ;;  %v17222_v41 = vld [vmem:[#allocation105_spill] sm:$0xff]  ;;  %v17224_v13 = vld [vmem:[#allocation102_spill] sm:$0xff] }
 0x474   : >> { %v7384_v12 = vpop.f32.mrf.mxu1  ;;  %v8183_v2 = vpop.f32.mrf.mxu0  ;;  %v17171_v60 = vmov %v8417_v62  ;;  %v17192_v62 = vld [vmem:[#allocation118_spill] sm:$0xff]  ;;  %v17221_v53 = vmax.f32 %v17220_v53, 0.0   ;;  %v17223_v41 = vmax.f32 %v17222_v41, 0.0   ;;  %v17225_v13 = vmax.f32 %v17224_v13, 0.0   ;;  %v17315_v15 = vld [vmem:[#allocation84_spill] sm:$0xff] (%p16005_p5)  ;;  %v17321_v19 = vld [vmem:[#allocation89_spill] sm:$0xff] (%p16005_p5) }
 0x475   : >> { %v8419_v47 = vmax.f32 %v8347_v54, 0.0   ;;  %v8346_v25 = vadd.f32 %v15671_v0, %v8266_v21  ;;  %v8269_v63 = vadd.f32 %v11492_v11, %v7480_v51  ;;  %v7479_v35 = vadd.f32 %v7384_v12, %v15652_v31  ;;  %v17177_v51 = vld [vmem:[#allocation126_spill] sm:$0xff]  ;;  %v17190_v11 = vld [vmem:[#allocation121_spill] sm:$0xff]  ;;  %v17196_v54 = vld [vmem:[#allocation116_spill] sm:$0xff] }
 0x476   : >> { %v11385_v9 = vpop.f32.mrf.mxu1  ;;  %v11498_v39 = vpop.f32.mrf.mxu0  ;;  %v17176_v12 = vmov %v17175_v37  ;;  %v17178_v51 = vmax.f32 %v17177_v51, 0.0   ;;  %v17191_v11 = vmax.f32 %v17190_v11, 0.0   ;;  %v17193_v62 = vmax.f32 %v17192_v62, 0.0   ;;  %v17226_v21 = vld [vmem:[#allocation103_spill] sm:$0xff]  ;;  %v17248_v48 = vld [vmem:[#allocation90_spill] sm:$0xff]  ;;  %v8433_v60 = vld [vmem:[%s12945_s8 + $0x38] sm:$0xff] (%p16005_p5) }
 0x477   : >> { %v8418_v4 = vmax.f32 %v8346_v25, 0.0   ;;  %v8349_v59 = vadd.f32 %v15671_v0, %v8269_v63  ;;  %v8268_v14 = vadd.f32 %v8173_v26, %v7479_v35  ;;  %v7482_v18 = vadd.f32 %v11385_v9, %v15655_v50  ;;  %v17180_v35 = vld [vmem:[#allocation124_spill] sm:$0xff]  ;;  %v17214_v26 = vld [vmem:[#allocation109_spill] sm:$0xff]  ;;  %v17234_v63 = vld [vmem:[#allocation99_spill] sm:$0xff] }
 0x478   : >> { %v7394_v55 = vpop.f32.mrf.mxu1  ;;  %v8193_v20 = vpop.f32.mrf.mxu0  ;;  %v17181_v35 = vmax.f32 %v17180_v35, 0.0   ;;  %v17197_v54 = vmax.f32 %v17196_v54, 0.0   ;;  %v17215_v26 = vmax.f32 %v17214_v26, 0.0   ;;  %v17227_v21 = vmax.f32 %v17226_v21, 0.0   ;;  %v17319_v36 = vld [vmem:[#allocation86_spill] sm:$0xff] (%p16005_p5)  ;;  %v17323_v53 = vld [vmem:[#allocation88_spill] sm:$0xff] (%p16005_p5) }
 0x479   : >> { %v8421_v31 = vmax.f32 %v8349_v59, 0.0   ;;  %v8348_v22 = vadd.f32 %v15671_v0, %v8268_v14  ;;  %v8271_v34 = vadd.f32 %v11495_v42, %v7482_v18  ;;  %v7481_v58 = vadd.f32 %v7394_v55, %v15658_v40  ;;  %v17206_v42 = vld [vmem:[#allocation113_spill] sm:$0xff]  ;;  %v17216_v14 = vld [vmem:[#allocation106_spill] sm:$0xff]  ;;  %v17218_v18 = vld [vmem:[#allocation107_spill] sm:$0xff] }
 0x47a   : >> { %v11388_v7 = vpop.f32.mrf.mxu1  ;;  %v17179_v59 = vmax.f32 %v17162_v61, 0.0   ;;  %v17207_v42 = vmax.f32 %v17206_v42, 0.0   ;;  %v17217_v14 = vmax.f32 %v17216_v14, 0.0   ;;  %v17219_v18 = vmax.f32 %v17218_v18, 0.0   ;;  %v17236_v55 = vld [vmem:[#allocation96_spill] sm:$0xff]  ;;  %v17272_v61 = vld [vmem:[#allocation83_spill] sm:$0xff] }
 0x47b   : >> { %v8420_v17 = vmax.f32 %v8348_v22, 0.0   ;;  %v8351_v8 = vadd.f32 %v15671_v0, %v8271_v34  ;;  %v8270_v46 = vadd.f32 %v8183_v2, %v7481_v58  ;;  %v7484_v1 = vadd.f32 %v11388_v7, %v15665_v43  ;;  %v17182_v43 = vld [vmem:[#allocation125_spill] sm:$0xff]  ;;  %v17194_v2 = vld [vmem:[#allocation119_spill] sm:$0xff]  ;;  %v17212_v22 = vld [vmem:[#allocation108_spill] sm:$0xff] }
 0x47c   : >> { %v7404_v16 = vpop.f32.mrf.mxu1  ;;  %v17183_v43 = vmax.f32 %v17182_v43, 0.0   ;;  %v17195_v2 = vmax.f32 %v17194_v2, 0.0   ;;  %v17198_v58 = vld [vmem:[#allocation117_spill] sm:$0xff]  ;;  %v17210_v34 = vld [vmem:[#allocation111_spill] sm:$0xff]  ;;  %v17213_v22 = vmax.f32 %v17212_v22, 0.0   ;;  %v17235_v63 = vmax.f32 %v17234_v63, 0.0  }
 0x47d   : >> { %v8423_v25 = vmax.f32 %v8351_v8, 0.0   ;;  %v8350_v38 = vadd.f32 %v15671_v0, %v8270_v46  ;;  %v8273_v50 = vadd.f32 %v11498_v39, %v7484_v1  ;;  %v7483_v56 = vadd.f32 %v7404_v16, %v15668_v10  ;;  %v17200_v46 = vld [vmem:[#allocation114_spill] sm:$0xff]  ;;  %v17238_v7 = vld [vmem:[#allocation97_spill] sm:$0xff]  ;;  %v17242_v39 = vld [vmem:[#allocation95_spill] sm:$0xff] }
 0x47e   : >> { %v17199_v58 = vmax.f32 %v17198_v58, 0.0   ;;  %v17201_v46 = vmax.f32 %v17200_v46, 0.0   ;;  %v17211_v34 = vmax.f32 %v17210_v34, 0.0   ;;  %v17237_v55 = vmax.f32 %v17236_v55, 0.0   ;;  %v17246_v8 = vld [vmem:[#allocation93_spill] sm:$0xff]  ;;  %v17257_v16 = vld [vmem:[#allocation86_spill] sm:$0xff] }
 0x47f   : >> { %v8422_v45 = vmax.f32 %v8350_v38, 0.0   ;;  %v8353_v23 = vadd.f32 %v15671_v0, %v8273_v50  ;;  %v8272_v40 = vadd.f32 %v8193_v20, %v7483_v56  ;;  %v17202_v50 = vld [vmem:[#allocation115_spill] sm:$0xff]  ;;  %v17204_v38 = vld [vmem:[#allocation112_spill] sm:$0xff]  ;;  %v17239_v7 = vmax.f32 %v17238_v7, 0.0   ;;  %v17313_v31 = vld [vmem:[#allocation85_spill] sm:$0xff] (%p16005_p5) }
 0x480   : >> { %v17203_v50 = vmax.f32 %v17202_v50, 0.0   ;;  %v17205_v38 = vmax.f32 %v17204_v38, 0.0   ;;  %v17228_v20 = vld [vmem:[#allocation100_spill] sm:$0xff]  ;;  %v17243_v39 = vmax.f32 %v17242_v39, 0.0   ;;  %v17247_v8 = vmax.f32 %v17246_v8, 0.0   ;;  %v17250_v56 = vld [vmem:[#allocation91_spill] sm:$0xff] }
 0x481   : >> { %v8425_v1 = vmax.f32 %v8353_v23, 0.0   ;;  %v8352_v52 = vadd.f32 %v15671_v0, %v8272_v40  ;;  %v17229_v20 = vmax.f32 %v17228_v20, 0.0   ;;  %v17240_v23 = vld [vmem:[#allocation94_spill] sm:$0xff]  ;;  %v17244_v0 = vld [vmem:[#allocation92_spill] sm:$0xff]  ;;  %v17249_v48 = vmax.f32 %v17248_v48, 0.0   ;;  %v17254_v40 = vld [vmem:[#allocation89_spill] sm:$0xff] }
 0x482   : >> { %v17241_v23 = vmax.f32 %v17240_v23, 0.0   ;;  %v17245_v0 = vmax.f32 %v17244_v0, 0.0   ;;  %v17251_v56 = vmax.f32 %v17250_v56, 0.0   ;;  %v17255_v40 = vmax.f32 %v17254_v40, 0.0   ;;  %v17263_v10 = vld [vmem:[#allocation84_spill] sm:$0xff]  ;;  %v17317_v48 = vld [vmem:[#allocation87_spill] sm:$0xff] (%p16005_p5) }
 0x483   : >> { %v8424_v9 = vmax.f32 %v8352_v52, 0.0   ;;  %v17230_v52 = vld [vmem:[#allocation101_spill] sm:$0xff]  ;;  %v17258_v16 = vmax.f32 %v17257_v16, 0.0   ;;  %v17264_v5 = vmax.f32 %v17263_v10, 0.0   ;;  %v17267_v37 = vmax.f32 %v17266_v29, 0.0   ;;  %v17281_v29 = vld [vmem:[#allocation78_spill] sm:$0xff] }
 0x484   : >> { %v17231_v52 = vmax.f32 %v17230_v52, 0.0   ;;  %17256 = vst [vmem:[#allocation18_spill] sm:$0xff] %v17255_v40  ;;  %v17273_v49 = vmax.f32 %v17272_v61, 0.0   ;;  %v17278_v10 = vld [vmem:[#allocation81_spill] sm:$0xff]  ;;  %v17282_v40 = vmax.f32 %v17281_v29, 0.0   ;;  %v17303_v33 = vmax.f32 %v17302_v33, 0.0  }
 0x485   : >> { %17259 = vst [vmem:[#allocation19_spill] sm:$0xff] %v17258_v16  ;;  %17265 = vst [vmem:[#allocation21_spill] sm:$0xff] %v17264_v5  ;;  %v17275_v16 = vld [vmem:[#allocation80_spill] sm:$0xff]  ;;  %v17279_v5 = vmax.f32 %v17278_v10, 0.0   ;;  %v17289_v10 = vld [vmem:[#allocation77_spill] sm:$0xff]  ;;  %v17314_v43 = vmax.f32 (%p16005_p5), %v17313_v31, 0.0  }
 0x486   : >> { %17268 = vst [vmem:[#allocation17_spill] sm:$0xff] %v17267_v37  ;;  %17274 = vst [vmem:[#allocation16_spill] sm:$0xff] %v17273_v49  ;;  %v17276_v24 = vmax.f32 %v17275_v16, 0.0   ;;  %v17284_v37 = vld [vmem:[#allocation79_spill] sm:$0xff]  ;;  %v17290_v10 = vmax.f32 %v17289_v10, 0.0   ;;  %v17299_v61 = vld [vmem:[#allocation73_spill] sm:$0xff] }
 0x487   : >> { %17280 = vst [vmem:[#allocation14_spill] sm:$0xff] %v17279_v5  ;;  %17283 = vst [vmem:[#allocation11_spill] sm:$0xff] %v17282_v40  ;;  %v17285_v57 = vmax.f32 %v17284_v37, 0.0   ;;  %v17287_v5 = vld [vmem:[#allocation76_spill] sm:$0xff]  ;;  %v17291_v37 = vld [vmem:[#allocation74_spill] sm:$0xff]  ;;  %v17300_v61 = vmax.f32 %v17299_v61, 0.0  }
 0x488   : >> { %17277 = vst [vmem:[#allocation13_spill] sm:$0xff] %v17276_v24  ;;  %v17288_v5 = vmax.f32 %v17287_v5, 0.0   ;;  %v17292_v37 = vmax.f32 %v17291_v37, 0.0   ;;  %v17294_v49 = vld [vmem:[#allocation75_spill] sm:$0xff]  ;;  %17304 = vst [vmem:[#allocation8_spill] sm:$0xff] %v17303_v33  ;;  %v17305_v29 = vld [vmem:[#allocation3_spill] sm:$0xff] }
 0x489   : >> { %17286 = vst [vmem:[#allocation12_spill] sm:$0xff] %v17285_v57  ;;  %v17295_v49 = vmax.f32 %v17294_v49, 0.0   ;;  %v17296_v57 = vld [vmem:[#allocation4_spill] sm:$0xff]  ;;  %17301 = vst [vmem:[#allocation7_spill] sm:$0xff] %v17300_v61  ;;  %v17306_v29 = vmax.f32 %v17305_v29, 0.0   ;;  %v8426_v61 = vld [vmem:[%s12945_s8] sm:$0xff] (%p16005_p5) }
 0x48a   : >> { %17293 = vst [vmem:[#allocation9_spill] sm:$0xff] %v17292_v37  ;;  %v17297_v57 = vmax.f32 %v17296_v57, 0.0   ;;  %v8427_v33 = vld [vmem:[%s12945_s8 + $0x8] sm:$0xff] (%p16005_p5)  ;;  %v8428_v24 = vld [vmem:[%s12945_s8 + $0x10] sm:$0xff] (%p16005_p5)  ;;  %v17311_v37 = vld [vmem:[#allocation82_spill] sm:$0xff] (%p16005_p5)  ;;  %v17316_v17 = vmax.f32 (%p16005_p5), %v17315_v15, 0.0  }
 0x48b   : >> { %17307 = vst [vmem:[#allocation5_spill] sm:$0xff] %v17306_v29  ;;  %v17309_v16 = vld [vmem:[#allocation83_spill] sm:$0xff] (%p16005_p5)  ;;  %v8476_v0 = vadd.f32 (%p16005_p5), %v8428_v24, %v17314_v43  ;;  %v8429_v49 = vld [vmem:[%s12945_s8 + $0x18] sm:$0xff] (%p16005_p5)  ;;  %v17318_v27 = vmax.f32 (%p16005_p5), %v17317_v48, 0.0   ;;  %v17320_v3 = vmax.f32 (%p16005_p5), %v17319_v36, 0.0   ;;  %v8432_v45 = vld [vmem:[%s12945_s8 + $0x30] sm:$0xff] (%p16005_p5) }
 0x48c   : >> { %17298 = vst [vmem:[#allocation10_spill] sm:$0xff] %v17297_v57  ;;  %1052 = sbr.rel (!%p16005_p5) target bundleno = 288 (0x120), region = 91  ;;  %v17310_v40 = vmax.f32 (%p16005_p5), %v17309_v16, 0.0   ;;  %v17312_v57 = vmax.f32 (%p16005_p5), %v17311_v37, 0.0   ;;  %v8477_v32 = vadd.f32 (%p16005_p5), %v8429_v49, %v17316_v17  ;;  %v8434_v6 = vld [vmem:[%s12945_s8 + $0x40] sm:$0xff] (%p16005_p5)  ;;  %v17322_v26 = vmax.f32 (%p16005_p5), %v17321_v19, 0.0  }
 0x48d   : > { %v8478_v30 = vadd.f32 (%p16005_p5), %v8430_v44, %v17318_v27  ;;  %v8479_v11 = vadd.f32 (%p16005_p5), %v8431_v28, %v17320_v3  ;;  %8524 = vst.msk [vmem:[%s12945_s8 + $0x10] sm:$0xff] (%p16005_p5), %vm261_vm2, %v8476_v0  ;;  %v17324_v41 = vmax.f32 (%p16005_p5), %v17323_v53, 0.0   ;;  %v17325_v13 = vld [vmem:[#allocation91_spill] sm:$0xff] (%p16005_p5)  ;;  %v8436_v51 = vld [vmem:[%s12945_s8 + $0x50] sm:$0xff] (%p16005_p5)  ;;  %v8437_v12 = vld [vmem:[%s12945_s8 + $0x58] sm:$0xff] (%p16005_p5) }
 0x48e   : > { %v8474_v29 = vadd.f32 (%p16005_p5), %v8426_v61, %v17310_v40  ;;  %v8475_v4 = vadd.f32 (%p16005_p5), %v8427_v33, %v17312_v57  ;;  %v8480_v62 = vadd.f32 (%p16005_p5), %v8432_v45, %v17322_v26  ;;  %v17326_v42 = vmax.f32 (%p16005_p5), %v17325_v13, 0.0   ;;  %v8435_v21 = vld [vmem:[%s12945_s8 + $0x48] sm:$0xff] (%p16005_p5)  ;;  %8525 = vst.msk [vmem:[%s12945_s8 + $0x18] sm:$0xff] (%p16005_p5), %vm261_vm2, %v8477_v32  ;;  %v17327_v25 = vld [vmem:[#allocation90_spill] sm:$0xff] (%p16005_p5)  ;;  %v17329_v9 = vld [vmem:[#allocation93_spill] sm:$0xff] (%p16005_p5) }
 0x48f   : > { %v8481_v47 = vadd.f32 (%p16005_p5), %v8433_v60, %v17324_v41  ;;  %8526 = vst.msk [vmem:[%s12945_s8 + $0x20] sm:$0xff] (%p16005_p5), %vm261_vm2, %v8478_v30  ;;  %8527 = vst.msk [vmem:[%s12945_s8 + $0x28] sm:$0xff] (%p16005_p5), %vm261_vm2, %v8479_v11  ;;  %v17328_v63 = vmax.f32 (%p16005_p5), %v17327_v25, 0.0   ;;  %v17330_v2 = vmax.f32 (%p16005_p5), %v17329_v9, 0.0   ;;  %v17331_v14 = vld [vmem:[#allocation92_spill] sm:$0xff] (%p16005_p5)  ;;  %v8438_v22 = vld [vmem:[%s12945_s8 + $0x60] sm:$0xff] (%p16005_p5) }
 0x490   : > { %8522 = vst.msk [vmem:[%s12945_s8] sm:$0xff] (%p16005_p5), %vm261_vm2, %v8474_v29  ;;  %8523 = vst.msk [vmem:[%s12945_s8 + $0x8] sm:$0xff] (%p16005_p5), %vm261_vm2, %v8475_v4  ;;  %v8482_v54 = vadd.f32 (%p16005_p5), %v8434_v6, %v17326_v42  ;;  %v17332_v18 = vmax.f32 (%p16005_p5), %v17331_v14, 0.0   ;;  %v8439_v34 = vld [vmem:[%s12945_s8 + $0x68] sm:$0xff] (%p16005_p5)  ;;  %v8440_v58 = vld [vmem:[%s12945_s8 + $0x70] sm:$0xff] (%p16005_p5) }
 0x491   : > { %v8483_v35 = vadd.f32 %v8435_v21, %v17328_v63  ;;  %v8484_v59 = vadd.f32 %v8436_v51, %v17330_v2  ;;  %8528 = vst.msk [vmem:[%s12945_s8 + $0x30] sm:$0xff] %vm261_vm2, %v8480_v62  ;;  %8529 = vst.msk [vmem:[%s12945_s8 + $0x38] sm:$0xff] %vm261_vm2, %v8481_v47  ;;  %v17333_v7 = vld [vmem:[#allocation95_spill] sm:$0xff]  ;;  %v17335_v46 = vld [vmem:[#allocation94_spill] sm:$0xff] }
 0x492   : > { %v8485_v55 = vadd.f32 %v8437_v12, %v17332_v18  ;;  %8530 = vst.msk [vmem:[%s12945_s8 + $0x40] sm:$0xff] %vm261_vm2, %v8482_v54  ;;  %v17334_v39 = vmax.f32 %v17333_v7, 0.0   ;;  %v17336_v1 = vmax.f32 %v17335_v46, 0.0   ;;  %v17337_v50 = vld [vmem:[#allocation97_spill] sm:$0xff]  ;;  %v8442_v52 = vld [vmem:[%s12945_s8 + $0x80] sm:$0xff]  ;;  %v8443_v10 = vld [vmem:[%s12945_s8 + $0x88] sm:$0xff] }
 0x493   : > { %v17338_v56 = vmax.f32 %v17337_v50, 0.0   ;;  %v8441_v23 = vld [vmem:[%s12945_s8 + $0x78] sm:$0xff]  ;;  %8531 = vst.msk [vmem:[%s12945_s8 + $0x48] sm:$0xff] %vm261_vm2, %v8483_v35  ;;  %8532 = vst.msk [vmem:[%s12945_s8 + $0x50] sm:$0xff] %vm261_vm2, %v8484_v59  ;;  %v17339_v5 = vld [vmem:[#allocation96_spill] sm:$0xff] }
 0x494   : > { %v8486_v8 = vadd.f32 %v8438_v22, %v17334_v39  ;;  %v8487_v38 = vadd.f32 %v8439_v34, %v17336_v1  ;;  %8533 = vst.msk [vmem:[%s12945_s8 + $0x58] sm:$0xff] %vm261_vm2, %v8485_v55  ;;  %v17340_v61 = vmax.f32 %v17339_v5, 0.0   ;;  %v17341_v24 = vld [vmem:[#allocation99_spill] sm:$0xff]  ;;  %v17343_v29 = vld [vmem:[#allocation98_spill] sm:$0xff]  ;;  %v8444_v4 = vld [vmem:[%s12945_s8 + $0x90] sm:$0xff] }
 0x495   : > { %v8488_v20 = vadd.f32 %v8440_v58, %v17338_v56  ;;  %v17342_v16 = vmax.f32 %v17341_v24, 0.0   ;;  %v17344_v37 = vmax.f32 %v17343_v29, 0.0   ;;  %v8445_v31 = vld [vmem:[%s12945_s8 + $0x98] sm:$0xff]  ;;  %v8446_v43 = vld [vmem:[%s12945_s8 + $0xa0] sm:$0xff]  ;;  %v17347_v28 = vld [vmem:[#allocation100_spill] sm:$0xff] }
 0x496   : > { %v8489_v33 = vadd.f32 %v8441_v23, %v17340_v61  ;;  %8534 = vst.msk [vmem:[%s12945_s8 + $0x60] sm:$0xff] %vm261_vm2, %v8486_v8  ;;  %8535 = vst.msk [vmem:[%s12945_s8 + $0x68] sm:$0xff] %vm261_vm2, %v8487_v38  ;;  %v17345_v0 = vld [vmem:[#allocation101_spill] sm:$0xff]  ;;  %v17348_v15 = vmax.f32 %v17347_v28, 0.0   ;;  %v17349_v32 = vld [vmem:[#allocation103_spill] sm:$0xff] }
 0x497   : > { %v8490_v40 = vadd.f32 %v8442_v52, %v17342_v16  ;;  %v8491_v57 = vadd.f32 %v8443_v10, %v17344_v37  ;;  %8536 = vst.msk [vmem:[%s12945_s8 + $0x70] sm:$0xff] %vm261_vm2, %v8488_v20  ;;  %v17346_v49 = vmax.f32 %v17345_v0, 0.0   ;;  %v17350_v48 = vmax.f32 %v17349_v32, 0.0   ;;  %v8447_v30 = vld [vmem:[%s12945_s8 + $0xa8] sm:$0xff]  ;;  %v8448_v36 = vld [vmem:[%s12945_s8 + $0xb0] sm:$0xff]  ;;  %v8449_v3 = vld [vmem:[%s12945_s8 + $0xb8] sm:$0xff] }
 0x498   : > { %v8493_v17 = vadd.f32 %v8445_v31, %v17348_v15  ;;  %8537 = vst.msk [vmem:[%s12945_s8 + $0x78] sm:$0xff] %vm261_vm2, %v8489_v33  ;;  %v17351_v11 = vld [vmem:[#allocation102_spill] sm:$0xff]  ;;  %v17353_v6 = vld [vmem:[#allocation105_spill] sm:$0xff]  ;;  %v17355_v62 = vld [vmem:[#allocation104_spill] sm:$0xff] }
 0x499   : > { %v8492_v44 = vadd.f32 %v8444_v4, %v17346_v49  ;;  %v8494_v27 = vadd.f32 %v8446_v43, %v17350_v48  ;;  %8538 = vst.msk [vmem:[%s12945_s8 + $0x80] sm:$0xff] %vm261_vm2, %v8490_v40  ;;  %8539 = vst.msk [vmem:[%s12945_s8 + $0x88] sm:$0xff] %vm261_vm2, %v8491_v57  ;;  %v17352_v45 = vmax.f32 %v17351_v11, 0.0   ;;  %v17354_v19 = vmax.f32 %v17353_v6, 0.0   ;;  %v8450_v47 = vld [vmem:[%s12945_s8 + $0xc0] sm:$0xff]  ;;  %v8451_v13 = vld [vmem:[%s12945_s8 + $0xc8] sm:$0xff] }
 0x49a   : > { %v17356_v53 = vmax.f32 %v17355_v62, 0.0   ;;  %v8452_v42 = vld [vmem:[%s12945_s8 + $0xd0] sm:$0xff]  ;;  %8541 = vst.msk [vmem:[%s12945_s8 + $0x98] sm:$0xff] %vm261_vm2, %v8493_v17  ;;  %v17357_v54 = vld [vmem:[#allocation107_spill] sm:$0xff]  ;;  %v17359_v12 = vld [vmem:[#allocation106_spill] sm:$0xff] }
 0x49b   : > { %v8495_v60 = vadd.f32 %v8447_v30, %v17352_v45  ;;  %v8496_v26 = vadd.f32 %v8448_v36, %v17354_v19  ;;  %8540 = vst.msk [vmem:[%s12945_s8 + $0x90] sm:$0xff] %vm261_vm2, %v8492_v44  ;;  %8542 = vst.msk [vmem:[%s12945_s8 + $0xa0] sm:$0xff] %vm261_vm2, %v8494_v27  ;;  %v17358_v21 = vmax.f32 %v17357_v54, 0.0   ;;  %v17360_v25 = vmax.f32 %v17359_v12, 0.0   ;;  %v17361_v35 = vld [vmem:[#allocation109_spill] sm:$0xff]  ;;  %v8454_v14 = vld [vmem:[%s12945_s8 + $0xe0] sm:$0xff] }
 0x49c   : > { %v8497_v41 = vadd.f32 %v8449_v3, %v17356_v53  ;;  %v17362_v9 = vmax.f32 %v17361_v35, 0.0   ;;  %v8453_v59 = vld [vmem:[%s12945_s8 + $0xd8] sm:$0xff]  ;;  %v8455_v18 = vld [vmem:[%s12945_s8 + $0xe8] sm:$0xff]  ;;  %v17363_v55 = vld [vmem:[#allocation108_spill] sm:$0xff] }
 0x49d   : > { %v8498_v51 = vadd.f32 %v8450_v47, %v17358_v21  ;;  %v8499_v63 = vadd.f32 %v8451_v13, %v17360_v25  ;;  %8543 = vst.msk [vmem:[%s12945_s8 + $0xa8] sm:$0xff] %vm261_vm2, %v8495_v60  ;;  %8544 = vst.msk [vmem:[%s12945_s8 + $0xb0] sm:$0xff] %vm261_vm2, %v8496_v26  ;;  %v17364_v22 = vmax.f32 %v17363_v55, 0.0   ;;  %v17365_v58 = vld [vmem:[#allocation111_spill] sm:$0xff]  ;;  %v17367_v8 = vld [vmem:[#allocation110_spill] sm:$0xff] }
 0x49e   : > { %v8500_v2 = vadd.f32 %v8452_v42, %v17362_v9  ;;  %8545 = vst.msk [vmem:[%s12945_s8 + $0xb8] sm:$0xff] %vm261_vm2, %v8497_v41  ;;  %v17366_v7 = vmax.f32 %v17365_v58, 0.0   ;;  %v17368_v46 = vmax.f32 %v17367_v8, 0.0   ;;  %v8456_v38 = vld [vmem:[%s12945_s8 + $0xf0] sm:$0xff]  ;;  %v8457_v50 = vld [vmem:[%s12945_s8 + $0xf8] sm:$0xff]  ;;  %v8458_v56 = vld [vmem:[%s12945_s8 + $0x100] sm:$0xff] }
 0x49f   : > { %v8501_v34 = vadd.f32 %v8453_v59, %v17364_v22  ;;  %8546 = vst.msk [vmem:[%s12945_s8 + $0xc0] sm:$0xff] %vm261_vm2, %v8498_v51  ;;  %8547 = vst.msk [vmem:[%s12945_s8 + $0xc8] sm:$0xff] %vm261_vm2, %v8499_v63  ;;  %v17369_v20 = vld [vmem:[#allocation113_spill] sm:$0xff]  ;;  %v17371_v10 = vld [vmem:[#allocation112_spill] sm:$0xff] }
 0x4a0   : > { %v8502_v39 = vadd.f32 %v8454_v14, %v17366_v7  ;;  %v8503_v1 = vadd.f32 %v8455_v18, %v17368_v46  ;;  %8548 = vst.msk [vmem:[%s12945_s8 + $0xd0] sm:$0xff] %vm261_vm2, %v8500_v2  ;;  %v17370_v23 = vmax.f32 %v17369_v20, 0.0   ;;  %v17372_v5 = vmax.f32 %v17371_v10, 0.0   ;;  %v17373_v33 = vld [vmem:[#allocation115_spill] sm:$0xff]  ;;  %v8460_v29 = vld [vmem:[%s12945_s8 + $0x110] sm:$0xff]  ;;  %v8461_v37 = vld [vmem:[%s12945_s8 + $0x118] sm:$0xff] }
 0x4a1   : > { %v17374_v24 = vmax.f32 %v17373_v33, 0.0   ;;  %v8459_v40 = vld [vmem:[%s12945_s8 + $0x108] sm:$0xff]  ;;  %8549 = vst.msk [vmem:[%s12945_s8 + $0xd8] sm:$0xff] %vm261_vm2, %v8501_v34  ;;  %v17375_v57 = vld [vmem:[#allocation114_spill] sm:$0xff]  ;;  %v17377_v43 = vld [vmem:[#allocation117_spill] sm:$0xff] }
 0x4a2   : > { %v8504_v52 = vadd.f32 %v8456_v38, %v17370_v23  ;;  %v8505_v61 = vadd.f32 %v8457_v50, %v17372_v5  ;;  %8550 = vst.msk [vmem:[%s12945_s8 + $0xe0] sm:$0xff] %vm261_vm2, %v8502_v39  ;;  %8551 = vst.msk [vmem:[%s12945_s8 + $0xe8] sm:$0xff] %vm261_vm2, %v8503_v1  ;;  %v17376_v4 = vmax.f32 %v17375_v57, 0.0   ;;  %v17378_v0 = vmax.f32 %v17377_v43, 0.0   ;;  %v17379_v44 = vld [vmem:[#allocation116_spill] sm:$0xff]  ;;  %v8462_v17 = vld [vmem:[%s12945_s8 + $0x120] sm:$0xff] }
 0x4a3   : > { %v8506_v16 = vadd.f32 %v8458_v56, %v17374_v24  ;;  %v17380_v28 = vmax.f32 %v17379_v44, 0.0   ;;  %v8463_v32 = vld [vmem:[%s12945_s8 + $0x128] sm:$0xff]  ;;  %v8464_v48 = vld [vmem:[%s12945_s8 + $0x130] sm:$0xff]  ;;  %v17383_v3 = vld [vmem:[#allocation118_spill] sm:$0xff] }
 0x4a4   : > { %v8507_v31 = vadd.f32 %v8459_v40, %v17376_v4  ;;  %v8508_v49 = vadd.f32 %v8460_v29, %v17378_v0  ;;  %8552 = vst.msk [vmem:[%s12945_s8 + $0xf0] sm:$0xff] %vm261_vm2, %v8504_v52  ;;  %8553 = vst.msk [vmem:[%s12945_s8 + $0xf8] sm:$0xff] %vm261_vm2, %v8505_v61  ;;  %v17381_v27 = vld [vmem:[#allocation119_spill] sm:$0xff]  ;;  %v17384_v11 = vmax.f32 %v17383_v3, 0.0   ;;  %v17385_v60 = vld [vmem:[#allocation121_spill] sm:$0xff] }
 0x4a5   : > { %v8509_v15 = vadd.f32 %v8461_v37, %v17380_v28  ;;  %8554 = vst.msk [vmem:[%s12945_s8 + $0x100] sm:$0xff] %vm261_vm2, %v8506_v16  ;;  %v17382_v30 = vmax.f32 %v17381_v27, 0.0   ;;  %v17386_v6 = vmax.f32 %v17385_v60, 0.0   ;;  %v8465_v26 = vld [vmem:[%s12945_s8 + $0x138] sm:$0xff]  ;;  %v8466_v62 = vld [vmem:[%s12945_s8 + $0x140] sm:$0xff]  ;;  %v8467_v53 = vld [vmem:[%s12945_s8 + $0x148] sm:$0xff] }
 0x4a6   : > { %v8511_v45 = vadd.f32 %v8463_v32, %v17384_v11  ;;  %8555 = vst.msk [vmem:[%s12945_s8 + $0x108] sm:$0xff] %vm261_vm2, %v8507_v31  ;;  %8556 = vst.msk [vmem:[%s12945_s8 + $0x110] sm:$0xff] %vm261_vm2, %v8508_v49  ;;  %v17387_v41 = vld [vmem:[#allocation120_spill] sm:$0xff]  ;;  %v17389_v42 = vld [vmem:[#allocation123_spill] sm:$0xff] }
 0x4a7   : > { %v8510_v36 = vadd.f32 %v8462_v17, %v17382_v30  ;;  %v8512_v19 = vadd.f32 %v8464_v48, %v17386_v6  ;;  %8557 = vst.msk [vmem:[%s12945_s8 + $0x118] sm:$0xff] %vm261_vm2, %v8509_v15  ;;  %v17388_v47 = vmax.f32 %v17387_v41, 0.0   ;;  %v17390_v54 = vmax.f32 %v17389_v42, 0.0   ;;  %v17391_v51 = vld [vmem:[#allocation122_spill] sm:$0xff]  ;;  %v8468_v63 = vld [vmem:[%s12945_s8 + $0x150] sm:$0xff]  ;;  %v8469_v35 = vld [vmem:[%s12945_s8 + $0x158] sm:$0xff] }
 0x4a8   : > { %v17392_v12 = vmax.f32 %v17391_v51, 0.0   ;;  %v8470_v9 = vld [vmem:[%s12945_s8 + $0x160] sm:$0xff]  ;;  %8559 = vst.msk [vmem:[%s12945_s8 + $0x128] sm:$0xff] %vm261_vm2, %v8511_v45  ;;  %v17393_v2 = vld [vmem:[#allocation125_spill] sm:$0xff]  ;;  %v17395_v18 = vld [vmem:[#allocation124_spill] sm:$0xff] }
 0x4a9   : > { %v8513_v13 = vadd.f32 %v8465_v26, %v17388_v47  ;;  %v8514_v21 = vadd.f32 %v8466_v62, %v17390_v54  ;;  %8558 = vst.msk [vmem:[%s12945_s8 + $0x120] sm:$0xff] %vm261_vm2, %v8510_v36  ;;  %8560 = vst.msk [vmem:[%s12945_s8 + $0x130] sm:$0xff] %vm261_vm2, %v8512_v19  ;;  %v17394_v59 = vmax.f32 %v17393_v2, 0.0   ;;  %v17396_v55 = vmax.f32 %v17395_v18, 0.0   ;;  %v17397_v34 = vld [vmem:[#allocation127_spill] sm:$0xff]  ;;  %v8472_v8 = vld [vmem:[%s12945_s8 + $0x170] sm:$0xff] }
 0x4aa   : > { %v8515_v25 = vadd.f32 %v8467_v53, %v17392_v12  ;;  %v17398_v58 = vmax.f32 %v17397_v34, 0.0   ;;  %v8471_v39 = vld [vmem:[%s12945_s8 + $0x168] sm:$0xff]  ;;  %v8473_v46 = vld [vmem:[%s12945_s8 + $0x178] sm:$0xff]  ;;  %v17399_v1 = vld [vmem:[#allocation126_spill] sm:$0xff] }
 0x4ab   : > { %v8516_v14 = vadd.f32 %v8468_v63, %v17394_v59  ;;  %v8517_v22 = vadd.f32 %v8469_v35, %v17396_v55  ;;  %8561 = vst.msk [vmem:[%s12945_s8 + $0x138] sm:$0xff] %vm261_vm2, %v8513_v13  ;;  %8562 = vst.msk [vmem:[%s12945_s8 + $0x140] sm:$0xff] %vm261_vm2, %v8514_v21  ;;  %v17400_v38 = vmax.f32 %v17399_v1, 0.0   ;;  %v17401_v56 = vld [vmem:[#allocation129_spill] sm:$0xff]  ;;  %v17403_v52 = vld [vmem:[#allocation128_spill] sm:$0xff] }
 0x4ac   : > { %v8518_v7 = vadd.f32 %v8470_v9, %v17398_v58  ;;  %8563 = vst.msk [vmem:[%s12945_s8 + $0x148] sm:$0xff] %vm261_vm2, %v8515_v25  ;;  %v17402_v20 = vmax.f32 %v17401_v56, 0.0   ;;  %v17404_v10 = vmax.f32 %v17403_v52, 0.0  }
 0x4ad   : > { %v8519_v50 = vadd.f32 %v8471_v39, %v17400_v38  ;;  %8564 = vst.msk [vmem:[%s12945_s8 + $0x150] sm:$0xff] %vm261_vm2, %v8516_v14  ;;  %8565 = vst.msk [vmem:[%s12945_s8 + $0x158] sm:$0xff] %vm261_vm2, %v8517_v22 }
 0x4ae   : > { %v8520_v23 = vadd.f32 %v8472_v8, %v17402_v20  ;;  %v8521_v5 = vadd.f32 %v8473_v46, %v17404_v10  ;;  %8566 = vst.msk [vmem:[%s12945_s8 + $0x160] sm:$0xff] %vm261_vm2, %v8518_v7 }
 0x4af   : > { %8567 = vst.msk [vmem:[%s12945_s8 + $0x168] sm:$0xff] %vm261_vm2, %v8519_v50 }
 0x4b0   : > { %8568 = vst.msk [vmem:[%s12945_s8 + $0x170] sm:$0xff] %vm261_vm2, %v8520_v23  ;;  %8569 = vst.msk [vmem:[%s12945_s8 + $0x178] sm:$0xff] %vm261_vm2, %v8521_v5 }
 0x4b1 PF: > { %s15_s20 = sadd.s32 1, %s12429_s20   ;;  %s17405_s18 = smov %s12425_s19 }
 0x4b2   : > { %p12_p6 = scmp.ge.s32.totalorder %s15_s20, 4   ;;  %s17406_s19 = smov %s17408_s21 }
 0x4b4   :  { %14 = sbr.rel (!%p12_p6) target bundleno = 2 (0x2), region = 102 }

</bundles_post_ra>
